<compile_context>
chip_gen: v5e
topology: v5e:2x2
jax: 0.10.0
libtpu: 0.0.40
codegen_flags: <defaults>
</compile_context>

<pallas_src>
import math
import jax
import jax.numpy as jnp
from jax.experimental import pallas as pl
from jax.experimental.pallas import tpu as pltpu

# ----------------------------- configuration --------------------------------
VOCAB = 50
D_MODEL = 32
N_HEADS = 4
D_HEAD = D_MODEL // N_HEADS
D_FF = 64
NUM_LAYERS = 2
MAX_LEN = 8
SEQ = MAX_LEN - 1          # target caption length (max_len - 1)
BATCH = 2
ENC_LEN = 16               # encode_size ** 2
PAD_ID = 0
LN_EPS = 1e-5
NEG = -1e9                 # finite "minus infinity" for additive masks

S_PAD = 8                  # sequence padded to native sublane granularity
X_ROW0 = 0                 # packed activation slab row layout
MEM_ROW0 = S_PAD
MASK_ROW0 = S_PAD + ENC_LEN
ACT_ROWS = MASK_ROW0 + S_PAD          # = 32

# lane offsets inside the packed per-layer weight slab w32 (rows = D_MODEL)
W_SQKV0, W_SQKV1 = 0, 3 * D_MODEL                 # self q|k|v        [0:96]
W_SO0, W_SO1 = 3 * D_MODEL, 4 * D_MODEL          # self out          [96:128]
W_CQ0, W_CQ1 = 4 * D_MODEL, 5 * D_MODEL          # cross q           [128:160]
W_CKV0, W_CKV1 = 5 * D_MODEL, 7 * D_MODEL        # cross k|v         [160:224]
W_CO0, W_CO1 = 7 * D_MODEL, 8 * D_MODEL          # cross out         [224:256]
W_F10, W_F11 = 8 * D_MODEL, 8 * D_MODEL + D_FF   # ff1               [256:320]
W32_LANES = W_F11

# rows of the packed bias / LayerNorm slab (NL, 16, 128)
R_SQKV_B, R_SO_B, R_CQ_B, R_CKV_B, R_CO_B, R_F1_B, R_F2_B = 0, 1, 2, 3, 4, 5, 6
R_LN1G, R_LN1B, R_LN2G, R_LN2B, R_LN3G, R_LN3B = 7, 8, 9, 10, 11, 12
VEC_ROWS = 16


# ------------------------------ Pallas kernel --------------------------------
def decoder_kernel(act_ref, w32_ref, w64_ref, vec_ref, out_ref, attn_ref):
    bb = act_ref.shape[0]          # batch elements handled by this grid step

    def vrow(l, r, width=D_MODEL):
        # (1, width) slice of the packed bias / LN slab
        return vec_ref[l, r:r + 1, :width]

    def layer_norm(v, l, gr, br):
        g = vrow(l, gr)
        b = vrow(l, br)
        mu = jnp.mean(v, axis=-1, keepdims=True)
        var = jnp.mean(jnp.square(v - mu), axis=-1, keepdims=True)
        return (v - mu) * jax.lax.rsqrt(var + LN_EPS) * g + b

    def heads(t, n):
        # (rows, n*D_HEAD) -> (n, rows, D_HEAD) head-batched layout
        r = t.shape[0]
        return jnp.transpose(t.reshape(r, n, D_HEAD), (1, 0, 2))

    batched_qk = (((2,), (2,)), ((0,), (0,)))   # scores: contract d_head
    batched_pv = (((2,), (1,)), ((0,), (0,)))   # context: contract keys

    for bi in range(bb):                                     # static batch loop
        x = act_ref[bi, X_ROW0:X_ROW0 + S_PAD, :]            # (8, D)
        mem = act_ref[bi, MEM_ROW0:MEM_ROW0 + ENC_LEN, :]    # (L, D)
        smask = act_ref[bi, MASK_ROW0:MASK_ROW0 + S_PAD, 0:S_PAD]  # (8, 8)

        p_layers = []
        for l in range(NUM_LAYERS):                          # layers fused
            # -------- masked self-attention (fused QKV, head-batched) -------
            qkv = (jnp.dot(x, w32_ref[l, :, W_SQKV0:W_SQKV1],
                           preferred_element_type=jnp.float32)
                   + vrow(l, R_SQKV_B, 3 * D_MODEL))         # (8, 96)
            qkvh = heads(qkv, 3 * N_HEADS)                   # (3H, 8, dh)
            qh = qkvh[0:N_HEADS]
            kh = qkvh[N_HEADS:2 * N_HEADS]
            vh = qkvh[2 * N_HEADS:3 * N_HEADS]
            s = jax.lax.dot_general(qh, kh, batched_qk,
                                    preferred_element_type=jnp.float32)  # (H,8,8)
            s = s + smask[None, :, :]
            s = s - jnp.max(s, axis=-1, keepdims=True)
            e = jnp.exp(s)
            # self-attn probs are not returned -> cheap approx reciprocal (EUP)
            p = e * pl.reciprocal(jnp.sum(e, axis=-1, keepdims=True), approx=True)
            ctx = jax.lax.dot_general(p, vh, batched_pv,
                                      preferred_element_type=jnp.float32)  # (H,8,dh)
            ctx = jnp.transpose(ctx, (1, 0, 2)).reshape(S_PAD, D_MODEL)
            sa = (jnp.dot(ctx, w32_ref[l, :, W_SO0:W_SO1],
                          preferred_element_type=jnp.float32)
                  + vrow(l, R_SO_B))
            x = layer_norm(x + sa, l, R_LN1G, R_LN1B)

            # -------- cross-attention over encoded image (fused KV) ---------
            q = (jnp.dot(x, w32_ref[l, :, W_CQ0:W_CQ1],
                         preferred_element_type=jnp.float32)
                 + vrow(l, R_CQ_B))                          # (8, D)
            kv = (jnp.dot(mem, w32_ref[l, :, W_CKV0:W_CKV1],
                          preferred_element_type=jnp.float32)
                  + vrow(l, R_CKV_B, 2 * D_MODEL))           # (L, 2D)
            qh = heads(q, N_HEADS)                           # (H, 8, dh)
            kvh = heads(kv, 2 * N_HEADS)                     # (2H, L, dh)
            kh = kvh[0:N_HEADS]
            vh = kvh[N_HEADS:2 * N_HEADS]
            s = jax.lax.dot_general(qh, kh, batched_qk,
                                    preferred_element_type=jnp.float32)  # (H,8,L)
            s = s - jnp.max(s, axis=-1, keepdims=True)
            e = jnp.exp(s)
            # these probs are returned -> exact divide (rows sum to 1 exactly)
            p = e / jnp.sum(e, axis=-1, keepdims=True)
            ctx = jax.lax.dot_general(p, vh, batched_pv,
                                      preferred_element_type=jnp.float32)
            ctx = jnp.transpose(ctx, (1, 0, 2)).reshape(S_PAD, D_MODEL)
            ca = (jnp.dot(ctx, w32_ref[l, :, W_CO0:W_CO1],
                          preferred_element_type=jnp.float32)
                  + vrow(l, R_CO_B))
            x = layer_norm(x + ca, l, R_LN2G, R_LN2B)
            # lane-dense (8, H*L) per layer, concatenated to 128 lanes below
            p_layers.append(jnp.transpose(p, (1, 0, 2)).reshape(S_PAD,
                                                                N_HEADS * ENC_LEN))

            # -------- feed-forward (Linear -> ReLU -> Linear) ---------------
            h1 = jnp.maximum(
                jnp.dot(x, w32_ref[l, :, W_F10:W_F11],
                        preferred_element_type=jnp.float32)
                + vrow(l, R_F1_B, D_FF), 0.0)
            h2 = (jnp.dot(h1, w64_ref[l],
                          preferred_element_type=jnp.float32)
                  + vrow(l, R_F2_B))
            x = layer_norm(x + h2, l, R_LN3G, R_LN3B)

        out_ref[bi] = x                                      # (8, D)
        # one unmasked 128-lane-wide store for both layers' cross-attn probs
        attn_ref[bi] = jnp.concatenate(p_layers, axis=-1)    # (8, 128)


def _batch_block(batch):
    """Batch elements per grid step.
    v7x (2 TensorCores/chip): 1 per step, 'parallel' grid spreads across cores.
    Single-TC v5e/v6e: fold the whole batch into one grid step (in-kernel loop)
    to avoid per-grid-step overhead and extra DMA rounds."""
    try:
        kind = jax.devices()[0].device_kind.lower()
    except Exception:
        return 1
    multi_tc = ("v7" in kind) or ("v4" in kind)
    bb = 1 if multi_tc else batch
    while batch % bb:
        bb -= 1
    return max(bb, 1)


def run_decoder(act, w32, w64, vecs, batch_block):
    B = act.shape[0]
    bb = batch_block
    attn_lanes = NUM_LAYERS * N_HEADS * ENC_LEN              # = 128

    def const_spec(a):
        n = a.ndim
        return pl.BlockSpec(a.shape, lambda g, n=n: (0,) * n)

    in_specs = [
        pl.BlockSpec((bb, ACT_ROWS, D_MODEL), lambda g: (g, 0, 0)),  # act slab
        const_spec(w32),                                             # (NL,32,320)
        const_spec(w64),                                             # (NL,64,32)
        const_spec(vecs),                                            # (NL,16,128)
    ]
    out_specs = [
        pl.BlockSpec((bb, S_PAD, D_MODEL), lambda g: (g, 0, 0)),
        pl.BlockSpec((bb, S_PAD, attn_lanes), lambda g: (g, 0, 0)),
    ]
    out_shape = [
        jax.ShapeDtypeStruct((B, S_PAD, D_MODEL), jnp.float32),
        jax.ShapeDtypeStruct((B, S_PAD, attn_lanes), jnp.float32),
    ]
    return pl.pallas_call(
        decoder_kernel,
        grid=(B // bb,),
        in_specs=in_specs,
        out_specs=out_specs,
        out_shape=out_shape,
        compiler_params=pltpu.CompilerParams(dimension_semantics=("parallel",)),
    )(act, w32, w64, vecs)


# --------------------------------- glue --------------------------------------
def positional_encoding(max_len, d_model):
    position = jnp.arange(max_len, dtype=jnp.float32)[:, None]
    div_term = jnp.exp(jnp.arange(0, d_model, 2, dtype=jnp.float32)
                       * (-math.log(10000.0) / d_model))
    pe = jnp.zeros((max_len, d_model), dtype=jnp.float32)
    pe = pe.at[:, 0::2].set(jnp.sin(position * div_term))
    pe = pe.at[:, 1::2].set(jnp.cos(position * div_term))
    return pe


def init_params(key):
    ks = jax.random.split(key, 22)

    def mat(k, shape, s=0.08):
        return jax.random.normal(k, shape, jnp.float32) * s

    D, F = D_MODEL, D_FF
    emb = mat(ks[0], (VOCAB, D), 0.1).at[PAD_ID].set(0.0)   # padding_idx row
    pe = positional_encoding(MAX_LEN, D)
    scale = 1.0 / math.sqrt(D_HEAD)        # folded into q projection / bias

    w_sq, w_sk, w_sv, w_so = (mat(ks[i], (D, D)) for i in range(1, 5))
    w_cq, w_ck, w_cv, w_co = (mat(ks[i], (D, D)) for i in range(5, 9))
    w_f1 = mat(ks[9], (D, F))
    w_f2 = mat(ks[10], (F, D))
    b_sq, b_sk, b_sv, b_so = (mat(ks[i], (D,), 0.02) for i in range(11, 15))
    b_cq, b_ck, b_cv, b_co = (mat(ks[i], (D,), 0.02) for i in range(15, 19))
    b_f1 = mat(ks[19], (F,), 0.02)
    b_f2 = mat(ks[20], (D,), 0.02)

    # lane-packed matrices, rows = D_MODEL (layout documented at top of file)
    w32_one = jnp.concatenate(
        [w_sq * scale, w_sk, w_sv, w_so,
         w_cq * scale, w_ck, w_cv, w_co, w_f1], axis=1)      # (32, 320)
    w64_one = w_f2                                            # (64, 32)

    def row(v):
        return jnp.pad(v, (0, 128 - v.shape[0]))
    ones = jnp.ones((D,), jnp.float32)
    zeros = jnp.zeros((D,), jnp.float32)
    vec_one = jnp.stack([
        row(jnp.concatenate([b_sq * scale, b_sk, b_sv])),     # 0 self qkv bias
        row(b_so),                                            # 1 self out bias
        row(b_cq * scale),                                    # 2 cross q bias
        row(jnp.concatenate([b_ck, b_cv])),                   # 3 cross kv bias
        row(b_co),                                            # 4 cross out bias
        row(b_f1),                                            # 5 ff1 bias
        row(b_f2),                                            # 6 ff2 bias
        row(ones), row(zeros),                                # 7,8   ln1
        row(ones), row(zeros),                                # 9,10  ln2
        row(ones), row(zeros),                                # 11,12 ln3
        row(zeros), row(zeros), row(zeros),                   # 13..15 pad
    ], axis=0)                                                # (16, 128)

    # nn.ModuleList([deepcopy(layer) ...]) -> identical initial weights/layer
    tile = lambda a: jnp.stack([a] * NUM_LAYERS, axis=0)
    return {"emb": emb, "pe": pe, "w32": tile(w32_one),
            "w64": tile(w64_one), "vecs": tile(vec_one)}


def decoder_forward(tgt_cptn, src_img, params):
    """tgt_cptn: [B, max_len-1] int32 ; src_img: [enc^2, B, D] (or [B, enc^2, D])."""
    if src_img.ndim == 3 and src_img.shape[0] == tgt_cptn.shape[0]:
        src_img = jnp.transpose(src_img, (1, 0, 2))           # -> [enc^2, B, D]

    B, S = tgt_cptn.shape
    L = src_img.shape[0]

    # combined additive self-attn mask built ONCE: causal + key-padding +
    # sequence-padding, all as large finite negatives (robust, no NaN rows).
    r = jnp.arange(S_PAD)[:, None]
    c = jnp.arange(S_PAD)[None, :]
    causal = jnp.where(c > r, NEG, 0.0).astype(jnp.float32)              # (8,8)
    key_is_pad = jnp.concatenate(
        [tgt_cptn == PAD_ID, jnp.ones((B, S_PAD - S), dtype=bool)], axis=1)
    pad = jnp.where(key_is_pad, NEG, 0.0).astype(jnp.float32)            # (B,8)
    self_mask = causal[None, :, :] + pad[:, None, :]                     # (B,8,8)

    x = params["emb"][tgt_cptn]                 # [B,S,D] embedding lookup (glue)
    x = x + params["pe"][:S][None, :, :]        # positional encoding
    # TODO(synk): nn.Dropout layers are identity here (eval-mode semantics).
    mem = jnp.transpose(src_img, (1, 0, 2))     # [B, L, D] batch-first

    # pack per-batch activations (x | mem | mask) into one zero-padded slab
    act = jnp.zeros((B, ACT_ROWS, D_MODEL), jnp.float32)
    act = act.at[:, X_ROW0:X_ROW0 + S, :].set(x)
    act = act.at[:, MEM_ROW0:MEM_ROW0 + L, :].set(mem)
    act = act.at[:, MASK_ROW0:MASK_ROW0 + S_PAD, 0:S_PAD].set(self_mask)

    out_p, attn_p = run_decoder(act, params["w32"], params["w64"],
                                params["vecs"], _batch_block(B))

    out = jnp.transpose(out_p[:, :S, :], (1, 0, 2))           # [S, B, D]
    # attn_p: (B, 8, NL*H*L) lane layout = (layer, head, enc) -> (NL,B,H,S,L)
    attn = attn_p.reshape(B, S_PAD, NUM_LAYERS, N_HEADS, L)[:, :S]
    attn_all = jnp.transpose(attn, (2, 0, 3, 1, 4))
    return out, attn_all


# --------------------------------- main ---------------------------------------
if __name__ == "__main__":
    key = jax.random.PRNGKey(0)
    k_p, k_tok, k_img = jax.random.split(key, 3)

    params = init_params(k_p)

    tgt_cptn = jax.random.randint(k_tok, (BATCH, SEQ), 1, VOCAB, dtype=jnp.int32)
    tgt_cptn = tgt_cptn.at[1, -1].set(PAD_ID)    # exercise the pad mask
    src_img = jax.random.normal(k_img, (ENC_LEN, BATCH, D_MODEL), jnp.float32)

    fwd = jax.jit(decoder_forward)
    out, attn_all = fwd(tgt_cptn, src_img, params)
    jax.block_until_ready(out)
    jax.block_until_ready(attn_all)

    assert out.shape == (SEQ, BATCH, D_MODEL)
    assert attn_all.shape == (NUM_LAYERS, BATCH, N_HEADS, SEQ, ENC_LEN)
    assert bool(jnp.all(jnp.isfinite(out)))
    assert bool(jnp.all(jnp.isfinite(attn_all)))
    # cross-attn probabilities use an exact softmax -> rows sum to 1
    assert bool(jnp.allclose(jnp.sum(attn_all, axis=-1), 1.0, atol=1e-4))

    print("KERNEL_OK")
</pallas_src>

<mosaic_0001>
module attributes {stable_mosaic.version = 11 : i64} {
  func.func @decoder_kernel(%arg0: i32, %arg1: memref<2x32x32xf32, #tpu.memory_space<vmem>>, %arg2: memref<2x32x320xf32, #tpu.memory_space<vmem>>, %arg3: memref<2x64x32xf32, #tpu.memory_space<vmem>>, %arg4: memref<2x16x128xf32, #tpu.memory_space<vmem>>, %arg5: memref<2x8x32xf32, #tpu.memory_space<vmem>>, %arg6: memref<2x8x128xf32, #tpu.memory_space<vmem>>) attributes {dimension_semantics = [#tpu.dimension_semantics<parallel>], iteration_bounds = array<i64: 1>, scalar_prefetch = 0 : i64, scratch_operands = 0 : i64, tpu.core_type = #tpu.core_type<tc>, window_params = [{transform_indices = @transform_0, window_bounds = array<i64: 2, 32, 32>}, {pipeline_mode = #tpu.pipeline_mode<synchronous>, transform_indices = @transform_1, window_bounds = array<i64: 2, 32, 320>}, {pipeline_mode = #tpu.pipeline_mode<synchronous>, transform_indices = @transform_2, window_bounds = array<i64: 2, 64, 32>}, {pipeline_mode = #tpu.pipeline_mode<synchronous>, transform_indices = @transform_3, window_bounds = array<i64: 2, 16, 128>}, {transform_indices = @transform_4, window_bounds = array<i64: 2, 8, 32>}, {transform_indices = @transform_5, window_bounds = array<i64: 2, 8, 128>}]} {
    %c0 = arith.constant 0 : index
    %c0_0 = arith.constant 0 : index
    %c0_1 = arith.constant 0 : index
    %0 = vector.load %arg1[%c0, %c0_0, %c0_1] : memref<2x32x32xf32, #tpu.memory_space<vmem>>, vector<1x8x32xf32>
    %1 = vector.shape_cast %0 : vector<1x8x32xf32> to vector<8x32xf32>
    %c0_2 = arith.constant 0 : index
    %c8 = arith.constant 8 : index
    %c0_3 = arith.constant 0 : index
    %2 = vector.load %arg1[%c0_2, %c8, %c0_3] : memref<2x32x32xf32, #tpu.memory_space<vmem>>, vector<1x16x32xf32>
    %3 = vector.shape_cast %2 : vector<1x16x32xf32> to vector<16x32xf32>
    %c0_4 = arith.constant 0 : index
    %c24 = arith.constant 24 : index
    %c0_5 = arith.constant 0 : index
    %4 = vector.load %arg1[%c0_4, %c24, %c0_5] : memref<2x32x32xf32, #tpu.memory_space<vmem>>, vector<1x8x8xf32>
    %5 = vector.shape_cast %4 : vector<1x8x8xf32> to vector<8x8xf32>
    %c0_6 = arith.constant 0 : index
    %c0_7 = arith.constant 0 : index
    %c0_8 = arith.constant 0 : index
    %6 = vector.load %arg2[%c0_6, %c0_7, %c0_8] : memref<2x32x320xf32, #tpu.memory_space<vmem>>, vector<1x32x96xf32>
    %7 = vector.shape_cast %6 : vector<1x32x96xf32> to vector<32x96xf32>
    %cst = arith.constant dense<0.000000e+00> : vector<8x96xf32>
    %8 = tpu.matmul %1, %7, %cst {dimension_numbers = #tpu.dot_dimension_numbers<[1], [0], [0], [1], [0, 0, 1, 1], [], []>} : vector<8x32xf32>, vector<32x96xf32>, vector<8x96xf32> -> vector<8x96xf32>
    %c0_9 = arith.constant 0 : index
    %c0_10 = arith.constant 0 : index
    %c0_11 = arith.constant 0 : index
    %9 = vector.load %arg4[%c0_9, %c0_10, %c0_11] : memref<2x16x128xf32, #tpu.memory_space<vmem>>, vector<1x1x96xf32>
    %10 = vector.shape_cast %9 : vector<1x1x96xf32> to vector<1x96xf32>
    %11 = vector.broadcast %10 : vector<1x96xf32> to vector<8x96xf32>
    %12 = arith.addf %8, %11 : vector<8x96xf32>
    %13 = vector.shape_cast %12 : vector<8x96xf32> to vector<8x12x8xf32>
    %14 = tpu.transpose %13, [1, 0, 2] : vector<8x12x8xf32> -> vector<12x8x8xf32>
    %15 = vector.extract_strided_slice %14 {offsets = [0, 0, 0], sizes = [4, 8, 8], strides = [1, 1, 1]} : vector<12x8x8xf32> to vector<4x8x8xf32>
    %16 = vector.extract_strided_slice %14 {offsets = [4, 0, 0], sizes = [4, 8, 8], strides = [1, 1, 1]} : vector<12x8x8xf32> to vector<4x8x8xf32>
    %17 = vector.extract_strided_slice %14 {offsets = [8, 0, 0], sizes = [4, 8, 8], strides = [1, 1, 1]} : vector<12x8x8xf32> to vector<4x8x8xf32>
    %cst_12 = arith.constant dense<0.000000e+00> : vector<4x8x8xf32>
    %18 = tpu.matmul %15, %16, %cst_12 {dimension_numbers = #tpu.dot_dimension_numbers<[2], [2], [1], [1], [0, 0, 0, 1, 1, 1], [0], [0]>} : vector<4x8x8xf32>, vector<4x8x8xf32>, vector<4x8x8xf32> -> vector<4x8x8xf32>
    %19 = vector.shape_cast %5 : vector<8x8xf32> to vector<1x8x8xf32>
    %20 = vector.broadcast %19 : vector<1x8x8xf32> to vector<4x8x8xf32>
    %21 = arith.addf %18, %20 : vector<4x8x8xf32>
    %cst_13 = arith.constant dense<0xFF800000> : vector<4x8xf32>
    %22 = vector.multi_reduction <maximumf>, %21, %cst_13 [2] : vector<4x8x8xf32> to vector<4x8xf32>
    %23 = vector.shape_cast %22 : vector<4x8xf32> to vector<4x8x1xf32>
    %24 = vector.broadcast %23 : vector<4x8x1xf32> to vector<4x8x8xf32>
    %25 = arith.subf %21, %24 : vector<4x8x8xf32>
    %26 = math.exp %25 : vector<4x8x8xf32>
    %cst_14 = arith.constant dense<0.000000e+00> : vector<4x8xf32>
    %27 = vector.multi_reduction <add>, %26, %cst_14 [2] : vector<4x8x8xf32> to vector<4x8xf32>
    %28 = vector.shape_cast %27 : vector<4x8xf32> to vector<4x8x1xf32>
    %29 = tpu.reciprocal %28 {approx = true} : vector<4x8x1xf32> -> vector<4x8x1xf32>
    %30 = vector.broadcast %29 : vector<4x8x1xf32> to vector<4x8x8xf32>
    %31 = arith.mulf %26, %30 : vector<4x8x8xf32>
    %cst_15 = arith.constant dense<0.000000e+00> : vector<4x8x8xf32>
    %32 = tpu.matmul %31, %17, %cst_15 {dimension_numbers = #tpu.dot_dimension_numbers<[2], [1], [1], [2], [0, 0, 0, 1, 1, 2], [0], [0]>} : vector<4x8x8xf32>, vector<4x8x8xf32>, vector<4x8x8xf32> -> vector<4x8x8xf32>
    %33 = tpu.transpose %32, [1, 0, 2] : vector<4x8x8xf32> -> vector<8x4x8xf32>
    %34 = vector.shape_cast %33 : vector<8x4x8xf32> to vector<8x32xf32>
    %c0_16 = arith.constant 0 : index
    %c0_17 = arith.constant 0 : index
    %c96 = arith.constant 96 : index
    %35 = vector.load %arg2[%c0_16, %c0_17, %c96] : memref<2x32x320xf32, #tpu.memory_space<vmem>>, vector<1x32x32xf32>
    %36 = vector.shape_cast %35 : vector<1x32x32xf32> to vector<32x32xf32>
    %cst_18 = arith.constant dense<0.000000e+00> : vector<8x32xf32>
    %37 = tpu.matmul %34, %36, %cst_18 {dimension_numbers = #tpu.dot_dimension_numbers<[1], [0], [0], [1], [0, 0, 1, 1], [], []>} : vector<8x32xf32>, vector<32x32xf32>, vector<8x32xf32> -> vector<8x32xf32>
    %c0_19 = arith.constant 0 : index
    %c1 = arith.constant 1 : index
    %c0_20 = arith.constant 0 : index
    %38 = vector.load %arg4[%c0_19, %c1, %c0_20] : memref<2x16x128xf32, #tpu.memory_space<vmem>>, vector<1x1x32xf32>
    %39 = vector.shape_cast %38 : vector<1x1x32xf32> to vector<1x32xf32>
    %40 = vector.broadcast %39 : vector<1x32xf32> to vector<8x32xf32>
    %41 = arith.addf %37, %40 : vector<8x32xf32>
    %42 = arith.addf %1, %41 : vector<8x32xf32>
    %c0_21 = arith.constant 0 : index
    %c7 = arith.constant 7 : index
    %c0_22 = arith.constant 0 : index
    %43 = vector.load %arg4[%c0_21, %c7, %c0_22] : memref<2x16x128xf32, #tpu.memory_space<vmem>>, vector<1x1x32xf32>
    %44 = vector.shape_cast %43 : vector<1x1x32xf32> to vector<1x32xf32>
    %c0_23 = arith.constant 0 : index
    %c8_24 = arith.constant 8 : index
    %c0_25 = arith.constant 0 : index
    %45 = vector.load %arg4[%c0_23, %c8_24, %c0_25] : memref<2x16x128xf32, #tpu.memory_space<vmem>>, vector<1x1x32xf32>
    %46 = vector.shape_cast %45 : vector<1x1x32xf32> to vector<1x32xf32>
    %cst_26 = arith.constant dense<0.000000e+00> : vector<8xf32>
    %47 = vector.multi_reduction <add>, %42, %cst_26 [1] : vector<8x32xf32> to vector<8xf32>
    %48 = vector.shape_cast %47 : vector<8xf32> to vector<8x1xf32>
    %cst_27 = arith.constant 3.200000e+01 : f32
    %49 = vector.broadcast %cst_27 : f32 to vector<8x1xf32>
    %50 = arith.divf %48, %49 : vector<8x1xf32>
    %51 = vector.broadcast %50 : vector<8x1xf32> to vector<8x32xf32>
    %52 = arith.subf %42, %51 : vector<8x32xf32>
    %53 = arith.mulf %52, %52 : vector<8x32xf32>
    %cst_28 = arith.constant dense<0.000000e+00> : vector<8xf32>
    %54 = vector.multi_reduction <add>, %53, %cst_28 [1] : vector<8x32xf32> to vector<8xf32>
    %55 = vector.shape_cast %54 : vector<8xf32> to vector<8x1xf32>
    %cst_29 = arith.constant 3.200000e+01 : f32
    %56 = vector.broadcast %cst_29 : f32 to vector<8x1xf32>
    %57 = arith.divf %55, %56 : vector<8x1xf32>
    %58 = vector.broadcast %50 : vector<8x1xf32> to vector<8x32xf32>
    %59 = arith.subf %42, %58 : vector<8x32xf32>
    %cst_30 = arith.constant 9.99999974E-6 : f32
    %60 = vector.broadcast %cst_30 : f32 to vector<8x1xf32>
    %61 = arith.addf %57, %60 : vector<8x1xf32>
    %62 = math.rsqrt %61 : vector<8x1xf32>
    %63 = vector.broadcast %62 : vector<8x1xf32> to vector<8x32xf32>
    %64 = arith.mulf %59, %63 : vector<8x32xf32>
    %65 = vector.broadcast %44 : vector<1x32xf32> to vector<8x32xf32>
    %66 = arith.mulf %64, %65 : vector<8x32xf32>
    %67 = vector.broadcast %46 : vector<1x32xf32> to vector<8x32xf32>
    %68 = arith.addf %66, %67 : vector<8x32xf32>
    %c0_31 = arith.constant 0 : index
    %c0_32 = arith.constant 0 : index
    %c128 = arith.constant 128 : index
    %69 = vector.load %arg2[%c0_31, %c0_32, %c128] : memref<2x32x320xf32, #tpu.memory_space<vmem>>, vector<1x32x32xf32>
    %70 = vector.shape_cast %69 : vector<1x32x32xf32> to vector<32x32xf32>
    %cst_33 = arith.constant dense<0.000000e+00> : vector<8x32xf32>
    %71 = tpu.matmul %68, %70, %cst_33 {dimension_numbers = #tpu.dot_dimension_numbers<[1], [0], [0], [1], [0, 0, 1, 1], [], []>} : vector<8x32xf32>, vector<32x32xf32>, vector<8x32xf32> -> vector<8x32xf32>
    %c0_34 = arith.constant 0 : index
    %c2 = arith.constant 2 : index
    %c0_35 = arith.constant 0 : index
    %72 = vector.load %arg4[%c0_34, %c2, %c0_35] : memref<2x16x128xf32, #tpu.memory_space<vmem>>, vector<1x1x32xf32>
    %73 = vector.shape_cast %72 : vector<1x1x32xf32> to vector<1x32xf32>
    %74 = vector.broadcast %73 : vector<1x32xf32> to vector<8x32xf32>
    %75 = arith.addf %71, %74 : vector<8x32xf32>
    %c0_36 = arith.constant 0 : index
    %c0_37 = arith.constant 0 : index
    %c160 = arith.constant 160 : index
    %76 = vector.load %arg2[%c0_36, %c0_37, %c160] : memref<2x32x320xf32, #tpu.memory_space<vmem>>, vector<1x32x64xf32>
    %77 = vector.shape_cast %76 : vector<1x32x64xf32> to vector<32x64xf32>
    %cst_38 = arith.constant dense<0.000000e+00> : vector<16x64xf32>
    %78 = tpu.matmul %3, %77, %cst_38 {dimension_numbers = #tpu.dot_dimension_numbers<[1], [0], [0], [1], [0, 0, 1, 1], [], []>} : vector<16x32xf32>, vector<32x64xf32>, vector<16x64xf32> -> vector<16x64xf32>
    %c0_39 = arith.constant 0 : index
    %c3 = arith.constant 3 : index
    %c0_40 = arith.constant 0 : index
    %79 = vector.load %arg4[%c0_39, %c3, %c0_40] : memref<2x16x128xf32, #tpu.memory_space<vmem>>, vector<1x1x64xf32>
    %80 = vector.shape_cast %79 : vector<1x1x64xf32> to vector<1x64xf32>
    %81 = vector.broadcast %80 : vector<1x64xf32> to vector<16x64xf32>
    %82 = arith.addf %78, %81 : vector<16x64xf32>
    %83 = vector.shape_cast %75 : vector<8x32xf32> to vector<8x4x8xf32>
    %84 = tpu.transpose %83, [1, 0, 2] : vector<8x4x8xf32> -> vector<4x8x8xf32>
    %85 = vector.shape_cast %82 : vector<16x64xf32> to vector<16x8x8xf32>
    %86 = tpu.transpose %85, [1, 0, 2] : vector<16x8x8xf32> -> vector<8x16x8xf32>
    %87 = vector.extract_strided_slice %86 {offsets = [0, 0, 0], sizes = [4, 16, 8], strides = [1, 1, 1]} : vector<8x16x8xf32> to vector<4x16x8xf32>
    %88 = vector.extract_strided_slice %86 {offsets = [4, 0, 0], sizes = [4, 16, 8], strides = [1, 1, 1]} : vector<8x16x8xf32> to vector<4x16x8xf32>
    %cst_41 = arith.constant dense<0.000000e+00> : vector<4x8x16xf32>
    %89 = tpu.matmul %84, %87, %cst_41 {dimension_numbers = #tpu.dot_dimension_numbers<[2], [2], [1], [1], [0, 0, 0, 1, 1, 1], [0], [0]>} : vector<4x8x8xf32>, vector<4x16x8xf32>, vector<4x8x16xf32> -> vector<4x8x16xf32>
    %cst_42 = arith.constant dense<0xFF800000> : vector<4x8xf32>
    %90 = vector.multi_reduction <maximumf>, %89, %cst_42 [2] : vector<4x8x16xf32> to vector<4x8xf32>
    %91 = vector.shape_cast %90 : vector<4x8xf32> to vector<4x8x1xf32>
    %92 = vector.broadcast %91 : vector<4x8x1xf32> to vector<4x8x16xf32>
    %93 = arith.subf %89, %92 : vector<4x8x16xf32>
    %94 = math.exp %93 : vector<4x8x16xf32>
    %cst_43 = arith.constant dense<0.000000e+00> : vector<4x8xf32>
    %95 = vector.multi_reduction <add>, %94, %cst_43 [2] : vector<4x8x16xf32> to vector<4x8xf32>
    %96 = vector.shape_cast %95 : vector<4x8xf32> to vector<4x8x1xf32>
    %97 = vector.broadcast %96 : vector<4x8x1xf32> to vector<4x8x16xf32>
    %98 = arith.divf %94, %97 : vector<4x8x16xf32>
    %cst_44 = arith.constant dense<0.000000e+00> : vector<4x8x8xf32>
    %99 = tpu.matmul %98, %88, %cst_44 {dimension_numbers = #tpu.dot_dimension_numbers<[2], [1], [1], [2], [0, 0, 0, 1, 1, 2], [0], [0]>} : vector<4x8x16xf32>, vector<4x16x8xf32>, vector<4x8x8xf32> -> vector<4x8x8xf32>
    %100 = tpu.transpose %99, [1, 0, 2] : vector<4x8x8xf32> -> vector<8x4x8xf32>
    %101 = vector.shape_cast %100 : vector<8x4x8xf32> to vector<8x32xf32>
    %c0_45 = arith.constant 0 : index
    %c0_46 = arith.constant 0 : index
    %c224 = arith.constant 224 : index
    %102 = vector.load %arg2[%c0_45, %c0_46, %c224] : memref<2x32x320xf32, #tpu.memory_space<vmem>>, vector<1x32x32xf32>
    %103 = vector.shape_cast %102 : vector<1x32x32xf32> to vector<32x32xf32>
    %cst_47 = arith.constant dense<0.000000e+00> : vector<8x32xf32>
    %104 = tpu.matmul %101, %103, %cst_47 {dimension_numbers = #tpu.dot_dimension_numbers<[1], [0], [0], [1], [0, 0, 1, 1], [], []>} : vector<8x32xf32>, vector<32x32xf32>, vector<8x32xf32> -> vector<8x32xf32>
    %c0_48 = arith.constant 0 : index
    %c4 = arith.constant 4 : index
    %c0_49 = arith.constant 0 : index
    %105 = vector.load %arg4[%c0_48, %c4, %c0_49] : memref<2x16x128xf32, #tpu.memory_space<vmem>>, vector<1x1x32xf32>
    %106 = vector.shape_cast %105 : vector<1x1x32xf32> to vector<1x32xf32>
    %107 = vector.broadcast %106 : vector<1x32xf32> to vector<8x32xf32>
    %108 = arith.addf %104, %107 : vector<8x32xf32>
    %109 = arith.addf %68, %108 : vector<8x32xf32>
    %c0_50 = arith.constant 0 : index
    %c9 = arith.constant 9 : index
    %c0_51 = arith.constant 0 : index
    %110 = vector.load %arg4[%c0_50, %c9, %c0_51] : memref<2x16x128xf32, #tpu.memory_space<vmem>>, vector<1x1x32xf32>
    %111 = vector.shape_cast %110 : vector<1x1x32xf32> to vector<1x32xf32>
    %c0_52 = arith.constant 0 : index
    %c10 = arith.constant 10 : index
    %c0_53 = arith.constant 0 : index
    %112 = vector.load %arg4[%c0_52, %c10, %c0_53] : memref<2x16x128xf32, #tpu.memory_space<vmem>>, vector<1x1x32xf32>
    %113 = vector.shape_cast %112 : vector<1x1x32xf32> to vector<1x32xf32>
    %cst_54 = arith.constant dense<0.000000e+00> : vector<8xf32>
    %114 = vector.multi_reduction <add>, %109, %cst_54 [1] : vector<8x32xf32> to vector<8xf32>
    %115 = vector.shape_cast %114 : vector<8xf32> to vector<8x1xf32>
    %cst_55 = arith.constant 3.200000e+01 : f32
    %116 = vector.broadcast %cst_55 : f32 to vector<8x1xf32>
    %117 = arith.divf %115, %116 : vector<8x1xf32>
    %118 = vector.broadcast %117 : vector<8x1xf32> to vector<8x32xf32>
    %119 = arith.subf %109, %118 : vector<8x32xf32>
    %120 = arith.mulf %119, %119 : vector<8x32xf32>
    %cst_56 = arith.constant dense<0.000000e+00> : vector<8xf32>
    %121 = vector.multi_reduction <add>, %120, %cst_56 [1] : vector<8x32xf32> to vector<8xf32>
    %122 = vector.shape_cast %121 : vector<8xf32> to vector<8x1xf32>
    %cst_57 = arith.constant 3.200000e+01 : f32
    %123 = vector.broadcast %cst_57 : f32 to vector<8x1xf32>
    %124 = arith.divf %122, %123 : vector<8x1xf32>
    %125 = vector.broadcast %117 : vector<8x1xf32> to vector<8x32xf32>
    %126 = arith.subf %109, %125 : vector<8x32xf32>
    %cst_58 = arith.constant 9.99999974E-6 : f32
    %127 = vector.broadcast %cst_58 : f32 to vector<8x1xf32>
    %128 = arith.addf %124, %127 : vector<8x1xf32>
    %129 = math.rsqrt %128 : vector<8x1xf32>
    %130 = vector.broadcast %129 : vector<8x1xf32> to vector<8x32xf32>
    %131 = arith.mulf %126, %130 : vector<8x32xf32>
    %132 = vector.broadcast %111 : vector<1x32xf32> to vector<8x32xf32>
    %133 = arith.mulf %131, %132 : vector<8x32xf32>
    %134 = vector.broadcast %113 : vector<1x32xf32> to vector<8x32xf32>
    %135 = arith.addf %133, %134 : vector<8x32xf32>
    %136 = tpu.transpose %98, [1, 0, 2] : vector<4x8x16xf32> -> vector<8x4x16xf32>
    %137 = vector.shape_cast %136 : vector<8x4x16xf32> to vector<8x64xf32>
    %c0_59 = arith.constant 0 : index
    %c0_60 = arith.constant 0 : index
    %c256 = arith.constant 256 : index
    %138 = vector.load %arg2[%c0_59, %c0_60, %c256] : memref<2x32x320xf32, #tpu.memory_space<vmem>>, vector<1x32x64xf32>
    %139 = vector.shape_cast %138 : vector<1x32x64xf32> to vector<32x64xf32>
    %cst_61 = arith.constant dense<0.000000e+00> : vector<8x64xf32>
    %140 = tpu.matmul %135, %139, %cst_61 {dimension_numbers = #tpu.dot_dimension_numbers<[1], [0], [0], [1], [0, 0, 1, 1], [], []>} : vector<8x32xf32>, vector<32x64xf32>, vector<8x64xf32> -> vector<8x64xf32>
    %c0_62 = arith.constant 0 : index
    %c5 = arith.constant 5 : index
    %c0_63 = arith.constant 0 : index
    %141 = vector.load %arg4[%c0_62, %c5, %c0_63] : memref<2x16x128xf32, #tpu.memory_space<vmem>>, vector<1x1x64xf32>
    %142 = vector.shape_cast %141 : vector<1x1x64xf32> to vector<1x64xf32>
    %143 = vector.broadcast %142 : vector<1x64xf32> to vector<8x64xf32>
    %144 = arith.addf %140, %143 : vector<8x64xf32>
    %cst_64 = arith.constant 0.000000e+00 : f32
    %145 = vector.broadcast %cst_64 : f32 to vector<8x64xf32>
    %146 = arith.maximumf %144, %145 : vector<8x64xf32>
    %c0_65 = arith.constant 0 : index
    %c0_66 = arith.constant 0 : index
    %c0_67 = arith.constant 0 : index
    %147 = vector.load %arg3[%c0_65, %c0_66, %c0_67] : memref<2x64x32xf32, #tpu.memory_space<vmem>>, vector<1x64x32xf32>
    %148 = vector.shape_cast %147 : vector<1x64x32xf32> to vector<64x32xf32>
    %cst_68 = arith.constant dense<0.000000e+00> : vector<8x32xf32>
    %149 = tpu.matmul %146, %148, %cst_68 {dimension_numbers = #tpu.dot_dimension_numbers<[1], [0], [0], [1], [0, 0, 1, 1], [], []>} : vector<8x64xf32>, vector<64x32xf32>, vector<8x32xf32> -> vector<8x32xf32>
    %c0_69 = arith.constant 0 : index
    %c6 = arith.constant 6 : index
    %c0_70 = arith.constant 0 : index
    %150 = vector.load %arg4[%c0_69, %c6, %c0_70] : memref<2x16x128xf32, #tpu.memory_space<vmem>>, vector<1x1x32xf32>
    %151 = vector.shape_cast %150 : vector<1x1x32xf32> to vector<1x32xf32>
    %152 = vector.broadcast %151 : vector<1x32xf32> to vector<8x32xf32>
    %153 = arith.addf %149, %152 : vector<8x32xf32>
    %154 = arith.addf %135, %153 : vector<8x32xf32>
    %c0_71 = arith.constant 0 : index
    %c11 = arith.constant 11 : index
    %c0_72 = arith.constant 0 : index
    %155 = vector.load %arg4[%c0_71, %c11, %c0_72] : memref<2x16x128xf32, #tpu.memory_space<vmem>>, vector<1x1x32xf32>
    %156 = vector.shape_cast %155 : vector<1x1x32xf32> to vector<1x32xf32>
    %c0_73 = arith.constant 0 : index
    %c12 = arith.constant 12 : index
    %c0_74 = arith.constant 0 : index
    %157 = vector.load %arg4[%c0_73, %c12, %c0_74] : memref<2x16x128xf32, #tpu.memory_space<vmem>>, vector<1x1x32xf32>
    %158 = vector.shape_cast %157 : vector<1x1x32xf32> to vector<1x32xf32>
    %cst_75 = arith.constant dense<0.000000e+00> : vector<8xf32>
    %159 = vector.multi_reduction <add>, %154, %cst_75 [1] : vector<8x32xf32> to vector<8xf32>
    %160 = vector.shape_cast %159 : vector<8xf32> to vector<8x1xf32>
    %cst_76 = arith.constant 3.200000e+01 : f32
    %161 = vector.broadcast %cst_76 : f32 to vector<8x1xf32>
    %162 = arith.divf %160, %161 : vector<8x1xf32>
    %163 = vector.broadcast %162 : vector<8x1xf32> to vector<8x32xf32>
    %164 = arith.subf %154, %163 : vector<8x32xf32>
    %165 = arith.mulf %164, %164 : vector<8x32xf32>
    %cst_77 = arith.constant dense<0.000000e+00> : vector<8xf32>
    %166 = vector.multi_reduction <add>, %165, %cst_77 [1] : vector<8x32xf32> to vector<8xf32>
    %167 = vector.shape_cast %166 : vector<8xf32> to vector<8x1xf32>
    %cst_78 = arith.constant 3.200000e+01 : f32
    %168 = vector.broadcast %cst_78 : f32 to vector<8x1xf32>
    %169 = arith.divf %167, %168 : vector<8x1xf32>
    %170 = vector.broadcast %162 : vector<8x1xf32> to vector<8x32xf32>
    %171 = arith.subf %154, %170 : vector<8x32xf32>
    %cst_79 = arith.constant 9.99999974E-6 : f32
    %172 = vector.broadcast %cst_79 : f32 to vector<8x1xf32>
    %173 = arith.addf %169, %172 : vector<8x1xf32>
    %174 = math.rsqrt %173 : vector<8x1xf32>
    %175 = vector.broadcast %174 : vector<8x1xf32> to vector<8x32xf32>
    %176 = arith.mulf %171, %175 : vector<8x32xf32>
    %177 = vector.broadcast %156 : vector<1x32xf32> to vector<8x32xf32>
    %178 = arith.mulf %176, %177 : vector<8x32xf32>
    %179 = vector.broadcast %158 : vector<1x32xf32> to vector<8x32xf32>
    %180 = arith.addf %178, %179 : vector<8x32xf32>
    %c1_80 = arith.constant 1 : index
    %c0_81 = arith.constant 0 : index
    %c0_82 = arith.constant 0 : index
    %181 = vector.load %arg2[%c1_80, %c0_81, %c0_82] : memref<2x32x320xf32, #tpu.memory_space<vmem>>, vector<1x32x96xf32>
    %182 = vector.shape_cast %181 : vector<1x32x96xf32> to vector<32x96xf32>
    %cst_83 = arith.constant dense<0.000000e+00> : vector<8x96xf32>
    %183 = tpu.matmul %180, %182, %cst_83 {dimension_numbers = #tpu.dot_dimension_numbers<[1], [0], [0], [1], [0, 0, 1, 1], [], []>} : vector<8x32xf32>, vector<32x96xf32>, vector<8x96xf32> -> vector<8x96xf32>
    %c1_84 = arith.constant 1 : index
    %c0_85 = arith.constant 0 : index
    %c0_86 = arith.constant 0 : index
    %184 = vector.load %arg4[%c1_84, %c0_85, %c0_86] : memref<2x16x128xf32, #tpu.memory_space<vmem>>, vector<1x1x96xf32>
    %185 = vector.shape_cast %184 : vector<1x1x96xf32> to vector<1x96xf32>
    %186 = vector.broadcast %185 : vector<1x96xf32> to vector<8x96xf32>
    %187 = arith.addf %183, %186 : vector<8x96xf32>
    %188 = vector.shape_cast %187 : vector<8x96xf32> to vector<8x12x8xf32>
    %189 = tpu.transpose %188, [1, 0, 2] : vector<8x12x8xf32> -> vector<12x8x8xf32>
    %190 = vector.extract_strided_slice %189 {offsets = [0, 0, 0], sizes = [4, 8, 8], strides = [1, 1, 1]} : vector<12x8x8xf32> to vector<4x8x8xf32>
    %191 = vector.extract_strided_slice %189 {offsets = [4, 0, 0], sizes = [4, 8, 8], strides = [1, 1, 1]} : vector<12x8x8xf32> to vector<4x8x8xf32>
    %192 = vector.extract_strided_slice %189 {offsets = [8, 0, 0], sizes = [4, 8, 8], strides = [1, 1, 1]} : vector<12x8x8xf32> to vector<4x8x8xf32>
    %cst_87 = arith.constant dense<0.000000e+00> : vector<4x8x8xf32>
    %193 = tpu.matmul %190, %191, %cst_87 {dimension_numbers = #tpu.dot_dimension_numbers<[2], [2], [1], [1], [0, 0, 0, 1, 1, 1], [0], [0]>} : vector<4x8x8xf32>, vector<4x8x8xf32>, vector<4x8x8xf32> -> vector<4x8x8xf32>
    %194 = vector.shape_cast %5 : vector<8x8xf32> to vector<1x8x8xf32>
    %195 = vector.broadcast %194 : vector<1x8x8xf32> to vector<4x8x8xf32>
    %196 = arith.addf %193, %195 : vector<4x8x8xf32>
    %cst_88 = arith.constant dense<0xFF800000> : vector<4x8xf32>
    %197 = vector.multi_reduction <maximumf>, %196, %cst_88 [2] : vector<4x8x8xf32> to vector<4x8xf32>
    %198 = vector.shape_cast %197 : vector<4x8xf32> to vector<4x8x1xf32>
    %199 = vector.broadcast %198 : vector<4x8x1xf32> to vector<4x8x8xf32>
    %200 = arith.subf %196, %199 : vector<4x8x8xf32>
    %201 = math.exp %200 : vector<4x8x8xf32>
    %cst_89 = arith.constant dense<0.000000e+00> : vector<4x8xf32>
    %202 = vector.multi_reduction <add>, %201, %cst_89 [2] : vector<4x8x8xf32> to vector<4x8xf32>
    %203 = vector.shape_cast %202 : vector<4x8xf32> to vector<4x8x1xf32>
    %204 = tpu.reciprocal %203 {approx = true} : vector<4x8x1xf32> -> vector<4x8x1xf32>
    %205 = vector.broadcast %204 : vector<4x8x1xf32> to vector<4x8x8xf32>
    %206 = arith.mulf %201, %205 : vector<4x8x8xf32>
    %cst_90 = arith.constant dense<0.000000e+00> : vector<4x8x8xf32>
    %207 = tpu.matmul %206, %192, %cst_90 {dimension_numbers = #tpu.dot_dimension_numbers<[2], [1], [1], [2], [0, 0, 0, 1, 1, 2], [0], [0]>} : vector<4x8x8xf32>, vector<4x8x8xf32>, vector<4x8x8xf32> -> vector<4x8x8xf32>
    %208 = tpu.transpose %207, [1, 0, 2] : vector<4x8x8xf32> -> vector<8x4x8xf32>
    %209 = vector.shape_cast %208 : vector<8x4x8xf32> to vector<8x32xf32>
    %c1_91 = arith.constant 1 : index
    %c0_92 = arith.constant 0 : index
    %c96_93 = arith.constant 96 : index
    %210 = vector.load %arg2[%c1_91, %c0_92, %c96_93] : memref<2x32x320xf32, #tpu.memory_space<vmem>>, vector<1x32x32xf32>
    %211 = vector.shape_cast %210 : vector<1x32x32xf32> to vector<32x32xf32>
    %cst_94 = arith.constant dense<0.000000e+00> : vector<8x32xf32>
    %212 = tpu.matmul %209, %211, %cst_94 {dimension_numbers = #tpu.dot_dimension_numbers<[1], [0], [0], [1], [0, 0, 1, 1], [], []>} : vector<8x32xf32>, vector<32x32xf32>, vector<8x32xf32> -> vector<8x32xf32>
    %c1_95 = arith.constant 1 : index
    %c1_96 = arith.constant 1 : index
    %c0_97 = arith.constant 0 : index
    %213 = vector.load %arg4[%c1_95, %c1_96, %c0_97] : memref<2x16x128xf32, #tpu.memory_space<vmem>>, vector<1x1x32xf32>
    %214 = vector.shape_cast %213 : vector<1x1x32xf32> to vector<1x32xf32>
    %215 = vector.broadcast %214 : vector<1x32xf32> to vector<8x32xf32>
    %216 = arith.addf %212, %215 : vector<8x32xf32>
    %217 = arith.addf %180, %216 : vector<8x32xf32>
    %c1_98 = arith.constant 1 : index
    %c7_99 = arith.constant 7 : index
    %c0_100 = arith.constant 0 : index
    %218 = vector.load %arg4[%c1_98, %c7_99, %c0_100] : memref<2x16x128xf32, #tpu.memory_space<vmem>>, vector<1x1x32xf32>
    %219 = vector.shape_cast %218 : vector<1x1x32xf32> to vector<1x32xf32>
    %c1_101 = arith.constant 1 : index
    %c8_102 = arith.constant 8 : index
    %c0_103 = arith.constant 0 : index
    %220 = vector.load %arg4[%c1_101, %c8_102, %c0_103] : memref<2x16x128xf32, #tpu.memory_space<vmem>>, vector<1x1x32xf32>
    %221 = vector.shape_cast %220 : vector<1x1x32xf32> to vector<1x32xf32>
    %cst_104 = arith.constant dense<0.000000e+00> : vector<8xf32>
    %222 = vector.multi_reduction <add>, %217, %cst_104 [1] : vector<8x32xf32> to vector<8xf32>
    %223 = vector.shape_cast %222 : vector<8xf32> to vector<8x1xf32>
    %cst_105 = arith.constant 3.200000e+01 : f32
    %224 = vector.broadcast %cst_105 : f32 to vector<8x1xf32>
    %225 = arith.divf %223, %224 : vector<8x1xf32>
    %226 = vector.broadcast %225 : vector<8x1xf32> to vector<8x32xf32>
    %227 = arith.subf %217, %226 : vector<8x32xf32>
    %228 = arith.mulf %227, %227 : vector<8x32xf32>
    %cst_106 = arith.constant dense<0.000000e+00> : vector<8xf32>
    %229 = vector.multi_reduction <add>, %228, %cst_106 [1] : vector<8x32xf32> to vector<8xf32>
    %230 = vector.shape_cast %229 : vector<8xf32> to vector<8x1xf32>
    %cst_107 = arith.constant 3.200000e+01 : f32
    %231 = vector.broadcast %cst_107 : f32 to vector<8x1xf32>
    %232 = arith.divf %230, %231 : vector<8x1xf32>
    %233 = vector.broadcast %225 : vector<8x1xf32> to vector<8x32xf32>
    %234 = arith.subf %217, %233 : vector<8x32xf32>
    %cst_108 = arith.constant 9.99999974E-6 : f32
    %235 = vector.broadcast %cst_108 : f32 to vector<8x1xf32>
    %236 = arith.addf %232, %235 : vector<8x1xf32>
    %237 = math.rsqrt %236 : vector<8x1xf32>
    %238 = vector.broadcast %237 : vector<8x1xf32> to vector<8x32xf32>
    %239 = arith.mulf %234, %238 : vector<8x32xf32>
    %240 = vector.broadcast %219 : vector<1x32xf32> to vector<8x32xf32>
    %241 = arith.mulf %239, %240 : vector<8x32xf32>
    %242 = vector.broadcast %221 : vector<1x32xf32> to vector<8x32xf32>
    %243 = arith.addf %241, %242 : vector<8x32xf32>
    %c1_109 = arith.constant 1 : index
    %c0_110 = arith.constant 0 : index
    %c128_111 = arith.constant 128 : index
    %244 = vector.load %arg2[%c1_109, %c0_110, %c128_111] : memref<2x32x320xf32, #tpu.memory_space<vmem>>, vector<1x32x32xf32>
    %245 = vector.shape_cast %244 : vector<1x32x32xf32> to vector<32x32xf32>
    %cst_112 = arith.constant dense<0.000000e+00> : vector<8x32xf32>
    %246 = tpu.matmul %243, %245, %cst_112 {dimension_numbers = #tpu.dot_dimension_numbers<[1], [0], [0], [1], [0, 0, 1, 1], [], []>} : vector<8x32xf32>, vector<32x32xf32>, vector<8x32xf32> -> vector<8x32xf32>
    %c1_113 = arith.constant 1 : index
    %c2_114 = arith.constant 2 : index
    %c0_115 = arith.constant 0 : index
    %247 = vector.load %arg4[%c1_113, %c2_114, %c0_115] : memref<2x16x128xf32, #tpu.memory_space<vmem>>, vector<1x1x32xf32>
    %248 = vector.shape_cast %247 : vector<1x1x32xf32> to vector<1x32xf32>
    %249 = vector.broadcast %248 : vector<1x32xf32> to vector<8x32xf32>
    %250 = arith.addf %246, %249 : vector<8x32xf32>
    %c1_116 = arith.constant 1 : index
    %c0_117 = arith.constant 0 : index
    %c160_118 = arith.constant 160 : index
    %251 = vector.load %arg2[%c1_116, %c0_117, %c160_118] : memref<2x32x320xf32, #tpu.memory_space<vmem>>, vector<1x32x64xf32>
    %252 = vector.shape_cast %251 : vector<1x32x64xf32> to vector<32x64xf32>
    %cst_119 = arith.constant dense<0.000000e+00> : vector<16x64xf32>
    %253 = tpu.matmul %3, %252, %cst_119 {dimension_numbers = #tpu.dot_dimension_numbers<[1], [0], [0], [1], [0, 0, 1, 1], [], []>} : vector<16x32xf32>, vector<32x64xf32>, vector<16x64xf32> -> vector<16x64xf32>
    %c1_120 = arith.constant 1 : index
    %c3_121 = arith.constant 3 : index
    %c0_122 = arith.constant 0 : index
    %254 = vector.load %arg4[%c1_120, %c3_121, %c0_122] : memref<2x16x128xf32, #tpu.memory_space<vmem>>, vector<1x1x64xf32>
    %255 = vector.shape_cast %254 : vector<1x1x64xf32> to vector<1x64xf32>
    %256 = vector.broadcast %255 : vector<1x64xf32> to vector<16x64xf32>
    %257 = arith.addf %253, %256 : vector<16x64xf32>
    %258 = vector.shape_cast %250 : vector<8x32xf32> to vector<8x4x8xf32>
    %259 = tpu.transpose %258, [1, 0, 2] : vector<8x4x8xf32> -> vector<4x8x8xf32>
    %260 = vector.shape_cast %257 : vector<16x64xf32> to vector<16x8x8xf32>
    %261 = tpu.transpose %260, [1, 0, 2] : vector<16x8x8xf32> -> vector<8x16x8xf32>
    %262 = vector.extract_strided_slice %261 {offsets = [0, 0, 0], sizes = [4, 16, 8], strides = [1, 1, 1]} : vector<8x16x8xf32> to vector<4x16x8xf32>
    %263 = vector.extract_strided_slice %261 {offsets = [4, 0, 0], sizes = [4, 16, 8], strides = [1, 1, 1]} : vector<8x16x8xf32> to vector<4x16x8xf32>
    %cst_123 = arith.constant dense<0.000000e+00> : vector<4x8x16xf32>
    %264 = tpu.matmul %259, %262, %cst_123 {dimension_numbers = #tpu.dot_dimension_numbers<[2], [2], [1], [1], [0, 0, 0, 1, 1, 1], [0], [0]>} : vector<4x8x8xf32>, vector<4x16x8xf32>, vector<4x8x16xf32> -> vector<4x8x16xf32>
    %cst_124 = arith.constant dense<0xFF800000> : vector<4x8xf32>
    %265 = vector.multi_reduction <maximumf>, %264, %cst_124 [2] : vector<4x8x16xf32> to vector<4x8xf32>
    %266 = vector.shape_cast %265 : vector<4x8xf32> to vector<4x8x1xf32>
    %267 = vector.broadcast %266 : vector<4x8x1xf32> to vector<4x8x16xf32>
    %268 = arith.subf %264, %267 : vector<4x8x16xf32>
    %269 = math.exp %268 : vector<4x8x16xf32>
    %cst_125 = arith.constant dense<0.000000e+00> : vector<4x8xf32>
    %270 = vector.multi_reduction <add>, %269, %cst_125 [2] : vector<4x8x16xf32> to vector<4x8xf32>
    %271 = vector.shape_cast %270 : vector<4x8xf32> to vector<4x8x1xf32>
    %272 = vector.broadcast %271 : vector<4x8x1xf32> to vector<4x8x16xf32>
    %273 = arith.divf %269, %272 : vector<4x8x16xf32>
    %cst_126 = arith.constant dense<0.000000e+00> : vector<4x8x8xf32>
    %274 = tpu.matmul %273, %263, %cst_126 {dimension_numbers = #tpu.dot_dimension_numbers<[2], [1], [1], [2], [0, 0, 0, 1, 1, 2], [0], [0]>} : vector<4x8x16xf32>, vector<4x16x8xf32>, vector<4x8x8xf32> -> vector<4x8x8xf32>
    %275 = tpu.transpose %274, [1, 0, 2] : vector<4x8x8xf32> -> vector<8x4x8xf32>
    %276 = vector.shape_cast %275 : vector<8x4x8xf32> to vector<8x32xf32>
    %c1_127 = arith.constant 1 : index
    %c0_128 = arith.constant 0 : index
    %c224_129 = arith.constant 224 : index
    %277 = vector.load %arg2[%c1_127, %c0_128, %c224_129] : memref<2x32x320xf32, #tpu.memory_space<vmem>>, vector<1x32x32xf32>
    %278 = vector.shape_cast %277 : vector<1x32x32xf32> to vector<32x32xf32>
    %cst_130 = arith.constant dense<0.000000e+00> : vector<8x32xf32>
    %279 = tpu.matmul %276, %278, %cst_130 {dimension_numbers = #tpu.dot_dimension_numbers<[1], [0], [0], [1], [0, 0, 1, 1], [], []>} : vector<8x32xf32>, vector<32x32xf32>, vector<8x32xf32> -> vector<8x32xf32>
    %c1_131 = arith.constant 1 : index
    %c4_132 = arith.constant 4 : index
    %c0_133 = arith.constant 0 : index
    %280 = vector.load %arg4[%c1_131, %c4_132, %c0_133] : memref<2x16x128xf32, #tpu.memory_space<vmem>>, vector<1x1x32xf32>
    %281 = vector.shape_cast %280 : vector<1x1x32xf32> to vector<1x32xf32>
    %282 = vector.broadcast %281 : vector<1x32xf32> to vector<8x32xf32>
    %283 = arith.addf %279, %282 : vector<8x32xf32>
    %284 = arith.addf %243, %283 : vector<8x32xf32>
    %c1_134 = arith.constant 1 : index
    %c9_135 = arith.constant 9 : index
    %c0_136 = arith.constant 0 : index
    %285 = vector.load %arg4[%c1_134, %c9_135, %c0_136] : memref<2x16x128xf32, #tpu.memory_space<vmem>>, vector<1x1x32xf32>
    %286 = vector.shape_cast %285 : vector<1x1x32xf32> to vector<1x32xf32>
    %c1_137 = arith.constant 1 : index
    %c10_138 = arith.constant 10 : index
    %c0_139 = arith.constant 0 : index
    %287 = vector.load %arg4[%c1_137, %c10_138, %c0_139] : memref<2x16x128xf32, #tpu.memory_space<vmem>>, vector<1x1x32xf32>
    %288 = vector.shape_cast %287 : vector<1x1x32xf32> to vector<1x32xf32>
    %cst_140 = arith.constant dense<0.000000e+00> : vector<8xf32>
    %289 = vector.multi_reduction <add>, %284, %cst_140 [1] : vector<8x32xf32> to vector<8xf32>
    %290 = vector.shape_cast %289 : vector<8xf32> to vector<8x1xf32>
    %cst_141 = arith.constant 3.200000e+01 : f32
    %291 = vector.broadcast %cst_141 : f32 to vector<8x1xf32>
    %292 = arith.divf %290, %291 : vector<8x1xf32>
    %293 = vector.broadcast %292 : vector<8x1xf32> to vector<8x32xf32>
    %294 = arith.subf %284, %293 : vector<8x32xf32>
    %295 = arith.mulf %294, %294 : vector<8x32xf32>
    %cst_142 = arith.constant dense<0.000000e+00> : vector<8xf32>
    %296 = vector.multi_reduction <add>, %295, %cst_142 [1] : vector<8x32xf32> to vector<8xf32>
    %297 = vector.shape_cast %296 : vector<8xf32> to vector<8x1xf32>
    %cst_143 = arith.constant 3.200000e+01 : f32
    %298 = vector.broadcast %cst_143 : f32 to vector<8x1xf32>
    %299 = arith.divf %297, %298 : vector<8x1xf32>
    %300 = vector.broadcast %292 : vector<8x1xf32> to vector<8x32xf32>
    %301 = arith.subf %284, %300 : vector<8x32xf32>
    %cst_144 = arith.constant 9.99999974E-6 : f32
    %302 = vector.broadcast %cst_144 : f32 to vector<8x1xf32>
    %303 = arith.addf %299, %302 : vector<8x1xf32>
    %304 = math.rsqrt %303 : vector<8x1xf32>
    %305 = vector.broadcast %304 : vector<8x1xf32> to vector<8x32xf32>
    %306 = arith.mulf %301, %305 : vector<8x32xf32>
    %307 = vector.broadcast %286 : vector<1x32xf32> to vector<8x32xf32>
    %308 = arith.mulf %306, %307 : vector<8x32xf32>
    %309 = vector.broadcast %288 : vector<1x32xf32> to vector<8x32xf32>
    %310 = arith.addf %308, %309 : vector<8x32xf32>
    %311 = tpu.transpose %273, [1, 0, 2] : vector<4x8x16xf32> -> vector<8x4x16xf32>
    %312 = vector.shape_cast %311 : vector<8x4x16xf32> to vector<8x64xf32>
    %c1_145 = arith.constant 1 : index
    %c0_146 = arith.constant 0 : index
    %c256_147 = arith.constant 256 : index
    %313 = vector.load %arg2[%c1_145, %c0_146, %c256_147] : memref<2x32x320xf32, #tpu.memory_space<vmem>>, vector<1x32x64xf32>
    %314 = vector.shape_cast %313 : vector<1x32x64xf32> to vector<32x64xf32>
    %cst_148 = arith.constant dense<0.000000e+00> : vector<8x64xf32>
    %315 = tpu.matmul %310, %314, %cst_148 {dimension_numbers = #tpu.dot_dimension_numbers<[1], [0], [0], [1], [0, 0, 1, 1], [], []>} : vector<8x32xf32>, vector<32x64xf32>, vector<8x64xf32> -> vector<8x64xf32>
    %c1_149 = arith.constant 1 : index
    %c5_150 = arith.constant 5 : index
    %c0_151 = arith.constant 0 : index
    %316 = vector.load %arg4[%c1_149, %c5_150, %c0_151] : memref<2x16x128xf32, #tpu.memory_space<vmem>>, vector<1x1x64xf32>
    %317 = vector.shape_cast %316 : vector<1x1x64xf32> to vector<1x64xf32>
    %318 = vector.broadcast %317 : vector<1x64xf32> to vector<8x64xf32>
    %319 = arith.addf %315, %318 : vector<8x64xf32>
    %cst_152 = arith.constant 0.000000e+00 : f32
    %320 = vector.broadcast %cst_152 : f32 to vector<8x64xf32>
    %321 = arith.maximumf %319, %320 : vector<8x64xf32>
    %c1_153 = arith.constant 1 : index
    %c0_154 = arith.constant 0 : index
    %c0_155 = arith.constant 0 : index
    %322 = vector.load %arg3[%c1_153, %c0_154, %c0_155] : memref<2x64x32xf32, #tpu.memory_space<vmem>>, vector<1x64x32xf32>
    %323 = vector.shape_cast %322 : vector<1x64x32xf32> to vector<64x32xf32>
    %cst_156 = arith.constant dense<0.000000e+00> : vector<8x32xf32>
    %324 = tpu.matmul %321, %323, %cst_156 {dimension_numbers = #tpu.dot_dimension_numbers<[1], [0], [0], [1], [0, 0, 1, 1], [], []>} : vector<8x64xf32>, vector<64x32xf32>, vector<8x32xf32> -> vector<8x32xf32>
    %c1_157 = arith.constant 1 : index
    %c6_158 = arith.constant 6 : index
    %c0_159 = arith.constant 0 : index
    %325 = vector.load %arg4[%c1_157, %c6_158, %c0_159] : memref<2x16x128xf32, #tpu.memory_space<vmem>>, vector<1x1x32xf32>
    %326 = vector.shape_cast %325 : vector<1x1x32xf32> to vector<1x32xf32>
    %327 = vector.broadcast %326 : vector<1x32xf32> to vector<8x32xf32>
    %328 = arith.addf %324, %327 : vector<8x32xf32>
    %329 = arith.addf %310, %328 : vector<8x32xf32>
    %c1_160 = arith.constant 1 : index
    %c11_161 = arith.constant 11 : index
    %c0_162 = arith.constant 0 : index
    %330 = vector.load %arg4[%c1_160, %c11_161, %c0_162] : memref<2x16x128xf32, #tpu.memory_space<vmem>>, vector<1x1x32xf32>
    %331 = vector.shape_cast %330 : vector<1x1x32xf32> to vector<1x32xf32>
    %c1_163 = arith.constant 1 : index
    %c12_164 = arith.constant 12 : index
    %c0_165 = arith.constant 0 : index
    %332 = vector.load %arg4[%c1_163, %c12_164, %c0_165] : memref<2x16x128xf32, #tpu.memory_space<vmem>>, vector<1x1x32xf32>
    %333 = vector.shape_cast %332 : vector<1x1x32xf32> to vector<1x32xf32>
    %cst_166 = arith.constant dense<0.000000e+00> : vector<8xf32>
    %334 = vector.multi_reduction <add>, %329, %cst_166 [1] : vector<8x32xf32> to vector<8xf32>
    %335 = vector.shape_cast %334 : vector<8xf32> to vector<8x1xf32>
    %cst_167 = arith.constant 3.200000e+01 : f32
    %336 = vector.broadcast %cst_167 : f32 to vector<8x1xf32>
    %337 = arith.divf %335, %336 : vector<8x1xf32>
    %338 = vector.broadcast %337 : vector<8x1xf32> to vector<8x32xf32>
    %339 = arith.subf %329, %338 : vector<8x32xf32>
    %340 = arith.mulf %339, %339 : vector<8x32xf32>
    %cst_168 = arith.constant dense<0.000000e+00> : vector<8xf32>
    %341 = vector.multi_reduction <add>, %340, %cst_168 [1] : vector<8x32xf32> to vector<8xf32>
    %342 = vector.shape_cast %341 : vector<8xf32> to vector<8x1xf32>
    %cst_169 = arith.constant 3.200000e+01 : f32
    %343 = vector.broadcast %cst_169 : f32 to vector<8x1xf32>
    %344 = arith.divf %342, %343 : vector<8x1xf32>
    %345 = vector.broadcast %337 : vector<8x1xf32> to vector<8x32xf32>
    %346 = arith.subf %329, %345 : vector<8x32xf32>
    %cst_170 = arith.constant 9.99999974E-6 : f32
    %347 = vector.broadcast %cst_170 : f32 to vector<8x1xf32>
    %348 = arith.addf %344, %347 : vector<8x1xf32>
    %349 = math.rsqrt %348 : vector<8x1xf32>
    %350 = vector.broadcast %349 : vector<8x1xf32> to vector<8x32xf32>
    %351 = arith.mulf %346, %350 : vector<8x32xf32>
    %352 = vector.broadcast %331 : vector<1x32xf32> to vector<8x32xf32>
    %353 = arith.mulf %351, %352 : vector<8x32xf32>
    %354 = vector.broadcast %333 : vector<1x32xf32> to vector<8x32xf32>
    %355 = arith.addf %353, %354 : vector<8x32xf32>
    %c0_171 = arith.constant 0 : index
    %c0_172 = arith.constant 0 : index
    %c0_173 = arith.constant 0 : index
    %356 = vector.load %arg5[%c0_171, %c0_172, %c0_173] : memref<2x8x32xf32, #tpu.memory_space<vmem>>, vector<1x8x32xf32>
    %357 = vector.shape_cast %356 : vector<1x8x32xf32> to vector<8x32xf32>
    %358 = vector.shape_cast %355 : vector<8x32xf32> to vector<1x8x32xf32>
    tpu.vector_store %arg5[%c0_171, %c0_172, %c0_173], %358 {strides = array<i32>} : memref<2x8x32xf32, #tpu.memory_space<vmem>>, vector<1x8x32xf32>,
    %359 = tpu.concatenate %137, %312 in 1 : vector<8x64xf32>, vector<8x64xf32> -> vector<8x128xf32>
    %c0_174 = arith.constant 0 : index
    %c0_175 = arith.constant 0 : index
    %c0_176 = arith.constant 0 : index
    %360 = vector.load %arg6[%c0_174, %c0_175, %c0_176] : memref<2x8x128xf32, #tpu.memory_space<vmem>>, vector<1x8x128xf32>
    %361 = vector.shape_cast %360 : vector<1x8x128xf32> to vector<8x128xf32>
    %362 = vector.shape_cast %359 : vector<8x128xf32> to vector<1x8x128xf32>
    tpu.vector_store %arg6[%c0_174, %c0_175, %c0_176], %362 {strides = array<i32>} : memref<2x8x128xf32, #tpu.memory_space<vmem>>, vector<1x8x128xf32>,
    %c1_177 = arith.constant 1 : index
    %c0_178 = arith.constant 0 : index
    %c0_179 = arith.constant 0 : index
    %363 = vector.load %arg1[%c1_177, %c0_178, %c0_179] : memref<2x32x32xf32, #tpu.memory_space<vmem>>, vector<1x8x32xf32>
    %364 = vector.shape_cast %363 : vector<1x8x32xf32> to vector<8x32xf32>
    %c1_180 = arith.constant 1 : index
    %c8_181 = arith.constant 8 : index
    %c0_182 = arith.constant 0 : index
    %365 = vector.load %arg1[%c1_180, %c8_181, %c0_182] : memref<2x32x32xf32, #tpu.memory_space<vmem>>, vector<1x16x32xf32>
    %366 = vector.shape_cast %365 : vector<1x16x32xf32> to vector<16x32xf32>
    %c1_183 = arith.constant 1 : index
    %c24_184 = arith.constant 24 : index
    %c0_185 = arith.constant 0 : index
    %367 = vector.load %arg1[%c1_183, %c24_184, %c0_185] : memref<2x32x32xf32, #tpu.memory_space<vmem>>, vector<1x8x8xf32>
    %368 = vector.shape_cast %367 : vector<1x8x8xf32> to vector<8x8xf32>
    %c0_186 = arith.constant 0 : index
    %c0_187 = arith.constant 0 : index
    %c0_188 = arith.constant 0 : index
    %369 = vector.load %arg2[%c0_186, %c0_187, %c0_188] : memref<2x32x320xf32, #tpu.memory_space<vmem>>, vector<1x32x96xf32>
    %370 = vector.shape_cast %369 : vector<1x32x96xf32> to vector<32x96xf32>
    %cst_189 = arith.constant dense<0.000000e+00> : vector<8x96xf32>
    %371 = tpu.matmul %364, %370, %cst_189 {dimension_numbers = #tpu.dot_dimension_numbers<[1], [0], [0], [1], [0, 0, 1, 1], [], []>} : vector<8x32xf32>, vector<32x96xf32>, vector<8x96xf32> -> vector<8x96xf32>
    %c0_190 = arith.constant 0 : index
    %c0_191 = arith.constant 0 : index
    %c0_192 = arith.constant 0 : index
    %372 = vector.load %arg4[%c0_190, %c0_191, %c0_192] : memref<2x16x128xf32, #tpu.memory_space<vmem>>, vector<1x1x96xf32>
    %373 = vector.shape_cast %372 : vector<1x1x96xf32> to vector<1x96xf32>
    %374 = vector.broadcast %373 : vector<1x96xf32> to vector<8x96xf32>
    %375 = arith.addf %371, %374 : vector<8x96xf32>
    %376 = vector.shape_cast %375 : vector<8x96xf32> to vector<8x12x8xf32>
    %377 = tpu.transpose %376, [1, 0, 2] : vector<8x12x8xf32> -> vector<12x8x8xf32>
    %378 = vector.extract_strided_slice %377 {offsets = [0, 0, 0], sizes = [4, 8, 8], strides = [1, 1, 1]} : vector<12x8x8xf32> to vector<4x8x8xf32>
    %379 = vector.extract_strided_slice %377 {offsets = [4, 0, 0], sizes = [4, 8, 8], strides = [1, 1, 1]} : vector<12x8x8xf32> to vector<4x8x8xf32>
    %380 = vector.extract_strided_slice %377 {offsets = [8, 0, 0], sizes = [4, 8, 8], strides = [1, 1, 1]} : vector<12x8x8xf32> to vector<4x8x8xf32>
    %cst_193 = arith.constant dense<0.000000e+00> : vector<4x8x8xf32>
    %381 = tpu.matmul %378, %379, %cst_193 {dimension_numbers = #tpu.dot_dimension_numbers<[2], [2], [1], [1], [0, 0, 0, 1, 1, 1], [0], [0]>} : vector<4x8x8xf32>, vector<4x8x8xf32>, vector<4x8x8xf32> -> vector<4x8x8xf32>
    %382 = vector.shape_cast %368 : vector<8x8xf32> to vector<1x8x8xf32>
    %383 = vector.broadcast %382 : vector<1x8x8xf32> to vector<4x8x8xf32>
    %384 = arith.addf %381, %383 : vector<4x8x8xf32>
    %cst_194 = arith.constant dense<0xFF800000> : vector<4x8xf32>
    %385 = vector.multi_reduction <maximumf>, %384, %cst_194 [2] : vector<4x8x8xf32> to vector<4x8xf32>
    %386 = vector.shape_cast %385 : vector<4x8xf32> to vector<4x8x1xf32>
    %387 = vector.broadcast %386 : vector<4x8x1xf32> to vector<4x8x8xf32>
    %388 = arith.subf %384, %387 : vector<4x8x8xf32>
    %389 = math.exp %388 : vector<4x8x8xf32>
    %cst_195 = arith.constant dense<0.000000e+00> : vector<4x8xf32>
    %390 = vector.multi_reduction <add>, %389, %cst_195 [2] : vector<4x8x8xf32> to vector<4x8xf32>
    %391 = vector.shape_cast %390 : vector<4x8xf32> to vector<4x8x1xf32>
    %392 = tpu.reciprocal %391 {approx = true} : vector<4x8x1xf32> -> vector<4x8x1xf32>
    %393 = vector.broadcast %392 : vector<4x8x1xf32> to vector<4x8x8xf32>
    %394 = arith.mulf %389, %393 : vector<4x8x8xf32>
    %cst_196 = arith.constant dense<0.000000e+00> : vector<4x8x8xf32>
    %395 = tpu.matmul %394, %380, %cst_196 {dimension_numbers = #tpu.dot_dimension_numbers<[2], [1], [1], [2], [0, 0, 0, 1, 1, 2], [0], [0]>} : vector<4x8x8xf32>, vector<4x8x8xf32>, vector<4x8x8xf32> -> vector<4x8x8xf32>
    %396 = tpu.transpose %395, [1, 0, 2] : vector<4x8x8xf32> -> vector<8x4x8xf32>
    %397 = vector.shape_cast %396 : vector<8x4x8xf32> to vector<8x32xf32>
    %c0_197 = arith.constant 0 : index
    %c0_198 = arith.constant 0 : index
    %c96_199 = arith.constant 96 : index
    %398 = vector.load %arg2[%c0_197, %c0_198, %c96_199] : memref<2x32x320xf32, #tpu.memory_space<vmem>>, vector<1x32x32xf32>
    %399 = vector.shape_cast %398 : vector<1x32x32xf32> to vector<32x32xf32>
    %cst_200 = arith.constant dense<0.000000e+00> : vector<8x32xf32>
    %400 = tpu.matmul %397, %399, %cst_200 {dimension_numbers = #tpu.dot_dimension_numbers<[1], [0], [0], [1], [0, 0, 1, 1], [], []>} : vector<8x32xf32>, vector<32x32xf32>, vector<8x32xf32> -> vector<8x32xf32>
    %c0_201 = arith.constant 0 : index
    %c1_202 = arith.constant 1 : index
    %c0_203 = arith.constant 0 : index
    %401 = vector.load %arg4[%c0_201, %c1_202, %c0_203] : memref<2x16x128xf32, #tpu.memory_space<vmem>>, vector<1x1x32xf32>
    %402 = vector.shape_cast %401 : vector<1x1x32xf32> to vector<1x32xf32>
    %403 = vector.broadcast %402 : vector<1x32xf32> to vector<8x32xf32>
    %404 = arith.addf %400, %403 : vector<8x32xf32>
    %405 = arith.addf %364, %404 : vector<8x32xf32>
    %c0_204 = arith.constant 0 : index
    %c7_205 = arith.constant 7 : index
    %c0_206 = arith.constant 0 : index
    %406 = vector.load %arg4[%c0_204, %c7_205, %c0_206] : memref<2x16x128xf32, #tpu.memory_space<vmem>>, vector<1x1x32xf32>
    %407 = vector.shape_cast %406 : vector<1x1x32xf32> to vector<1x32xf32>
    %c0_207 = arith.constant 0 : index
    %c8_208 = arith.constant 8 : index
    %c0_209 = arith.constant 0 : index
    %408 = vector.load %arg4[%c0_207, %c8_208, %c0_209] : memref<2x16x128xf32, #tpu.memory_space<vmem>>, vector<1x1x32xf32>
    %409 = vector.shape_cast %408 : vector<1x1x32xf32> to vector<1x32xf32>
    %cst_210 = arith.constant dense<0.000000e+00> : vector<8xf32>
    %410 = vector.multi_reduction <add>, %405, %cst_210 [1] : vector<8x32xf32> to vector<8xf32>
    %411 = vector.shape_cast %410 : vector<8xf32> to vector<8x1xf32>
    %cst_211 = arith.constant 3.200000e+01 : f32
    %412 = vector.broadcast %cst_211 : f32 to vector<8x1xf32>
    %413 = arith.divf %411, %412 : vector<8x1xf32>
    %414 = vector.broadcast %413 : vector<8x1xf32> to vector<8x32xf32>
    %415 = arith.subf %405, %414 : vector<8x32xf32>
    %416 = arith.mulf %415, %415 : vector<8x32xf32>
    %cst_212 = arith.constant dense<0.000000e+00> : vector<8xf32>
    %417 = vector.multi_reduction <add>, %416, %cst_212 [1] : vector<8x32xf32> to vector<8xf32>
    %418 = vector.shape_cast %417 : vector<8xf32> to vector<8x1xf32>
    %cst_213 = arith.constant 3.200000e+01 : f32
    %419 = vector.broadcast %cst_213 : f32 to vector<8x1xf32>
    %420 = arith.divf %418, %419 : vector<8x1xf32>
    %421 = vector.broadcast %413 : vector<8x1xf32> to vector<8x32xf32>
    %422 = arith.subf %405, %421 : vector<8x32xf32>
    %cst_214 = arith.constant 9.99999974E-6 : f32
    %423 = vector.broadcast %cst_214 : f32 to vector<8x1xf32>
    %424 = arith.addf %420, %423 : vector<8x1xf32>
    %425 = math.rsqrt %424 : vector<8x1xf32>
    %426 = vector.broadcast %425 : vector<8x1xf32> to vector<8x32xf32>
    %427 = arith.mulf %422, %426 : vector<8x32xf32>
    %428 = vector.broadcast %407 : vector<1x32xf32> to vector<8x32xf32>
    %429 = arith.mulf %427, %428 : vector<8x32xf32>
    %430 = vector.broadcast %409 : vector<1x32xf32> to vector<8x32xf32>
    %431 = arith.addf %429, %430 : vector<8x32xf32>
    %c0_215 = arith.constant 0 : index
    %c0_216 = arith.constant 0 : index
    %c128_217 = arith.constant 128 : index
    %432 = vector.load %arg2[%c0_215, %c0_216, %c128_217] : memref<2x32x320xf32, #tpu.memory_space<vmem>>, vector<1x32x32xf32>
    %433 = vector.shape_cast %432 : vector<1x32x32xf32> to vector<32x32xf32>
    %cst_218 = arith.constant dense<0.000000e+00> : vector<8x32xf32>
    %434 = tpu.matmul %431, %433, %cst_218 {dimension_numbers = #tpu.dot_dimension_numbers<[1], [0], [0], [1], [0, 0, 1, 1], [], []>} : vector<8x32xf32>, vector<32x32xf32>, vector<8x32xf32> -> vector<8x32xf32>
    %c0_219 = arith.constant 0 : index
    %c2_220 = arith.constant 2 : index
    %c0_221 = arith.constant 0 : index
    %435 = vector.load %arg4[%c0_219, %c2_220, %c0_221] : memref<2x16x128xf32, #tpu.memory_space<vmem>>, vector<1x1x32xf32>
    %436 = vector.shape_cast %435 : vector<1x1x32xf32> to vector<1x32xf32>
    %437 = vector.broadcast %436 : vector<1x32xf32> to vector<8x32xf32>
    %438 = arith.addf %434, %437 : vector<8x32xf32>
    %c0_222 = arith.constant 0 : index
    %c0_223 = arith.constant 0 : index
    %c160_224 = arith.constant 160 : index
    %439 = vector.load %arg2[%c0_222, %c0_223, %c160_224] : memref<2x32x320xf32, #tpu.memory_space<vmem>>, vector<1x32x64xf32>
    %440 = vector.shape_cast %439 : vector<1x32x64xf32> to vector<32x64xf32>
    %cst_225 = arith.constant dense<0.000000e+00> : vector<16x64xf32>
    %441 = tpu.matmul %366, %440, %cst_225 {dimension_numbers = #tpu.dot_dimension_numbers<[1], [0], [0], [1], [0, 0, 1, 1], [], []>} : vector<16x32xf32>, vector<32x64xf32>, vector<16x64xf32> -> vector<16x64xf32>
    %c0_226 = arith.constant 0 : index
    %c3_227 = arith.constant 3 : index
    %c0_228 = arith.constant 0 : index
    %442 = vector.load %arg4[%c0_226, %c3_227, %c0_228] : memref<2x16x128xf32, #tpu.memory_space<vmem>>, vector<1x1x64xf32>
    %443 = vector.shape_cast %442 : vector<1x1x64xf32> to vector<1x64xf32>
    %444 = vector.broadcast %443 : vector<1x64xf32> to vector<16x64xf32>
    %445 = arith.addf %441, %444 : vector<16x64xf32>
    %446 = vector.shape_cast %438 : vector<8x32xf32> to vector<8x4x8xf32>
    %447 = tpu.transpose %446, [1, 0, 2] : vector<8x4x8xf32> -> vector<4x8x8xf32>
    %448 = vector.shape_cast %445 : vector<16x64xf32> to vector<16x8x8xf32>
    %449 = tpu.transpose %448, [1, 0, 2] : vector<16x8x8xf32> -> vector<8x16x8xf32>
    %450 = vector.extract_strided_slice %449 {offsets = [0, 0, 0], sizes = [4, 16, 8], strides = [1, 1, 1]} : vector<8x16x8xf32> to vector<4x16x8xf32>
    %451 = vector.extract_strided_slice %449 {offsets = [4, 0, 0], sizes = [4, 16, 8], strides = [1, 1, 1]} : vector<8x16x8xf32> to vector<4x16x8xf32>
    %cst_229 = arith.constant dense<0.000000e+00> : vector<4x8x16xf32>
    %452 = tpu.matmul %447, %450, %cst_229 {dimension_numbers = #tpu.dot_dimension_numbers<[2], [2], [1], [1], [0, 0, 0, 1, 1, 1], [0], [0]>} : vector<4x8x8xf32>, vector<4x16x8xf32>, vector<4x8x16xf32> -> vector<4x8x16xf32>
    %cst_230 = arith.constant dense<0xFF800000> : vector<4x8xf32>
    %453 = vector.multi_reduction <maximumf>, %452, %cst_230 [2] : vector<4x8x16xf32> to vector<4x8xf32>
    %454 = vector.shape_cast %453 : vector<4x8xf32> to vector<4x8x1xf32>
    %455 = vector.broadcast %454 : vector<4x8x1xf32> to vector<4x8x16xf32>
    %456 = arith.subf %452, %455 : vector<4x8x16xf32>
    %457 = math.exp %456 : vector<4x8x16xf32>
    %cst_231 = arith.constant dense<0.000000e+00> : vector<4x8xf32>
    %458 = vector.multi_reduction <add>, %457, %cst_231 [2] : vector<4x8x16xf32> to vector<4x8xf32>
    %459 = vector.shape_cast %458 : vector<4x8xf32> to vector<4x8x1xf32>
    %460 = vector.broadcast %459 : vector<4x8x1xf32> to vector<4x8x16xf32>
    %461 = arith.divf %457, %460 : vector<4x8x16xf32>
    %cst_232 = arith.constant dense<0.000000e+00> : vector<4x8x8xf32>
    %462 = tpu.matmul %461, %451, %cst_232 {dimension_numbers = #tpu.dot_dimension_numbers<[2], [1], [1], [2], [0, 0, 0, 1, 1, 2], [0], [0]>} : vector<4x8x16xf32>, vector<4x16x8xf32>, vector<4x8x8xf32> -> vector<4x8x8xf32>
    %463 = tpu.transpose %462, [1, 0, 2] : vector<4x8x8xf32> -> vector<8x4x8xf32>
    %464 = vector.shape_cast %463 : vector<8x4x8xf32> to vector<8x32xf32>
    %c0_233 = arith.constant 0 : index
    %c0_234 = arith.constant 0 : index
    %c224_235 = arith.constant 224 : index
    %465 = vector.load %arg2[%c0_233, %c0_234, %c224_235] : memref<2x32x320xf32, #tpu.memory_space<vmem>>, vector<1x32x32xf32>
    %466 = vector.shape_cast %465 : vector<1x32x32xf32> to vector<32x32xf32>
    %cst_236 = arith.constant dense<0.000000e+00> : vector<8x32xf32>
    %467 = tpu.matmul %464, %466, %cst_236 {dimension_numbers = #tpu.dot_dimension_numbers<[1], [0], [0], [1], [0, 0, 1, 1], [], []>} : vector<8x32xf32>, vector<32x32xf32>, vector<8x32xf32> -> vector<8x32xf32>
    %c0_237 = arith.constant 0 : index
    %c4_238 = arith.constant 4 : index
    %c0_239 = arith.constant 0 : index
    %468 = vector.load %arg4[%c0_237, %c4_238, %c0_239] : memref<2x16x128xf32, #tpu.memory_space<vmem>>, vector<1x1x32xf32>
    %469 = vector.shape_cast %468 : vector<1x1x32xf32> to vector<1x32xf32>
    %470 = vector.broadcast %469 : vector<1x32xf32> to vector<8x32xf32>
    %471 = arith.addf %467, %470 : vector<8x32xf32>
    %472 = arith.addf %431, %471 : vector<8x32xf32>
    %c0_240 = arith.constant 0 : index
    %c9_241 = arith.constant 9 : index
    %c0_242 = arith.constant 0 : index
    %473 = vector.load %arg4[%c0_240, %c9_241, %c0_242] : memref<2x16x128xf32, #tpu.memory_space<vmem>>, vector<1x1x32xf32>
    %474 = vector.shape_cast %473 : vector<1x1x32xf32> to vector<1x32xf32>
    %c0_243 = arith.constant 0 : index
    %c10_244 = arith.constant 10 : index
    %c0_245 = arith.constant 0 : index
    %475 = vector.load %arg4[%c0_243, %c10_244, %c0_245] : memref<2x16x128xf32, #tpu.memory_space<vmem>>, vector<1x1x32xf32>
    %476 = vector.shape_cast %475 : vector<1x1x32xf32> to vector<1x32xf32>
    %cst_246 = arith.constant dense<0.000000e+00> : vector<8xf32>
    %477 = vector.multi_reduction <add>, %472, %cst_246 [1] : vector<8x32xf32> to vector<8xf32>
    %478 = vector.shape_cast %477 : vector<8xf32> to vector<8x1xf32>
    %cst_247 = arith.constant 3.200000e+01 : f32
    %479 = vector.broadcast %cst_247 : f32 to vector<8x1xf32>
    %480 = arith.divf %478, %479 : vector<8x1xf32>
    %481 = vector.broadcast %480 : vector<8x1xf32> to vector<8x32xf32>
    %482 = arith.subf %472, %481 : vector<8x32xf32>
    %483 = arith.mulf %482, %482 : vector<8x32xf32>
    %cst_248 = arith.constant dense<0.000000e+00> : vector<8xf32>
    %484 = vector.multi_reduction <add>, %483, %cst_248 [1] : vector<8x32xf32> to vector<8xf32>
    %485 = vector.shape_cast %484 : vector<8xf32> to vector<8x1xf32>
    %cst_249 = arith.constant 3.200000e+01 : f32
    %486 = vector.broadcast %cst_249 : f32 to vector<8x1xf32>
    %487 = arith.divf %485, %486 : vector<8x1xf32>
    %488 = vector.broadcast %480 : vector<8x1xf32> to vector<8x32xf32>
    %489 = arith.subf %472, %488 : vector<8x32xf32>
    %cst_250 = arith.constant 9.99999974E-6 : f32
    %490 = vector.broadcast %cst_250 : f32 to vector<8x1xf32>
    %491 = arith.addf %487, %490 : vector<8x1xf32>
    %492 = math.rsqrt %491 : vector<8x1xf32>
    %493 = vector.broadcast %492 : vector<8x1xf32> to vector<8x32xf32>
    %494 = arith.mulf %489, %493 : vector<8x32xf32>
    %495 = vector.broadcast %474 : vector<1x32xf32> to vector<8x32xf32>
    %496 = arith.mulf %494, %495 : vector<8x32xf32>
    %497 = vector.broadcast %476 : vector<1x32xf32> to vector<8x32xf32>
    %498 = arith.addf %496, %497 : vector<8x32xf32>
    %499 = tpu.transpose %461, [1, 0, 2] : vector<4x8x16xf32> -> vector<8x4x16xf32>
    %500 = vector.shape_cast %499 : vector<8x4x16xf32> to vector<8x64xf32>
    %c0_251 = arith.constant 0 : index
    %c0_252 = arith.constant 0 : index
    %c256_253 = arith.constant 256 : index
    %501 = vector.load %arg2[%c0_251, %c0_252, %c256_253] : memref<2x32x320xf32, #tpu.memory_space<vmem>>, vector<1x32x64xf32>
    %502 = vector.shape_cast %501 : vector<1x32x64xf32> to vector<32x64xf32>
    %cst_254 = arith.constant dense<0.000000e+00> : vector<8x64xf32>
    %503 = tpu.matmul %498, %502, %cst_254 {dimension_numbers = #tpu.dot_dimension_numbers<[1], [0], [0], [1], [0, 0, 1, 1], [], []>} : vector<8x32xf32>, vector<32x64xf32>, vector<8x64xf32> -> vector<8x64xf32>
    %c0_255 = arith.constant 0 : index
    %c5_256 = arith.constant 5 : index
    %c0_257 = arith.constant 0 : index
    %504 = vector.load %arg4[%c0_255, %c5_256, %c0_257] : memref<2x16x128xf32, #tpu.memory_space<vmem>>, vector<1x1x64xf32>
    %505 = vector.shape_cast %504 : vector<1x1x64xf32> to vector<1x64xf32>
    %506 = vector.broadcast %505 : vector<1x64xf32> to vector<8x64xf32>
    %507 = arith.addf %503, %506 : vector<8x64xf32>
    %cst_258 = arith.constant 0.000000e+00 : f32
    %508 = vector.broadcast %cst_258 : f32 to vector<8x64xf32>
    %509 = arith.maximumf %507, %508 : vector<8x64xf32>
    %c0_259 = arith.constant 0 : index
    %c0_260 = arith.constant 0 : index
    %c0_261 = arith.constant 0 : index
    %510 = vector.load %arg3[%c0_259, %c0_260, %c0_261] : memref<2x64x32xf32, #tpu.memory_space<vmem>>, vector<1x64x32xf32>
    %511 = vector.shape_cast %510 : vector<1x64x32xf32> to vector<64x32xf32>
    %cst_262 = arith.constant dense<0.000000e+00> : vector<8x32xf32>
    %512 = tpu.matmul %509, %511, %cst_262 {dimension_numbers = #tpu.dot_dimension_numbers<[1], [0], [0], [1], [0, 0, 1, 1], [], []>} : vector<8x64xf32>, vector<64x32xf32>, vector<8x32xf32> -> vector<8x32xf32>
    %c0_263 = arith.constant 0 : index
    %c6_264 = arith.constant 6 : index
    %c0_265 = arith.constant 0 : index
    %513 = vector.load %arg4[%c0_263, %c6_264, %c0_265] : memref<2x16x128xf32, #tpu.memory_space<vmem>>, vector<1x1x32xf32>
    %514 = vector.shape_cast %513 : vector<1x1x32xf32> to vector<1x32xf32>
    %515 = vector.broadcast %514 : vector<1x32xf32> to vector<8x32xf32>
    %516 = arith.addf %512, %515 : vector<8x32xf32>
    %517 = arith.addf %498, %516 : vector<8x32xf32>
    %c0_266 = arith.constant 0 : index
    %c11_267 = arith.constant 11 : index
    %c0_268 = arith.constant 0 : index
    %518 = vector.load %arg4[%c0_266, %c11_267, %c0_268] : memref<2x16x128xf32, #tpu.memory_space<vmem>>, vector<1x1x32xf32>
    %519 = vector.shape_cast %518 : vector<1x1x32xf32> to vector<1x32xf32>
    %c0_269 = arith.constant 0 : index
    %c12_270 = arith.constant 12 : index
    %c0_271 = arith.constant 0 : index
    %520 = vector.load %arg4[%c0_269, %c12_270, %c0_271] : memref<2x16x128xf32, #tpu.memory_space<vmem>>, vector<1x1x32xf32>
    %521 = vector.shape_cast %520 : vector<1x1x32xf32> to vector<1x32xf32>
    %cst_272 = arith.constant dense<0.000000e+00> : vector<8xf32>
    %522 = vector.multi_reduction <add>, %517, %cst_272 [1] : vector<8x32xf32> to vector<8xf32>
    %523 = vector.shape_cast %522 : vector<8xf32> to vector<8x1xf32>
    %cst_273 = arith.constant 3.200000e+01 : f32
    %524 = vector.broadcast %cst_273 : f32 to vector<8x1xf32>
    %525 = arith.divf %523, %524 : vector<8x1xf32>
    %526 = vector.broadcast %525 : vector<8x1xf32> to vector<8x32xf32>
    %527 = arith.subf %517, %526 : vector<8x32xf32>
    %528 = arith.mulf %527, %527 : vector<8x32xf32>
    %cst_274 = arith.constant dense<0.000000e+00> : vector<8xf32>
    %529 = vector.multi_reduction <add>, %528, %cst_274 [1] : vector<8x32xf32> to vector<8xf32>
    %530 = vector.shape_cast %529 : vector<8xf32> to vector<8x1xf32>
    %cst_275 = arith.constant 3.200000e+01 : f32
    %531 = vector.broadcast %cst_275 : f32 to vector<8x1xf32>
    %532 = arith.divf %530, %531 : vector<8x1xf32>
    %533 = vector.broadcast %525 : vector<8x1xf32> to vector<8x32xf32>
    %534 = arith.subf %517, %533 : vector<8x32xf32>
    %cst_276 = arith.constant 9.99999974E-6 : f32
    %535 = vector.broadcast %cst_276 : f32 to vector<8x1xf32>
    %536 = arith.addf %532, %535 : vector<8x1xf32>
    %537 = math.rsqrt %536 : vector<8x1xf32>
    %538 = vector.broadcast %537 : vector<8x1xf32> to vector<8x32xf32>
    %539 = arith.mulf %534, %538 : vector<8x32xf32>
    %540 = vector.broadcast %519 : vector<1x32xf32> to vector<8x32xf32>
    %541 = arith.mulf %539, %540 : vector<8x32xf32>
    %542 = vector.broadcast %521 : vector<1x32xf32> to vector<8x32xf32>
    %543 = arith.addf %541, %542 : vector<8x32xf32>
    %c1_277 = arith.constant 1 : index
    %c0_278 = arith.constant 0 : index
    %c0_279 = arith.constant 0 : index
    %544 = vector.load %arg2[%c1_277, %c0_278, %c0_279] : memref<2x32x320xf32, #tpu.memory_space<vmem>>, vector<1x32x96xf32>
    %545 = vector.shape_cast %544 : vector<1x32x96xf32> to vector<32x96xf32>
    %cst_280 = arith.constant dense<0.000000e+00> : vector<8x96xf32>
    %546 = tpu.matmul %543, %545, %cst_280 {dimension_numbers = #tpu.dot_dimension_numbers<[1], [0], [0], [1], [0, 0, 1, 1], [], []>} : vector<8x32xf32>, vector<32x96xf32>, vector<8x96xf32> -> vector<8x96xf32>
    %c1_281 = arith.constant 1 : index
    %c0_282 = arith.constant 0 : index
    %c0_283 = arith.constant 0 : index
    %547 = vector.load %arg4[%c1_281, %c0_282, %c0_283] : memref<2x16x128xf32, #tpu.memory_space<vmem>>, vector<1x1x96xf32>
    %548 = vector.shape_cast %547 : vector<1x1x96xf32> to vector<1x96xf32>
    %549 = vector.broadcast %548 : vector<1x96xf32> to vector<8x96xf32>
    %550 = arith.addf %546, %549 : vector<8x96xf32>
    %551 = vector.shape_cast %550 : vector<8x96xf32> to vector<8x12x8xf32>
    %552 = tpu.transpose %551, [1, 0, 2] : vector<8x12x8xf32> -> vector<12x8x8xf32>
    %553 = vector.extract_strided_slice %552 {offsets = [0, 0, 0], sizes = [4, 8, 8], strides = [1, 1, 1]} : vector<12x8x8xf32> to vector<4x8x8xf32>
    %554 = vector.extract_strided_slice %552 {offsets = [4, 0, 0], sizes = [4, 8, 8], strides = [1, 1, 1]} : vector<12x8x8xf32> to vector<4x8x8xf32>
    %555 = vector.extract_strided_slice %552 {offsets = [8, 0, 0], sizes = [4, 8, 8], strides = [1, 1, 1]} : vector<12x8x8xf32> to vector<4x8x8xf32>
    %cst_284 = arith.constant dense<0.000000e+00> : vector<4x8x8xf32>
    %556 = tpu.matmul %553, %554, %cst_284 {dimension_numbers = #tpu.dot_dimension_numbers<[2], [2], [1], [1], [0, 0, 0, 1, 1, 1], [0], [0]>} : vector<4x8x8xf32>, vector<4x8x8xf32>, vector<4x8x8xf32> -> vector<4x8x8xf32>
    %557 = vector.shape_cast %368 : vector<8x8xf32> to vector<1x8x8xf32>
    %558 = vector.broadcast %557 : vector<1x8x8xf32> to vector<4x8x8xf32>
    %559 = arith.addf %556, %558 : vector<4x8x8xf32>
    %cst_285 = arith.constant dense<0xFF800000> : vector<4x8xf32>
    %560 = vector.multi_reduction <maximumf>, %559, %cst_285 [2] : vector<4x8x8xf32> to vector<4x8xf32>
    %561 = vector.shape_cast %560 : vector<4x8xf32> to vector<4x8x1xf32>
    %562 = vector.broadcast %561 : vector<4x8x1xf32> to vector<4x8x8xf32>
    %563 = arith.subf %559, %562 : vector<4x8x8xf32>
    %564 = math.exp %563 : vector<4x8x8xf32>
    %cst_286 = arith.constant dense<0.000000e+00> : vector<4x8xf32>
    %565 = vector.multi_reduction <add>, %564, %cst_286 [2] : vector<4x8x8xf32> to vector<4x8xf32>
    %566 = vector.shape_cast %565 : vector<4x8xf32> to vector<4x8x1xf32>
    %567 = tpu.reciprocal %566 {approx = true} : vector<4x8x1xf32> -> vector<4x8x1xf32>
    %568 = vector.broadcast %567 : vector<4x8x1xf32> to vector<4x8x8xf32>
    %569 = arith.mulf %564, %568 : vector<4x8x8xf32>
    %cst_287 = arith.constant dense<0.000000e+00> : vector<4x8x8xf32>
    %570 = tpu.matmul %569, %555, %cst_287 {dimension_numbers = #tpu.dot_dimension_numbers<[2], [1], [1], [2], [0, 0, 0, 1, 1, 2], [0], [0]>} : vector<4x8x8xf32>, vector<4x8x8xf32>, vector<4x8x8xf32> -> vector<4x8x8xf32>
    %571 = tpu.transpose %570, [1, 0, 2] : vector<4x8x8xf32> -> vector<8x4x8xf32>
    %572 = vector.shape_cast %571 : vector<8x4x8xf32> to vector<8x32xf32>
    %c1_288 = arith.constant 1 : index
    %c0_289 = arith.constant 0 : index
    %c96_290 = arith.constant 96 : index
    %573 = vector.load %arg2[%c1_288, %c0_289, %c96_290] : memref<2x32x320xf32, #tpu.memory_space<vmem>>, vector<1x32x32xf32>
    %574 = vector.shape_cast %573 : vector<1x32x32xf32> to vector<32x32xf32>
    %cst_291 = arith.constant dense<0.000000e+00> : vector<8x32xf32>
    %575 = tpu.matmul %572, %574, %cst_291 {dimension_numbers = #tpu.dot_dimension_numbers<[1], [0], [0], [1], [0, 0, 1, 1], [], []>} : vector<8x32xf32>, vector<32x32xf32>, vector<8x32xf32> -> vector<8x32xf32>
    %c1_292 = arith.constant 1 : index
    %c1_293 = arith.constant 1 : index
    %c0_294 = arith.constant 0 : index
    %576 = vector.load %arg4[%c1_292, %c1_293, %c0_294] : memref<2x16x128xf32, #tpu.memory_space<vmem>>, vector<1x1x32xf32>
    %577 = vector.shape_cast %576 : vector<1x1x32xf32> to vector<1x32xf32>
    %578 = vector.broadcast %577 : vector<1x32xf32> to vector<8x32xf32>
    %579 = arith.addf %575, %578 : vector<8x32xf32>
    %580 = arith.addf %543, %579 : vector<8x32xf32>
    %c1_295 = arith.constant 1 : index
    %c7_296 = arith.constant 7 : index
    %c0_297 = arith.constant 0 : index
    %581 = vector.load %arg4[%c1_295, %c7_296, %c0_297] : memref<2x16x128xf32, #tpu.memory_space<vmem>>, vector<1x1x32xf32>
    %582 = vector.shape_cast %581 : vector<1x1x32xf32> to vector<1x32xf32>
    %c1_298 = arith.constant 1 : index
    %c8_299 = arith.constant 8 : index
    %c0_300 = arith.constant 0 : index
    %583 = vector.load %arg4[%c1_298, %c8_299, %c0_300] : memref<2x16x128xf32, #tpu.memory_space<vmem>>, vector<1x1x32xf32>
    %584 = vector.shape_cast %583 : vector<1x1x32xf32> to vector<1x32xf32>
    %cst_301 = arith.constant dense<0.000000e+00> : vector<8xf32>
    %585 = vector.multi_reduction <add>, %580, %cst_301 [1] : vector<8x32xf32> to vector<8xf32>
    %586 = vector.shape_cast %585 : vector<8xf32> to vector<8x1xf32>
    %cst_302 = arith.constant 3.200000e+01 : f32
    %587 = vector.broadcast %cst_302 : f32 to vector<8x1xf32>
    %588 = arith.divf %586, %587 : vector<8x1xf32>
    %589 = vector.broadcast %588 : vector<8x1xf32> to vector<8x32xf32>
    %590 = arith.subf %580, %589 : vector<8x32xf32>
    %591 = arith.mulf %590, %590 : vector<8x32xf32>
    %cst_303 = arith.constant dense<0.000000e+00> : vector<8xf32>
    %592 = vector.multi_reduction <add>, %591, %cst_303 [1] : vector<8x32xf32> to vector<8xf32>
    %593 = vector.shape_cast %592 : vector<8xf32> to vector<8x1xf32>
    %cst_304 = arith.constant 3.200000e+01 : f32
    %594 = vector.broadcast %cst_304 : f32 to vector<8x1xf32>
    %595 = arith.divf %593, %594 : vector<8x1xf32>
    %596 = vector.broadcast %588 : vector<8x1xf32> to vector<8x32xf32>
    %597 = arith.subf %580, %596 : vector<8x32xf32>
    %cst_305 = arith.constant 9.99999974E-6 : f32
    %598 = vector.broadcast %cst_305 : f32 to vector<8x1xf32>
    %599 = arith.addf %595, %598 : vector<8x1xf32>
    %600 = math.rsqrt %599 : vector<8x1xf32>
    %601 = vector.broadcast %600 : vector<8x1xf32> to vector<8x32xf32>
    %602 = arith.mulf %597, %601 : vector<8x32xf32>
    %603 = vector.broadcast %582 : vector<1x32xf32> to vector<8x32xf32>
    %604 = arith.mulf %602, %603 : vector<8x32xf32>
    %605 = vector.broadcast %584 : vector<1x32xf32> to vector<8x32xf32>
    %606 = arith.addf %604, %605 : vector<8x32xf32>
    %c1_306 = arith.constant 1 : index
    %c0_307 = arith.constant 0 : index
    %c128_308 = arith.constant 128 : index
    %607 = vector.load %arg2[%c1_306, %c0_307, %c128_308] : memref<2x32x320xf32, #tpu.memory_space<vmem>>, vector<1x32x32xf32>
    %608 = vector.shape_cast %607 : vector<1x32x32xf32> to vector<32x32xf32>
    %cst_309 = arith.constant dense<0.000000e+00> : vector<8x32xf32>
    %609 = tpu.matmul %606, %608, %cst_309 {dimension_numbers = #tpu.dot_dimension_numbers<[1], [0], [0], [1], [0, 0, 1, 1], [], []>} : vector<8x32xf32>, vector<32x32xf32>, vector<8x32xf32> -> vector<8x32xf32>
    %c1_310 = arith.constant 1 : index
    %c2_311 = arith.constant 2 : index
    %c0_312 = arith.constant 0 : index
    %610 = vector.load %arg4[%c1_310, %c2_311, %c0_312] : memref<2x16x128xf32, #tpu.memory_space<vmem>>, vector<1x1x32xf32>
    %611 = vector.shape_cast %610 : vector<1x1x32xf32> to vector<1x32xf32>
    %612 = vector.broadcast %611 : vector<1x32xf32> to vector<8x32xf32>
    %613 = arith.addf %609, %612 : vector<8x32xf32>
    %c1_313 = arith.constant 1 : index
    %c0_314 = arith.constant 0 : index
    %c160_315 = arith.constant 160 : index
    %614 = vector.load %arg2[%c1_313, %c0_314, %c160_315] : memref<2x32x320xf32, #tpu.memory_space<vmem>>, vector<1x32x64xf32>
    %615 = vector.shape_cast %614 : vector<1x32x64xf32> to vector<32x64xf32>
    %cst_316 = arith.constant dense<0.000000e+00> : vector<16x64xf32>
    %616 = tpu.matmul %366, %615, %cst_316 {dimension_numbers = #tpu.dot_dimension_numbers<[1], [0], [0], [1], [0, 0, 1, 1], [], []>} : vector<16x32xf32>, vector<32x64xf32>, vector<16x64xf32> -> vector<16x64xf32>
    %c1_317 = arith.constant 1 : index
    %c3_318 = arith.constant 3 : index
    %c0_319 = arith.constant 0 : index
    %617 = vector.load %arg4[%c1_317, %c3_318, %c0_319] : memref<2x16x128xf32, #tpu.memory_space<vmem>>, vector<1x1x64xf32>
    %618 = vector.shape_cast %617 : vector<1x1x64xf32> to vector<1x64xf32>
    %619 = vector.broadcast %618 : vector<1x64xf32> to vector<16x64xf32>
    %620 = arith.addf %616, %619 : vector<16x64xf32>
    %621 = vector.shape_cast %613 : vector<8x32xf32> to vector<8x4x8xf32>
    %622 = tpu.transpose %621, [1, 0, 2] : vector<8x4x8xf32> -> vector<4x8x8xf32>
    %623 = vector.shape_cast %620 : vector<16x64xf32> to vector<16x8x8xf32>
    %624 = tpu.transpose %623, [1, 0, 2] : vector<16x8x8xf32> -> vector<8x16x8xf32>
    %625 = vector.extract_strided_slice %624 {offsets = [0, 0, 0], sizes = [4, 16, 8], strides = [1, 1, 1]} : vector<8x16x8xf32> to vector<4x16x8xf32>
    %626 = vector.extract_strided_slice %624 {offsets = [4, 0, 0], sizes = [4, 16, 8], strides = [1, 1, 1]} : vector<8x16x8xf32> to vector<4x16x8xf32>
    %cst_320 = arith.constant dense<0.000000e+00> : vector<4x8x16xf32>
    %627 = tpu.matmul %622, %625, %cst_320 {dimension_numbers = #tpu.dot_dimension_numbers<[2], [2], [1], [1], [0, 0, 0, 1, 1, 1], [0], [0]>} : vector<4x8x8xf32>, vector<4x16x8xf32>, vector<4x8x16xf32> -> vector<4x8x16xf32>
    %cst_321 = arith.constant dense<0xFF800000> : vector<4x8xf32>
    %628 = vector.multi_reduction <maximumf>, %627, %cst_321 [2] : vector<4x8x16xf32> to vector<4x8xf32>
    %629 = vector.shape_cast %628 : vector<4x8xf32> to vector<4x8x1xf32>
    %630 = vector.broadcast %629 : vector<4x8x1xf32> to vector<4x8x16xf32>
    %631 = arith.subf %627, %630 : vector<4x8x16xf32>
    %632 = math.exp %631 : vector<4x8x16xf32>
    %cst_322 = arith.constant dense<0.000000e+00> : vector<4x8xf32>
    %633 = vector.multi_reduction <add>, %632, %cst_322 [2] : vector<4x8x16xf32> to vector<4x8xf32>
    %634 = vector.shape_cast %633 : vector<4x8xf32> to vector<4x8x1xf32>
    %635 = vector.broadcast %634 : vector<4x8x1xf32> to vector<4x8x16xf32>
    %636 = arith.divf %632, %635 : vector<4x8x16xf32>
    %cst_323 = arith.constant dense<0.000000e+00> : vector<4x8x8xf32>
    %637 = tpu.matmul %636, %626, %cst_323 {dimension_numbers = #tpu.dot_dimension_numbers<[2], [1], [1], [2], [0, 0, 0, 1, 1, 2], [0], [0]>} : vector<4x8x16xf32>, vector<4x16x8xf32>, vector<4x8x8xf32> -> vector<4x8x8xf32>
    %638 = tpu.transpose %637, [1, 0, 2] : vector<4x8x8xf32> -> vector<8x4x8xf32>
    %639 = vector.shape_cast %638 : vector<8x4x8xf32> to vector<8x32xf32>
    %c1_324 = arith.constant 1 : index
    %c0_325 = arith.constant 0 : index
    %c224_326 = arith.constant 224 : index
    %640 = vector.load %arg2[%c1_324, %c0_325, %c224_326] : memref<2x32x320xf32, #tpu.memory_space<vmem>>, vector<1x32x32xf32>
    %641 = vector.shape_cast %640 : vector<1x32x32xf32> to vector<32x32xf32>
    %cst_327 = arith.constant dense<0.000000e+00> : vector<8x32xf32>
    %642 = tpu.matmul %639, %641, %cst_327 {dimension_numbers = #tpu.dot_dimension_numbers<[1], [0], [0], [1], [0, 0, 1, 1], [], []>} : vector<8x32xf32>, vector<32x32xf32>, vector<8x32xf32> -> vector<8x32xf32>
    %c1_328 = arith.constant 1 : index
    %c4_329 = arith.constant 4 : index
    %c0_330 = arith.constant 0 : index
    %643 = vector.load %arg4[%c1_328, %c4_329, %c0_330] : memref<2x16x128xf32, #tpu.memory_space<vmem>>, vector<1x1x32xf32>
    %644 = vector.shape_cast %643 : vector<1x1x32xf32> to vector<1x32xf32>
    %645 = vector.broadcast %644 : vector<1x32xf32> to vector<8x32xf32>
    %646 = arith.addf %642, %645 : vector<8x32xf32>
    %647 = arith.addf %606, %646 : vector<8x32xf32>
    %c1_331 = arith.constant 1 : index
    %c9_332 = arith.constant 9 : index
    %c0_333 = arith.constant 0 : index
    %648 = vector.load %arg4[%c1_331, %c9_332, %c0_333] : memref<2x16x128xf32, #tpu.memory_space<vmem>>, vector<1x1x32xf32>
    %649 = vector.shape_cast %648 : vector<1x1x32xf32> to vector<1x32xf32>
    %c1_334 = arith.constant 1 : index
    %c10_335 = arith.constant 10 : index
    %c0_336 = arith.constant 0 : index
    %650 = vector.load %arg4[%c1_334, %c10_335, %c0_336] : memref<2x16x128xf32, #tpu.memory_space<vmem>>, vector<1x1x32xf32>
    %651 = vector.shape_cast %650 : vector<1x1x32xf32> to vector<1x32xf32>
    %cst_337 = arith.constant dense<0.000000e+00> : vector<8xf32>
    %652 = vector.multi_reduction <add>, %647, %cst_337 [1] : vector<8x32xf32> to vector<8xf32>
    %653 = vector.shape_cast %652 : vector<8xf32> to vector<8x1xf32>
    %cst_338 = arith.constant 3.200000e+01 : f32
    %654 = vector.broadcast %cst_338 : f32 to vector<8x1xf32>
    %655 = arith.divf %653, %654 : vector<8x1xf32>
    %656 = vector.broadcast %655 : vector<8x1xf32> to vector<8x32xf32>
    %657 = arith.subf %647, %656 : vector<8x32xf32>
    %658 = arith.mulf %657, %657 : vector<8x32xf32>
    %cst_339 = arith.constant dense<0.000000e+00> : vector<8xf32>
    %659 = vector.multi_reduction <add>, %658, %cst_339 [1] : vector<8x32xf32> to vector<8xf32>
    %660 = vector.shape_cast %659 : vector<8xf32> to vector<8x1xf32>
    %cst_340 = arith.constant 3.200000e+01 : f32
    %661 = vector.broadcast %cst_340 : f32 to vector<8x1xf32>
    %662 = arith.divf %660, %661 : vector<8x1xf32>
    %663 = vector.broadcast %655 : vector<8x1xf32> to vector<8x32xf32>
    %664 = arith.subf %647, %663 : vector<8x32xf32>
    %cst_341 = arith.constant 9.99999974E-6 : f32
    %665 = vector.broadcast %cst_341 : f32 to vector<8x1xf32>
    %666 = arith.addf %662, %665 : vector<8x1xf32>
    %667 = math.rsqrt %666 : vector<8x1xf32>
    %668 = vector.broadcast %667 : vector<8x1xf32> to vector<8x32xf32>
    %669 = arith.mulf %664, %668 : vector<8x32xf32>
    %670 = vector.broadcast %649 : vector<1x32xf32> to vector<8x32xf32>
    %671 = arith.mulf %669, %670 : vector<8x32xf32>
    %672 = vector.broadcast %651 : vector<1x32xf32> to vector<8x32xf32>
    %673 = arith.addf %671, %672 : vector<8x32xf32>
    %674 = tpu.transpose %636, [1, 0, 2] : vector<4x8x16xf32> -> vector<8x4x16xf32>
    %675 = vector.shape_cast %674 : vector<8x4x16xf32> to vector<8x64xf32>
    %c1_342 = arith.constant 1 : index
    %c0_343 = arith.constant 0 : index
    %c256_344 = arith.constant 256 : index
    %676 = vector.load %arg2[%c1_342, %c0_343, %c256_344] : memref<2x32x320xf32, #tpu.memory_space<vmem>>, vector<1x32x64xf32>
    %677 = vector.shape_cast %676 : vector<1x32x64xf32> to vector<32x64xf32>
    %cst_345 = arith.constant dense<0.000000e+00> : vector<8x64xf32>
    %678 = tpu.matmul %673, %677, %cst_345 {dimension_numbers = #tpu.dot_dimension_numbers<[1], [0], [0], [1], [0, 0, 1, 1], [], []>} : vector<8x32xf32>, vector<32x64xf32>, vector<8x64xf32> -> vector<8x64xf32>
    %c1_346 = arith.constant 1 : index
    %c5_347 = arith.constant 5 : index
    %c0_348 = arith.constant 0 : index
    %679 = vector.load %arg4[%c1_346, %c5_347, %c0_348] : memref<2x16x128xf32, #tpu.memory_space<vmem>>, vector<1x1x64xf32>
    %680 = vector.shape_cast %679 : vector<1x1x64xf32> to vector<1x64xf32>
    %681 = vector.broadcast %680 : vector<1x64xf32> to vector<8x64xf32>
    %682 = arith.addf %678, %681 : vector<8x64xf32>
    %cst_349 = arith.constant 0.000000e+00 : f32
    %683 = vector.broadcast %cst_349 : f32 to vector<8x64xf32>
    %684 = arith.maximumf %682, %683 : vector<8x64xf32>
    %c1_350 = arith.constant 1 : index
    %c0_351 = arith.constant 0 : index
    %c0_352 = arith.constant 0 : index
    %685 = vector.load %arg3[%c1_350, %c0_351, %c0_352] : memref<2x64x32xf32, #tpu.memory_space<vmem>>, vector<1x64x32xf32>
    %686 = vector.shape_cast %685 : vector<1x64x32xf32> to vector<64x32xf32>
    %cst_353 = arith.constant dense<0.000000e+00> : vector<8x32xf32>
    %687 = tpu.matmul %684, %686, %cst_353 {dimension_numbers = #tpu.dot_dimension_numbers<[1], [0], [0], [1], [0, 0, 1, 1], [], []>} : vector<8x64xf32>, vector<64x32xf32>, vector<8x32xf32> -> vector<8x32xf32>
    %c1_354 = arith.constant 1 : index
    %c6_355 = arith.constant 6 : index
    %c0_356 = arith.constant 0 : index
    %688 = vector.load %arg4[%c1_354, %c6_355, %c0_356] : memref<2x16x128xf32, #tpu.memory_space<vmem>>, vector<1x1x32xf32>
    %689 = vector.shape_cast %688 : vector<1x1x32xf32> to vector<1x32xf32>
    %690 = vector.broadcast %689 : vector<1x32xf32> to vector<8x32xf32>
    %691 = arith.addf %687, %690 : vector<8x32xf32>
    %692 = arith.addf %673, %691 : vector<8x32xf32>
    %c1_357 = arith.constant 1 : index
    %c11_358 = arith.constant 11 : index
    %c0_359 = arith.constant 0 : index
    %693 = vector.load %arg4[%c1_357, %c11_358, %c0_359] : memref<2x16x128xf32, #tpu.memory_space<vmem>>, vector<1x1x32xf32>
    %694 = vector.shape_cast %693 : vector<1x1x32xf32> to vector<1x32xf32>
    %c1_360 = arith.constant 1 : index
    %c12_361 = arith.constant 12 : index
    %c0_362 = arith.constant 0 : index
    %695 = vector.load %arg4[%c1_360, %c12_361, %c0_362] : memref<2x16x128xf32, #tpu.memory_space<vmem>>, vector<1x1x32xf32>
    %696 = vector.shape_cast %695 : vector<1x1x32xf32> to vector<1x32xf32>
    %cst_363 = arith.constant dense<0.000000e+00> : vector<8xf32>
    %697 = vector.multi_reduction <add>, %692, %cst_363 [1] : vector<8x32xf32> to vector<8xf32>
    %698 = vector.shape_cast %697 : vector<8xf32> to vector<8x1xf32>
    %cst_364 = arith.constant 3.200000e+01 : f32
    %699 = vector.broadcast %cst_364 : f32 to vector<8x1xf32>
    %700 = arith.divf %698, %699 : vector<8x1xf32>
    %701 = vector.broadcast %700 : vector<8x1xf32> to vector<8x32xf32>
    %702 = arith.subf %692, %701 : vector<8x32xf32>
    %703 = arith.mulf %702, %702 : vector<8x32xf32>
    %cst_365 = arith.constant dense<0.000000e+00> : vector<8xf32>
    %704 = vector.multi_reduction <add>, %703, %cst_365 [1] : vector<8x32xf32> to vector<8xf32>
    %705 = vector.shape_cast %704 : vector<8xf32> to vector<8x1xf32>
    %cst_366 = arith.constant 3.200000e+01 : f32
    %706 = vector.broadcast %cst_366 : f32 to vector<8x1xf32>
    %707 = arith.divf %705, %706 : vector<8x1xf32>
    %708 = vector.broadcast %700 : vector<8x1xf32> to vector<8x32xf32>
    %709 = arith.subf %692, %708 : vector<8x32xf32>
    %cst_367 = arith.constant 9.99999974E-6 : f32
    %710 = vector.broadcast %cst_367 : f32 to vector<8x1xf32>
    %711 = arith.addf %707, %710 : vector<8x1xf32>
    %712 = math.rsqrt %711 : vector<8x1xf32>
    %713 = vector.broadcast %712 : vector<8x1xf32> to vector<8x32xf32>
    %714 = arith.mulf %709, %713 : vector<8x32xf32>
    %715 = vector.broadcast %694 : vector<1x32xf32> to vector<8x32xf32>
    %716 = arith.mulf %714, %715 : vector<8x32xf32>
    %717 = vector.broadcast %696 : vector<1x32xf32> to vector<8x32xf32>
    %718 = arith.addf %716, %717 : vector<8x32xf32>
    %c1_368 = arith.constant 1 : index
    %c0_369 = arith.constant 0 : index
    %c0_370 = arith.constant 0 : index
    %719 = vector.load %arg5[%c1_368, %c0_369, %c0_370] : memref<2x8x32xf32, #tpu.memory_space<vmem>>, vector<1x8x32xf32>
    %720 = vector.shape_cast %719 : vector<1x8x32xf32> to vector<8x32xf32>
    %721 = vector.shape_cast %718 : vector<8x32xf32> to vector<1x8x32xf32>
    tpu.vector_store %arg5[%c1_368, %c0_369, %c0_370], %721 {strides = array<i32>} : memref<2x8x32xf32, #tpu.memory_space<vmem>>, vector<1x8x32xf32>,
    %722 = tpu.concatenate %500, %675 in 1 : vector<8x64xf32>, vector<8x64xf32> -> vector<8x128xf32>
    %c1_371 = arith.constant 1 : index
    %c0_372 = arith.constant 0 : index
    %c0_373 = arith.constant 0 : index
    %723 = vector.load %arg6[%c1_371, %c0_372, %c0_373] : memref<2x8x128xf32, #tpu.memory_space<vmem>>, vector<1x8x128xf32>
    %724 = vector.shape_cast %723 : vector<1x8x128xf32> to vector<8x128xf32>
    %725 = vector.shape_cast %722 : vector<8x128xf32> to vector<1x8x128xf32>
    tpu.vector_store %arg6[%c1_371, %c0_372, %c0_373], %725 {strides = array<i32>} : memref<2x8x128xf32, #tpu.memory_space<vmem>>, vector<1x8x128xf32>,
    return
  }
  func.func @transform_0(%arg0: i32) -> (i32, i32, i32) {
    %c0_i32 = arith.constant 0 : i32
    %c0_i32_0 = arith.constant 0 : i32
    %c0_i32_1 = arith.constant 0 : i32
    return %arg0, %c0_i32, %c0_i32_0 : i32, i32, i32
  }
  func.func @transform_1(%arg0: i32) -> (i32, i32, i32) {
    %c0_i32 = arith.constant 0 : i32
    %c0_i32_0 = arith.constant 0 : i32
    %c0_i32_1 = arith.constant 0 : i32
    %c0_i32_2 = arith.constant 0 : i32
    return %c0_i32, %c0_i32_0, %c0_i32_1 : i32, i32, i32
  }
  func.func @transform_2(%arg0: i32) -> (i32, i32, i32) {
    %c0_i32 = arith.constant 0 : i32
    %c0_i32_0 = arith.constant 0 : i32
    %c0_i32_1 = arith.constant 0 : i32
    %c0_i32_2 = arith.constant 0 : i32
    return %c0_i32, %c0_i32_0, %c0_i32_1 : i32, i32, i32
  }
  func.func @transform_3(%arg0: i32) -> (i32, i32, i32) {
    %c0_i32 = arith.constant 0 : i32
    %c0_i32_0 = arith.constant 0 : i32
    %c0_i32_1 = arith.constant 0 : i32
    %c0_i32_2 = arith.constant 0 : i32
    return %c0_i32, %c0_i32_0, %c0_i32_1 : i32, i32, i32
  }
  func.func @transform_4(%arg0: i32) -> (i32, i32, i32) {
    %c0_i32 = arith.constant 0 : i32
    %c0_i32_0 = arith.constant 0 : i32
    %c0_i32_1 = arith.constant 0 : i32
    return %arg0, %c0_i32, %c0_i32_0 : i32, i32, i32
  }
  func.func @transform_5(%arg0: i32) -> (i32, i32, i32) {
    %c0_i32 = arith.constant 0 : i32
    %c0_i32_0 = arith.constant 0 : i32
    %c0_i32_1 = arith.constant 0 : i32
    return %arg0, %c0_i32, %c0_i32_0 : i32, i32, i32
  }
}

</mosaic_0001>

<bundles_post_ra>
// kernel: decoder_forward.1
= control target key start
LH: loop header
LB: loop body
LE: loop exit
PB: predicated region body
PF: predicated region fallthrough
CT: control target
= control target key end

     0   :  { %vm29_vm0 = vcmask 261120   ;;  %s9618_s30 = smov 88   ;;  %s9619_s6 = smov 112   ;;  %v9626_v12 = vmov 1983009808   ;;  %vm88_vm1 = vcmask 1047556   ;;  %s13103_s1 = inlined_call_operand.vmem [shape: f32[2,32,320], index: 1, kind: input, shape index: {}]   ;;  %s13104_s0 = inlined_call_operand.vmem [shape: f32[2,32,32], index: 0, kind: input, shape index: {}]   ;;  %s13105_s3 = inlined_call_operand.vmem [shape: f32[2,16,128], index: 3, kind: input, shape index: {}]   ;;  %s13106_s2 = inlined_call_operand.vmem [shape: f32[2,64,32], index: 2, kind: input, shape index: {}]   ;;  %s13107_s4 = inlined_call_operand.vmem [shape: f32[2,8,32], index: 4, kind: output, shape index: {0}]   ;;  %s13108_s5 = inlined_call_operand.vmem [shape: f32[2,8,128], index: 5, kind: output, shape index: {1}]  }
   0x1   :  { %v9669_v0 = vld [vmem:[%s13103_s1 + $0x48] sm:$0xff]  ;;  %v9674_v1 = vld [vmem:[%s13103_s1 + $0x30] sm:$0xff]  ;;  %v9680_v2 = vld [vmem:[%s13103_s1 + $0x18] sm:$0xff]  ;;  %s9620_s7 = smov 104   ;;  %s9621_s8 = smov 80   ;;  %v93_v13 = vunpack.c.l.s4 %v9626_v12  ;;  %vm422_vm2 = vcmask 64512  }
   0x2   :  { %45 = vmatpush.msra.mxu0 %v9669_v0  ;;  %v9685_v3 = vld [vmem:[%s13103_s1] sm:$0xff]  ;;  %s9622_s9 = smov 72   ;;  %s9623_s10 = smov 120   ;;  %v9627_v26 = vmov 1934713408   ;;  %vm786_vm3 = vcmask 130048  }
   0x3   :  { %v9691_v4 = vld [vmem:[%s13104_s0] sm:$0xff]  ;;  %s9624_s11 = smov 64   ;;  %s9625_s12 = smov 96   ;;  %v9720_v15 = vunpack.c.0.s8 %v93_v13  ;;  %v141_v27 = vunpack.c.l.s4 %v9627_v26  ;;  %vm788_vm4 = vcmask 195584  }
   0x4   :  { %46 = vmatpush.msra.mxu0 %v9674_v1  ;;  %v9403_v5 = vld [vmem:[%s13105_s3] ss:$0 sm:$0xff]  ;;  %s9628_s15 = smov 48   ;;  %s9629_s16 = smov 40  }
   0x5   :  { %v9733_v38 = vunpack.c.0.s8 %v141_v27  ;;  %s9630_s17 = smov 56   ;;  %s9631_s18 = smov 32  }
   0x6   :  { %47 = vmatpush.msra.mxu0 %v9680_v2  ;;  %s9632_s19 = smov 16   ;;  %s9633_s20 = smov 24  }
   0x7   :  { %s9634_s21 = smov 8  }
   0x8   :  { %48 = vmatpush.msra.mxu0 %v9685_v3 }
   0x9   :  { %9033 = vmatmul.msk.f32.vlgmr.msra.gmra.mxu0 %vm29_vm0, %v9691_v4 }
  0x86   :  { %v50_v6 = vpop.f32.mrf.mxu0 }
  0x87   :  { %v9700_v7 = vadd.f32 %v9403_v5, %v50_v6 }
  0x89   :  { %66 = vrot.lane.b32.xlu2 %v9700_v7, %s9618_s30  ;;  %57 = vrot.lane.b32.xlu1 %v9700_v7, %s9619_s6  ;;  %v90_v16 = vrot.slane %v9700_v7, 4 }
  0x8a   :  { %60 = vrot.lane.b32.xlu0 %v9700_v7, %s9620_s7 }
  0x91   :  { %69 = vrot.lane.b32.xlu2 %v9700_v7, %s9621_s8  ;;  %72 = vrot.lane.b32.xlu1 %v9700_v7, %s9622_s9 }
  0x92   :  { %54 = vrot.lane.b32.xlu0 %v9700_v7, %s9623_s10 }
  0x99   :  { %75 = vrot.lane.b32.xlu1 %v9700_v7, %s9624_s11 }
  0x9a   :  { %63 = vrot.lane.b32.xlu0 %v9700_v7, %s9625_s12 }
  0xe3   :  { %v67_v10 = vpop.permute.xlu2 %66 }
  0xe4   :  { %v126_v30 = vrot.slane %v67_v10, 4 }
  0xeb   :  { %v70_v31 = vpop.permute.xlu2 %69 }
  0xec   :  { %v112_v40 = vrot.slane %v70_v31, 4 }
  0xfb   :  { %v58_v8 = vpop.permute.xlu1 %57 }
  0xfc   :  { %v61_v9 = vpop.permute.xlu0 %60  ;;  %v87_v11 = vrot.slane %v58_v8, 4  ;;  %v91_v21 = vsel %vm88_vm1, %v58_v8, %v90_v16 }
  0xfd   :  { %v100_v17 = vrot.slane %v61_v9, 4  ;;  %v99_v32 = vperm.slane %v91_v21, %v9720_v15 }
  0xfe   :  { %v89_v14 = vsel %vm88_vm1, %v87_v11, %v9700_v7 }
  0xff   :  { %v95_v22 = vperm.slane %v89_v14, %v9720_v15  ;;  %v150_v43 = vrot.slane %v99_v32, 4 }
 0x101   :  { %v138_v35 = vrot.slane %v95_v22, 4 }
 0x103   :  { %v73_v18 = vpop.permute.xlu1 %72 }
 0x104   :  { %v124_v19 = vrot.slane %v73_v18, 4  ;;  %v55_v20 = vpop.permute.xlu0 %54  ;;  %v127_v37 = vsel %vm88_vm1, %v73_v18, %v126_v30 }
 0x105   :  { %v101_v23 = vsel %vm88_vm1, %v100_v17, %v55_v20  ;;  %v102_v24 = vrot.slane %v55_v20, 4  ;;  %v135_v45 = vperm.slane %v127_v37, %v9720_v15 }
 0x106   :  { %v125_v25 = vsel %vm88_vm1, %v124_v19, %v67_v10  ;;  %v107_v28 = vperm.slane %v101_v23, %v9720_v15 }
 0x107   :  { %v103_v29 = vsel %vm88_vm1, %v61_v9, %v102_v24  ;;  %v131_v36 = vperm.slane %v125_v25, %v9720_v15  ;;  %v172_v58 = vrot.slane %v135_v45, 4 }
 0x108   :  { %v111_v33 = vperm.slane %v103_v29, %v9720_v15  ;;  %v136_v34 = vrot.slane %v107_v28, 4  ;;  %v139_v42 = vsel %vm88_vm1, %v107_v28, %v138_v35 }
 0x109   :  { %v160_v46 = vrot.slane %v131_v36, 4  ;;  %v147_v50 = vperm.slane %v139_v42, %v9733_v38 }
 0x10a   :  { %v148_v39 = vrot.slane %v111_v33, 4  ;;  %v137_v41 = vsel %vm88_vm1, %v136_v34, %v95_v22  ;;  %v151_v53 = vsel %vm88_vm1, %v111_v33, %v150_v43 }
 0x10b   :  { %v143_v49 = vperm.slane %v137_v41, %v9733_v38  ;;  %v159_v61 = vperm.slane %v151_v53, %v9733_v38  ;;  %v190_v63 = vrot.slane %v147_v50, 4 }
 0x10c   :  { %v64_v44 = vpop.permute.xlu0 %63  ;;  %v149_v47 = vsel %vm88_vm1, %v148_v39, %v99_v32 }
 0x10d   :  { %v113_v48 = vsel %vm88_vm1, %v112_v40, %v64_v44  ;;  %v114_v51 = vrot.slane %v64_v44, 4  ;;  %v155_v54 = vperm.slane %v149_v47, %v9733_v38  ;;  %v186_v62 = vrot.slane %v143_v49, 4 }
 0x10e   :  { %v119_v52 = vperm.slane %v113_v48, %v9720_v15  ;;  %v198_v19 = vrot.slane %v159_v61, 4 }
 0x10f   :  { %v115_v55 = vsel %vm88_vm1, %v70_v31, %v114_v51  ;;  %v194_v11 = vrot.slane %v155_v54, 4 }
 0x110   :  { %v161_v56 = vsel %vm88_vm1, %v160_v46, %v119_v52  ;;  %v162_v57 = vrot.slane %v119_v52, 4  ;;  %v123_v59 = vperm.slane %v115_v55, %v9720_v15 }
 0x111   :  { %v167_v60 = vperm.slane %v161_v56, %v9733_v38 }
 0x112   :  { %v163_v5 = vsel %vm88_vm1, %v131_v36, %v162_v57  ;;  %v173_v8 = vsel %vm88_vm1, %v172_v58, %v123_v59  ;;  %v174_v9 = vrot.slane %v123_v59, 4 }
 0x113   :  { %v171_v6 = vperm.slane %v163_v5, %v9733_v38  ;;  %v184_v10 = vrot.slane %v167_v60, 4  ;;  %v179_v12 = vperm.slane %v173_v8, %v9733_v38  ;;  %v187_v13 = vsel %vm88_vm1, %v167_v60, %v186_v62 }
 0x114   :  { %v175_v14 = vsel %vm88_vm1, %v135_v45, %v174_v9  ;;  %v270_v24 = vrot.slane %v187_v13, 4 }
 0x115   :  { %v185_v16 = vsel %vm88_vm1, %v184_v10, %v143_v49  ;;  %v188_v17 = vrot.slane %v171_v6, 4  ;;  %v191_v18 = vsel %vm88_vm1, %v171_v6, %v190_v63  ;;  %v183_v20 = vperm.slane %v175_v14, %v9733_v38 }
 0x116   :  { %v192_v21 = vrot.slane %v179_v12, 4  ;;  %v258_v22 = vrot.slane %v185_v16, 4  ;;  %v268_v23 = vrot.slane %v191_v18, 4  ;;  %v195_v26 = vsel %vm88_vm1, %v179_v12, %v194_v11 }
 0x117   :  { %v189_v25 = vsel %vm88_vm1, %v188_v17, %v147_v50  ;;  %v196_v28 = vrot.slane %v183_v20, 4  ;;  %v199_v29 = vsel %vm88_vm1, %v183_v20, %v198_v19  ;;  %v271_v32 = vsel %vm88_vm1, %v191_v18, %v270_v24 }
 0x118   :  { %v193_v27 = vsel %vm88_vm1, %v192_v21, %v155_v54  ;;  %v256_v30 = vrot.slane %v189_v25, 4  ;;  %v259_v31 = vsel %vm88_vm1, %v189_v25, %v258_v22  ;;  %v292_v34 = vrot.slane %v199_v29, 4 }
 0x119   :  { %v282_v33 = vrot.slane %v193_v27, 4  ;;  %v197_v35 = vsel %vm88_vm1, %v196_v28, %v159_v61  ;;  %v267_v36 = vperm.slane %v259_v31, %v9720_v15  ;;  %v279_v37 = vperm.slane %v271_v32, %v9720_v15 }
 0x11a   :  { %v294_v39 = vrot.slane %v195_v26, 4  ;;  %v280_v40 = vrot.slane %v197_v35, 4  ;;  %v257_v42 = vsel %vm88_vm1, %v256_v30, %v185_v16  ;;  %v269_v43 = vsel %vm88_vm1, %v268_v23, %v187_v13 }
 0x11b   :  { %v283_v41 = vsel %vm88_vm1, %v197_v35, %v282_v33  ;;  %v316_v46 = vrot.slane %v279_v37, 4  ;;  %v263_v47 = vperm.slane %v257_v42, %v9720_v15  ;;  %v275_v49 = vperm.slane %v269_v43, %v9720_v15 }
 0x11c   :  { %v291_v44 = vperm.slane %v283_v41, %v9720_v15  ;;  %v295_v45 = vsel %vm88_vm1, %v199_v29, %v294_v39  ;;  %v281_v50 = vsel %vm88_vm1, %v280_v40, %v193_v27  ;;  %v293_v51 = vsel %vm88_vm1, %v292_v34, %v195_v26 }
 0x11d   :  { %v303_v48 = vperm.slane %v295_v45, %v9720_v15  ;;  %v317_v52 = vsel %vm88_vm1, %v316_v46, %v267_v36  ;;  %v287_v53 = vperm.slane %v281_v50, %v9720_v15  ;;  %v299_v54 = vperm.slane %v293_v51, %v9720_v15  ;;  %v76_v50 = vpop.permute.xlu1 %75 }
 0x11e   :  { %v318_v55 = vrot.slane %v267_v36, 4  ;;  %v323_v56 = vperm.slane %v317_v52, %v9733_v38  ;;  %v304_v58 = vrot.slane %v275_v49, 4  ;;  %v342_v59 = vrot.slane %v291_v44, 4  ;;  %v22_v36 = vld [vmem:[%s13104_s0 + $0x18] sm:$0xff] }
 0x11f   :  { %v340_v57 = vrot.slane %v303_v48, 4  ;;  %v328_v60 = vrot.slane %v299_v54, 4  ;;  %v330_v61 = vrot.slane %v287_v53, 4  ;;  %v306_v63 = vrot.slane %v263_v47, 4 }
 0x120   :  { %v319_v62 = vsel %vm88_vm1, %v279_v37, %v318_v55  ;;  %v362_v6 = vrot.slane %v323_v56, 4  ;;  %v305_v8 = vsel %vm88_vm1, %v304_v58, %v263_v47  ;;  %v343_v13 = vsel %vm88_vm1, %v303_v48, %v342_v59 }
 0x121   :  { %v341_v5 = vsel %vm88_vm1, %v340_v57, %v291_v44  ;;  %v327_v9 = vperm.slane %v319_v62, %v9733_v38  ;;  %v311_v11 = vperm.slane %v305_v8, %v9733_v38  ;;  %v329_v12 = vsel %vm88_vm1, %v328_v60, %v287_v53 }
 0x122   :  { %v347_v10 = vperm.slane %v341_v5, %v9733_v38  ;;  %v335_v14 = vperm.slane %v329_v12, %v9733_v38  ;;  %v351_v16 = vperm.slane %v343_v13, %v9733_v38  ;;  %v307_v21 = vsel %vm88_vm1, %v275_v49, %v306_v63 }
 0x123   :  { %v366_v17 = vrot.slane %v327_v9, 4  ;;  %v354_v20 = vrot.slane %v311_v11, 4  ;;  %v331_v25 = vsel %vm88_vm1, %v299_v54, %v330_v61  ;;  %v315_v31 = vperm.slane %v307_v21, %v9733_v38 }
 0x124   :  { %v363_v18 = vsel %vm88_vm1, %v347_v10, %v362_v6  ;;  %v360_v19 = vrot.slane %v347_v10, 4  ;;  %v364_v23 = vrot.slane %v351_v16, 4  ;;  %v352_v24 = vrot.slane %v335_v14, 4 }
 0x125   :  { %9036 = vmatpush.xpose.msk.msra.mxu2 %vm422_vm2, %v363_v18  ;;  %v367_v22 = vsel %vm88_vm1, %v351_v16, %v366_v17  ;;  %v355_v27 = vsel %vm88_vm1, %v335_v14, %v354_v20  ;;  %v339_v28 = vperm.slane %v331_v25, %v9733_v38  ;;  %v358_v34 = vrot.slane %v315_v31, 4 }
 0x126   :  { %v361_v26 = vsel %vm88_vm1, %v360_v19, %v323_v56  ;;  %v365_v29 = vsel %vm88_vm1, %v364_v23, %v327_v9  ;;  %v353_v30 = vsel %vm88_vm1, %v352_v24, %v311_v11  ;;  %v202_v10 = vrot.slane %v76_v50, 4 }
 0x127   :  { %9034 = vmatpush.xpose.msk.msra.mxu1 %vm422_vm2, %v361_v26  ;;  %v356_v32 = vrot.slane %v339_v28, 4  ;;  %9038 = vmatpush.xpose.msk.msrb.mxu0 %vm422_vm2, %v365_v29  ;;  %v359_v35 = vsel %vm88_vm1, %v339_v28, %v358_v34 }
 0x128   :  { %9037 = vmatmul.msk.f32.vlgmr.msra.gmra.mxu2 %vm422_vm2, %v355_v27 }
 0x129   :  { %v357_v33 = vsel %vm88_vm1, %v356_v32, %v315_v31 }
 0x12a   :  { %9035 = vmatmul.msk.f32.vlgmr.msra.gmra.mxu1 %vm422_vm2, %v353_v30  ;;  %9039 = vmatmul.msk.f32.vlgmr.msrb.gmra.mxu0 %vm422_vm2, %v357_v33 }
 0x12b   :  { %9040 = vmatpush.xpose.msk.msrb.mxu1 %vm422_vm2, %v367_v22 }
 0x132   :  { %9041 = vmatmul.msk.f32.vlgmr.msrb.gmra.mxu1 %vm422_vm2, %v359_v35 }
 0x1a7   :  { %v446_v37 = vpop.f32.mrf.mxu1  ;;  %v498_v40 = vpop.f32.mrf.mxu0 }
 0x1a8   :  { %v447_v39 = vadd.f32 %v446_v37, %v22_v36  ;;  %v499_v41 = vadd.f32 %v498_v40, %v22_v36 }
 0x1aa   :  { %v527_v42 = vsel %vm422_vm2, %v447_v39, -inf  ;;  %v533_v45 = vsel %vm422_vm2, %v499_v41, -inf }
 0x1ab   :  { %v472_v43 = vpop.f32.mrf.mxu2  ;;  %528 = vmax.xlane.f32.xlu1 %v527_v42  ;;  %534 = vmax.xlane.f32.xlu0 %v533_v45 }
 0x1ac   :  { %v473_v44 = vadd.f32 %v472_v43, %v22_v36 }
 0x1ae   :  { %v530_v46 = vsel %vm422_vm2, %v473_v44, -inf }
 0x1af   :  { %531 = vmax.xlane.f32.xlu2 %v530_v46  ;;  %v524_v47 = vpop.f32.mrf.mxu1 }
 0x1b0   :  { %v525_v48 = vadd.f32 %v524_v47, %v22_v36 }
 0x1b2   :  { %v536_v49 = vsel %vm422_vm2, %v525_v48, -inf }
 0x1b7   :  { %537 = vmax.xlane.f32.xlu2 %v536_v49 }
 0x1bf   :  { %81 = vrot.lane.b32.xlu0 %v9700_v7, %s9628_s15 }
 0x1c4   :  { %84 = vrot.lane.b32.xlu1 %v9700_v7, %s9629_s16 }
 0x1cf   :  { %78 = vrot.lane.b32.xlu2 %v9700_v7, %s9630_s17 }
 0x21e   :  { %v529_v51 = vpop.xlane.xlu1 %528  ;;  %v535_v53 = vpop.xlane.xlu0 %534 }
 0x21f   :  { %v539_v52 = vsub.f32 %v447_v39, %v529_v51  ;;  %v541_v55 = vsub.f32 %v499_v41, %v535_v53 }
 0x221   :  { %v543_v54 = vmul.f32 1.442695, %v539_v52  ;;  %v547_v57 = vmul.f32 1.442695, %v541_v55 }
 0x222   :  { %v532_v56 = vpop.xlane.xlu2 %531 }
 0x223   :  { %9455 = vpow2.f32 %v543_v54  ;;  %v540_v58 = vsub.f32 %v473_v44, %v532_v56 }
 0x224   :  { %9457 = vpow2.f32 %v547_v57 }
 0x225   :  { %v545_v59 = vmul.f32 1.442695, %v540_v58 }
 0x227   :  { %9459 = vpow2.f32 %v545_v59 }
 0x229   :  { %v9825_v60 = vpop.eup %9455 }
 0x22a   :  { %v538_v61 = vpop.xlane.xlu2 %537  ;;  %v551_v62 = vsel %vm422_vm2, %v9825_v60, 0.0  ;;  %v9829_v7 = vpop.eup %9457 }
 0x22b   :  { %v542_v63 = vsub.f32 %v525_v48, %v538_v61  ;;  %552 = vadd.xlane.f32.xlu0 %v551_v62  ;;  %v557_v5 = vsel %vm422_vm2, %v9829_v7, 0.0 }
 0x22c   :  { %558 = vadd.xlane.f32.xlu1 %v557_v5 }
 0x22d   :  { %v9833_v6 = vpop.eup %9459  ;;  %v549_v8 = vmul.f32 1.442695, %v542_v63 }
 0x22e   :  { %v554_v9 = vsel %vm422_vm2, %v9833_v6, 0.0 }
 0x22f   :  { %9461 = vpow2.f32 %v549_v8  ;;  %555 = vadd.xlane.f32.xlu2 %v554_v9 }
 0x231   :  { %v82_v12 = vpop.permute.xlu0 %81 }
 0x232   :  { %v79_v11 = vpop.permute.xlu2 %78  ;;  %v200_v13 = vrot.slane %v82_v12, 4  ;;  %v203_v14 = vsel %vm88_vm1, %v82_v12, %v202_v10 }
 0x233   :  { %v214_v17 = vrot.slane %v79_v11, 4  ;;  %v211_v18 = vperm.slane %v203_v14, %v9720_v15 }
 0x234   :  { %v201_v19 = vsel %vm88_vm1, %v200_v13, %v76_v50 }
 0x235   :  { %v9838_v16 = vpop.eup %9461  ;;  %v207_v22 = vperm.slane %v201_v19, %v9720_v15  ;;  %v238_v23 = vrot.slane %v211_v18, 4 }
 0x236   :  { %v85_v20 = vpop.permute.xlu1 %84  ;;  %v560_v21 = vsel %vm422_vm2, %v9838_v16, 0.0 }
 0x237   :  { %v212_v24 = vrot.slane %v85_v20, 4  ;;  %v215_v25 = vsel %vm88_vm1, %v85_v20, %v214_v17  ;;  %561 = vadd.xlane.f32.xlu0 %v560_v21  ;;  %v226_v27 = vrot.slane %v207_v22, 4 }
 0x238   :  { %v223_v26 = vperm.slane %v215_v25, %v9720_v15 }
 0x239   :  { %v213_v28 = vsel %vm88_vm1, %v212_v24, %v79_v11 }
 0x23a   :  { %v219_v29 = vperm.slane %v213_v28, %v9720_v15  ;;  %v236_v30 = vrot.slane %v223_v26, 4  ;;  %v239_v31 = vsel %vm88_vm1, %v223_v26, %v238_v23 }
 0x23b   :  { %v247_v32 = vperm.slane %v239_v31, %v9733_v38 }
 0x23c   :  { %v224_v33 = vrot.slane %v219_v29, 4  ;;  %v227_v34 = vsel %vm88_vm1, %v219_v29, %v226_v27  ;;  %v237_v35 = vsel %vm88_vm1, %v236_v30, %v211_v18 }
 0x23d   :  { %v235_v36 = vperm.slane %v227_v34, %v9733_v38  ;;  %v243_v37 = vperm.slane %v237_v35, %v9733_v38  ;;  %v254_v39 = vrot.slane %v247_v32, 4 }
 0x23e   :  { %v225_v40 = vsel %vm88_vm1, %v224_v33, %v207_v22 }
 0x23f   :  { %v231_v41 = vperm.slane %v225_v40, %v9733_v38  ;;  %v250_v42 = vrot.slane %v235_v36, 4  ;;  %v252_v43 = vrot.slane %v243_v37, 4  ;;  %v255_v44 = vsel %vm88_vm1, 0.0, %v254_v39 }
 0x240   :  { %v379_v45 = vsel %vm88_vm1, %v254_v39, %v243_v37  ;;  %v384_v46 = vrot.slane %v255_v44, 4 }
 0x241   :  { %v248_v47 = vrot.slane %v231_v41, 4  ;;  %v251_v48 = vsel %vm88_vm1, 0.0, %v250_v42  ;;  %v253_v49 = vsel %vm88_vm1, 0.0, %v252_v43  ;;  %v383_v50 = vperm.slane %v379_v45, %v9720_v15 }
 0x242   :  { %v373_v51 = vrot.slane %v251_v48, 4  ;;  %v368_v52 = vsel %vm88_vm1, %v250_v42, %v231_v41  ;;  %v385_v53 = vsel %vm88_vm1, %v384_v46, %v253_v49 }
 0x243   :  { %v249_v54 = vsel %vm88_vm1, 0.0, %v248_v47  ;;  %v372_v55 = vperm.slane %v368_v52, %v9720_v15  ;;  %v389_v56 = vperm.slane %v385_v53, %v9720_v15  ;;  %v404_v57 = vrot.slane %v383_v50, 4 }
 0x244   :  { %v374_v58 = vsel %vm88_vm1, %v373_v51, %v249_v54 }
 0x245   :  { %v378_v59 = vperm.slane %v374_v58, %v9720_v15  ;;  %v392_v61 = vrot.slane %v372_v55, 4  ;;  %v405_v62 = vsel %vm88_vm1, %v389_v56, %v404_v57  ;;  %v402_v63 = vrot.slane %v389_v56, 4 }
 0x246   :  { %v413_v5 = vperm.slane %v405_v62, %v9733_v38 }
 0x247   :  { %v393_v8 = vsel %vm88_vm1, %v378_v59, %v392_v61  ;;  %v390_v9 = vrot.slane %v378_v59, 4  ;;  %v403_v10 = vsel %vm88_vm1, %v402_v63, %v383_v50 }
 0x248   :  { %v401_v11 = vperm.slane %v393_v8, %v9733_v38  ;;  %v418_v12 = vrot.slane %v413_v5, 4  ;;  %v409_v13 = vperm.slane %v403_v10, %v9733_v38 }
 0x249   :  { %v391_v14 = vsel %vm88_vm1, %v390_v9, %v372_v55 }
 0x24a   :  { %v419_v17 = vsel %vm88_vm1, %v418_v12, %v401_v11  ;;  %v397_v18 = vperm.slane %v391_v14, %v9733_v38  ;;  %v414_v19 = vrot.slane %v409_v13, 4  ;;  %v420_v20 = vrot.slane %v401_v11, 4 }
 0x24b   :  { %635 = vmatpush.msra.mxu0 %v419_v17 }
 0x24c   :  { %v415_v21 = vsel %vm88_vm1, %v414_v19, %v397_v18  ;;  %v421_v22 = vsel %vm88_vm1, %v413_v5, %v420_v20  ;;  %v416_v23 = vrot.slane %v397_v18, 4 }
 0x24d   :  { %589 = vmatpush.msrb.mxu2 %v415_v21  ;;  %658 = vmatpush.msra.mxu1 %v421_v22 }
 0x24e   :  { %v417_v24 = vsel %vm88_vm1, %v409_v13, %v416_v23 }
 0x24f   :  { %612 = vmatpush.msra.mxu3 %v417_v24 }
 0x29e   :  { %v553_v25 = vpop.xlane.xlu0 %552 }
 0x29f   :  { %9463 = vrcp.f32 %v553_v25  ;;  %v559_v26 = vpop.xlane.xlu1 %558 }
 0x2a0   :  { %9465 = vrcp.f32 %v559_v26 }
 0x2a2   :  { %v556_v27 = vpop.xlane.xlu2 %555 }
 0x2a3   :  { %9467 = vrcp.f32 %v556_v27 }
 0x2a5   :  { %v9464_v28 = vpop.eup %9463 }
 0x2a6   :  { %v567_v29 = vmul.f32 %v9464_v28, %v9825_v60  ;;  %v9466_v30 = vpop.eup %9465  ;;  %v9283_v60 = vpack.i.bf16 %v9674_v1, %v9669_v0 }
 0x2a7   :  { %v569_v31 = vmul.f32 %v9466_v30, %v9829_v7  ;;  %v9288_v7 = vpack.i.bf16 %v9685_v3, %v9680_v2 }
 0x2a8   :  { %9042 = vmatmul.msk.f32.vlgmr.msrb.gmra.mxu2 %vm422_vm2, %v567_v29  ;;  %9284 = vrot.lane.b32.xlu2 %v9283_v60, %s9631_s18 }
 0x2a9   :  { %v9468_v32 = vpop.eup %9467  ;;  %9044 = vmatmul.msk.f32.vlgmr.msra.gmra.mxu0 %vm422_vm2, %v569_v31  ;;  %9289 = vrot.lane.b32.xlu0 %v9288_v7, %s9631_s18 }
 0x2aa   :  { %v562_v33 = vpop.xlane.xlu0 %561  ;;  %v568_v34 = vmul.f32 %v9468_v32, %v9833_v6 }
 0x2ab   :  { %9469 = vrcp.f32 %v562_v33 }
 0x2ac   :  { %9043 = vmatmul.msk.f32.vlgmr.msra.gmra.mxu3 %vm422_vm2, %v568_v34 }
 0x2b1   :  { %v9470_v35 = vpop.eup %9469 }
 0x2b2   :  { %v570_v36 = vmul.f32 %v9470_v35, %v9838_v16 }
 0x2b4   :  { %9045 = vmatmul.msk.f32.vlgmr.msra.gmra.mxu1 %vm422_vm2, %v570_v36 }
 0x326   :  { %v637_v6 = vpop.f32.mrf.mxu0 }
 0x327   :  { %v663_v39 = vrot.slane %v637_v6, 4 }
 0x32b   :  { %v591_v37 = vpop.f32.mrf.mxu2 }
 0x32c   :  { %v665_v40 = vrot.slane %v591_v37, 4  ;;  %v664_v41 = vsel %vm88_vm1, %v663_v39, %v591_v37 }
 0x32d   :  { %v670_v1 = vperm.slane %v664_v41, %v9720_v15 }
 0x32e   :  { %v666_v16 = vsel %vm88_vm1, %v637_v6, %v665_v40 }
 0x32f   :  { %v674_v42 = vperm.slane %v666_v16, %v9720_v15  ;;  %v614_v43 = vpop.f32.mrf.mxu3  ;;  %v689_v48 = vrot.slane %v670_v1, 4  ;;  %v9285_v16 = vpop.permute.xlu2 %9284 }
 0x330   :  { %v677_v0 = vrot.slane %v614_v43, 4 }
 0x331   :  { %v660_v2 = vpop.f32.mrf.mxu1  ;;  %v701_v45 = vrot.slane %v674_v42, 4 }
 0x332   :  { %v675_v3 = vrot.slane %v660_v2, 4  ;;  %v678_v44 = vsel %vm88_vm1, %v660_v2, %v677_v0  ;;  %v9290_v0 = vpop.permute.xlu0 %9289 }
 0x333   :  { %v686_v46 = vperm.slane %v678_v44, %v9720_v15  ;;  %v9291_v2 = vunpack.i.l.bf16 %v9290_v0  ;;  %v874_v44 = vld [vmem:[%s13103_s1 + $0x50] sm:$0xff] }
 0x334   :  { %v676_v47 = vsel %vm88_vm1, %v675_v3, %v614_v43  ;;  %v9286_v43 = vunpack.i.l.bf16 %v9285_v16  ;;  %v873_v3 = vld [vmem:[%s13103_s1 + $0x38] sm:$0xff]  ;;  %892 = vmatpush.msrb.mxu3 %v874_v44 }
 0x335   :  { %v682_v49 = vperm.slane %v676_v47, %v9720_v15  ;;  %v699_v50 = vrot.slane %v686_v46, 4  ;;  %v702_v51 = vsel %vm88_vm1, %v686_v46, %v701_v45  ;;  %v9293_v45 = vpack.i.bf16 %v873_v3, %v874_v44  ;;  %v871_v46 = vld [vmem:[%s13103_s1 + $0x8] sm:$0xff]  ;;  %v872_v47 = vld [vmem:[%s13103_s1 + $0x20] sm:$0xff] }
 0x336   :  { %v710_v52 = vperm.slane %v702_v51, %v9733_v38  ;;  %827 = vmatpush.msra.mxu2 %v9286_v43  ;;  %893 = vmatpush.msrb.mxu3 %v873_v3  ;;  %v9407_v44 = vld [vmem:[%s13105_s3 + $0x8] ss:$0 sm:$0xff] }
 0x337   :  { %v687_v53 = vrot.slane %v682_v49, 4  ;;  %v690_v54 = vsel %vm88_vm1, %v682_v49, %v689_v48  ;;  %v700_v55 = vsel %vm88_vm1, %v699_v50, %v674_v42  ;;  %v9287_v42 = vunpack.i.h.bf16 %v9285_v16 }
 0x338   :  { %v698_v56 = vperm.slane %v690_v54, %v9733_v38  ;;  %v706_v57 = vperm.slane %v700_v55, %v9733_v38  ;;  %v717_v58 = vrot.slane %v710_v52, 4  ;;  %894 = vmatpush.msrb.mxu3 %v872_v47  ;;  %v9298_v48 = vpack.i.bf16 %v871_v46, %v872_v47 }
 0x339   :  { %v688_v59 = vsel %vm88_vm1, %v687_v53, %v670_v1  ;;  %828 = vmatpush.msra.mxu2 %v9287_v42  ;;  %v9292_v1 = vunpack.i.h.bf16 %v9290_v0  ;;  %v9406_v42 = vld [vmem:[%s13105_s3 + $0x7] ss:$0 sm:$0xff] }
 0x33a   :  { %v694_v61 = vperm.slane %v688_v59, %v9733_v38  ;;  %v713_v62 = vrot.slane %v698_v56, 4  ;;  %v715_v63 = vrot.slane %v706_v57, 4  ;;  %v718_v5 = vsel %vm88_vm1, 0.0, %v717_v58  ;;  %895 = vmatpush.msrb.mxu3 %v871_v46 }
 0x33b   :  { %v730_v8 = vsel %vm88_vm1, %v717_v58, %v706_v57  ;;  %v735_v9 = vrot.slane %v718_v5, 4  ;;  %829 = vmatpush.msra.mxu2 %v9291_v2  ;;  %v9404_v5 = vld [vmem:[%s13105_s3 + $0x1] ss:$0 sm:$0xff] }
 0x33c   :  { %v711_v10 = vrot.slane %v694_v61, 4  ;;  %v714_v11 = vsel %vm88_vm1, 0.0, %v713_v62  ;;  %v716_v12 = vsel %vm88_vm1, 0.0, %v715_v63  ;;  %v734_v13 = vperm.slane %v730_v8, %v9720_v15  ;;  %v21_v63 = vld [vmem:[%s13104_s0 + $0x10] sm:$0xff] }
 0x33d   :  { %v724_v14 = vrot.slane %v714_v11, 4  ;;  %v719_v17 = vsel %vm88_vm1, %v713_v62, %v694_v61  ;;  %v736_v18 = vsel %vm88_vm1, %v735_v9, %v716_v12  ;;  %830 = vmatpush.msra.mxu2 %v9292_v1  ;;  %v20_v62 = vld [vmem:[%s13104_s0 + $0x8] sm:$0xff]  ;;  %v9635_v12 = vmov 32.0  }
 0x33e   :  { %v712_v19 = vsel %vm88_vm1, 0.0, %v711_v10  ;;  %v723_v20 = vperm.slane %v719_v17, %v9720_v15  ;;  %v740_v21 = vperm.slane %v736_v18, %v9720_v15  ;;  %v755_v22 = vrot.slane %v734_v13, 4 }
 0x33f   :  { %v725_v23 = vsel %vm88_vm1, %v724_v14, %v712_v19  ;;  %9471 = vrcp.f32 %v9635_v12 }
 0x340   :  { %v729_v24 = vperm.slane %v725_v23, %v9720_v15  ;;  %v743_v25 = vrot.slane %v723_v20, 4  ;;  %v756_v26 = vsel %vm88_vm1, %v740_v21, %v755_v22  ;;  %v753_v27 = vrot.slane %v740_v21, 4  ;;  %v9405_v21 = vld [vmem:[%s13105_s3 + $0x3] ss:$0 sm:$0xff] }
 0x341   :  { %v764_v28 = vperm.slane %v756_v26, %v9733_v38 }
 0x342   :  { %v744_v29 = vsel %vm88_vm1, %v729_v24, %v743_v25  ;;  %v741_v30 = vrot.slane %v729_v24, 4  ;;  %v754_v31 = vsel %vm88_vm1, %v753_v27, %v734_v13 }
 0x343   :  { %v752_v32 = vperm.slane %v744_v29, %v9733_v38  ;;  %v769_v33 = vrot.slane %v764_v28, 4  ;;  %v760_v34 = vperm.slane %v754_v31, %v9733_v38 }
 0x344   :  { %v742_v35 = vsel %vm88_vm1, %v741_v30, %v723_v20 }
 0x345   :  { %v770_v36 = vsel %vm88_vm1, %v769_v33, %v752_v32  ;;  %v771_v60 = vrot.slane %v752_v32, 4  ;;  %v748_v7 = vperm.slane %v742_v35, %v9733_v38  ;;  %v765_v6 = vrot.slane %v760_v34, 4  ;;  %v9472_v13 = vpop.eup %9471 }
 0x346   :  { %778 = vrot.lane.b32.xlu2 %v770_v36, %s9632_s19  ;;  %v842_v14 = vmul.f32 32.0, %v9472_v13  ;;  %vm846_vm5 = vweird.f32 %v9472_v13 }
 0x347   :  { %v772_v37 = vsel %vm88_vm1, %v764_v28, %v771_v60  ;;  %v767_v39 = vrot.slane %v748_v7, 4  ;;  %v766_v40 = vsel %vm88_vm1, %v765_v6, %v748_v7 }
 0x348   :  { %782 = vrot.lane.b32.xlu0 %v772_v37, %s9633_s20  ;;  %v843_v17 = vsub.f32 1.0, %v842_v14 }
 0x349   :  { %v768_v41 = vsel %vm88_vm1, %v760_v34, %v767_v39 }
 0x34a   :  { %774 = vrot.lane.b32.xlu1 %v768_v41, %s9634_s21  ;;  %v844_v18 = vmul.f32 %v9472_v13, %v843_v17 }
 0x34c   :  { %v845_v20 = vadd.f32 %v9472_v13, %v844_v18 }
 0x34e   :  { %v9972_v22 = vsel %vm846_vm5, %v9472_v13, %v845_v20 }
 0x350   :  { %9294 = vrot.lane.b32.xlu0 %v9293_v45, %s9625_s12 }
 0x358   :  { %9299 = vrot.lane.b32.xlu0 %v9298_v48, %s9625_s12 }
 0x3a0   :  { %v779_v50 = vpop.permute.xlu2 %778 }
 0x3ba   :  { %v783_v52 = vpop.permute.xlu0 %782 }
 0x3bc   :  { %v775_v49 = vpop.permute.xlu1 %774 }
 0x3bd   :  { %v785_v51 = vsel %vm422_vm2, %v766_v40, %v775_v49 }
 0x3be   :  { %v787_v53 = vsel %vm786_vm3, %v785_v51, %v779_v50 }
 0x3bf   :  { %v789_v54 = vsel %vm788_vm4, %v787_v53, %v783_v52 }
 0x3c0   :  { %9046 = vmatmul.msk.f32.vlgmr.msra.gmra.mxu2 %vm29_vm0, %v789_v54 }
 0x3c2   :  { %v9295_v55 = vpop.permute.xlu0 %9294 }
 0x3c3   :  { %v9297_v56 = vunpack.i.h.bf16 %v9295_v55  ;;  %v9296_v57 = vunpack.i.l.bf16 %v9295_v55 }
 0x3c5   :  { %936 = vmatpush.msrb.mxu0 %v9296_v57 }
 0x3c7   :  { %937 = vmatpush.msrb.mxu0 %v9297_v56 }
 0x3ca   :  { %v9300_v58 = vpop.permute.xlu0 %9299 }
 0x3cb   :  { %v9302_v59 = vunpack.i.h.bf16 %v9300_v58  ;;  %v9301_v61 = vunpack.i.l.bf16 %v9300_v58 }
 0x3cd   :  { %938 = vmatpush.msrb.mxu0 %v9301_v61 }
 0x3cf   :  { %939 = vmatpush.msrb.mxu0 %v9302_v59 }
 0x3d0   :  { %9048 = vmatmul.msk.f32.vlgmr.msrb.gmra.mxu0 %vm29_vm0, %v20_v62 }
 0x3d8   :  { %9049 = vmatmul.msk.f32.gmra.mxu0 %vm29_vm0, %v21_v63 }
 0x443   :  { %v832_v8 = vpop.f32.mrf.mxu2 }
 0x444   :  { %v833_v9 = vadd.f32 %v9404_v5, %v832_v8 }
 0x446   :  { %v835_v10 = vadd.f32 %v833_v9, %v9691_v4 }
 0x448   :  { %v838_v11 = vsel %vm29_vm0, %v835_v10, 0.0 }
 0x449   :  { %839 = vadd.xlane.f32.xlu1 %v838_v11 }
 0x44d   :  { %v941_v19 = vpop.f32.mrf.mxu0 }
 0x44e   :  { %v9978_v29 = vadd.f32 %v9405_v21, %v941_v19 }
 0x455   :  { %v944_v4 = vpop.f32.mrf.mxu0 }
 0x456   :  { %v945_v25 = vadd.f32 %v9405_v21, %v944_v4 }
 0x458   :  { %1077 = vrot.lane.b32.xlu0 %v945_v25, %s9619_s6  ;;  %v1225_v39 = vrot.slane %v945_v25, 4 }
 0x460   :  { %1083 = vrot.lane.b32.xlu0 %v945_v25, %s9620_s7 }
 0x462   :  { %1101 = vrot.lane.b32.xlu1 %v945_v25, %s9621_s8 }
 0x468   :  { %1089 = vrot.lane.b32.xlu0 %v945_v25, %s9625_s12 }
 0x46a   :  { %1081 = vrot.lane.b32.xlu1 %v9978_v29, %s9620_s7 }
 0x470   :  { %1075 = vrot.lane.b32.xlu0 %v9978_v29, %s9619_s6 }
 0x478   :  { %1095 = vrot.lane.b32.xlu0 %v945_v25, %s9618_s30 }
 0x480   :  { %1107 = vrot.lane.b32.xlu0 %v945_v25, %s9622_s9 }
 0x488   :  { %1099 = vrot.lane.b32.xlu0 %v9978_v29, %s9621_s8 }
 0x490   :  { %1093 = vrot.lane.b32.xlu0 %v9978_v29, %s9618_s30 }
 0x4bc   :  { %v840_v23 = vpop.xlane.xlu1 %839 }
 0x4bd   :  { %v848_v24 = vmul.f32 %v9972_v22, %v840_v23 }
 0x4bf   :  { %v849_v26 = vsub.f32 %v835_v10, %v848_v24 }
 0x4c1   :  { %v850_v27 = vmul.f32 %v849_v26, %v849_v26 }
 0x4c3   :  { %v851_v28 = vsel %vm29_vm0, %v850_v27, 0.0 }
 0x4c4   :  { %852 = vadd.xlane.f32.xlu2 %v851_v28 }
 0x4ca   :  { %v1078_v30 = vpop.permute.xlu0 %1077 }
 0x4cb   :  { %v1223_v41 = vrot.slane %v1078_v30, 4  ;;  %v1226_v2 = vsel %vm88_vm1, %v1078_v30, %v1225_v39 }
 0x4cc   :  { %v1234_v48 = vperm.slane %v1226_v2, %v9720_v15 }
 0x4cd   :  { %v1224_v46 = vsel %vm88_vm1, %v1223_v41, %v945_v25 }
 0x4ce   :  { %v1230_v52 = vperm.slane %v1224_v46, %v9720_v15  ;;  %v1285_v57 = vrot.slane %v1234_v48, 4 }
 0x4d0   :  { %v1273_v62 = vrot.slane %v1230_v52, 4 }
 0x4d2   :  { %v1084_v34 = vpop.permute.xlu0 %1083 }
 0x4d3   :  { %v1235_v45 = vrot.slane %v1084_v34, 4 }
 0x4d4   :  { %v1102_v54 = vpop.permute.xlu1 %1101 }
 0x4d5   :  { %v1247_v56 = vrot.slane %v1102_v54, 4 }
 0x4da   :  { %v1090_v60 = vpop.permute.xlu0 %1089 }
 0x4db   :  { %v1249_v50 = vrot.slane %v1090_v60, 4  ;;  %v1248_v5 = vsel %vm88_vm1, %v1247_v56, %v1090_v60 }
 0x4dc   :  { %1071 = vrot.lane.b32.xlu2 %v945_v25, %s9623_s10  ;;  %v1254_v13 = vperm.slane %v1248_v5, %v9720_v15 }
 0x4dd   :  { %v1250_v61 = vsel %vm88_vm1, %v1102_v54, %v1249_v50 }
 0x4de   :  { %v1258_v9 = vperm.slane %v1250_v61, %v9720_v15  ;;  %v1297_v25 = vrot.slane %v1254_v13, 4 }
 0x4e0   :  { %v1309_v18 = vrot.slane %v1258_v9, 4 }
 0x4e2   :  { %v10001_v0 = vpop.permute.xlu0 %1075 }
 0x4e4   :  { %1087 = vrot.lane.b32.xlu2 %v9978_v29, %s9625_s12 }
 0x4ea   :  { %v1096_v58 = vpop.permute.xlu0 %1095 }
 0x4eb   :  { %v1261_v11 = vrot.slane %v1096_v58, 4 }
 0x4ec   :  { %1069 = vrot.lane.b32.xlu2 %v9978_v29, %s9623_s10 }
 0x4f2   :  { %v1108_v19 = vpop.permute.xlu0 %1107 }
 0x4f3   :  { %v1259_v23 = vrot.slane %v1108_v19, 4  ;;  %v1262_v4 = vsel %vm88_vm1, %v1108_v19, %v1261_v11 }
 0x4f5   :  { %v1260_v28 = vsel %vm88_vm1, %v1259_v23, %v1096_v58 }
 0x537   :  { %v853_v31 = vpop.xlane.xlu2 %852 }
 0x538   :  { %v854_v32 = vmul.f32 %v853_v31, %v9972_v22  ;;  %v1266_v31 = vperm.slane %v1260_v28, %v9720_v15 }
 0x53a   :  { %v855_v33 = vadd.f32 1e-05, %v854_v32  ;;  %v1295_v60 = vrot.slane %v1266_v31, 4 }
 0x53c   :  { %9473 = vrsqrt.f32 %v855_v33  ;;  %vm862_vm7 = vweird.f32 %v855_v33 }
 0x53f   :  { %v1072_v16 = vpop.permute.xlu2 %1071 }
 0x540   :  { %v1237_v43 = vrot.slane %v1072_v16, 4  ;;  %v1236_v53 = vsel %vm88_vm1, %v1235_v45, %v1072_v16 }
 0x541   :  { %v1242_v59 = vperm.slane %v1236_v53, %v9720_v15 }
 0x542   :  { %v9474_v35 = vpop.eup %9473  ;;  %v1238_v49 = vsel %vm88_vm1, %v1084_v34, %v1237_v43 }
 0x543   :  { %v857_v36 = vmul.f32 %v9474_v35, %v855_v33  ;;  %vm863_vm6 = vweird.f32 %v9474_v35  ;;  %v1246_v55 = vperm.slane %v1238_v49, %v9720_v15  ;;  %v1271_v10 = vrot.slane %v1242_v59, 4 }
 0x544   :  { %vm864_vm8 = vmor %vm862_vm7, %vm863_vm6  ;;  %v1274_v12 = vsel %vm88_vm1, %v1242_v59, %v1273_v62 }
 0x545   :  { %v858_v7 = vmul.f32 %v9474_v35, %v857_v36  ;;  %v1283_v63 = vrot.slane %v1246_v55, 4  ;;  %v1286_v8 = vsel %vm88_vm1, %v1246_v55, %v1285_v57  ;;  %v1272_v20 = vsel %vm88_vm1, %v1271_v10, %v1230_v52 }
 0x546   :  { %v1294_v17 = vperm.slane %v1286_v8, %v9733_v38  ;;  %v1282_v21 = vperm.slane %v1274_v12, %v9733_v38  ;;  %v1278_v30 = vperm.slane %v1272_v20, %v9733_v38 }
 0x547   :  { %v859_v6 = vmul.f32 0.5, %v858_v7  ;;  %v1284_v14 = vsel %vm88_vm1, %v1283_v63, %v1234_v48  ;;  %v1298_v7 = vsel %vm88_vm1, %v1266_v31, %v1297_v25 }
 0x548   :  { %v1290_v24 = vperm.slane %v1284_v14, %v9733_v38  ;;  %v1333_v27 = vrot.slane %v1294_v17, 4  ;;  %v1325_v34 = vrot.slane %v1282_v21, 4  ;;  %v1321_v16 = vrot.slane %v1278_v30, 4 }
 0x549   :  { %v860_v37 = vsub.f32 1.5, %v859_v6 }
 0x54a   :  { %v1329_v36 = vrot.slane %v1290_v24, 4 }
 0x54b   :  { %v861_v40 = vmul.f32 %v9474_v35, %v860_v37  ;;  %v1306_v37 = vperm.slane %v1298_v7, %v9733_v38 }
 0x54d   :  { %v865_v1 = vsel %vm864_vm8, %v9474_v35, %v861_v40  ;;  %v1323_v2 = vrot.slane %v1306_v37, 4 }
 0x54e   :  { %v866_v3 = vmul.f32 %v865_v1, %v849_v26  ;;  %v1270_v26 = vperm.slane %v1262_v4, %v9720_v15 }
 0x54f   :  { %v1324_v49 = vsel %vm88_vm1, %v1323_v2, %v1282_v21 }
 0x550   :  { %v868_v47 = vmul.f32 %v9406_v42, %v866_v3  ;;  %v1307_v32 = vrot.slane %v1270_v26, 4  ;;  %v1310_v33 = vsel %vm88_vm1, %v1270_v26, %v1309_v18  ;;  %v1296_v42 = vsel %vm88_vm1, %v1295_v60, %v1254_v13 }
 0x551   :  { %v1318_v35 = vperm.slane %v1310_v33, %v9733_v38  ;;  %v1302_v1 = vperm.slane %v1296_v42, %v9733_v38  ;;  %v1326_v3 = vsel %vm88_vm1, %v1306_v37, %v1325_v34  ;;  %v1447_v58 = vrot.slane %v1324_v49, 4 }
 0x552   :  { %v10010_v51 = vadd.f32 %v9407_v44, %v868_v47  ;;  %v1308_v6 = vsel %vm88_vm1, %v1307_v32, %v1258_v9  ;;  %v1459_v47 = vrot.slane %v1326_v3, 4 }
 0x553   :  { %v1314_v39 = vperm.slane %v1308_v6, %v9733_v38  ;;  %v1331_v40 = vrot.slane %v1318_v35, 4  ;;  %v1334_v41 = vsel %vm88_vm1, %v1318_v35, %v1333_v27  ;;  %v1319_v48 = vrot.slane %v1302_v1, 4 }
 0x554   :  { %9047 = vmatmul.msk.f32.vlgmr.msrb.gmra.mxu3 %vm29_vm0, %v10010_v51  ;;  %v1483_v43 = vrot.slane %v1334_v41, 4  ;;  %v1322_v56 = vsel %vm88_vm1, %v1302_v1, %v1321_v16 }
 0x555   :  { %v1327_v44 = vrot.slane %v1314_v39, 4  ;;  %v1330_v45 = vsel %vm88_vm1, %v1314_v39, %v1329_v36  ;;  %v1332_v46 = vsel %vm88_vm1, %v1331_v40, %v1294_v17  ;;  %v1320_v57 = vsel %vm88_vm1, %v1319_v48, %v1278_v30 }
 0x556   :  { %v1471_v52 = vrot.slane %v1332_v46, 4  ;;  %v1484_v54 = vsel %vm88_vm1, %v1483_v43, %v1330_v45  ;;  %v1485_v55 = vrot.slane %v1330_v45, 4  ;;  %v1460_v59 = vsel %vm88_vm1, %v1459_v47, %v1322_v56 }
 0x557   :  { %v1328_v50 = vsel %vm88_vm1, %v1327_v44, %v1290_v24  ;;  %v1449_v62 = vrot.slane %v1320_v57, 4  ;;  %v1466_v63 = vperm.slane %v1460_v59, %v9720_v15  ;;  %v1490_v8 = vperm.slane %v1484_v54, %v9720_v15 }
 0x558   :  { %v1473_v53 = vrot.slane %v1328_v50, 4  ;;  %v1472_v61 = vsel %vm88_vm1, %v1471_v52, %v1328_v50  ;;  %v1448_v9 = vsel %vm88_vm1, %v1447_v58, %v1320_v57  ;;  %v1461_v10 = vrot.slane %v1322_v56, 4  ;;  %v9408_v58 = vld [vmem:[%s13105_s3 + $0x2] ss:$0 sm:$0xff] }
 0x559   :  { %v1478_v5 = vperm.slane %v1472_v61, %v9720_v15  ;;  %v1454_v12 = vperm.slane %v1448_v9, %v9720_v15  ;;  %v1495_v13 = vrot.slane %v1466_v63, 4  ;;  %v1519_v14 = vrot.slane %v1490_v8, 4 }
 0x55a   :  { %v1474_v11 = vsel %vm88_vm1, %v1332_v46, %v1473_v53  ;;  %v1450_v18 = vsel %vm88_vm1, %v1324_v49, %v1449_v62  ;;  %v1462_v19 = vsel %vm88_vm1, %v1326_v3, %v1461_v10  ;;  %v1486_v21 = vsel %vm88_vm1, %v1334_v41, %v1485_v55  ;;  %v1088_v62 = vpop.permute.xlu2 %1087  ;;  %v1100_v10 = vpop.permute.xlu0 %1099 }
 0x55b   :  { %v1521_v17 = vrot.slane %v1478_v5, 4  ;;  %v1482_v20 = vperm.slane %v1474_v11, %v9720_v15  ;;  %v1496_v23 = vsel %vm88_vm1, %v1495_v13, %v1454_v12  ;;  %v1520_v4 = vsel %vm88_vm1, %v1519_v14, %v1478_v5 }
 0x55c   :  { %v1497_v24 = vrot.slane %v1454_v12, 4  ;;  %v1502_v26 = vperm.slane %v1496_v23, %v9733_v38  ;;  %v1526_v27 = vperm.slane %v1520_v4, %v9733_v38  ;;  %v1458_v30 = vperm.slane %v1450_v18, %v9720_v15 }
 0x55d   :  { %v1522_v25 = vsel %vm88_vm1, %v1490_v8, %v1521_v17  ;;  %v1494_v32 = vperm.slane %v1486_v21, %v9720_v15  ;;  %v1533_v33 = vrot.slane %v1482_v20, 4  ;;  %v1470_v7 = vperm.slane %v1462_v19, %v9720_v15 }
 0x55e   :  { %v1530_v28 = vperm.slane %v1522_v25, %v9733_v38  ;;  %v1498_v31 = vsel %vm88_vm1, %v1466_v63, %v1497_v24  ;;  %v1543_v34 = vrot.slane %v1526_v27, 4  ;;  %v1545_v35 = vrot.slane %v1502_v26, 4  ;;  %v1082_v63 = vpop.permute.xlu1 %1081 }
 0x55f   :  { %v1506_v36 = vperm.slane %v1498_v31, %v9733_v38  ;;  %v1509_v6 = vrot.slane %v1458_v30, 4  ;;  %v1534_v37 = vsel %vm88_vm1, %v1494_v32, %v1533_v33  ;;  %v1531_v3 = vrot.slane %v1494_v32, 4 }
 0x560   :  { %v1547_v60 = vrot.slane %v1530_v28, 4  ;;  %v1544_v39 = vsel %vm88_vm1, %v1543_v34, %v1502_v26  ;;  %v1546_v40 = vsel %vm88_vm1, %v1526_v27, %v1545_v35  ;;  %v1542_v16 = vperm.slane %v1534_v37, %v9733_v38 }
 0x561   :  { %9050 = vmatpush.xpose.msk.msrb.mxu1 %vm422_vm2, %v1544_v39  ;;  %9053 = vmatpush.xpose.msk.msrb.mxu2 %vm422_vm2, %v1546_v40  ;;  %v1510_v42 = vsel %vm88_vm1, %v1470_v7, %v1509_v6  ;;  %v1507_v44 = vrot.slane %v1470_v7, 4  ;;  %v1532_v45 = vsel %vm88_vm1, %v1531_v3, %v1482_v20  ;;  %v1549_v47 = vrot.slane %v1506_v36, 4 }
 0x562   :  { %v1548_v41 = vsel %vm88_vm1, %v1547_v60, %v1506_v36  ;;  %v1518_v43 = vperm.slane %v1510_v42, %v9733_v38  ;;  %v1555_v1 = vrot.slane %v1542_v16, 4  ;;  %v1538_v46 = vperm.slane %v1532_v45, %v9733_v38  ;;  %v1070_v9 = vpop.permute.xlu2 %1069  ;;  %v10120_v23 = vpop.permute.xlu0 %1093 }
 0x563   :  { %9056 = vmatpush.xpose.msk.msra.mxu3 %vm422_vm2, %v1548_v41  ;;  %v1508_v48 = vsel %vm88_vm1, %v1507_v44, %v1458_v30  ;;  %v10090_v52 = vsel %vm88_vm1, %v1530_v28, %v1549_v47  ;;  %v1111_v5 = vrot.slane %v10001_v0, 4  ;;  %v1123_v8 = vrot.slane %v1082_v63, 4 }
 0x564   :  { %v1556_v2 = vsel %vm88_vm1, %v1555_v1, %v1518_v43  ;;  %v1514_v49 = vperm.slane %v1508_v48, %v9733_v38  ;;  %v1551_v50 = vrot.slane %v1538_v46, 4  ;;  %v1557_v56 = vrot.slane %v1518_v43, 4 }
 0x565   :  { %1834 = vmatpush.msra.mxu0 %v1556_v2  ;;  %v1113_v11 = vrot.slane %v9978_v29, 4  ;;  %v1112_v12 = vsel %vm88_vm1, %v1111_v5, %v9978_v29  ;;  %v1124_v13 = vsel %vm88_vm1, %v1123_v8, %v1070_v9  ;;  %v1125_v14 = vrot.slane %v1070_v9, 4 }
 0x566   :  { %v10093_v53 = vsel %vm88_vm1, %v1551_v50, %v1514_v49  ;;  %v1553_v54 = vrot.slane %v1514_v49, 4  ;;  %v10099_v57 = vsel %vm88_vm1, %v1542_v16, %v1557_v56  ;;  %v1118_v18 = vperm.slane %v1112_v12, %v9720_v15 }
 0x567   :  { %v1114_v17 = vsel %vm88_vm1, %v10001_v0, %v1113_v11  ;;  %v1130_v19 = vperm.slane %v1124_v13, %v9720_v15  ;;  %v1126_v20 = vsel %vm88_vm1, %v1082_v63, %v1125_v14  ;;  %v1137_v30 = vrot.slane %v1088_v62, 4 }
 0x568   :  { %v10096_v55 = vsel %vm88_vm1, %v1538_v46, %v1553_v54  ;;  %v1122_v21 = vperm.slane %v1114_v17, %v9720_v15  ;;  %v1161_v4 = vrot.slane %v1118_v18, 4  ;;  %v1134_v24 = vperm.slane %v1126_v20, %v9720_v15 }
 0x569   :  { %v1135_v33 = vrot.slane %v1100_v10, 4  ;;  %v1138_v43 = vsel %vm88_vm1, %v1100_v10, %v1137_v30  ;;  %v1149_v12 = vrot.slane %v10120_v23, 4 }
 0x56a   :  { %v1173_v25 = vrot.slane %v1122_v21, 4  ;;  %v1162_v0 = vsel %vm88_vm1, %v1130_v19, %v1161_v4  ;;  %v1171_v28 = vrot.slane %v1134_v24, 4  ;;  %v1146_v56 = vperm.slane %v1138_v43, %v9720_v15 }
 0x56b   :  { %v10130_v60 = vperm.slane %v1162_v0, %v9733_v38  ;;  %v1136_v3 = vsel %vm88_vm1, %v1135_v33, %v1088_v62 }
 0x56c   :  { %v1174_v32 = vsel %vm88_vm1, %v1134_v24, %v1173_v25  ;;  %v1172_v39 = vsel %vm88_vm1, %v1171_v28, %v1122_v21  ;;  %v1197_v24 = vrot.slane %v1146_v56, 4 }
 0x56d   :  { %v10137_v42 = vperm.slane %v1174_v32, %v9733_v38  ;;  %v10146_v47 = vperm.slane %v1172_v39, %v9733_v38  ;;  %v1213_v54 = vrot.slane %v10130_v60, 4 }
 0x56f   :  { %v1221_v5 = vrot.slane %v10137_v42, 4  ;;  %v1217_v11 = vrot.slane %v10146_v47, 4 }
 0x5d7   :  { %v897_v59 = vpop.f32.mrf.mxu3 }
 0x5d8   :  { %v898_v61 = vadd.f32 %v9408_v58, %v897_v59  ;;  %v1142_v59 = vperm.slane %v1136_v3, %v9720_v15 }
 0x5da   :  { %948 = vrot.lane.b32.xlu0 %v898_v61, %s9623_s10  ;;  %954 = vrot.lane.b32.xlu2 %v898_v61, %s9620_s7  ;;  %v959_v35 = vrot.slane %v898_v61, 4  ;;  %v1185_v4 = vrot.slane %v1142_v59, 4 }
 0x5db   :  { %951 = vrot.lane.b32.xlu1 %v898_v61, %s9619_s6 }
 0x5e3   :  { %1105 = vrot.lane.b32.xlu1 %v9978_v29, %s9622_s9  ;;  %v1159_v29 = vrot.slane %v1130_v19, 4 }
 0x5e5   :  { %v1160_v27 = vsel %vm88_vm1, %v1159_v29, %v1118_v18 }
 0x5e6   :  { %v10127_v36 = vperm.slane %v1160_v27, %v9733_v38 }
 0x5e8   :  { %v1209_v50 = vrot.slane %v10127_v36, 4 }
 0x634   :  { %v955_v26 = vpop.permute.xlu2 %954 }
 0x635   :  { %v969_v31 = vrot.slane %v955_v26, 4 }
 0x64c   :  { %v949_v34 = vpop.permute.xlu0 %948 }
 0x64d   :  { %v970_v7 = vsel %vm88_vm1, %v969_v31, %v949_v34  ;;  %v971_v6 = vrot.slane %v949_v34, 4  ;;  %v952_v37 = vpop.permute.xlu1 %951 }
 0x64e   :  { %v976_v40 = vperm.slane %v970_v7, %v9720_v15  ;;  %v957_v41 = vrot.slane %v952_v37, 4  ;;  %v960_v16 = vsel %vm88_vm1, %v952_v37, %v959_v35 }
 0x64f   :  { %v972_v1 = vsel %vm88_vm1, %v955_v26, %v971_v6  ;;  %v968_v2 = vperm.slane %v960_v16, %v9720_v15 }
 0x650   :  { %v980_v44 = vperm.slane %v972_v1, %v9720_v15  ;;  %v981_v45 = vrot.slane %v976_v40, 4  ;;  %v958_v46 = vsel %vm88_vm1, %v957_v41, %v898_v61 }
 0x651   :  { %v964_v48 = vperm.slane %v958_v46, %v9720_v15  ;;  %v995_v49 = vrot.slane %v968_v2, 4 }
 0x652   :  { %v993_v58 = vrot.slane %v980_v44, 4 }
 0x653   :  { %v982_v62 = vsel %vm88_vm1, %v981_v45, %v964_v48  ;;  %v983_v63 = vrot.slane %v964_v48, 4  ;;  %v996_v61 = vsel %vm88_vm1, %v980_v44, %v995_v49 }
 0x654   :  { %v988_v8 = vperm.slane %v982_v62, %v9733_v38  ;;  %v994_v9 = vsel %vm88_vm1, %v993_v58, %v968_v2  ;;  %v1004_v10 = vperm.slane %v996_v61, %v9733_v38 }
 0x655   :  { %v984_v13 = vsel %vm88_vm1, %v976_v40, %v983_v63  ;;  %v1000_v14 = vperm.slane %v994_v9, %v9733_v38  ;;  %v1106_v17 = vpop.permute.xlu1 %1105 }
 0x656   :  { %v992_v18 = vperm.slane %v984_v13, %v9733_v38  ;;  %v1005_v19 = vrot.slane %v988_v8, 4  ;;  %v1011_v20 = vrot.slane %v1004_v10, 4  ;;  %v1147_v21 = vrot.slane %v1106_v17, 4 }
 0x657   :  { %v1009_v29 = vrot.slane %v1000_v14, 4  ;;  %v1150_v25 = vsel %vm88_vm1, %v1106_v17, %v1149_v12 }
 0x658   :  { %v1006_v26 = vsel %vm88_vm1, 0.0, %v1005_v19  ;;  %v1007_v27 = vrot.slane %v992_v18, 4  ;;  %v1012_v0 = vsel %vm88_vm1, 0.0, %v1011_v20  ;;  %v1024_v28 = vsel %vm88_vm1, %v1011_v20, %v1000_v14 }
 0x659   :  { %v1010_v30 = vsel %vm88_vm1, 0.0, %v1009_v29  ;;  %v10170_v31 = vperm.slane %v1024_v28, %v9720_v15  ;;  %v1029_v32 = vrot.slane %v1012_v0, 4  ;;  %v1148_v33 = vsel %vm88_vm1, %v1147_v21, %v10120_v23 }
 0x65a   :  { %v1008_v34 = vsel %vm88_vm1, 0.0, %v1007_v27  ;;  %v1154_v35 = vperm.slane %v1148_v33, %v9720_v15  ;;  %v1158_v7 = vperm.slane %v1150_v25, %v9720_v15  ;;  %v1013_v6 = vsel %vm88_vm1, %v1007_v27, %v988_v8 }
 0x65b   :  { %v1018_v37 = vrot.slane %v1008_v34, 4  ;;  %v1030_v39 = vsel %vm88_vm1, %v1029_v32, %v1010_v30  ;;  %v1049_v40 = vrot.slane %v10170_v31, 4  ;;  %v10181_v41 = vperm.slane %v1013_v6, %v9720_v15 }
 0x65c   :  { %v10184_v16 = vperm.slane %v1030_v39, %v9720_v15  ;;  %v1183_v23 = vrot.slane %v1154_v35, 4  ;;  %v1186_v43 = vsel %vm88_vm1, %v1154_v35, %v1185_v4  ;;  %v1195_v1 = vrot.slane %v1158_v7, 4 }
 0x65d   :  { %v1194_v2 = vperm.slane %v1186_v43, %v9733_v38  ;;  %v1198_v3 = vsel %vm88_vm1, %v1158_v7, %v1197_v24  ;;  %v1019_v44 = vsel %vm88_vm1, %v1018_v37, %v1006_v26  ;;  %v1037_v45 = vrot.slane %v10181_v41, 4 }
 0x65e   :  { %v1184_v46 = vsel %vm88_vm1, %v1183_v23, %v1142_v59  ;;  %v1196_v48 = vsel %vm88_vm1, %v1195_v1, %v1146_v56  ;;  %v1206_v49 = vperm.slane %v1198_v3, %v9733_v38  ;;  %v10195_v58 = vperm.slane %v1019_v44, %v9720_v15 }
 0x65f   :  { %v1190_v62 = vperm.slane %v1184_v46, %v9733_v38  ;;  %v1202_v63 = vperm.slane %v1196_v48, %v9733_v38  ;;  %v1211_v61 = vrot.slane %v1194_v2, 4  ;;  %v1214_v8 = vsel %vm88_vm1, %v1194_v2, %v1213_v54 }
 0x660   :  { %v1219_v9 = vrot.slane %v1206_v49, 4  ;;  %v1222_v10 = vsel %vm88_vm1, %v1206_v49, %v1221_v5  ;;  %v1347_v12 = vrot.slane %v1214_v8, 4  ;;  %v1035_v59 = vrot.slane %v10195_v58, 4 }
 0x661   :  { %v1207_v13 = vrot.slane %v1190_v62, 4  ;;  %v1215_v56 = vrot.slane %v1202_v63, 4  ;;  %v1218_v14 = vsel %vm88_vm1, %v1202_v63, %v1217_v11  ;;  %v1371_v17 = vrot.slane %v1222_v10, 4 }
 0x662   :  { %v1220_v18 = vsel %vm88_vm1, %v1219_v9, %v10137_v42  ;;  %v1373_v19 = vrot.slane %v1218_v14, 4  ;;  %v1210_v20 = vsel %vm88_vm1, %v1190_v62, %v1209_v50  ;;  %v1212_v54 = vsel %vm88_vm1, %v1211_v61, %v10130_v60 }
 0x663   :  { %v1216_v5 = vsel %vm88_vm1, %v1215_v56, %v10146_v47  ;;  %v1359_v21 = vrot.slane %v1220_v18, 4  ;;  %v1208_v4 = vsel %vm88_vm1, %v1207_v13, %v10127_v36  ;;  %v1335_v11 = vrot.slane %v1212_v54, 4 }
 0x664   :  { %v1361_v24 = vrot.slane %v1216_v5, 4  ;;  %v1337_v29 = vrot.slane %v1208_v4, 4  ;;  %v1348_v42 = vsel %vm88_vm1, %v1347_v12, %v1210_v20  ;;  %v1372_v25 = vsel %vm88_vm1, %v1371_v17, %v1218_v14 }
 0x665   :  { %v1336_v26 = vsel %vm88_vm1, %v1335_v11, %v1208_v4  ;;  %v1354_v50 = vperm.slane %v1348_v42, %v9720_v15  ;;  %v1360_v60 = vsel %vm88_vm1, %v1359_v21, %v1216_v5  ;;  %v1378_v27 = vperm.slane %v1372_v25, %v9720_v15 }
 0x666   :  { %v1342_v47 = vperm.slane %v1336_v26, %v9720_v15  ;;  %v1366_v0 = vperm.slane %v1360_v60, %v9720_v15  ;;  %v1036_v36 = vsel %vm88_vm1, %v1035_v59, %v10181_v41  ;;  %v1047_v28 = vrot.slane %v10184_v16, 4 }
 0x667   :  { %v1383_v30 = vrot.slane %v1354_v50, 4  ;;  %v1407_v32 = vrot.slane %v1378_v27, 4  ;;  %v1042_v33 = vperm.slane %v1036_v36, %v9733_v38  ;;  %v1338_v34 = vsel %vm88_vm1, %v1212_v54, %v1337_v29 }
 0x668   :  { %v1385_v35 = vrot.slane %v1342_v47, 4  ;;  %v1409_v7 = vrot.slane %v1366_v0, 4  ;;  %v1048_v6 = vsel %vm88_vm1, %v1047_v28, %v10170_v31  ;;  %v1346_v37 = vperm.slane %v1338_v34, %v9720_v15 }
 0x669   :  { %v1384_v39 = vsel %vm88_vm1, %v1383_v30, %v1342_v47  ;;  %v1408_v23 = vsel %vm88_vm1, %v1407_v32, %v1366_v0  ;;  %v1054_v43 = vperm.slane %v1048_v6, %v9733_v38  ;;  %v1349_v1 = vrot.slane %v1210_v20, 4 }
 0x66a   :  { %v1390_v2 = vperm.slane %v1384_v39, %v9733_v38  ;;  %v1414_v3 = vperm.slane %v1408_v23, %v9733_v38  ;;  %v1386_v44 = vsel %vm88_vm1, %v1354_v50, %v1385_v35  ;;  %v1410_v46 = vsel %vm88_vm1, %v1378_v27, %v1409_v7 }
 0x66b   :  { %v1394_v48 = vperm.slane %v1386_v44, %v9733_v38  ;;  %v1418_v49 = vperm.slane %v1410_v46, %v9733_v38  ;;  %v1059_v62 = vrot.slane %v1054_v43, 4  ;;  %v1350_v63 = vsel %vm88_vm1, %v1214_v8, %v1349_v1 }
 0x66c   :  { %v1431_v61 = vrot.slane %v1414_v3, 4  ;;  %v1433_v9 = vrot.slane %v1390_v2, 4  ;;  %v1358_v12 = vperm.slane %v1350_v63, %v9720_v15  ;;  %v1362_v59 = vsel %vm88_vm1, %v1220_v18, %v1361_v24 }
 0x66d   :  { %v1435_v13 = vrot.slane %v1418_v49, 4  ;;  %v1060_v56 = vsel %vm88_vm1, %v1059_v62, %v1042_v33  ;;  %v1370_v14 = vperm.slane %v1362_v59, %v9720_v15  ;;  %v1374_v17 = vsel %vm88_vm1, %v1222_v10, %v1373_v19 }
 0x66e   :  { %v1432_v20 = vsel %vm88_vm1, %v1431_v61, %v1390_v2  ;;  %v1434_v54 = vsel %vm88_vm1, %v1414_v3, %v1433_v9  ;;  %v1382_v5 = vperm.slane %v1374_v17, %v9720_v15  ;;  %v1397_v8 = vrot.slane %v1346_v37, 4 }
 0x66f   :  { %9051 = vmatpush.xpose.msk.msrb.mxu1 %vm422_vm2, %v1432_v20  ;;  %9054 = vmatpush.xpose.msk.msrb.mxu2 %vm422_vm2, %v1434_v54  ;;  %v1436_v18 = vsel %vm88_vm1, %v1435_v13, %v1394_v48  ;;  %v1421_v21 = vrot.slane %v1370_v14, 4  ;;  %v1061_v4 = vrot.slane %v1042_v33, 4  ;;  %v1038_v10 = vsel %vm88_vm1, %v10195_v58, %v1037_v45 }
 0x670   :  { %9057 = vmatpush.xpose.msk.msra.mxu3 %vm422_vm2, %v1436_v18  ;;  %v1398_v19 = vsel %vm88_vm1, %v1358_v12, %v1397_v8  ;;  %v1046_v11 = vperm.slane %v1038_v10, %v9733_v38  ;;  %v1050_v24 = vsel %vm88_vm1, %v10184_v16, %v1049_v40  ;;  %v1437_v29 = vrot.slane %v1394_v48, 4 }
 0x671   :  { %v1406_v41 = vperm.slane %v1398_v19, %v9733_v38  ;;  %v1062_v45 = vsel %vm88_vm1, %v1054_v43, %v1061_v4  ;;  %v1395_v58 = vrot.slane %v1358_v12, 4  ;;  %v1058_v31 = vperm.slane %v1050_v24, %v9733_v38 }
 0x672   :  { %9052 = vmatmul.msk.f32.vlgmr.msrb.gmra.mxu1 %vm422_vm2, %v1060_v56  ;;  %9055 = vmatmul.msk.f32.vlgmr.msrb.gmra.mxu2 %vm422_vm2, %v1062_v45  ;;  %v1438_v40 = vsel %vm88_vm1, %v1418_v49, %v1437_v29  ;;  %v1065_v47 = vrot.slane %v1046_v11, 4 }
 0x673   :  { %9059 = vmatpush.xpose.msk.msra.mxu1 %vm422_vm2, %v10090_v52  ;;  %1788 = vmatpush.msra.mxu2 %v10093_v53  ;;  %v1422_v52 = vsel %vm88_vm1, %v1382_v5, %v1421_v21  ;;  %v1419_v53 = vrot.slane %v1382_v5, 4  ;;  %v1445_v16 = vrot.slane %v1406_v41, 4  ;;  %v1063_v26 = vrot.slane %v1058_v31, 4 }
 0x674   :  { %1811 = vmatpush.msrb.mxu3 %v10096_v55  ;;  %v1430_v42 = vperm.slane %v1422_v52, %v9733_v38  ;;  %v1396_v55 = vsel %vm88_vm1, %v1395_v58, %v1346_v37 }
 0x675   :  { %v1402_v50 = vperm.slane %v1396_v55, %v9733_v38  ;;  %v1420_v60 = vsel %vm88_vm1, %v1419_v53, %v1370_v14  ;;  %v1064_v36 = vsel %vm88_vm1, %v1063_v26, %v1046_v11 }
 0x676   :  { %v1443_v25 = vrot.slane %v1430_v42, 4  ;;  %v1426_v27 = vperm.slane %v1420_v60, %v9733_v38  ;;  %9058 = vmatmul.msk.f32.vlgmr.msra.gmra.mxu3 %vm422_vm2, %v1064_v36  ;;  %v1446_v32 = vsel %vm88_vm1, %v1430_v42, %v1445_v16 }
 0x677   :  { %9060 = vmatpush.xpose.msk.msra.mxu1 %vm422_vm2, %v1438_v40  ;;  %v1441_v28 = vrot.slane %v1402_v50, 4 }
 0x678   :  { %v1444_v0 = vsel %vm88_vm1, %v1443_v25, %v1406_v41  ;;  %v1439_v30 = vrot.slane %v1426_v27, 4 }
 0x679   :  { %1835 = vmatpush.msra.mxu0 %v1444_v0  ;;  %v1442_v33 = vsel %vm88_vm1, %v1426_v27, %v1441_v28 }
 0x67a   :  { %v1440_v34 = vsel %vm88_vm1, %v1439_v30, %v1402_v50  ;;  %1812 = vmatpush.msrb.mxu3 %v1442_v33 }
 0x67b   :  { %1857 = vmatpush.msrb.mxu1 %v10099_v57  ;;  %v1066_v57 = vsel %vm88_vm1, %v1058_v31, %v1065_v47  ;;  %1789 = vmatpush.msra.mxu2 %v1440_v34 }
 0x67c   :  { %9061 = vmatmul.msk.f32.vlgmr.msra.gmra.mxu1 %vm422_vm2, %v1066_v57 }
 0x67d   :  { %1858 = vmatpush.msrb.mxu1 %v1446_v32 }
 0x6ef   :  { %v1585_v35 = vpop.f32.mrf.mxu1 }
 0x6f0   :  { %v1675_v7 = vsel %vm786_vm3, %v1585_v35, -inf }
 0x6f1   :  { %1676 = vmax.xlane.f32.xlu1 %v1675_v7 }
 0x6f5   :  { %v1614_v6 = vpop.f32.mrf.mxu2 }
 0x6f6   :  { %v1678_v37 = vsel %vm786_vm3, %v1614_v6, -inf }
 0x6f7   :  { %1679 = vmax.xlane.f32.xlu2 %v1678_v37 }
 0x6f9   :  { %v1672_v39 = vpop.f32.mrf.mxu1  ;;  %v1643_v43 = vpop.f32.mrf.mxu3 }
 0x6fa   :  { %v1684_v23 = vsel %vm786_vm3, %v1672_v39, -inf  ;;  %v1681_v1 = vsel %vm786_vm3, %v1643_v43, -inf }
 0x6fb   :  { %1685 = vmax.xlane.f32.xlu1 %v1684_v23  ;;  %1682 = vmax.xlane.f32.xlu0 %v1681_v1 }
 0x764   :  { %v1677_v2 = vpop.xlane.xlu1 %1676 }
 0x765   :  { %v1687_v3 = vsub.f32 %v1585_v35, %v1677_v2 }
 0x767   :  { %v1691_v44 = vmul.f32 1.442695, %v1687_v3 }
 0x769   :  { %9475 = vpow2.f32 %v1691_v44 }
 0x76a   :  { %v1680_v46 = vpop.xlane.xlu2 %1679 }
 0x76b   :  { %v1688_v48 = vsub.f32 %v1614_v6, %v1680_v46 }
 0x76d   :  { %v1693_v62 = vmul.f32 1.442695, %v1688_v48 }
 0x76e   :  { %v1686_v49 = vpop.xlane.xlu1 %1685  ;;  %v1683_v9 = vpop.xlane.xlu0 %1682 }
 0x76f   :  { %v1690_v63 = vsub.f32 %v1672_v39, %v1686_v49  ;;  %v9476_v61 = vpop.eup %9475  ;;  %9477 = vpow2.f32 %v1693_v62  ;;  %v1689_v59 = vsub.f32 %v1643_v43, %v1683_v9 }
 0x770   :  { %v1699_v13 = vsel %vm786_vm3, %v9476_v61, 0.0 }
 0x771   :  { %v1697_v12 = vmul.f32 1.442695, %v1690_v63  ;;  %1700 = vadd.xlane.f32.xlu2 %v1699_v13  ;;  %v1695_v56 = vmul.f32 1.442695, %v1689_v59 }
 0x773   :  { %9479 = vpow2.f32 %v1697_v12 }
 0x774   :  { %9481 = vpow2.f32 %v1695_v56 }
 0x775   :  { %v10293_v14 = vpop.eup %9477 }
 0x776   :  { %v1702_v17 = vsel %vm786_vm3, %v10293_v14, 0.0 }
 0x777   :  { %1703 = vadd.xlane.f32.xlu0 %v1702_v17 }
 0x779   :  { %v10297_v20 = vpop.eup %9479 }
 0x77a   :  { %v1708_v54 = vsel %vm786_vm3, %v10297_v20, 0.0  ;;  %v10301_v5 = vpop.eup %9481 }
 0x77b   :  { %1709 = vadd.xlane.f32.xlu2 %v1708_v54  ;;  %v1705_v8 = vsel %vm786_vm3, %v10301_v5, 0.0 }
 0x77c   :  { %1706 = vadd.xlane.f32.xlu1 %v1705_v8 }
 0x7e4   :  { %v1701_v18 = vpop.xlane.xlu2 %1700 }
 0x7e5   :  { %9483 = vrcp.f32 %v1701_v18  ;;  %v1722_v24 = vand.u32 2147483648, %v1701_v18  ;;  %v1720_v52 = vand.u32 2147483647, %v1701_v18  ;;  %vm1716_vm10 = vweird.f32 %v1701_v18 }
 0x7e7   :  { %v1723_v40 = vor.u32 1.1754944e-38, %v1722_v24  ;;  %vm1721_vm12 = vcmp.eq.f32.partialorder %v1720_v52, 8.507059e+37 }
 0x7ea   :  { %v1704_v21 = vpop.xlane.xlu0 %1703 }
 0x7eb   :  { %v9484_v4 = vpop.eup %9483  ;;  %9485 = vrcp.f32 %v1704_v21  ;;  %v1735_v25 = vand.u32 2147483647, %v1704_v21  ;;  %v1737_v26 = vand.u32 2147483648, %v1704_v21  ;;  %vm1731_vm14 = vweird.f32 %v1704_v21 }
 0x7ec   :  { %v1712_v10 = vmul.f32 %v9484_v4, %v1701_v18  ;;  %vm1717_vm9 = vweird.f32 %v9484_v4 }
 0x7ed   :  { %vm1718_vm11 = vmor %vm1716_vm10, %vm1717_vm9  ;;  %vm1736_vm6 = vcmp.eq.f32.partialorder %v1735_v25, 8.507059e+37  ;;  %v1738_v34 = vor.u32 1.1754944e-38, %v1737_v26 }
 0x7ee   :  { %v1710_v19 = vpop.xlane.xlu2 %1709  ;;  %v1713_v11 = vsub.f32 1.0, %v1712_v10 }
 0x7ef   :  { %9487 = vrcp.f32 %v1710_v19  ;;  %v1707_v29 = vpop.xlane.xlu1 %1706  ;;  %v1767_v50 = vand.u32 2147483648, %v1710_v19  ;;  %v1765_v33 = vand.u32 2147483647, %v1710_v19  ;;  %vm1761_vm7 = vweird.f32 %v1710_v19 }
 0x7f0   :  { %v1714_v41 = vmul.f32 %v9484_v4, %v1713_v11  ;;  %9489 = vrcp.f32 %v1707_v29  ;;  %v1752_v37 = vand.u32 2147483648, %v1707_v29  ;;  %v1750_v23 = vand.u32 2147483647, %v1707_v29 }
 0x7f1   :  { %v9486_v45 = vpop.eup %9485  ;;  %v1768_v6 = vor.u32 1.1754944e-38, %v1767_v50  ;;  %vm1766_vm10 = vcmp.eq.f32.partialorder %v1765_v33, 8.507059e+37 }
 0x7f2   :  { %v1715_v58 = vadd.f32 %v9484_v4, %v1714_v41  ;;  %v1727_v42 = vmul.f32 %v9486_v45, %v1704_v21  ;;  %vm1732_vm13 = vweird.f32 %v9486_v45  ;;  %v1753_v46 = vor.u32 1.1754944e-38, %v1752_v37 }
 0x7f3   :  { %vm1733_vm5 = vmor %vm1731_vm14, %vm1732_vm13  ;;  %vm1751_vm13 = vcmp.eq.f32.partialorder %v1750_v23, 8.507059e+37 }
 0x7f4   :  { %v1719_v53 = vsel %vm1718_vm11, %v9484_v4, %v1715_v58  ;;  %v1728_v55 = vsub.f32 1.0, %v1727_v42  ;;  %vm1746_vm11 = vweird.f32 %v1707_v29 }
 0x7f5   :  { %v9488_v31 = vpop.eup %9487  ;;  %v1724_v60 = vsel %vm1721_vm12, %v1723_v40, %v1719_v53 }
 0x7f6   :  { %v1757_v16 = vmul.f32 %v9488_v31, %v1710_v19  ;;  %v9490_v27 = vpop.eup %9489  ;;  %v1729_v47 = vmul.f32 %v9486_v45, %v1728_v55  ;;  %v1725_v36 = vmul.f32 %v9476_v61, %v1724_v60  ;;  %vm1762_vm15 = vweird.f32 %v9488_v31 }
 0x7f7   :  { %v1742_v28 = vmul.f32 %v9490_v27, %v1707_v29  ;;  %vm1763_vm8 = vmor %vm1761_vm7, %vm1762_vm15  ;;  %vm1747_vm9 = vweird.f32 %v9490_v27 }
 0x7f8   :  { %v1758_v0 = vsub.f32 1.0, %v1757_v16  ;;  %v1730_v30 = vadd.f32 %v9486_v45, %v1729_v47  ;;  %9062 = vmatmul.msk.f32.vlgmr.msra.gmra.mxu2 %vm786_vm3, %v1725_v36  ;;  %vm1748_vm12 = vmor %vm1746_vm11, %vm1747_vm9  ;;  %v2064_v12 = vrot.slane %v1725_v36, 4 }
 0x7f9   :  { %v1743_v57 = vsub.f32 1.0, %v1742_v28 }
 0x7fa   :  { %v1759_v32 = vmul.f32 %v9488_v31, %v1758_v0  ;;  %v1734_v35 = vsel %vm1733_vm5, %v9486_v45, %v1730_v30 }
 0x7fb   :  { %v1744_v39 = vmul.f32 %v9490_v27, %v1743_v57  ;;  %v1739_v43 = vsel %vm1736_vm6, %v1738_v34, %v1734_v35  ;;  %vm2228_vm6 = vcmask 523264  }
 0x7fc   :  { %v1760_v7 = vadd.f32 %v9488_v31, %v1759_v32  ;;  %v1740_v2 = vmul.f32 %v10293_v14, %v1739_v43 }
 0x7fd   :  { %v1745_v3 = vadd.f32 %v9490_v27, %v1744_v39 }
 0x7fe   :  { %v1764_v1 = vsel %vm1763_vm8, %v9488_v31, %v1760_v7  ;;  %9063 = vmatmul.msk.f32.vlgmr.msrb.gmra.mxu3 %vm786_vm3, %v1740_v2  ;;  %v2076_v48 = vrot.slane %v1740_v2, 4 }
 0x7ff   :  { %v1769_v44 = vsel %vm1766_vm10, %v1768_v6, %v1764_v1  ;;  %v1749_v62 = vsel %vm1748_vm12, %v9490_v27, %v1745_v3 }
 0x800   :  { %v1770_v49 = vmul.f32 %v10297_v20, %v1769_v44  ;;  %v1754_v63 = vsel %vm1751_vm13, %v1753_v46, %v1749_v62 }
 0x801   :  { %v1755_v59 = vmul.f32 %v10301_v5, %v1754_v63 }
 0x802   :  { %9065 = vmatmul.msk.f32.vlgmr.msrb.gmra.mxu1 %vm786_vm3, %v1770_v49  ;;  %v2074_v61 = vrot.slane %v1770_v49, 4  ;;  %v2077_v9 = vsel %vm88_vm1, %v1770_v49, %v2076_v48 }
 0x803   :  { %v2085_v13 = vperm.slane %v2077_v9, %v9720_v15  ;;  %9064 = vmatmul.msk.f32.vlgmr.msra.gmra.mxu0 %vm786_vm3, %v1755_v59  ;;  %v2062_v14 = vrot.slane %v1755_v59, 4  ;;  %v2065_v17 = vsel %vm88_vm1, %v1755_v59, %v2064_v12  ;;  %v1990_v12 = vld [vmem:[%s13103_s1 + $0x38] sm:$0xff]  ;;  %v1991_v59 = vld [vmem:[%s13103_s1 + $0x50] sm:$0xff] }
 0x804   :  { %v2075_v56 = vsel %vm88_vm1, %v2074_v61, %v1740_v2  ;;  %v2073_v8 = vperm.slane %v2065_v17, %v9720_v15 }
 0x805   :  { %v2081_v20 = vperm.slane %v2075_v56, %v9720_v15  ;;  %v2098_v54 = vrot.slane %v2085_v13, 4  ;;  %v2063_v18 = vsel %vm88_vm1, %v2062_v14, %v1725_v36 }
 0x806   :  { %v2069_v4 = vperm.slane %v2063_v18, %v9720_v15  ;;  %v2100_v5 = vrot.slane %v2073_v8, 4  ;;  %v1989_v18 = vld [vmem:[%s13103_s1 + $0x20] sm:$0xff] }
 0x807   :  { %v2086_v21 = vrot.slane %v2081_v20, 4  ;;  %v2099_v10 = vsel %vm88_vm1, %v2098_v54, %v2073_v8  ;;  %v1988_v8 = vld [vmem:[%s13103_s1 + $0x8] sm:$0xff] }
 0x808   :  { %v2105_v19 = vperm.slane %v2099_v10, %v9733_v38  ;;  %v2088_v11 = vrot.slane %v2069_v4, 4  ;;  %v2101_v29 = vsel %vm88_vm1, %v2085_v13, %v2100_v5  ;;  %v9303_v13 = vpack.i.bf16 %v1990_v12, %v1991_v59 }
 0x809   :  { %v2087_v24 = vsel %vm88_vm1, %v2086_v21, %v2069_v4  ;;  %v2109_v52 = vperm.slane %v2101_v29, %v9733_v38  ;;  %v9308_v10 = vpack.i.bf16 %v1988_v8, %v1989_v18 }
 0x80a   :  { %v2093_v41 = vperm.slane %v2087_v24, %v9733_v38  ;;  %v2114_v45 = vrot.slane %v2105_v19, 4  ;;  %v2089_v58 = vsel %vm88_vm1, %v2081_v20, %v2088_v11  ;;  %9304 = vrot.lane.b32.xlu0 %v9303_v13, %s9631_s18 }
 0x80b   :  { %v2097_v42 = vperm.slane %v2089_v58, %v9733_v38  ;;  %v2116_v31 = vrot.slane %v2109_v52, 4  ;;  %9309 = vrot.lane.b32.xlu2 %v9308_v10, %s9631_s18 }
 0x80c   :  { %v2110_v40 = vrot.slane %v2093_v41, 4  ;;  %v2115_v55 = vsel %vm88_vm1, 0.0, %v2114_v45 }
 0x80d   :  { %v2112_v53 = vrot.slane %v2097_v42, 4  ;;  %v2117_v16 = vsel %vm88_vm1, 0.0, %v2116_v31  ;;  %v2129_v25 = vsel %vm88_vm1, %v2116_v31, %v2105_v19 }
 0x80e   :  { %v2133_v26 = vperm.slane %v2129_v25, %v9720_v15  ;;  %v2134_v50 = vrot.slane %v2117_v16, 4  ;;  %v2111_v30 = vsel %vm88_vm1, 0.0, %v2110_v40 }
 0x80f   :  { %v2113_v60 = vsel %vm88_vm1, 0.0, %v2112_v53  ;;  %v2118_v27 = vsel %vm88_vm1, %v2112_v53, %v2093_v41 }
 0x810   :  { %v2122_v47 = vperm.slane %v2118_v27, %v9720_v15  ;;  %v2123_v0 = vrot.slane %v2113_v60, 4  ;;  %v2135_v36 = vsel %vm88_vm1, %v2134_v50, %v2115_v55  ;;  %v2154_v28 = vrot.slane %v2133_v26, 4 }
 0x811   :  { %v2139_v32 = vperm.slane %v2135_v36, %v9720_v15 }
 0x812   :  { %v2124_v33 = vsel %vm88_vm1, %v2123_v0, %v2111_v30  ;;  %v2142_v34 = vrot.slane %v2122_v47, 4 }
 0x813   :  { %v2128_v57 = vperm.slane %v2124_v33, %v9720_v15  ;;  %v2152_v35 = vrot.slane %v2139_v32, 4  ;;  %v2155_v7 = vsel %vm88_vm1, %v2139_v32, %v2154_v28 }
 0x814   :  { %v2163_v6 = vperm.slane %v2155_v7, %v9733_v38 }
 0x815   :  { %v2140_v37 = vrot.slane %v2128_v57, 4  ;;  %v2153_v39 = vsel %vm88_vm1, %v2152_v35, %v2133_v26  ;;  %v2143_v23 = vsel %vm88_vm1, %v2128_v57, %v2142_v34 }
 0x816   :  { %v2159_v43 = vperm.slane %v2153_v39, %v9733_v38  ;;  %v2151_v1 = vperm.slane %v2143_v23, %v9733_v38  ;;  %v2168_v2 = vrot.slane %v2163_v6, 4 }
 0x817   :  { %v2141_v3 = vsel %vm88_vm1, %v2140_v37, %v2122_v47 }
 0x818   :  { %v2147_v44 = vperm.slane %v2141_v3, %v9733_v38  ;;  %v10349_v46 = vsel %vm88_vm1, %v2168_v2, %v2151_v1  ;;  %v2170_v48 = vrot.slane %v2151_v1, 4  ;;  %v2164_v49 = vrot.slane %v2159_v43, 4 }
 0x81a   :  { %v2166_v62 = vrot.slane %v2147_v44, 4  ;;  %v10352_v63 = vsel %vm88_vm1, %v2163_v6, %v2170_v48  ;;  %v10355_v61 = vsel %vm88_vm1, %v2164_v49, %v2147_v44 }
 0x81c   :  { %v10358_v9 = vsel %vm88_vm1, %v2159_v43, %v2166_v62 }
 0x87b   :  { %v1791_v56 = vpop.f32.mrf.mxu2 }
 0x87c   :  { %v1865_v14 = vrot.slane %v1791_v56, 4 }
 0x87f   :  { %v1860_v17 = vpop.f32.mrf.mxu1 }
 0x880   :  { %v1837_v20 = vpop.f32.mrf.mxu0  ;;  %v1875_v54 = vrot.slane %v1860_v17, 4 }
 0x881   :  { %v1863_v21 = vrot.slane %v1837_v20, 4  ;;  %v1866_v4 = vsel %vm88_vm1, %v1837_v20, %v1865_v14  ;;  %v1814_v5 = vpop.f32.mrf.mxu3 }
 0x882   :  { %v1874_v19 = vperm.slane %v1866_v4, %v9720_v15  ;;  %v1876_v11 = vsel %vm88_vm1, %v1875_v54, %v1814_v5  ;;  %v1877_v24 = vrot.slane %v1814_v5, 4 }
 0x883   :  { %v1864_v29 = vsel %vm88_vm1, %v1863_v21, %v1791_v56  ;;  %v1882_v41 = vperm.slane %v1876_v11, %v9720_v15 }
 0x884   :  { %v1870_v52 = vperm.slane %v1864_v29, %v9720_v15  ;;  %v1878_v45 = vsel %vm88_vm1, %v1860_v17, %v1877_v24  ;;  %v1901_v58 = vrot.slane %v1874_v19, 4  ;;  %v9305_v24 = vpop.permute.xlu0 %9304 }
 0x885   :  { %v1886_v42 = vperm.slane %v1878_v45, %v9720_v15  ;;  %v1887_v31 = vrot.slane %v1882_v41, 4  ;;  %v9307_v29 = vunpack.i.h.bf16 %v9305_v24 }
 0x886   :  { %v1889_v40 = vrot.slane %v1870_v52, 4 }
 0x887   :  { %v1888_v53 = vsel %vm88_vm1, %v1887_v31, %v1870_v52  ;;  %v1899_v55 = vrot.slane %v1886_v42, 4  ;;  %v1902_v16 = vsel %vm88_vm1, %v1886_v42, %v1901_v58  ;;  %v9310_v52 = vpop.permute.xlu2 %9309 }
 0x888   :  { %v1890_v25 = vsel %vm88_vm1, %v1882_v41, %v1889_v40  ;;  %v1894_v26 = vperm.slane %v1888_v53, %v9733_v38  ;;  %v1910_v50 = vperm.slane %v1902_v16, %v9733_v38  ;;  %v9306_v41 = vunpack.i.l.bf16 %v9305_v24 }
 0x889   :  { %v1898_v60 = vperm.slane %v1890_v25, %v9733_v38  ;;  %v1900_v27 = vsel %vm88_vm1, %v1899_v55, %v1874_v19  ;;  %v9312_v45 = vunpack.i.h.bf16 %v9310_v52  ;;  %v9311_v58 = vunpack.i.l.bf16 %v9310_v52  ;;  %v9409_v25 = vld [vmem:[%s13105_s3 + $0x4] ss:$0 sm:$0xff] }
 0x88a   :  { %v1906_v47 = vperm.slane %v1900_v27, %v9733_v38  ;;  %v1911_v0 = vrot.slane %v1894_v26, 4  ;;  %v1917_v36 = vrot.slane %v1910_v50, 4  ;;  %2025 = vmatpush.msrb.mxu2 %v9306_v41 }
 0x88b   :  { %v1913_v28 = vrot.slane %v1898_v60, 4 }
 0x88c   :  { %v1912_v30 = vsel %vm88_vm1, 0.0, %v1911_v0  ;;  %v1915_v32 = vrot.slane %v1906_v47, 4  ;;  %v1918_v33 = vsel %vm88_vm1, 0.0, %v1917_v36  ;;  %v1930_v34 = vsel %vm88_vm1, %v1917_v36, %v1906_v47  ;;  %2026 = vmatpush.msrb.mxu2 %v9307_v29 }
 0x88d   :  { %v1914_v57 = vsel %vm88_vm1, 0.0, %v1913_v28  ;;  %v1919_v35 = vsel %vm88_vm1, %v1913_v28, %v1894_v26  ;;  %v1935_v7 = vrot.slane %v1918_v33, 4  ;;  %v1934_v6 = vperm.slane %v1930_v34, %v9720_v15  ;;  %v2190_v33 = vld [vmem:[%s13103_s1 + $0x40] sm:$0xff]  ;;  %v2188_v34 = vld [vmem:[%s13103_s1 + $0x10] sm:$0xff] }
 0x88e   :  { %v1924_v37 = vrot.slane %v1914_v57, 4  ;;  %v1916_v39 = vsel %vm88_vm1, 0.0, %v1915_v32  ;;  %v1923_v23 = vperm.slane %v1919_v35, %v9720_v15  ;;  %2027 = vmatpush.msrb.mxu2 %v9311_v58  ;;  %v2191_v32 = vld [vmem:[%s13103_s1 + $0x58] sm:$0xff]  ;;  %v2224_v35 = vld [vmem:[%s13106_s2 + $0x30] sm:$0xff] }
 0x88f   :  { %v1936_v43 = vsel %vm88_vm1, %v1935_v7, %v1916_v39  ;;  %v1955_v1 = vrot.slane %v1934_v6, 4  ;;  %2209 = vmatpush.msra.mxu3 %v2191_v32  ;;  %v2225_v57 = vld [vmem:[%s13106_s2 + $0x38] sm:$0xff]  ;;  %v2223_v7 = vld [vmem:[%s13106_s2 + $0x28] sm:$0xff]  ;;  %v2222_v39 = vld [vmem:[%s13106_s2 + $0x20] sm:$0xff] }
 0x890   :  { %v1925_v2 = vsel %vm88_vm1, %v1924_v37, %v1912_v30  ;;  %v1940_v3 = vperm.slane %v1936_v43, %v9720_v15  ;;  %v1943_v44 = vrot.slane %v1923_v23, 4  ;;  %2028 = vmatpush.msrb.mxu2 %v9312_v45  ;;  %2240 = vmatpush.msrb.mxu0 %v2225_v57  ;;  %v2221_v43 = vld [vmem:[%s13106_s2 + $0x18] sm:$0xff]  ;;  %v9415_v32 = vld [vmem:[%s13105_s3 + $0xc] ss:$0 sm:$0xff] }
 0x891   :  { %v1929_v48 = vperm.slane %v1925_v2, %v9720_v15  ;;  %2210 = vmatpush.msra.mxu3 %v2190_v33 }
 0x892   :  { %v1956_v49 = vsel %vm88_vm1, %v1940_v3, %v1955_v1  ;;  %v1953_v62 = vrot.slane %v1940_v3, 4  ;;  %2241 = vmatpush.msrb.mxu0 %v2224_v35 }
 0x893   :  { %v1944_v12 = vsel %vm88_vm1, %v1929_v48, %v1943_v44  ;;  %v1964_v59 = vperm.slane %v1956_v49, %v9733_v38  ;;  %v1941_v13 = vrot.slane %v1929_v48, 4 }
 0x894   :  { %v1954_v56 = vsel %vm88_vm1, %v1953_v62, %v1934_v6  ;;  %v1952_v14 = vperm.slane %v1944_v12, %v9733_v38  ;;  %2242 = vmatpush.msrb.mxu0 %v2223_v7  ;;  %v9410_v62 = vld [vmem:[%s13105_s3 + $0x9] ss:$0 sm:$0xff] }
 0x895   :  { %v1969_v17 = vrot.slane %v1964_v59, 4  ;;  %v1942_v20 = vsel %vm88_vm1, %v1941_v13, %v1923_v23  ;;  %v1960_v54 = vperm.slane %v1954_v56, %v9733_v38  ;;  %v9411_v13 = vld [vmem:[%s13105_s3 + $0xa] ss:$0 sm:$0xff] }
 0x896   :  { %v1948_v8 = vperm.slane %v1942_v20, %v9733_v38  ;;  %v1971_v19 = vrot.slane %v1952_v14, 4  ;;  %2243 = vmatpush.msrb.mxu0 %v2222_v39  ;;  %v2219_v20 = vld [vmem:[%s13106_s2 + $0x8] sm:$0xff] }
 0x897   :  { %v1970_v18 = vsel %vm88_vm1, %v1969_v17, %v1952_v14  ;;  %v1965_v21 = vrot.slane %v1960_v54, 4  ;;  %v2220_v17 = vld [vmem:[%s13106_s2 + $0x10] sm:$0xff] }
 0x898   :  { %1978 = vrot.lane.b32.xlu0 %v1970_v18, %s9632_s19  ;;  %v1967_v4 = vrot.slane %v1948_v8, 4  ;;  %v1972_v11 = vsel %vm88_vm1, %v1964_v59, %v1971_v19  ;;  %2244 = vmatpush.msrb.mxu0 %v2221_v43 }
 0x899   :  { %v1966_v5 = vsel %vm88_vm1, %v1965_v21, %v1948_v8  ;;  %v9412_v8 = vld [vmem:[%s13105_s3 + $0x5] ss:$0 sm:$0xff] }
 0x89a   :  { %v1968_v10 = vsel %vm88_vm1, %v1960_v54, %v1967_v4  ;;  %2245 = vmatpush.msrb.mxu0 %v2220_v17  ;;  %v2218_v54 = vld [vmem:[%s13106_s2] sm:$0xff] }
 0x89b   :  { %1974 = vrot.lane.b32.xlu1 %v1968_v10, %s9634_s21 }
 0x89c   :  { %2246 = vmatpush.msrb.mxu0 %v2219_v20 }
 0x89e   :  { %2247 = vmatpush.msrb.mxu0 %v2218_v54 }
 0x8a0   :  { %1982 = vrot.lane.b32.xlu0 %v1972_v11, %s9633_s20 }
 0x90a   :  { %v1979_v42 = vpop.permute.xlu0 %1978 }
 0x90d   :  { %v1975_v31 = vpop.permute.xlu1 %1974 }
 0x90e   :  { %v1985_v40 = vsel %vm422_vm2, %v1966_v5, %v1975_v31  ;;  %v9413_v5 = vld [vmem:[%s13105_s3 + $0x6] ss:$0 sm:$0xff]  ;;  %v10490_v31 = vld [vmem:[%s13103_s1 + $0x90] sm:$0xff] }
 0x90f   :  { %v1986_v55 = vsel %vm786_vm3, %v1985_v40, %v1979_v42  ;;  %v10485_v42 = vld [vmem:[%s13103_s1 + $0xa8] sm:$0xff]  ;;  %v10496_v40 = vld [vmem:[%s13103_s1 + $0x78] sm:$0xff] }
 0x910   :  { %2304 = vmatpush.msra.mxu1 %v10485_v42 }
 0x912   :  { %v1983_v53 = vpop.permute.xlu0 %1982  ;;  %2305 = vmatpush.msra.mxu1 %v10490_v31 }
 0x913   :  { %v1987_v16 = vsel %vm788_vm4, %v1986_v55, %v1983_v53  ;;  %v10502_v53 = vld [vmem:[%s13103_s1 + $0x60] sm:$0xff] }
 0x914   :  { %9066 = vmatmul.msk.f32.vlgmr.msrb.gmra.mxu2 %vm29_vm0, %v1987_v16  ;;  %2306 = vmatpush.msra.mxu1 %v10496_v40 }
 0x916   :  { %2307 = vmatpush.msra.mxu1 %v10502_v53 }
 0x997   :  { %v2030_v26 = vpop.f32.mrf.mxu2 }
 0x998   :  { %v2031_v50 = vadd.f32 %v9409_v25, %v2030_v26 }
 0x99a   :  { %v2033_v60 = vadd.f32 %v2031_v50, %v10010_v51  ;;  %v2189_v51 = vld [vmem:[%s13103_s1 + $0x28] sm:$0xff] }
 0x99b   :  { %2211 = vmatpush.msra.mxu3 %v2189_v51 }
 0x99c   :  { %v2036_v27 = vsel %vm29_vm0, %v2033_v60, 0.0 }
 0x99d   :  { %2037 = vadd.xlane.f32.xlu1 %v2036_v27  ;;  %2212 = vmatpush.msra.mxu3 %v2188_v34  ;;  %v9416_v34 = vld [vmem:[%s13105_s3 + $0x10] ss:$0 sm:$0xff] }
 0xa10   :  { %v2038_v47 = vpop.xlane.xlu1 %2037 }
 0xa11   :  { %v2039_v0 = vmul.f32 %v2038_v47, %v9972_v22 }
 0xa13   :  { %v2040_v36 = vsub.f32 %v2033_v60, %v2039_v0 }
 0xa15   :  { %v2041_v28 = vmul.f32 %v2040_v36, %v2040_v36 }
 0xa17   :  { %v2042_v30 = vsel %vm29_vm0, %v2041_v28, 0.0 }
 0xa18   :  { %2043 = vadd.xlane.f32.xlu2 %v2042_v30 }
 0xa8b   :  { %v2044_v6 = vpop.xlane.xlu2 %2043 }
 0xa8c   :  { %v2045_v37 = vmul.f32 %v2044_v6, %v9972_v22 }
 0xa8e   :  { %v2046_v23 = vadd.f32 1e-05, %v2045_v37 }
 0xa90   :  { %9491 = vrsqrt.f32 %v2046_v23  ;;  %vm2053_vm15 = vweird.f32 %v2046_v23 }
 0xa96   :  { %v9492_v1 = vpop.eup %9491 }
 0xa97   :  { %v2048_v2 = vmul.f32 %v9492_v1, %v2046_v23  ;;  %vm2054_vm14 = vweird.f32 %v9492_v1 }
 0xa98   :  { %vm2055_vm5 = vmor %vm2053_vm15, %vm2054_vm14 }
 0xa99   :  { %v2049_v3 = vmul.f32 %v9492_v1, %v2048_v2 }
 0xa9b   :  { %v2050_v44 = vmul.f32 0.5, %v2049_v3 }
 0xa9d   :  { %v2051_v48 = vsub.f32 1.5, %v2050_v44 }
 0xa9f   :  { %v2052_v49 = vmul.f32 %v9492_v1, %v2051_v48 }
 0xaa1   :  { %v2056_v12 = vsel %vm2055_vm5, %v9492_v1, %v2052_v49 }
 0xaa2   :  { %v2057_v59 = vmul.f32 %v2056_v12, %v2040_v36  ;;  %v9414_v36 = vld [vmem:[%s13105_s3 + $0xb] ss:$0 sm:$0xff] }
 0xaa4   :  { %v2059_v56 = vmul.f32 %v9410_v62, %v2057_v59 }
 0xaa6   :  { %v2061_v14 = vadd.f32 %v9411_v13, %v2059_v56 }
 0xaa8   :  { %9067 = vmatmul.msk.f32.vlgmr.msra.gmra.mxu3 %vm29_vm0, %v2061_v14 }
 0xb2b   :  { %v2214_v18 = vpop.f32.mrf.mxu3 }
 0xb2c   :  { %v2215_v21 = vadd.f32 %v9412_v8, %v2214_v18 }
 0xb2e   :  { %v2217_v4 = vmax.f32 %v2215_v21, 0.0 }
 0xb30   :  { %9068 = vmatmul.msk.f32.vlgmr.msrb.gmra.mxu0 %vm2228_vm6, %v2217_v4 }
 0xbad   :  { %v2249_v10 = vpop.f32.mrf.mxu0 }
 0xbae   :  { %v2250_v19 = vadd.f32 %v9413_v5, %v2249_v10 }
 0xbb0   :  { %v2252_v11 = vadd.f32 %v2250_v19, %v2061_v14 }
 0xbb2   :  { %v2255_v24 = vsel %vm29_vm0, %v2252_v11, 0.0 }
 0xbb3   :  { %2256 = vadd.xlane.f32.xlu0 %v2255_v24 }
 0xc26   :  { %v2257_v29 = vpop.xlane.xlu0 %2256 }
 0xc27   :  { %v2258_v41 = vmul.f32 %v2257_v29, %v9972_v22 }
 0xc29   :  { %v2259_v52 = vsub.f32 %v2252_v11, %v2258_v41 }
 0xc2b   :  { %v2260_v45 = vmul.f32 %v2259_v52, %v2259_v52 }
 0xc2d   :  { %v2261_v58 = vsel %vm29_vm0, %v2260_v45, 0.0 }
 0xc2e   :  { %2262 = vadd.xlane.f32.xlu2 %v2261_v58 }
 0xca1   :  { %v2263_v55 = vpop.xlane.xlu2 %2262 }
 0xca2   :  { %v2264_v16 = vmul.f32 %v2263_v55, %v9972_v22 }
 0xca4   :  { %v2265_v25 = vadd.f32 1e-05, %v2264_v16 }
 0xca6   :  { %9493 = vrsqrt.f32 %v2265_v25  ;;  %vm2272_vm8 = vweird.f32 %v2265_v25 }
 0xcac   :  { %v9494_v26 = vpop.eup %9493 }
 0xcad   :  { %v2267_v50 = vmul.f32 %v9494_v26, %v2265_v25  ;;  %vm2273_vm7 = vweird.f32 %v9494_v26 }
 0xcae   :  { %vm2274_vm9 = vmor %vm2272_vm8, %vm2273_vm7 }
 0xcaf   :  { %v2268_v60 = vmul.f32 %v9494_v26, %v2267_v50 }
 0xcb1   :  { %v2269_v27 = vmul.f32 0.5, %v2268_v60 }
 0xcb3   :  { %v2270_v47 = vsub.f32 1.5, %v2269_v27 }
 0xcb5   :  { %v2271_v0 = vmul.f32 %v9494_v26, %v2270_v47 }
 0xcb7   :  { %v2275_v28 = vsel %vm2274_vm9, %v9494_v26, %v2271_v0 }
 0xcb8   :  { %v2276_v30 = vmul.f32 %v2275_v28, %v2259_v52 }
 0xcba   :  { %v2278_v33 = vmul.f32 %v9414_v36, %v2276_v30 }
 0xcbc   :  { %v10513_v51 = vadd.f32 %v9415_v32, %v2278_v33 }
 0xcbe   :  { %9074 = vmatmul.msk.f32.vlgmr.msra.gmra.mxu1 %vm29_vm0, %v10513_v51 }
 0xd3b   :  { %v2309_v57 = vpop.f32.mrf.mxu1 }
 0xd3c   :  { %v10520_v35 = vadd.f32 %v9416_v34, %v2309_v57 }
 0xd3e   :  { %2325 = vrot.lane.b32.xlu2 %v10520_v35, %s9618_s30  ;;  %2319 = vrot.lane.b32.xlu0 %v10520_v35, %s9620_s7  ;;  %v2348_v3 = vrot.slane %v10520_v35, 4 }
 0xd3f   :  { %2313 = vrot.lane.b32.xlu1 %v10520_v35, %s9623_s10 }
 0xd46   :  { %2331 = vrot.lane.b32.xlu2 %v10520_v35, %s9622_s9  ;;  %2322 = vrot.lane.b32.xlu0 %v10520_v35, %s9625_s12 }
 0xd47   :  { %2316 = vrot.lane.b32.xlu1 %v10520_v35, %s9619_s6 }
 0xd4f   :  { %2328 = vrot.lane.b32.xlu1 %v10520_v35, %s9621_s8 }
 0xd98   :  { %v2326_v7 = vpop.permute.xlu2 %2325 }
 0xd99   :  { %v2384_v44 = vrot.slane %v2326_v7, 4 }
 0xda0   :  { %v2332_v1 = vpop.permute.xlu2 %2331 }
 0xda1   :  { %v2382_v62 = vrot.slane %v2332_v1, 4  ;;  %v2385_v14 = vsel %vm88_vm1, %v2332_v1, %v2384_v44 }
 0xda2   :  { %v2393_v5 = vperm.slane %v2385_v14, %v9720_v15 }
 0xda3   :  { %v2383_v18 = vsel %vm88_vm1, %v2382_v62, %v2326_v7 }
 0xda4   :  { %v2389_v24 = vperm.slane %v2383_v18, %v9720_v15  ;;  %v2430_v16 = vrot.slane %v2393_v5, 4 }
 0xda6   :  { %v2418_v0 = vrot.slane %v2389_v24, 4 }
 0xdb0   :  { %v2320_v6 = vpop.permute.xlu0 %2319 }
 0xdb1   :  { %v2314_v37 = vpop.permute.xlu1 %2313  ;;  %v2358_v23 = vrot.slane %v2320_v6, 4 }
 0xdb2   :  { %v2360_v39 = vrot.slane %v2314_v37, 4 }
 0xdb3   :  { %v2359_v2 = vsel %vm88_vm1, %v2358_v23, %v2314_v37 }
 0xdb4   :  { %v2361_v43 = vsel %vm88_vm1, %v2320_v6, %v2360_v39  ;;  %v2365_v12 = vperm.slane %v2359_v2, %v9720_v15 }
 0xdb5   :  { %v2369_v48 = vperm.slane %v2361_v43, %v9720_v15 }
 0xdb6   :  { %v2394_v21 = vrot.slane %v2365_v12, 4 }
 0xdb7   :  { %v2406_v20 = vrot.slane %v2369_v48, 4 }
 0xdb8   :  { %v2323_v4 = vpop.permute.xlu0 %2322 }
 0xdb9   :  { %v2317_v49 = vpop.permute.xlu1 %2316  ;;  %v2372_v29 = vrot.slane %v2323_v4, 4 }
 0xdba   :  { %v2346_v59 = vrot.slane %v2317_v49, 4  ;;  %v2349_v13 = vsel %vm88_vm1, %v2317_v49, %v2348_v3 }
 0xdbb   :  { %v2357_v56 = vperm.slane %v2349_v13, %v9720_v15 }
 0xdbc   :  { %v2347_v17 = vsel %vm88_vm1, %v2346_v59, %v10520_v35 }
 0xdbd   :  { %v2353_v54 = vperm.slane %v2347_v17, %v9720_v15  ;;  %v2408_v8 = vrot.slane %v2357_v56, 4  ;;  %v2407_v19 = vsel %vm88_vm1, %v2406_v20, %v2357_v56 }
 0xdbe   :  { %v2413_v58 = vperm.slane %v2407_v19, %v9733_v38 }
 0xdbf   :  { %v2396_v10 = vrot.slane %v2353_v54, 4  ;;  %v2395_v11 = vsel %vm88_vm1, %v2394_v21, %v2353_v54  ;;  %v2409_v52 = vsel %vm88_vm1, %v2369_v48, %v2408_v8 }
 0xdc0   :  { %v2401_v25 = vperm.slane %v2395_v11, %v9733_v38  ;;  %v2417_v60 = vperm.slane %v2409_v52, %v9733_v38  ;;  %v2452_v28 = vrot.slane %v2413_v58, 4 }
 0xdc1   :  { %v2397_v41 = vsel %vm88_vm1, %v2365_v12, %v2396_v10  ;;  %v2329_v45 = vpop.permute.xlu1 %2328 }
 0xdc2   :  { %v2370_v55 = vrot.slane %v2329_v45, 4  ;;  %v2373_v26 = vsel %vm88_vm1, %v2329_v45, %v2372_v29  ;;  %v2405_v50 = vperm.slane %v2397_v41, %v9733_v38  ;;  %v2444_v33 = vrot.slane %v2401_v25, 4 }
 0xdc3   :  { %v2381_v47 = vperm.slane %v2373_v26, %v9720_v15  ;;  %v2456_v37 = vrot.slane %v2417_v60, 4 }
 0xdc4   :  { %v2371_v27 = vsel %vm88_vm1, %v2370_v55, %v2323_v4  ;;  %v2448_v6 = vrot.slane %v2405_v50, 4 }
 0xdc5   :  { %v2377_v36 = vperm.slane %v2371_v27, %v9720_v15  ;;  %v2431_v30 = vsel %vm88_vm1, %v2430_v16, %v2381_v47  ;;  %v2432_v32 = vrot.slane %v2381_v47, 4 }
 0xdc6   :  { %v2437_v7 = vperm.slane %v2431_v30, %v9733_v38 }
 0xdc7   :  { %v2419_v34 = vsel %vm88_vm1, %v2418_v0, %v2377_v36  ;;  %v2420_v57 = vrot.slane %v2377_v36, 4  ;;  %v2433_v23 = vsel %vm88_vm1, %v2393_v5, %v2432_v32 }
 0xdc8   :  { %v2425_v39 = vperm.slane %v2419_v34, %v9733_v38  ;;  %v2441_v1 = vperm.slane %v2433_v23, %v9733_v38  ;;  %v2450_v2 = vrot.slane %v2437_v7, 4  ;;  %v2453_v3 = vsel %vm88_vm1, %v2437_v7, %v2452_v28 }
 0xdc9   :  { %v2421_v43 = vsel %vm88_vm1, %v2389_v24, %v2420_v57  ;;  %v2552_v62 = vrot.slane %v2453_v3, 4 }
 0xdca   :  { %v2429_v44 = vperm.slane %v2421_v43, %v9733_v38  ;;  %v2442_v48 = vrot.slane %v2425_v39, 4  ;;  %v2445_v49 = vsel %vm88_vm1, %v2425_v39, %v2444_v33  ;;  %v2451_v12 = vsel %vm88_vm1, %v2450_v2, %v2413_v58 }
 0xdcb   :  { %v2454_v59 = vrot.slane %v2441_v1, 4  ;;  %v2457_v13 = vsel %vm88_vm1, %v2441_v1, %v2456_v37  ;;  %v2528_v56 = vrot.slane %v2445_v49, 4  ;;  %v2540_v20 = vrot.slane %v2451_v12, 4 }
 0xdcc   :  { %v2443_v14 = vsel %vm88_vm1, %v2442_v48, %v2401_v25  ;;  %v2446_v17 = vrot.slane %v2429_v44, 4  ;;  %v2550_v54 = vrot.slane %v2457_v13, 4  ;;  %v2553_v18 = vsel %vm88_vm1, %v2457_v13, %v2552_v62 }
 0xdcd   :  { %v2455_v8 = vsel %vm88_vm1, %v2454_v59, %v2417_v60  ;;  %v2449_v21 = vsel %vm88_vm1, %v2429_v44, %v2448_v6  ;;  %v2516_v4 = vrot.slane %v2443_v14, 4  ;;  %v2561_v16 = vperm.slane %v2553_v18, %v9720_v15 }
 0xdce   :  { %v2538_v5 = vrot.slane %v2455_v8, 4  ;;  %v2551_v10 = vsel %vm88_vm1, %v2550_v54, %v2453_v3  ;;  %v2447_v19 = vsel %vm88_vm1, %v2446_v17, %v2405_v50  ;;  %v2526_v11 = vrot.slane %v2449_v21, 4 }
 0xdcf   :  { %v2557_v24 = vperm.slane %v2551_v10, %v9720_v15  ;;  %v2514_v29 = vrot.slane %v2447_v19, 4  ;;  %v2517_v41 = vsel %vm88_vm1, %v2447_v19, %v2516_v4  ;;  %v2529_v52 = vsel %vm88_vm1, %v2449_v21, %v2528_v56 }
 0xdd0   :  { %v2525_v45 = vperm.slane %v2517_v41, %v9720_v15  ;;  %v2537_v58 = vperm.slane %v2529_v52, %v9720_v15  ;;  %v2541_v55 = vsel %vm88_vm1, %v2455_v8, %v2540_v20  ;;  %v2527_v50 = vsel %vm88_vm1, %v2526_v11, %v2445_v49 }
 0xdd1   :  { %v2549_v25 = vperm.slane %v2541_v55, %v9720_v15  ;;  %v2515_v26 = vsel %vm88_vm1, %v2514_v29, %v2443_v14  ;;  %v2539_v60 = vsel %vm88_vm1, %v2538_v5, %v2451_v12  ;;  %v2598_v47 = vrot.slane %v2561_v16, 4 }
 0xdd2   :  { %v2574_v27 = vrot.slane %v2537_v58, 4  ;;  %v2576_v0 = vrot.slane %v2525_v45, 4  ;;  %v2521_v36 = vperm.slane %v2515_v26, %v9720_v15  ;;  %v2533_v30 = vperm.slane %v2527_v50, %v9720_v15 }
 0xdd3   :  { %v2600_v28 = vrot.slane %v2549_v25, 4  ;;  %v2545_v32 = vperm.slane %v2539_v60, %v9720_v15  ;;  %v2586_v33 = vrot.slane %v2557_v24, 4  ;;  %v2599_v57 = vsel %vm88_vm1, %v2598_v47, %v2549_v25 }
 0xdd4   :  { %v2575_v34 = vsel %vm88_vm1, %v2574_v27, %v2525_v45  ;;  %v2577_v7 = vsel %vm88_vm1, %v2537_v58, %v2576_v0  ;;  %v2564_v6 = vrot.slane %v2521_v36, 4  ;;  %v2605_v39 = vperm.slane %v2599_v57, %v9733_v38  ;;  %v9609_v58 = vld [vmem:[%s13104_s0 + $0x18] sm:$0xff] }
 0xdd5   :  { %v2581_v37 = vperm.slane %v2575_v34, %v9733_v38  ;;  %v2585_v23 = vperm.slane %v2577_v7, %v9733_v38  ;;  %v2601_v43 = vsel %vm88_vm1, %v2561_v16, %v2600_v28  ;;  %v2562_v2 = vrot.slane %v2533_v30, 4 }
 0xdd6   :  { %v2609_v1 = vperm.slane %v2601_v43, %v9733_v38  ;;  %v2587_v3 = vsel %vm88_vm1, %v2586_v33, %v2545_v32  ;;  %v2618_v44 = vrot.slane %v2605_v39, 4  ;;  %v2565_v13 = vsel %vm88_vm1, %v2533_v30, %v2564_v6 }
 0xdd7   :  { %v2620_v48 = vrot.slane %v2581_v37, 4  ;;  %v2593_v49 = vperm.slane %v2587_v3, %v9733_v38  ;;  %v2624_v62 = vrot.slane %v2585_v23, 4  ;;  %v2563_v59 = vsel %vm88_vm1, %v2562_v2, %v2521_v36 }
 0xdd8   :  { %v2622_v12 = vrot.slane %v2609_v1, 4  ;;  %v2588_v56 = vrot.slane %v2545_v32, 4  ;;  %v2619_v14 = vsel %vm88_vm1, %v2618_v44, %v2581_v37  ;;  %v2569_v20 = vperm.slane %v2563_v59, %v9733_v38 }
 0xdd9   :  { %v2621_v17 = vsel %vm88_vm1, %v2605_v39, %v2620_v48  ;;  %v2610_v54 = vrot.slane %v2593_v49, 4  ;;  %9075 = vmatpush.xpose.msk.msra.mxu2 %vm422_vm2, %v2619_v14  ;;  %v2625_v18 = vsel %vm88_vm1, %v2609_v1, %v2624_v62  ;;  %v2573_v10 = vperm.slane %v2565_v13, %v9733_v38 }
 0xdda   :  { %9077 = vmatpush.xpose.msk.msrb.mxu3 %vm422_vm2, %v2621_v17  ;;  %v2623_v8 = vsel %vm88_vm1, %v2622_v12, %v2585_v23  ;;  %v2589_v21 = vsel %vm88_vm1, %v2557_v24, %v2588_v56  ;;  %v2612_v5 = vrot.slane %v2569_v20, 4 }
 0xddb   :  { %9079 = vmatpush.xpose.msk.msrb.mxu1 %vm422_vm2, %v2623_v8  ;;  %v2611_v4 = vsel %vm88_vm1, %v2610_v54, %v2569_v20  ;;  %v2597_v19 = vperm.slane %v2589_v21, %v9733_v38  ;;  %v2616_v41 = vrot.slane %v2573_v10, 4 }
 0xddc   :  { %9076 = vmatmul.msk.f32.vlgmr.msra.gmra.mxu2 %vm422_vm2, %v2611_v4  ;;  %v2613_v11 = vsel %vm88_vm1, %v2593_v49, %v2612_v5 }
 0xddd   :  { %9081 = vmatpush.xpose.msk.msrb.mxu2 %vm422_vm2, %v2625_v18  ;;  %v2614_v29 = vrot.slane %v2597_v19, 4  ;;  %9078 = vmatmul.msk.f32.vlgmr.msrb.gmra.mxu3 %vm422_vm2, %v2613_v11  ;;  %v2617_v52 = vsel %vm88_vm1, %v2597_v19, %v2616_v41 }
 0xddf   :  { %v2615_v24 = vsel %vm88_vm1, %v2614_v29, %v2573_v10 }
 0xde0   :  { %9080 = vmatmul.msk.f32.vlgmr.msrb.gmra.mxu1 %vm422_vm2, %v2615_v24 }
 0xde4   :  { %9082 = vmatmul.msk.f32.vlgmr.msrb.gmra.mxu2 %vm422_vm2, %v2617_v52 }
 0xe5d   :  { %v2755_v45 = vpop.f32.mrf.mxu1 }
 0xe5e   :  { %v2756_v55 = vadd.f32 %v9609_v58, %v2755_v45 }
 0xe5f   :  { %v2703_v25 = vpop.f32.mrf.mxu2 }
 0xe60   :  { %v2790_v16 = vsel %vm422_vm2, %v2756_v55, -inf  ;;  %v2704_v26 = vadd.f32 %v9609_v58, %v2703_v25  ;;  %v2729_v60 = vpop.f32.mrf.mxu3 }
 0xe61   :  { %2791 = vmax.xlane.f32.xlu1 %v2790_v16  ;;  %v2730_v27 = vadd.f32 %v9609_v58, %v2729_v60 }
 0xe62   :  { %v2784_v50 = vsel %vm422_vm2, %v2704_v26, -inf }
 0xe63   :  { %2785 = vmax.xlane.f32.xlu0 %v2784_v50  ;;  %v2787_v28 = vsel %vm422_vm2, %v2730_v27, -inf }
 0xe67   :  { %v2781_v47 = vpop.f32.mrf.mxu2 }
 0xe68   :  { %v2782_v0 = vadd.f32 %v9609_v58, %v2781_v47 }
 0xe6a   :  { %v2793_v36 = vsel %vm422_vm2, %v2782_v0, -inf }
 0xe6b   :  { %2794 = vmax.xlane.f32.xlu2 %v2793_v36  ;;  %2788 = vmax.xlane.f32.xlu0 %v2787_v28 }
 0xe7a   :  { %2337 = vrot.lane.b32.xlu1 %v10520_v35, %s9630_s17 }
 0xe7f   :  { %2340 = vrot.lane.b32.xlu0 %v10520_v35, %s9628_s15 }
 0xe83   :  { %2334 = vrot.lane.b32.xlu2 %v10520_v35, %s9624_s11 }
 0xe87   :  { %2343 = vrot.lane.b32.xlu0 %v10520_v35, %s9629_s16 }
 0xed4   :  { %v2792_v30 = vpop.xlane.xlu1 %2791 }
 0xed5   :  { %v2798_v32 = vsub.f32 %v2756_v55, %v2792_v30 }
 0xed6   :  { %v2786_v34 = vpop.xlane.xlu0 %2785 }
 0xed7   :  { %v2804_v33 = vmul.f32 1.442695, %v2798_v32  ;;  %v2796_v57 = vsub.f32 %v2704_v26, %v2786_v34 }
 0xed9   :  { %9495 = vpow2.f32 %v2804_v33  ;;  %v2800_v7 = vmul.f32 1.442695, %v2796_v57 }
 0xedb   :  { %9497 = vpow2.f32 %v2800_v7 }
 0xede   :  { %v2795_v37 = vpop.xlane.xlu2 %2794  ;;  %v2789_v39 = vpop.xlane.xlu0 %2788 }
 0xedf   :  { %v10641_v6 = vpop.eup %9495  ;;  %v2799_v23 = vsub.f32 %v2782_v0, %v2795_v37  ;;  %v2797_v43 = vsub.f32 %v2730_v27, %v2789_v39 }
 0xee0   :  { %v2814_v1 = vsel %vm422_vm2, %v10641_v6, 0.0 }
 0xee1   :  { %2815 = vadd.xlane.f32.xlu0 %v2814_v1  ;;  %v10645_v2 = vpop.eup %9497  ;;  %v2806_v35 = vmul.f32 1.442695, %v2799_v23  ;;  %v2802_v3 = vmul.f32 1.442695, %v2797_v43 }
 0xee2   :  { %v2808_v44 = vsel %vm422_vm2, %v10645_v2, 0.0 }
 0xee3   :  { %9499 = vpow2.f32 %v2806_v35  ;;  %2809 = vadd.xlane.f32.xlu2 %v2808_v44 }
 0xee4   :  { %9501 = vpow2.f32 %v2802_v3 }
 0xee6   :  { %v2335_v59 = vpop.permute.xlu2 %2334 }
 0xee7   :  { %v2460_v56 = vrot.slane %v2335_v59, 4 }
 0xee9   :  { %v10649_v48 = vpop.eup %9499 }
 0xeea   :  { %v10651_v49 = vpop.eup %9501  ;;  %v2817_v62 = vsel %vm422_vm2, %v10649_v48, 0.0 }
 0xeeb   :  { %2818 = vadd.xlane.f32.xlu1 %v2817_v62  ;;  %v2811_v12 = vsel %vm422_vm2, %v10651_v49, 0.0 }
 0xeec   :  { %2812 = vadd.xlane.f32.xlu2 %v2811_v12  ;;  %v2338_v20 = vpop.permute.xlu1 %2337 }
 0xeed   :  { %v2472_v18 = vrot.slane %v2338_v20, 4 }
 0xef1   :  { %v2341_v13 = vpop.permute.xlu0 %2340 }
 0xef2   :  { %v2458_v14 = vrot.slane %v2341_v13, 4  ;;  %v2461_v17 = vsel %vm88_vm1, %v2341_v13, %v2460_v56 }
 0xef3   :  { %v2469_v8 = vperm.slane %v2461_v17, %v9720_v15 }
 0xef4   :  { %v2459_v54 = vsel %vm88_vm1, %v2458_v14, %v2335_v59 }
 0xef5   :  { %v2465_v21 = vperm.slane %v2459_v54, %v9720_v15  ;;  %v2496_v19 = vrot.slane %v2469_v8, 4 }
 0xef7   :  { %v2484_v24 = vrot.slane %v2465_v21, 4 }
 0xef9   :  { %v2344_v4 = vpop.permute.xlu0 %2343 }
 0xefa   :  { %v2470_v5 = vrot.slane %v2344_v4, 4  ;;  %v2473_v10 = vsel %vm88_vm1, %v2344_v4, %v2472_v18 }
 0xefb   :  { %v2481_v11 = vperm.slane %v2473_v10, %v9720_v15 }
 0xefc   :  { %v2471_v29 = vsel %vm88_vm1, %v2470_v5, %v2338_v20 }
 0xefd   :  { %v2477_v41 = vperm.slane %v2471_v29, %v9720_v15  ;;  %v2494_v52 = vrot.slane %v2481_v11, 4  ;;  %v2497_v45 = vsel %vm88_vm1, %v2481_v11, %v2496_v19 }
 0xefe   :  { %v2505_v58 = vperm.slane %v2497_v45, %v9733_v38 }
 0xeff   :  { %v2482_v55 = vrot.slane %v2477_v41, 4  ;;  %v2485_v16 = vsel %vm88_vm1, %v2477_v41, %v2484_v24  ;;  %v2495_v25 = vsel %vm88_vm1, %v2494_v52, %v2469_v8 }
 0xf00   :  { %v2493_v26 = vperm.slane %v2485_v16, %v9733_v38  ;;  %v2501_v50 = vperm.slane %v2495_v25, %v9733_v38  ;;  %v2512_v60 = vrot.slane %v2505_v58, 4 }
 0xf01   :  { %v2483_v27 = vsel %vm88_vm1, %v2482_v55, %v2465_v21 }
 0xf02   :  { %v2489_v47 = vperm.slane %v2483_v27, %v9733_v38  ;;  %v2508_v0 = vrot.slane %v2493_v26, 4  ;;  %v2510_v36 = vrot.slane %v2501_v50, 4  ;;  %v2513_v28 = vsel %vm88_vm1, 0.0, %v2512_v60 }
 0xf03   :  { %v2637_v30 = vsel %vm88_vm1, %v2512_v60, %v2501_v50  ;;  %v2642_v32 = vrot.slane %v2513_v28, 4 }
 0xf04   :  { %v2506_v33 = vrot.slane %v2489_v47, 4  ;;  %v2509_v34 = vsel %vm88_vm1, 0.0, %v2508_v0  ;;  %v2511_v57 = vsel %vm88_vm1, 0.0, %v2510_v36  ;;  %v2641_v7 = vperm.slane %v2637_v30, %v9720_v15 }
 0xf05   :  { %v2631_v37 = vrot.slane %v2509_v34, 4  ;;  %v2626_v39 = vsel %vm88_vm1, %v2508_v0, %v2489_v47  ;;  %v2643_v23 = vsel %vm88_vm1, %v2642_v32, %v2511_v57 }
 0xf06   :  { %v2507_v43 = vsel %vm88_vm1, 0.0, %v2506_v33  ;;  %v2630_v1 = vperm.slane %v2626_v39, %v9720_v15  ;;  %v2647_v35 = vperm.slane %v2643_v23, %v9720_v15  ;;  %v2662_v3 = vrot.slane %v2641_v7, 4 }
 0xf07   :  { %v2632_v44 = vsel %vm88_vm1, %v2631_v37, %v2507_v43 }
 0xf08   :  { %v2636_v62 = vperm.slane %v2632_v44, %v9720_v15  ;;  %v2650_v12 = vrot.slane %v2630_v1, 4  ;;  %v2663_v59 = vsel %vm88_vm1, %v2647_v35, %v2662_v3  ;;  %v2660_v13 = vrot.slane %v2647_v35, 4 }
 0xf09   :  { %v2671_v56 = vperm.slane %v2663_v59, %v9733_v38 }
 0xf0a   :  { %v2651_v14 = vsel %vm88_vm1, %v2636_v62, %v2650_v12  ;;  %v2648_v17 = vrot.slane %v2636_v62, 4  ;;  %v2661_v20 = vsel %vm88_vm1, %v2660_v13, %v2641_v7 }
 0xf0b   :  { %v2659_v54 = vperm.slane %v2651_v14, %v9733_v38  ;;  %v2676_v8 = vrot.slane %v2671_v56, 4  ;;  %v2667_v18 = vperm.slane %v2661_v20, %v9733_v38 }
 0xf0c   :  { %v2649_v21 = vsel %vm88_vm1, %v2648_v17, %v2630_v1 }
 0xf0d   :  { %v2677_v4 = vsel %vm88_vm1, %v2676_v8, %v2659_v54  ;;  %v2655_v5 = vperm.slane %v2649_v21, %v9733_v38  ;;  %v2672_v10 = vrot.slane %v2667_v18, 4  ;;  %v2678_v19 = vrot.slane %v2659_v54, 4 }
 0xf0e   :  { %2892 = vmatpush.msra.mxu1 %v2677_v4 }
 0xf0f   :  { %v2673_v11 = vsel %vm88_vm1, %v2672_v10, %v2655_v5  ;;  %v2679_v29 = vsel %vm88_vm1, %v2671_v56, %v2678_v19  ;;  %v2674_v24 = vrot.slane %v2655_v5, 4 }
 0xf10   :  { %2846 = vmatpush.msra.mxu3 %v2673_v11  ;;  %2915 = vmatpush.msra.mxu2 %v2679_v29 }
 0xf11   :  { %v2675_v41 = vsel %vm88_vm1, %v2667_v18, %v2674_v24 }
 0xf12   :  { %2869 = vmatpush.msra.mxu0 %v2675_v41 }
 0xf54   :  { %v2816_v52 = vpop.xlane.xlu0 %2815 }
 0xf55   :  { %9503 = vrcp.f32 %v2816_v52 }
 0xf56   :  { %v2810_v45 = vpop.xlane.xlu2 %2809 }
 0xf57   :  { %9505 = vrcp.f32 %v2810_v45 }
 0xf5b   :  { %v9504_v58 = vpop.eup %9503 }
 0xf5c   :  { %v2826_v55 = vmul.f32 %v9504_v58, %v10641_v6  ;;  %v9313_v6 = vpack.i.bf16 %v10490_v31, %v10485_v42 }
 0xf5d   :  { %v9506_v16 = vpop.eup %9505 }
 0xf5e   :  { %9085 = vmatmul.msk.f32.vlgmr.msra.gmra.mxu1 %vm422_vm2, %v2826_v55  ;;  %v2824_v25 = vmul.f32 %v9506_v16, %v10645_v2  ;;  %v2819_v26 = vpop.xlane.xlu1 %2818  ;;  %v9318_v2 = vpack.i.bf16 %v10502_v53, %v10496_v40  ;;  %9314 = vrot.lane.b32.xlu1 %v9313_v6, %s9631_s18 }
 0xf5f   :  { %9507 = vrcp.f32 %v2819_v26  ;;  %v2813_v50 = vpop.xlane.xlu2 %2812 }
 0xf60   :  { %9509 = vrcp.f32 %v2813_v50  ;;  %9083 = vmatmul.msk.f32.vlgmr.msra.gmra.mxu3 %vm422_vm2, %v2824_v25  ;;  %9319 = vrot.lane.b32.xlu0 %v9318_v2, %s9631_s18 }
 0xf65   :  { %v9508_v60 = vpop.eup %9507 }
 0xf66   :  { %v9510_v27 = vpop.eup %9509  ;;  %v2827_v47 = vmul.f32 %v9508_v60, %v10649_v48 }
 0xf67   :  { %v2825_v0 = vmul.f32 %v9510_v27, %v10651_v49 }
 0xf68   :  { %9086 = vmatmul.msk.f32.vlgmr.msra.gmra.mxu2 %vm422_vm2, %v2827_v47 }
 0xf69   :  { %9084 = vmatmul.msk.f32.vlgmr.msra.gmra.mxu0 %vm422_vm2, %v2825_v0 }
 0xfdb   :  { %v2894_v36 = vpop.f32.mrf.mxu1 }
 0xfdc   :  { %v2920_v48 = vrot.slane %v2894_v36, 4 }
 0xfe3   :  { %v2848_v28 = vpop.f32.mrf.mxu3 }
 0xfe4   :  { %v2922_v30 = vrot.slane %v2848_v28, 4  ;;  %v2921_v33 = vsel %vm88_vm1, %v2920_v48, %v2848_v28 }
 0xfe5   :  { %v2927_v42 = vperm.slane %v2921_v33, %v9720_v15 }
 0xfe6   :  { %v2923_v49 = vsel %vm88_vm1, %v2894_v36, %v2922_v30  ;;  %v2871_v32 = vpop.f32.mrf.mxu0 }
 0xfe7   :  { %v2931_v34 = vperm.slane %v2923_v49, %v9720_v15  ;;  %v2934_v57 = vrot.slane %v2871_v32, 4  ;;  %v2946_v23 = vrot.slane %v2927_v42, 4 }
 0xfe9   :  { %v2958_v7 = vrot.slane %v2931_v34, 4 }
 0xfeb   :  { %v2917_v31 = vpop.f32.mrf.mxu2 }
 0xfec   :  { %v2932_v40 = vrot.slane %v2917_v31, 4  ;;  %v2935_v53 = vsel %vm88_vm1, %v2917_v31, %v2934_v57  ;;  %v9315_v31 = vpop.permute.xlu1 %9314 }
 0xfed   :  { %v2943_v37 = vperm.slane %v2935_v53, %v9720_v15  ;;  %v9317_v53 = vunpack.i.h.bf16 %v9315_v31 }
 0xfee   :  { %v2933_v39 = vsel %vm88_vm1, %v2932_v40, %v2871_v32  ;;  %v9320_v40 = vpop.permute.xlu0 %9319 }
 0xfef   :  { %v2939_v43 = vperm.slane %v2933_v39, %v9720_v15  ;;  %v2956_v1 = vrot.slane %v2943_v37, 4  ;;  %v2959_v35 = vsel %vm88_vm1, %v2943_v37, %v2958_v7  ;;  %v9316_v7 = vunpack.i.l.bf16 %v9315_v31 }
 0xff0   :  { %v2967_v3 = vperm.slane %v2959_v35, %v9733_v38  ;;  %v9321_v37 = vunpack.i.l.bf16 %v9320_v40  ;;  %v9322_v39 = vunpack.i.h.bf16 %v9320_v40  ;;  %v9095_v35 = vld [vmem:[%s13103_s1 + $0x68] sm:$0xff] }
 0xff1   :  { %v2944_v44 = vrot.slane %v2939_v43, 4  ;;  %v2947_v62 = vsel %vm88_vm1, %v2939_v43, %v2946_v23  ;;  %v2957_v12 = vsel %vm88_vm1, %v2956_v1, %v2931_v34  ;;  %3082 = vmatpush.msrb.mxu3 %v9316_v7  ;;  %v9097_v23 = vld [vmem:[%s13103_s1 + $0x98] sm:$0xff]  ;;  %v9098_v43 = vld [vmem:[%s13103_s1 + $0xb0] sm:$0xff] }
 0xff2   :  { %v2955_v59 = vperm.slane %v2947_v62, %v9733_v38  ;;  %v2963_v13 = vperm.slane %v2957_v12, %v9733_v38  ;;  %v2974_v56 = vrot.slane %v2967_v3, 4  ;;  %v9323_v1 = vpack.i.bf16 %v9097_v23, %v9098_v43  ;;  %3140 = vmatpush.msrb.mxu0 %v9098_v43  ;;  %v9096_v3 = vld [vmem:[%s13103_s1 + $0x80] sm:$0xff] }
 0xff3   :  { %v2945_v14 = vsel %vm88_vm1, %v2944_v44, %v2927_v42  ;;  %3083 = vmatpush.msrb.mxu3 %v9317_v53  ;;  %v9328_v44 = vpack.i.bf16 %v9095_v35, %v9096_v3 }
 0xff4   :  { %v2951_v17 = vperm.slane %v2945_v14, %v9733_v38  ;;  %v2970_v20 = vrot.slane %v2955_v59, 4  ;;  %v2972_v54 = vrot.slane %v2963_v13, 4  ;;  %v2975_v8 = vsel %vm88_vm1, 0.0, %v2974_v56  ;;  %3141 = vmatpush.msrb.mxu0 %v9097_v23 }
 0xff5   :  { %v2987_v18 = vsel %vm88_vm1, %v2974_v56, %v2963_v13  ;;  %v2992_v21 = vrot.slane %v2975_v8, 4  ;;  %3084 = vmatpush.msrb.mxu3 %v9321_v37 }
 0xff6   :  { %v2968_v4 = vrot.slane %v2951_v17, 4  ;;  %v2971_v5 = vsel %vm88_vm1, 0.0, %v2970_v20  ;;  %v2973_v10 = vsel %vm88_vm1, 0.0, %v2972_v54  ;;  %v2991_v19 = vperm.slane %v2987_v18, %v9720_v15  ;;  %3142 = vmatpush.msrb.mxu0 %v9096_v3 }
 0xff7   :  { %v2981_v11 = vrot.slane %v2971_v5, 4  ;;  %v2976_v29 = vsel %vm88_vm1, %v2970_v20, %v2951_v17  ;;  %v2993_v24 = vsel %vm88_vm1, %v2992_v21, %v2973_v10  ;;  %3085 = vmatpush.msrb.mxu3 %v9322_v39  ;;  %v9611_v5 = vld [vmem:[%s13104_s0 + $0x10] sm:$0xff] }
 0xff8   :  { %v2969_v41 = vsel %vm88_vm1, 0.0, %v2968_v4  ;;  %v2980_v52 = vperm.slane %v2976_v29, %v9720_v15  ;;  %v2997_v45 = vperm.slane %v2993_v24, %v9720_v15  ;;  %v3012_v58 = vrot.slane %v2991_v19, 4  ;;  %3143 = vmatpush.msrb.mxu0 %v9095_v35  ;;  %v9610_v4 = vld [vmem:[%s13104_s0 + $0x8] sm:$0xff]  ;;  %v9417_v10 = vld [vmem:[%s13105_s3 + $0x11] ss:$0 sm:$0xff] }
 0xff9   :  { %v2982_v55 = vsel %vm88_vm1, %v2981_v11, %v2969_v41 }
 0xffa   :  { %v2986_v16 = vperm.slane %v2982_v55, %v9720_v15  ;;  %v3000_v25 = vrot.slane %v2980_v52, 4  ;;  %v3013_v26 = vsel %vm88_vm1, %v2997_v45, %v3012_v58  ;;  %v3010_v50 = vrot.slane %v2997_v45, 4 }
 0xffb   :  { %v3021_v60 = vperm.slane %v3013_v26, %v9733_v38 }
 0xffc   :  { %v3001_v27 = vsel %vm88_vm1, %v2986_v16, %v3000_v25  ;;  %v2998_v47 = vrot.slane %v2986_v16, 4  ;;  %v3011_v0 = vsel %vm88_vm1, %v3010_v50, %v2991_v19 }
 0xffd   :  { %v3009_v6 = vperm.slane %v3001_v27, %v9733_v38  ;;  %v3026_v2 = vrot.slane %v3021_v60, 4  ;;  %v3017_v36 = vperm.slane %v3011_v0, %v9733_v38 }
 0xffe   :  { %v2999_v28 = vsel %vm88_vm1, %v2998_v47, %v2980_v52  ;;  %v9418_v52 = vld [vmem:[%s13105_s3 + $0x13] ss:$0 sm:$0xff] }
 0xfff   :  { %v3027_v30 = vsel %vm88_vm1, %v3026_v2, %v3009_v6  ;;  %v3028_v48 = vrot.slane %v3009_v6, 4  ;;  %v3005_v49 = vperm.slane %v2999_v28, %v9733_v38  ;;  %v3022_v32 = vrot.slane %v3017_v36, 4 }
0x1000   :  { %3035 = vrot.lane.b32.xlu0 %v3027_v30, %s9632_s19 }
0x1001   :  { %v3029_v33 = vsel %vm88_vm1, %v3021_v60, %v3028_v48  ;;  %v3024_v34 = vrot.slane %v3005_v49, 4  ;;  %v3023_v57 = vsel %vm88_vm1, %v3022_v32, %v3005_v49 }
0x1002   :  { %3039 = vrot.lane.b32.xlu1 %v3029_v33, %s9633_s20 }
0x1003   :  { %v3025_v42 = vsel %vm88_vm1, %v3017_v36, %v3024_v34 }
0x1004   :  { %3031 = vrot.lane.b32.xlu2 %v3025_v42, %s9634_s21 }
0x100a   :  { %9324 = vrot.lane.b32.xlu1 %v9323_v1, %s9625_s12 }
0x1012   :  { %9329 = vrot.lane.b32.xlu1 %v9328_v44, %s9625_s12 }
0x105e   :  { %v3032_v62 = vpop.permute.xlu2 %3031 }
0x105f   :  { %v3042_v12 = vsel %vm422_vm2, %v3023_v57, %v3032_v62 }
0x1072   :  { %v3036_v59 = vpop.permute.xlu0 %3035 }
0x1073   :  { %v3043_v13 = vsel %vm786_vm3, %v3042_v12, %v3036_v59  ;;  %v9419_v59 = vld [vmem:[%s13105_s3 + $0x17] ss:$0 sm:$0xff] }
0x1074   :  { %v3040_v56 = vpop.permute.xlu1 %3039 }
0x1075   :  { %v3044_v14 = vsel %vm788_vm4, %v3043_v13, %v3040_v56 }
0x1076   :  { %9092 = vmatmul.msk.f32.vlgmr.msrb.gmra.mxu3 %vm29_vm0, %v3044_v14 }
0x107c   :  { %v9325_v17 = vpop.permute.xlu1 %9324 }
0x107d   :  { %v9327_v20 = vunpack.i.h.bf16 %v9325_v17  ;;  %v9326_v54 = vunpack.i.l.bf16 %v9325_v17 }
0x107f   :  { %3178 = vmatpush.msrb.mxu1 %v9326_v54 }
0x1081   :  { %3179 = vmatpush.msrb.mxu1 %v9327_v20 }
0x1084   :  { %v9330_v8 = vpop.permute.xlu1 %9329 }
0x1085   :  { %v9332_v18 = vunpack.i.h.bf16 %v9330_v8  ;;  %v9331_v21 = vunpack.i.l.bf16 %v9330_v8 }
0x1087   :  { %3180 = vmatpush.msrb.mxu1 %v9331_v21  ;;  %v9420_v21 = vld [vmem:[%s13105_s3 + $0x18] ss:$0 sm:$0xff] }
0x1089   :  { %3181 = vmatpush.msrb.mxu1 %v9332_v18 }
0x108a   :  { %9102 = vmatmul.msk.f32.vlgmr.msrb.gmra.mxu1 %vm29_vm0, %v9610_v4 }
0x1092   :  { %9103 = vmatmul.msk.f32.gmra.mxu1 %vm29_vm0, %v9611_v5 }
0x10f9   :  { %v3087_v19 = vpop.f32.mrf.mxu3 }
0x10fa   :  { %v3088_v11 = vadd.f32 %v9417_v10, %v3087_v19 }
0x10fc   :  { %v3090_v29 = vadd.f32 %v3088_v11, %v10513_v51 }
0x10fe   :  { %v3093_v24 = vsel %vm29_vm0, %v3090_v29, 0.0 }
0x10ff   :  { %3094 = vadd.xlane.f32.xlu2 %v3093_v24 }
0x1107   :  { %v3183_v41 = vpop.f32.mrf.mxu1 }
0x1108   :  { %v10792_v50 = vadd.f32 %v9418_v52, %v3183_v41 }
0x110f   :  { %v3186_v58 = vpop.f32.mrf.mxu1 }
0x1110   :  { %v3187_v16 = vadd.f32 %v9418_v52, %v3186_v58 }
0x1112   :  { %3313 = vrot.lane.b32.xlu1 %v3187_v16, %s9623_s10  ;;  %v3467_v2 = vrot.slane %v3187_v16, 4 }
0x1117   :  { %3325 = vrot.lane.b32.xlu2 %v3187_v16, %s9620_s7 }
0x111a   :  { %3319 = vrot.lane.b32.xlu1 %v3187_v16, %s9619_s6 }
0x111f   :  { %3329 = vrot.lane.b32.xlu2 %v10792_v50, %s9625_s12 }
0x1122   :  { %3331 = vrot.lane.b32.xlu1 %v3187_v16, %s9625_s12 }
0x1127   :  { %3335 = vrot.lane.b32.xlu2 %v10792_v50, %s9618_s30 }
0x112a   :  { %3337 = vrot.lane.b32.xlu1 %v3187_v16, %s9618_s30 }
0x1132   :  { %3311 = vrot.lane.b32.xlu1 %v10792_v50, %s9623_s10 }
0x113a   :  { %3317 = vrot.lane.b32.xlu1 %v10792_v50, %s9619_s6 }
0x1142   :  { %3323 = vrot.lane.b32.xlu1 %v10792_v50, %s9620_s7 }
0x1172   :  { %v3095_v45 = vpop.xlane.xlu2 %3094 }
0x1173   :  { %v3096_v55 = vmul.f32 %v3095_v45, %v9972_v22 }
0x1175   :  { %v3097_v25 = vsub.f32 %v3090_v29, %v3096_v55 }
0x1177   :  { %v3098_v26 = vmul.f32 %v3097_v25, %v3097_v25 }
0x1179   :  { %v3099_v51 = vsel %vm29_vm0, %v3098_v26, 0.0 }
0x117a   :  { %3100 = vadd.xlane.f32.xlu0 %v3099_v51  ;;  %v3326_v30 = vpop.permute.xlu2 %3325 }
0x117b   :  { %v3477_v49 = vrot.slane %v3326_v30, 4 }
0x1182   :  { %v10827_v8 = vpop.permute.xlu2 %3329 }
0x1184   :  { %v3314_v60 = vpop.permute.xlu1 %3313 }
0x1185   :  { %v3479_v36 = vrot.slane %v3314_v60, 4  ;;  %v3478_v53 = vsel %vm88_vm1, %v3477_v49, %v3314_v60 }
0x1186   :  { %v3484_v1 = vperm.slane %v3478_v53, %v9720_v15 }
0x1187   :  { %v3480_v31 = vsel %vm88_vm1, %v3326_v30, %v3479_v36 }
0x1188   :  { %v3488_v23 = vperm.slane %v3480_v31, %v9720_v15  ;;  %v3513_v54 = vrot.slane %v3484_v1, 4 }
0x118a   :  { %v3525_v14 = vrot.slane %v3488_v23, 4 }
0x118c   :  { %v3320_v6 = vpop.permute.xlu1 %3319 }
0x118d   :  { %v3465_v28 = vrot.slane %v3320_v6, 4  ;;  %v3468_v33 = vsel %vm88_vm1, %v3320_v6, %v3467_v2 }
0x118e   :  { %3343 = vrot.lane.b32.xlu0 %v3187_v16, %s9621_s8  ;;  %v3476_v40 = vperm.slane %v3468_v33, %v9720_v15 }
0x118f   :  { %v3466_v42 = vsel %vm88_vm1, %v3465_v28, %v3187_v16 }
0x1190   :  { %v3472_v39 = vperm.slane %v3466_v42, %v9720_v15  ;;  %v3527_v35 = vrot.slane %v3476_v40, 4  ;;  %v3526_v24 = vsel %vm88_vm1, %v3525_v14, %v3476_v40 }
0x1191   :  { %v3532_v51 = vperm.slane %v3526_v24, %v9733_v38 }
0x1192   :  { %v3515_v13 = vrot.slane %v3472_v39, 4  ;;  %v3528_v5 = vsel %vm88_vm1, %v3488_v23, %v3527_v35  ;;  %v3514_v41 = vsel %vm88_vm1, %v3513_v54, %v3472_v39 }
0x1193   :  { %v3536_v52 = vperm.slane %v3528_v5, %v9733_v38  ;;  %v3571_v33 = vrot.slane %v3532_v51, 4 }
0x1194   :  { %v3332_v34 = vpop.permute.xlu1 %3331  ;;  %v3516_v29 = vsel %vm88_vm1, %v3484_v1, %v3515_v13 }
0x1195   :  { %v3491_v37 = vrot.slane %v3332_v34, 4  ;;  %v3524_v26 = vperm.slane %v3516_v29, %v9733_v38  ;;  %v3575_v2 = vrot.slane %v3536_v52, 4 }
0x1196   :  { %3349 = vrot.lane.b32.xlu0 %v3187_v16, %s9622_s9 }
0x119c   :  { %v3338_v56 = vpop.permute.xlu1 %3337 }
0x119d   :  { %v3503_v10 = vrot.slane %v3338_v56, 4 }
0x119e   :  { %3341 = vrot.lane.b32.xlu0 %v10792_v50, %s9621_s8 }
0x11a6   :  { %3347 = vrot.lane.b32.xlu0 %v10792_v50, %s9622_s9 }
0x11ed   :  { %v3101_v27 = vpop.xlane.xlu0 %3100 }
0x11ee   :  { %v3102_v47 = vmul.f32 %v3101_v27, %v9972_v22  ;;  %v10846_v27 = vpop.permute.xlu1 %3311 }
0x11f0   :  { %v3103_v0 = vadd.f32 1e-05, %v3102_v47 }
0x11f2   :  { %9511 = vrsqrt.f32 %v3103_v0  ;;  %vm3110_vm11 = vweird.f32 %v3103_v0 }
0x11f8   :  { %v9512_v48 = vpop.eup %9511 }
0x11f9   :  { %v3105_v32 = vmul.f32 %v9512_v48, %v3103_v0  ;;  %vm3111_vm10 = vweird.f32 %v9512_v48  ;;  %v3520_v0 = vperm.slane %v3514_v41, %v9733_v38 }
0x11fa   :  { %vm3112_vm12 = vmor %vm3110_vm11, %vm3111_vm10 }
0x11fb   :  { %v3106_v57 = vmul.f32 %v9512_v48, %v3105_v32  ;;  %v3567_v32 = vrot.slane %v3524_v26, 4  ;;  %v3563_v53 = vrot.slane %v3520_v0, 4 }
0x11fd   :  { %v3107_v7 = vmul.f32 0.5, %v3106_v57  ;;  %v3336_v57 = vpop.permute.xlu2 %3335 }
0x11ff   :  { %v3108_v43 = vsub.f32 1.5, %v3107_v7 }
0x1200   :  { %v3344_v3 = vpop.permute.xlu0 %3343 }
0x1201   :  { %v3109_v44 = vmul.f32 %v9512_v48, %v3108_v43  ;;  %v3489_v62 = vrot.slane %v3344_v3, 4  ;;  %v3492_v12 = vsel %vm88_vm1, %v3344_v3, %v3491_v37  ;;  %v3367_v43 = vrot.slane %v10846_v27, 4 }
0x1202   :  { %v3500_v4 = vperm.slane %v3492_v12, %v9720_v15 }
0x1203   :  { %v3113_v17 = vsel %vm3112_vm12, %v9512_v48, %v3109_v44  ;;  %v3490_v20 = vsel %vm88_vm1, %v3489_v62, %v3332_v34  ;;  %v3355_v48 = vrot.slane %v10792_v50, 4  ;;  %v3379_v34 = vrot.slane %v10827_v8, 4 }
0x1204   :  { %v3114_v18 = vmul.f32 %v3113_v17, %v3097_v25  ;;  %v3496_v11 = vperm.slane %v3490_v20, %v9720_v15  ;;  %v3551_v58 = vrot.slane %v3500_v4, 4  ;;  %v3391_v44 = vrot.slane %v3336_v57, 4  ;;  %v3318_v20 = vpop.permute.xlu1 %3317 }
0x1205   :  { %v3353_v29 = vrot.slane %v3318_v20, 4  ;;  %v3356_v24 = vsel %vm88_vm1, %v3318_v20, %v3355_v48 }
0x1206   :  { %v3116_v19 = vmul.f32 %v9419_v59, %v3114_v18  ;;  %v3539_v60 = vrot.slane %v3496_v11, 4 }
0x1208   :  { %v10839_v45 = vadd.f32 %v9420_v21, %v3116_v19  ;;  %v3350_v55 = vpop.permute.xlu0 %3349 }
0x1209   :  { %v3501_v16 = vrot.slane %v3350_v55, 4  ;;  %v3504_v25 = vsel %vm88_vm1, %v3350_v55, %v3503_v10  ;;  %v3354_v55 = vsel %vm88_vm1, %v3353_v29, %v10792_v50 }
0x120a   :  { %9100 = vmatmul.msk.f32.vlgmr.msrb.gmra.mxu0 %vm29_vm0, %v10839_v45  ;;  %v3512_v47 = vperm.slane %v3504_v25, %v9720_v15 }
0x120b   :  { %v3502_v6 = vsel %vm88_vm1, %v3501_v16, %v3338_v56  ;;  %v3364_v16 = vperm.slane %v3356_v24, %v9720_v15 }
0x120c   :  { %v3508_v36 = vperm.slane %v3502_v6, %v9720_v15  ;;  %v3549_v28 = vrot.slane %v3512_v47, 4  ;;  %v3552_v30 = vsel %vm88_vm1, %v3512_v47, %v3551_v58 }
0x120d   :  { %v3560_v49 = vperm.slane %v3552_v30, %v9733_v38 }
0x120e   :  { %v3537_v42 = vrot.slane %v3508_v36, 4  ;;  %v3540_v31 = vsel %vm88_vm1, %v3508_v36, %v3539_v60  ;;  %v3550_v40 = vsel %vm88_vm1, %v3549_v28, %v3500_v4 }
0x120f   :  { %v3548_v7 = vperm.slane %v3540_v31, %v9733_v38  ;;  %v3556_v37 = vperm.slane %v3550_v40, %v9733_v38  ;;  %v3573_v39 = vrot.slane %v3560_v49, 4  ;;  %v10861_v23 = vsel %vm88_vm1, %v3560_v49, %v3575_v2 }
0x1210   :  { %v3538_v1 = vsel %vm88_vm1, %v3537_v42, %v3496_v11  ;;  %v3725_v35 = vrot.slane %v10861_v23, 4  ;;  %v3342_v3 = vpop.permute.xlu0 %3341 }
0x1211   :  { %v3544_v62 = vperm.slane %v3538_v1, %v9733_v38  ;;  %v3565_v12 = vrot.slane %v3548_v7, 4  ;;  %v3569_v59 = vrot.slane %v3556_v37, 4  ;;  %v10868_v13 = vsel %vm88_vm1, %v3548_v7, %v3567_v32  ;;  %v3324_v32 = vpop.permute.xlu1 %3323 }
0x1212   :  { %v10871_v56 = vsel %vm88_vm1, %v3556_v37, %v3571_v33  ;;  %v10874_v14 = vsel %vm88_vm1, %v3573_v39, %v3536_v52  ;;  %v3701_v17 = vrot.slane %v10868_v13, 4  ;;  %v3377_v54 = vrot.slane %v3342_v3, 4 }
0x1213   :  { %v3561_v18 = vrot.slane %v3544_v62, 4  ;;  %v10878_v21 = vsel %vm88_vm1, %v3565_v12, %v3524_v26  ;;  %v10881_v4 = vsel %vm88_vm1, %v3569_v59, %v3532_v51  ;;  %v3713_v5 = vrot.slane %v10874_v14, 4 }
0x1214   :  { %v3689_v10 = vrot.slane %v10878_v21, 4  ;;  %v3715_v19 = vrot.slane %v10881_v4, 4  ;;  %v3727_v11 = vrot.slane %v10871_v56, 4  ;;  %v3378_v41 = vsel %vm88_vm1, %v3377_v54, %v10827_v8 }
0x1215   :  { %v3380_v52 = vsel %vm88_vm1, %v3342_v3, %v3379_v34  ;;  %v10892_v58 = vsel %vm88_vm1, %v3561_v18, %v3520_v0  ;;  %v3384_v25 = vperm.slane %v3378_v41, %v9720_v15  ;;  %v3360_v51 = vperm.slane %v3354_v55, %v9720_v15 }
0x1216   :  { %v3388_v26 = vperm.slane %v3380_v52, %v9720_v15  ;;  %v10901_v60 = vsel %vm88_vm1, %v3544_v62, %v3563_v53  ;;  %v3690_v8 = vsel %vm88_vm1, %v3689_v10, %v10892_v58  ;;  %v3714_v47 = vsel %vm88_vm1, %v3713_v5, %v10881_v4 }
0x1217   :  { %v3415_v0 = vrot.slane %v3364_v16, 4  ;;  %v3427_v6 = vrot.slane %v3384_v25, 4  ;;  %v10908_v36 = vperm.slane %v3690_v8, %v9720_v15  ;;  %v3403_v28 = vrot.slane %v3360_v51, 4 }
0x1218   :  { %v3439_v50 = vrot.slane %v3388_v26, 4  ;;  %v3348_v2 = vpop.permute.xlu0 %3347  ;;  %v3702_v49 = vsel %vm88_vm1, %v3701_v17, %v10901_v60  ;;  %v10916_v42 = vperm.slane %v3714_v47, %v9720_v15  ;;  %v3726_v31 = vsel %vm88_vm1, %v3725_v35, %v10871_v56 }
0x1219   :  { %v3389_v30 = vrot.slane %v3348_v2, 4  ;;  %v3392_v48 = vsel %vm88_vm1, %v3348_v2, %v3391_v44  ;;  %v3708_v34 = vperm.slane %v3702_v49, %v9720_v15  ;;  %v3365_v40 = vrot.slane %v3324_v32, 4 }
0x121a   :  { %v3400_v33 = vperm.slane %v3392_v48, %v9720_v15  ;;  %v3368_v53 = vsel %vm88_vm1, %v3324_v32, %v3367_v43  ;;  %v3732_v37 = vperm.slane %v3726_v31, %v9720_v15 }
0x121b   :  { %v3390_v7 = vsel %vm88_vm1, %v3389_v30, %v3336_v57  ;;  %v3376_v39 = vperm.slane %v3368_v53, %v9720_v15  ;;  %v3366_v62 = vsel %vm88_vm1, %v3365_v40, %v10846_v27  ;;  %v3737_v35 = vrot.slane %v3708_v34, 4 }
0x121c   :  { %v3396_v1 = vperm.slane %v3390_v7, %v9720_v15  ;;  %v3437_v3 = vrot.slane %v3400_v33, 4  ;;  %v3440_v44 = vsel %vm88_vm1, %v3400_v33, %v3439_v50  ;;  %v3761_v59 = vrot.slane %v3732_v37, 4 }
0x121d   :  { %v3448_v12 = vperm.slane %v3440_v44, %v9733_v38  ;;  %v3372_v43 = vperm.slane %v3366_v62, %v9720_v15  ;;  %v3413_v17 = vrot.slane %v3376_v39, 4  ;;  %v3416_v57 = vsel %vm88_vm1, %v3376_v39, %v3415_v0 }
0x121e   :  { %v3425_v20 = vrot.slane %v3396_v1, 4  ;;  %v3424_v54 = vperm.slane %v3416_v57, %v9733_v38  ;;  %v3428_v18 = vsel %vm88_vm1, %v3396_v1, %v3427_v6  ;;  %v3438_v5 = vsel %vm88_vm1, %v3437_v3, %v3388_v26 }
0x121f   :  { %v3461_v10 = vrot.slane %v3448_v12, 4  ;;  %v3401_v29 = vrot.slane %v3372_v43, 4  ;;  %v3404_v27 = vsel %vm88_vm1, %v3372_v43, %v3403_v28  ;;  %v3414_v24 = vsel %vm88_vm1, %v3413_v17, %v3364_v16 }
0x1220   :  { %v3426_v41 = vsel %vm88_vm1, %v3425_v20, %v3384_v25  ;;  %v3412_v52 = vperm.slane %v3404_v27, %v9733_v38  ;;  %v3420_v55 = vperm.slane %v3414_v24, %v9733_v38  ;;  %v3463_v8 = vrot.slane %v3424_v54, 4 }
0x1221   :  { %v3432_v47 = vperm.slane %v3426_v41, %v9733_v38  ;;  %v3402_v0 = vsel %vm88_vm1, %v3401_v29, %v3360_v51  ;;  %v3436_v6 = vperm.slane %v3428_v18, %v9733_v38  ;;  %v3444_v26 = vperm.slane %v3438_v5, %v9733_v38 }
0x1222   :  { %v10944_v50 = vsel %vm88_vm1, %v3461_v10, %v3424_v54  ;;  %v3408_v16 = vperm.slane %v3402_v0, %v9733_v38  ;;  %v3455_v2 = vrot.slane %v3412_v52, 4  ;;  %v3459_v25 = vrot.slane %v3420_v55, 4 }
0x1223   :  { %v3449_v28 = vrot.slane %v3432_v47, 4  ;;  %v3453_v30 = vrot.slane %v3436_v6, 4  ;;  %v3457_v48 = vrot.slane %v3444_v26, 4  ;;  %v10948_v49 = vsel %vm88_vm1, %v3448_v12, %v3463_v8 }
0x1224   :  { %v3738_v51 = vsel %vm88_vm1, %v3737_v35, %v10908_v36  ;;  %v3451_v32 = vrot.slane %v3408_v16, 4  ;;  %v3456_v33 = vsel %vm88_vm1, %v3436_v6, %v3455_v2  ;;  %v3613_v31 = vrot.slane %v10948_v49, 4 }
0x1225   :  { %v3744_v40 = vperm.slane %v3738_v51, %v9733_v38  ;;  %v10956_v53 = vsel %vm88_vm1, %v3453_v30, %v3412_v52  ;;  %v3589_v7 = vrot.slane %v3456_v33, 4  ;;  %v3762_v39 = vsel %vm88_vm1, %v3761_v59, %v10916_v42 }
0x1226   :  { %v3739_v1 = vrot.slane %v10908_v36, 4  ;;  %v3452_v3 = vsel %vm88_vm1, %v3432_v47, %v3451_v32  ;;  %v3577_v44 = vrot.slane %v10956_v53, 4  ;;  %v3768_v62 = vperm.slane %v3762_v39, %v9733_v38 }
0x1227   :  { %v3787_v12 = vrot.slane %v3744_v40, 4  ;;  %v3591_v35 = vrot.slane %v3452_v3, 4  ;;  %v3763_v17 = vrot.slane %v10916_v42, 4  ;;  %v3450_v57 = vsel %vm88_vm1, %v3449_v28, %v3408_v16 }
0x1228   :  { %v3740_v43 = vsel %vm88_vm1, %v3708_v34, %v3739_v1  ;;  %v3785_v20 = vrot.slane %v3768_v62, 4  ;;  %v10970_v36 = vsel %vm88_vm1, %v3457_v48, %v3420_v55  ;;  %v10975_v5 = vsel %vm88_vm1, %v3444_v26, %v3459_v25 }
0x1229   :  { %v3788_v54 = vsel %vm88_vm1, %v3768_v62, %v3787_v12  ;;  %v3748_v59 = vperm.slane %v3740_v43, %v9733_v38  ;;  %v3764_v18 = vsel %vm88_vm1, %v3732_v37, %v3763_v17  ;;  %v3578_v34 = vsel %vm88_vm1, %v3577_v44, %v3450_v57 }
0x122a   :  { %9107 = vmatpush.xpose.msk.msra.mxu3 %vm422_vm2, %v3788_v54  ;;  %v3590_v42 = vsel %vm88_vm1, %v3589_v7, %v3452_v3  ;;  %v3786_v10 = vsel %vm88_vm1, %v3785_v20, %v3744_v40  ;;  %v3772_v29 = vperm.slane %v3764_v18, %v9733_v38  ;;  %v3584_v27 = vperm.slane %v3578_v34, %v9720_v15 }
0x122b   :  { %v3596_v24 = vperm.slane %v3590_v42, %v9720_v15  ;;  %9104 = vmatpush.xpose.msk.msrb.mxu2 %vm422_vm2, %v3786_v10  ;;  %v3601_v41 = vrot.slane %v10944_v50, 4  ;;  %v3614_v37 = vsel %vm88_vm1, %v3613_v31, %v10975_v5  ;;  %v3791_v52 = vrot.slane %v3748_v59, 4 }
0x122c   :  { %v3691_v55 = vrot.slane %v10892_v58, 4  ;;  %v3789_v8 = vrot.slane %v3772_v29, 4  ;;  %v3620_v47 = vperm.slane %v3614_v37, %v9720_v15  ;;  %v3703_v6 = vrot.slane %v10901_v60, 4 }
0x122d   :  { %v3625_v0 = vrot.slane %v3596_v24, 4  ;;  %v3602_v26 = vsel %vm88_vm1, %v3601_v41, %v10970_v36  ;;  %v3792_v16 = vsel %vm88_vm1, %v3772_v29, %v3791_v52  ;;  %v3716_v25 = vsel %vm88_vm1, %v10874_v14, %v3715_v19 }
0x122e   :  { %v3692_v2 = vsel %vm88_vm1, %v10878_v21, %v3691_v55  ;;  %v3790_v58 = vsel %vm88_vm1, %v3789_v8, %v3748_v59  ;;  %v3608_v28 = vperm.slane %v3602_v26, %v9720_v15  ;;  %v3649_v60 = vrot.slane %v3620_v47, 4 }
0x122f   :  { %v3626_v30 = vsel %vm88_vm1, %v3625_v0, %v3584_v27  ;;  %9110 = vmatpush.xpose.msk.msra.mxu0 %vm422_vm2, %v3790_v58  ;;  %v3700_v51 = vperm.slane %v3692_v2, %v9720_v15  ;;  %v3704_v21 = vsel %vm88_vm1, %v10868_v13, %v3703_v6  ;;  %v3724_v4 = vperm.slane %v3716_v25, %v9720_v15 }
0x1230   :  { %v3632_v48 = vperm.slane %v3626_v30, %v9733_v38  ;;  %v3650_v14 = vsel %vm88_vm1, %v3649_v60, %v3608_v28  ;;  %v3712_v19 = vperm.slane %v3704_v21, %v9720_v15  ;;  %v3728_v32 = vsel %vm88_vm1, %v10861_v23, %v3727_v11 }
0x1231   :  { %v3627_v31 = vrot.slane %v3584_v27, 4  ;;  %v3656_v40 = vperm.slane %v3650_v14, %v9733_v38  ;;  %v3736_v39 = vperm.slane %v3728_v32, %v9720_v15  ;;  %v3651_v1 = vrot.slane %v3608_v28, 4 }
0x1232   :  { %v3675_v7 = vrot.slane %v3632_v48, 4  ;;  %v3749_v3 = vrot.slane %v3712_v19, 4  ;;  %v3579_v44 = vrot.slane %v3450_v57, 4  ;;  %v3592_v62 = vsel %vm88_vm1, %v3456_v33, %v3591_v35 }
0x1233   :  { %v3628_v13 = vsel %vm88_vm1, %v3596_v24, %v3627_v31  ;;  %v3673_v12 = vrot.slane %v3656_v40, 4  ;;  %v3773_v56 = vrot.slane %v3736_v39, 4  ;;  %v3652_v11 = vsel %vm88_vm1, %v3620_v47, %v3651_v1 }
0x1234   :  { %v3676_v43 = vsel %vm88_vm1, %v3656_v40, %v3675_v7  ;;  %v3636_v17 = vperm.slane %v3628_v13, %v9733_v38  ;;  %v3750_v23 = vsel %vm88_vm1, %v3749_v3, %v3700_v51  ;;  %v3580_v20 = vsel %vm88_vm1, %v10956_v53, %v3579_v44 }
0x1235   :  { %9108 = vmatpush.xpose.msk.msra.mxu3 %vm422_vm2, %v3676_v43  ;;  %v3600_v54 = vperm.slane %v3592_v62, %v9720_v15  ;;  %v3674_v57 = vsel %vm88_vm1, %v3673_v12, %v3632_v48  ;;  %v3756_v33 = vperm.slane %v3750_v23, %v9733_v38  ;;  %v3774_v35 = vsel %vm88_vm1, %v3773_v56, %v3724_v4  ;;  %v9421_v56 = vld [vmem:[%s13105_s3 + $0x12] ss:$0 sm:$0xff] }
0x1236   :  { %v3660_v59 = vperm.slane %v3652_v11, %v9733_v38  ;;  %9105 = vmatpush.xpose.msk.msrb.mxu2 %vm422_vm2, %v3674_v57  ;;  %v3780_v18 = vperm.slane %v3774_v35, %v9733_v38  ;;  %v3588_v34 = vperm.slane %v3580_v20, %v9720_v15  ;;  %v3603_v42 = vrot.slane %v10970_v36, 4 }
0x1237   :  { %v3615_v53 = vrot.slane %v10975_v5, 4  ;;  %v3637_v29 = vrot.slane %v3600_v54, 4  ;;  %v3795_v27 = vrot.slane %v3756_v33, 4  ;;  %v3751_v24 = vrot.slane %v3700_v51, 4 }
0x1238   :  { %v3677_v10 = vrot.slane %v3660_v59, 4  ;;  %v3793_v41 = vrot.slane %v3780_v18, 4  ;;  %v3604_v37 = vsel %vm88_vm1, %v10944_v50, %v3603_v42  ;;  %v3775_v55 = vrot.slane %v3724_v4, 4 }
0x1239   :  { %v3616_v52 = vsel %vm88_vm1, %v10948_v49, %v3615_v53  ;;  %v3612_v36 = vperm.slane %v3604_v37, %v9720_v15  ;;  %v3638_v47 = vsel %vm88_vm1, %v3637_v29, %v3588_v34  ;;  %v3796_v50 = vsel %vm88_vm1, %v3780_v18, %v3795_v27 }
0x123a   :  { %9113 = vmatpush.xpose.msk.msra.mxu2 %vm422_vm2, %v3792_v16  ;;  %v3678_v8 = vsel %vm88_vm1, %v3677_v10, %v3636_v17  ;;  %v3624_v5 = vperm.slane %v3616_v52, %v9720_v15  ;;  %v3794_v0 = vsel %vm88_vm1, %v3793_v41, %v3756_v33  ;;  %v3644_v6 = vperm.slane %v3638_v47, %v9733_v38 }
0x123b   :  { %9111 = vmatpush.xpose.msk.msra.mxu0 %vm422_vm2, %v3678_v8  ;;  %v3752_v26 = vsel %vm88_vm1, %v3712_v19, %v3751_v24  ;;  %4030 = vmatpush.msrb.mxu3 %v3794_v0  ;;  %v3776_v2 = vsel %vm88_vm1, %v3736_v39, %v3775_v55  ;;  %v3679_v25 = vrot.slane %v3636_v17, 4  ;;  %v3639_v30 = vrot.slane %v3588_v34, 4 }
0x123c   :  { %v3661_v49 = vrot.slane %v3624_v5, 4  ;;  %v3760_v16 = vperm.slane %v3752_v26, %v9733_v38  ;;  %v3784_v58 = vperm.slane %v3776_v2, %v9733_v38  ;;  %v3683_v28 = vrot.slane %v3644_v6, 4 }
0x123d   :  { %v3663_v60 = vrot.slane %v3612_v36, 4  ;;  %v3680_v51 = vsel %vm88_vm1, %v3660_v59, %v3679_v25  ;;  %v3640_v14 = vsel %vm88_vm1, %v3600_v54, %v3639_v30 }
0x123e   :  { %v3662_v48 = vsel %vm88_vm1, %v3661_v49, %v3612_v36  ;;  %v3797_v4 = vrot.slane %v3784_v58, 4  ;;  %9114 = vmatpush.xpose.msk.msra.mxu2 %vm422_vm2, %v3680_v51  ;;  %v3648_v32 = vperm.slane %v3640_v14, %v9733_v38  ;;  %v3799_v12 = vrot.slane %v3760_v16, 4 }
0x123f   :  { %4053 = vmatpush.msrb.mxu0 %v3796_v50  ;;  %v3668_v21 = vperm.slane %v3662_v48, %v9733_v38  ;;  %v3664_v19 = vsel %vm88_vm1, %v3624_v5, %v3663_v60 }
0x1240   :  { %v3672_v31 = vperm.slane %v3664_v19, %v9733_v38  ;;  %v3798_v7 = vsel %vm88_vm1, %v3797_v4, %v3760_v16  ;;  %v3687_v44 = vrot.slane %v3648_v32, 4  ;;  %v11068_v43 = vsel %vm88_vm1, %v3784_v58, %v3799_v12 }
0x1241   :  { %v3681_v40 = vrot.slane %v3668_v21, 4  ;;  %v3684_v39 = vsel %vm88_vm1, %v3668_v21, %v3683_v28  ;;  %4076 = vmatpush.msra.mxu1 %v3798_v7 }
0x1242   :  { %4054 = vmatpush.msrb.mxu0 %v3684_v39  ;;  %v3685_v1 = vrot.slane %v3672_v31, 4  ;;  %v11065_v62 = vsel %vm88_vm1, %v3672_v31, %v3687_v44 }
0x1243   :  { %v3682_v3 = vsel %vm88_vm1, %v3681_v40, %v3644_v6 }
0x1244   :  { %4031 = vmatpush.msrb.mxu3 %v3682_v3  ;;  %v3686_v13 = vsel %vm88_vm1, %v3685_v1, %v3648_v32 }
0x1245   :  { %4077 = vmatpush.msra.mxu1 %v3686_v13 }
0x1287   :  { %v3145_v17 = vpop.f32.mrf.mxu0 }
0x1288   :  { %v3146_v23 = vadd.f32 %v9421_v56, %v3145_v17 }
0x128a   :  { %3193 = vrot.lane.b32.xlu2 %v3146_v23, %s9619_s6  ;;  %3190 = vrot.lane.b32.xlu1 %v3146_v23, %s9623_s10  ;;  %v3201_v54 = vrot.slane %v3146_v23, 4 }
0x1292   :  { %3196 = vrot.lane.b32.xlu1 %v3146_v23, %s9620_s7 }
0x12e4   :  { %v3194_v11 = vpop.permute.xlu2 %3193 }
0x12e5   :  { %v3199_v57 = vrot.slane %v3194_v11, 4  ;;  %v3202_v33 = vsel %vm88_vm1, %v3194_v11, %v3201_v54 }
0x12e6   :  { %v3210_v59 = vperm.slane %v3202_v33, %v9720_v15 }
0x12e7   :  { %v3200_v35 = vsel %vm88_vm1, %v3199_v57, %v3146_v23 }
0x12e8   :  { %v3206_v34 = vperm.slane %v3200_v35, %v9720_v15  ;;  %v3237_v29 = vrot.slane %v3210_v59, 4 }
0x12ea   :  { %v3225_v41 = vrot.slane %v3206_v34, 4 }
0x12fc   :  { %v3191_v20 = vpop.permute.xlu1 %3190 }
0x12fd   :  { %v3213_v18 = vrot.slane %v3191_v20, 4 }
0x1304   :  { %v3197_v42 = vpop.permute.xlu1 %3196 }
0x1305   :  { %v3211_v53 = vrot.slane %v3197_v42, 4  ;;  %v3214_v10 = vsel %vm88_vm1, %v3197_v42, %v3213_v18 }
0x1306   :  { %v3222_v27 = vperm.slane %v3214_v10, %v9720_v15 }
0x1307   :  { %v3212_v24 = vsel %vm88_vm1, %v3211_v53, %v3191_v20 }
0x1308   :  { %v3218_v37 = vperm.slane %v3212_v24, %v9720_v15  ;;  %v3235_v52 = vrot.slane %v3222_v27, 4  ;;  %v3238_v55 = vsel %vm88_vm1, %v3222_v27, %v3237_v29 }
0x1309   :  { %v3246_v8 = vperm.slane %v3238_v55, %v9733_v38 }
0x130a   :  { %v3223_v36 = vrot.slane %v3218_v37, 4  ;;  %v3226_v5 = vsel %vm88_vm1, %v3218_v37, %v3225_v41  ;;  %v3236_v47 = vsel %vm88_vm1, %v3235_v52, %v3210_v59 }
0x130b   :  { %v3234_v0 = vperm.slane %v3226_v5, %v9733_v38  ;;  %v3242_v6 = vperm.slane %v3236_v47, %v9733_v38  ;;  %v3253_v50 = vrot.slane %v3246_v8, 4 }
0x130c   :  { %v3224_v26 = vsel %vm88_vm1, %v3223_v36, %v3206_v34 }
0x130d   :  { %v3230_v49 = vperm.slane %v3224_v26, %v9733_v38  ;;  %v3249_v16 = vrot.slane %v3234_v0, 4  ;;  %v3251_v2 = vrot.slane %v3242_v6, 4  ;;  %v3254_v25 = vsel %vm88_vm1, 0.0, %v3253_v50 }
0x130e   :  { %v3266_v58 = vsel %vm88_vm1, %v3253_v50, %v3242_v6  ;;  %v3271_v28 = vrot.slane %v3254_v25, 4 }
0x130f   :  { %v3247_v30 = vrot.slane %v3230_v49, 4  ;;  %v3250_v60 = vsel %vm88_vm1, 0.0, %v3249_v16  ;;  %v3252_v48 = vsel %vm88_vm1, 0.0, %v3251_v2  ;;  %v3270_v51 = vperm.slane %v3266_v58, %v9720_v15 }
0x1310   :  { %v3260_v21 = vrot.slane %v3250_v60, 4  ;;  %v3272_v4 = vsel %vm88_vm1, %v3271_v28, %v3252_v48  ;;  %v3255_v14 = vsel %vm88_vm1, %v3249_v16, %v3230_v49 }
0x1311   :  { %v3248_v19 = vsel %vm88_vm1, 0.0, %v3247_v30  ;;  %v3259_v32 = vperm.slane %v3255_v14, %v9720_v15  ;;  %v3276_v31 = vperm.slane %v3272_v4, %v9720_v15  ;;  %v3291_v40 = vrot.slane %v3270_v51, 4 }
0x1312   :  { %v3261_v7 = vsel %vm88_vm1, %v3260_v21, %v3248_v19 }
0x1313   :  { %v3265_v39 = vperm.slane %v3261_v7, %v9720_v15  ;;  %v3279_v1 = vrot.slane %v3259_v32, 4  ;;  %v3292_v3 = vsel %vm88_vm1, %v3276_v31, %v3291_v40  ;;  %v3289_v13 = vrot.slane %v3276_v31, 4  ;;  %v4537_v31 = vld [vmem:[%s13103_s1 + $0x48] sm:$0xff]  ;;  %v4536_v40 = vld [vmem:[%s13103_s1 + $0x30] sm:$0xff] }
0x1314   :  { %v3300_v44 = vperm.slane %v3292_v3, %v9733_v38 }
0x1315   :  { %v3280_v12 = vsel %vm88_vm1, %v3265_v39, %v3279_v1  ;;  %v3277_v56 = vrot.slane %v3265_v39, 4  ;;  %v3290_v17 = vsel %vm88_vm1, %v3289_v13, %v3270_v51  ;;  %v4535_v39 = vld [vmem:[%s13103_s1 + $0x18] sm:$0xff] }
0x1316   :  { %v3288_v23 = vperm.slane %v3280_v12, %v9733_v38  ;;  %v3305_v11 = vrot.slane %v3300_v44, 4  ;;  %v3296_v20 = vperm.slane %v3290_v17, %v9733_v38 }
0x1317   :  { %v3278_v54 = vsel %vm88_vm1, %v3277_v56, %v3259_v32 }
0x1318   :  { %v3306_v57 = vsel %vm88_vm1, %v3305_v11, %v3288_v23  ;;  %v3284_v33 = vperm.slane %v3278_v54, %v9733_v38  ;;  %v3301_v35 = vrot.slane %v3296_v20, 4  ;;  %v3307_v42 = vrot.slane %v3288_v23, 4 }
0x1319   :  { %9112 = vmatmul.msk.f32.vlgmr.msra.gmra.mxu0 %vm422_vm2, %v3306_v57 }
0x131a   :  { %v3302_v59 = vsel %vm88_vm1, %v3301_v35, %v3284_v33  ;;  %v3303_v18 = vrot.slane %v3284_v33, 4  ;;  %v3308_v53 = vsel %vm88_vm1, %v3300_v44, %v3307_v42  ;;  %v4534_v44 = vld [vmem:[%s13103_s1] sm:$0xff] }
0x131b   :  { %9106 = vmatmul.msk.f32.vlgmr.msrb.gmra.mxu2 %vm422_vm2, %v3302_v59 }
0x131c   :  { %4099 = vmatpush.msrb.mxu2 %v11068_v43  ;;  %v3304_v34 = vsel %vm88_vm1, %v3296_v20, %v3303_v18 }
0x131d   :  { %9109 = vmatmul.msk.f32.vlgmr.msra.gmra.mxu3 %vm422_vm2, %v3304_v34 }
0x131e   :  { %4100 = vmatpush.msrb.mxu2 %v11065_v62 }
0x1323   :  { %9115 = vmatmul.msk.f32.vlgmr.msra.gmra.mxu2 %vm422_vm2, %v3308_v53 }
0x1324   :  { %4555 = vmatpush.msra.mxu2 %v4537_v31 }
0x1326   :  { %4556 = vmatpush.msra.mxu2 %v4536_v40 }
0x1328   :  { %4557 = vmatpush.msra.mxu2 %v4535_v39 }
0x132a   :  { %4558 = vmatpush.msra.mxu2 %v4534_v44 }
0x1396   :  { %v3885_v10 = vpop.f32.mrf.mxu0 }
0x1397   :  { %v3923_v29 = vsel %vm786_vm3, %v3885_v10, -inf }
0x1398   :  { %3924 = vmax.xlane.f32.xlu1 %v3923_v29 }
0x139e   :  { %v3827_v27 = vpop.f32.mrf.mxu2 }
0x139f   :  { %v3917_v24 = vsel %vm786_vm3, %v3827_v27, -inf }
0x13a0   :  { %3918 = vmax.xlane.f32.xlu2 %v3917_v24  ;;  %v3856_v43 = vpop.f32.mrf.mxu3 }
0x13a1   :  { %v3920_v37 = vsel %vm786_vm3, %v3856_v43, -inf }
0x13a6   :  { %v3914_v41 = vpop.f32.mrf.mxu2 }
0x13a7   :  { %v3926_v52 = vsel %vm786_vm3, %v3914_v41, -inf }
0x13a8   :  { %3921 = vmax.xlane.f32.xlu2 %v3920_v37  ;;  %3927 = vmax.xlane.f32.xlu0 %v3926_v52 }
0x140b   :  { %v3925_v62 = vpop.xlane.xlu1 %3924 }
0x140c   :  { %v3931_v55 = vsub.f32 %v3885_v10, %v3925_v62 }
0x140e   :  { %v3937_v8 = vmul.f32 1.442695, %v3931_v55 }
0x1410   :  { %9513 = vpow2.f32 %v3937_v8 }
0x1413   :  { %v3919_v36 = vpop.xlane.xlu2 %3918 }
0x1414   :  { %v3929_v5 = vsub.f32 %v3827_v27, %v3919_v36 }
0x1416   :  { %v9514_v47 = vpop.eup %9513  ;;  %v3933_v0 = vmul.f32 1.442695, %v3929_v5 }
0x1417   :  { %v3947_v6 = vsel %vm786_vm3, %v9514_v47, 0.0 }
0x1418   :  { %9515 = vpow2.f32 %v3933_v0  ;;  %3948 = vadd.xlane.f32.xlu2 %v3947_v6 }
0x141b   :  { %v3922_v50 = vpop.xlane.xlu2 %3921  ;;  %v3928_v26 = vpop.xlane.xlu0 %3927 }
0x141c   :  { %v3930_v49 = vsub.f32 %v3856_v43, %v3922_v50  ;;  %v3932_v16 = vsub.f32 %v3914_v41, %v3928_v26 }
0x141e   :  { %v11127_v2 = vpop.eup %9515  ;;  %v3935_v25 = vmul.f32 1.442695, %v3930_v49  ;;  %v3939_v58 = vmul.f32 1.442695, %v3932_v16 }
0x141f   :  { %v3941_v28 = vsel %vm786_vm3, %v11127_v2, 0.0 }
0x1420   :  { %9517 = vpow2.f32 %v3935_v25  ;;  %3942 = vadd.xlane.f32.xlu0 %v3941_v28 }
0x1421   :  { %9519 = vpow2.f32 %v3939_v58 }
0x1426   :  { %v11131_v30 = vpop.eup %9517 }
0x1427   :  { %v11133_v60 = vpop.eup %9519  ;;  %v3944_v48 = vsel %vm786_vm3, %v11131_v30, 0.0 }
0x1428   :  { %3945 = vadd.xlane.f32.xlu0 %v3944_v48  ;;  %v3950_v51 = vsel %vm786_vm3, %v11133_v60, 0.0 }
0x1429   :  { %3951 = vadd.xlane.f32.xlu1 %v3950_v51 }
0x148b   :  { %v3949_v21 = vpop.xlane.xlu2 %3948 }
0x148c   :  { %9521 = vrcp.f32 %v3949_v21  ;;  %v3994_v1 = vand.u32 2147483648, %v3949_v21  ;;  %vm3988_vm14 = vweird.f32 %v3949_v21  ;;  %v3992_v13 = vand.u32 2147483647, %v3949_v21 }
0x148e   :  { %v3995_v11 = vor.u32 1.1754944e-38, %v3994_v1  ;;  %vm3993_vm5 = vcmp.eq.f32.partialorder %v3992_v13, 8.507059e+37 }
0x1492   :  { %v9522_v4 = vpop.eup %9521 }
0x1493   :  { %v3984_v14 = vmul.f32 %v9522_v4, %v3949_v21  ;;  %v3943_v19 = vpop.xlane.xlu0 %3942  ;;  %vm3989_vm13 = vweird.f32 %v9522_v4 }
0x1494   :  { %9523 = vrcp.f32 %v3943_v19  ;;  %vm3990_vm15 = vmor %vm3988_vm14, %vm3989_vm13  ;;  %v3964_v57 = vand.u32 2147483648, %v3943_v19  ;;  %v3962_v59 = vand.u32 2147483647, %v3943_v19  ;;  %vm3958_vm8 = vweird.f32 %v3943_v19 }
0x1495   :  { %v3985_v32 = vsub.f32 1.0, %v3984_v14 }
0x1496   :  { %v3965_v53 = vor.u32 1.1754944e-38, %v3964_v57  ;;  %vm3963_vm10 = vcmp.eq.f32.partialorder %v3962_v59, 8.507059e+37 }
0x1497   :  { %v3986_v7 = vmul.f32 %v9522_v4, %v3985_v32 }
0x1499   :  { %v3987_v3 = vadd.f32 %v9522_v4, %v3986_v7 }
0x149a   :  { %v9524_v12 = vpop.eup %9523 }
0x149b   :  { %v3991_v56 = vsel %vm3990_vm15, %v9522_v4, %v3987_v3  ;;  %v3954_v17 = vmul.f32 %v9524_v12, %v3943_v19  ;;  %v3946_v23 = vpop.xlane.xlu0 %3945  ;;  %vm3959_vm7 = vweird.f32 %v9524_v12 }
0x149c   :  { %v3952_v20 = vpop.xlane.xlu1 %3951  ;;  %9525 = vrcp.f32 %v3946_v23  ;;  %v3996_v33 = vsel %vm3993_vm5, %v3995_v11, %v3991_v56  ;;  %vm3960_vm9 = vmor %vm3958_vm8, %vm3959_vm7  ;;  %v3977_v8 = vand.u32 2147483647, %v3946_v23  ;;  %v3979_v36 = vand.u32 2147483648, %v3946_v23  ;;  %v9146_v56 = vld [vmem:[%s13104_s0 + $0x20] sm:$0xff] }
0x149d   :  { %v3955_v54 = vsub.f32 1.0, %v3954_v17  ;;  %9527 = vrcp.f32 %v3952_v20  ;;  %v3997_v18 = vmul.f32 %v9514_v47, %v3996_v33  ;;  %v4009_v55 = vand.u32 2147483648, %v3952_v20 }
0x149e   :  { %v4007_v50 = vand.u32 2147483647, %v3952_v20  ;;  %vm3973_vm13 = vweird.f32 %v3946_v23  ;;  %vm4003_vm14 = vweird.f32 %v3952_v20  ;;  %vm3978_vm7 = vcmp.eq.f32.partialorder %v3977_v8, 8.507059e+37 }
0x149f   :  { %v3956_v35 = vmul.f32 %v9524_v12, %v3955_v54  ;;  %9118 = vmatmul.msk.f32.vlgmr.msra.gmra.mxu1 %vm786_vm3, %v3997_v18  ;;  %v4304_v37 = vrot.slane %v3997_v18, 4  ;;  %v4010_v25 = vor.u32 1.1754944e-38, %v4009_v55 }
0x14a0   :  { %vm4008_vm8 = vcmp.eq.f32.partialorder %v4007_v50, 8.507059e+37 }
0x14a1   :  { %v3957_v34 = vadd.f32 %v9524_v12, %v3956_v35 }
0x14a2   :  { %v9526_v42 = vpop.eup %9525 }
0x14a3   :  { %v9528_v10 = vpop.eup %9527  ;;  %v3961_v29 = vsel %vm3960_vm9, %v9524_v12, %v3957_v34  ;;  %v3969_v27 = vmul.f32 %v9526_v42, %v3946_v23  ;;  %vm3974_vm11 = vweird.f32 %v9526_v42 }
0x14a4   :  { %v3999_v24 = vmul.f32 %v9528_v10, %v3952_v20  ;;  %v3966_v43 = vsel %vm3963_vm10, %v3965_v53, %v3961_v29  ;;  %vm4004_vm12 = vweird.f32 %v9528_v10  ;;  %vm3975_vm15 = vmor %vm3973_vm13, %vm3974_vm11 }
0x14a5   :  { %v3970_v41 = vsub.f32 1.0, %v3969_v27  ;;  %v3967_v52 = vmul.f32 %v11127_v2, %v3966_v43  ;;  %v3980_v2 = vor.u32 1.1754944e-38, %v3979_v36  ;;  %vm4005_vm5 = vmor %vm4003_vm14, %vm4004_vm12 }
0x14a6   :  { %v4000_v62 = vsub.f32 1.0, %v3999_v24 }
0x14a7   :  { %v3971_v5 = vmul.f32 %v9526_v42, %v3970_v41  ;;  %9116 = vmatmul.msk.f32.vlgmr.msrb.gmra.mxu3 %vm786_vm3, %v3967_v52  ;;  %v4305_v47 = vsel %vm88_vm1, %v4304_v37, %v3967_v52  ;;  %v4306_v0 = vrot.slane %v3967_v52, 4 }
0x14a8   :  { %v4001_v6 = vmul.f32 %v9528_v10, %v4000_v62  ;;  %v4311_v19 = vperm.slane %v4305_v47, %v9720_v15 }
0x14a9   :  { %v3972_v26 = vadd.f32 %v9526_v42, %v3971_v5  ;;  %v4307_v49 = vsel %vm88_vm1, %v3997_v18, %v4306_v0 }
0x14aa   :  { %v4002_v16 = vadd.f32 %v9528_v10, %v4001_v6  ;;  %v4315_v4 = vperm.slane %v4307_v49, %v9720_v15 }
0x14ab   :  { %v3976_v58 = vsel %vm3975_vm15, %v9526_v42, %v3972_v26 }
0x14ac   :  { %v4006_v28 = vsel %vm4005_vm5, %v9528_v10, %v4002_v16  ;;  %v3981_v48 = vsel %vm3978_vm7, %v3980_v2, %v3976_v58  ;;  %v4342_v7 = vrot.slane %v4315_v4, 4 }
0x14ad   :  { %v4011_v51 = vsel %vm4008_vm8, %v4010_v25, %v4006_v28  ;;  %v3982_v21 = vmul.f32 %v11131_v30, %v3981_v48  ;;  %v4330_v30 = vrot.slane %v4311_v19, 4 }
0x14ae   :  { %v4012_v14 = vmul.f32 %v11133_v60, %v4011_v51 }
0x14af   :  { %9117 = vmatmul.msk.f32.vlgmr.msrb.gmra.mxu0 %vm786_vm3, %v3982_v21  ;;  %v4318_v32 = vrot.slane %v3982_v21, 4 }
0x14b0   :  { %9119 = vmatmul.msk.f32.vlgmr.msrb.gmra.mxu2 %vm786_vm3, %v4012_v14  ;;  %v4316_v31 = vrot.slane %v4012_v14, 4 }
0x14b1   :  { %v4319_v40 = vsel %vm88_vm1, %v4012_v14, %v4318_v32 }
0x14b2   :  { %v4317_v39 = vsel %vm88_vm1, %v4316_v31, %v3982_v21  ;;  %v4327_v1 = vperm.slane %v4319_v40, %v9720_v15  ;;  %v9122_v31 = vld [vmem:[%s13103_s1 + $0x98] sm:$0xff]  ;;  %v9123_v40 = vld [vmem:[%s13103_s1 + $0xb0] sm:$0xff] }
0x14b3   :  { %v4323_v3 = vperm.slane %v4317_v39, %v9720_v15  ;;  %v9333_v39 = vpack.i.bf16 %v9122_v31, %v9123_v40 }
0x14b4   :  { %v4340_v13 = vrot.slane %v4327_v1, 4  ;;  %v4343_v60 = vsel %vm88_vm1, %v4327_v1, %v4342_v7  ;;  %v9120_v7 = vld [vmem:[%s13103_s1 + $0x68] sm:$0xff]  ;;  %v9121_v1 = vld [vmem:[%s13103_s1 + $0x80] sm:$0xff] }
0x14b5   :  { %v4328_v44 = vrot.slane %v4323_v3, 4  ;;  %v4351_v12 = vperm.slane %v4343_v60, %v9733_v38  ;;  %v4331_v17 = vsel %vm88_vm1, %v4323_v3, %v4330_v30  ;;  %v9338_v30 = vpack.i.bf16 %v9120_v7, %v9121_v1  ;;  %9334 = vrot.lane.b32.xlu1 %v9333_v39, %s9631_s18 }
0x14b6   :  { %v4339_v23 = vperm.slane %v4331_v17, %v9733_v38  ;;  %v4341_v11 = vsel %vm88_vm1, %v4340_v13, %v4315_v4 }
0x14b7   :  { %v4329_v20 = vsel %vm88_vm1, %v4328_v44, %v4311_v19  ;;  %v4347_v54 = vperm.slane %v4341_v11, %v9733_v38  ;;  %v4358_v57 = vrot.slane %v4351_v12, 4  ;;  %9339 = vrot.lane.b32.xlu0 %v9338_v30, %s9631_s18 }
0x14b8   :  { %9150 = vmatmul.msk.f32.vlgmr.msra.gmra.mxu2 %vm29_vm0, %v9146_v56  ;;  %v4335_v33 = vperm.slane %v4329_v20, %v9733_v38  ;;  %v4354_v35 = vrot.slane %v4339_v23, 4 }
0x14b9   :  { %v4356_v59 = vrot.slane %v4347_v54, 4  ;;  %v4359_v18 = vsel %vm88_vm1, 0.0, %v4358_v57  ;;  %v4371_v34 = vsel %vm88_vm1, %v4358_v57, %v4347_v54 }
0x14ba   :  { %v4352_v42 = vrot.slane %v4335_v33, 4  ;;  %v4355_v53 = vsel %vm88_vm1, 0.0, %v4354_v35  ;;  %v4360_v10 = vsel %vm88_vm1, %v4354_v35, %v4335_v33  ;;  %v4375_v29 = vperm.slane %v4371_v34, %v9720_v15 }
0x14bb   :  { %v4357_v27 = vsel %vm88_vm1, 0.0, %v4356_v59  ;;  %v4364_v24 = vperm.slane %v4360_v10, %v9720_v15  ;;  %v4365_v43 = vrot.slane %v4355_v53, 4  ;;  %v4376_v41 = vrot.slane %v4359_v18, 4 }
0x14bc   :  { %v4353_v37 = vsel %vm88_vm1, 0.0, %v4352_v42  ;;  %v4396_v52 = vrot.slane %v4375_v29, 4 }
0x14bd   :  { %v4366_v62 = vsel %vm88_vm1, %v4365_v43, %v4353_v37  ;;  %v4377_v55 = vsel %vm88_vm1, %v4376_v41, %v4357_v27  ;;  %v4384_v8 = vrot.slane %v4364_v24, 4 }
0x14be   :  { %v4370_v36 = vperm.slane %v4366_v62, %v9720_v15  ;;  %v4381_v5 = vperm.slane %v4377_v55, %v9720_v15 }
0x14c0   :  { %v4385_v47 = vsel %vm88_vm1, %v4370_v36, %v4384_v8  ;;  %v4397_v0 = vsel %vm88_vm1, %v4381_v5, %v4396_v52  ;;  %v4382_v6 = vrot.slane %v4370_v36, 4  ;;  %v4394_v50 = vrot.slane %v4381_v5, 4 }
0x14c1   :  { %v4393_v26 = vperm.slane %v4385_v47, %v9733_v38  ;;  %v4405_v49 = vperm.slane %v4397_v0, %v9733_v38 }
0x14c2   :  { %v4383_v16 = vsel %vm88_vm1, %v4382_v6, %v4364_v24  ;;  %v4395_v2 = vsel %vm88_vm1, %v4394_v50, %v4375_v29 }
0x14c3   :  { %v4410_v25 = vrot.slane %v4405_v49, 4  ;;  %v4389_v58 = vperm.slane %v4383_v16, %v9733_v38  ;;  %v4401_v28 = vperm.slane %v4395_v2, %v9733_v38  ;;  %v4412_v48 = vrot.slane %v4393_v26, 4 }
0x14c5   :  { %v11199_v51 = vsel %vm88_vm1, %v4410_v25, %v4393_v26  ;;  %v4408_v21 = vrot.slane %v4389_v58, 4  ;;  %v11202_v4 = vsel %vm88_vm1, %v4405_v49, %v4412_v48  ;;  %v4406_v14 = vrot.slane %v4401_v28, 4 }
0x14c7   :  { %v11205_v19 = vsel %vm88_vm1, %v4401_v28, %v4408_v21  ;;  %v11208_v32 = vsel %vm88_vm1, %v4406_v14, %v4389_v58 }
0x151c   :  { %v4079_v13 = vpop.f32.mrf.mxu1 }
0x151d   :  { %v4105_v44 = vrot.slane %v4079_v13, 4 }
0x152a   :  { %v4033_v3 = vpop.f32.mrf.mxu3 }
0x152b   :  { %v4107_v60 = vrot.slane %v4033_v3, 4  ;;  %v4106_v17 = vsel %vm88_vm1, %v4105_v44, %v4033_v3 }
0x152c   :  { %v4056_v56 = vpop.f32.mrf.mxu0  ;;  %v4112_v20 = vperm.slane %v4106_v17, %v9720_v15 }
0x152d   :  { %v4108_v12 = vsel %vm88_vm1, %v4079_v13, %v4107_v60  ;;  %v4119_v11 = vrot.slane %v4056_v56, 4 }
0x152e   :  { %v4116_v23 = vperm.slane %v4108_v12, %v9720_v15  ;;  %v4131_v34 = vrot.slane %v4112_v20, 4 }
0x1530   :  { %v4143_v35 = vrot.slane %v4116_v23, 4 }
0x1533   :  { %v4102_v54 = vpop.f32.mrf.mxu2 }
0x1534   :  { %v4117_v57 = vrot.slane %v4102_v54, 4  ;;  %v4120_v33 = vsel %vm88_vm1, %v4102_v54, %v4119_v11  ;;  %v9422_v54 = vld [vmem:[%s13105_s3] ss:$0 sm:$0xff] }
0x1535   :  { %v4128_v59 = vperm.slane %v4120_v33, %v9720_v15 }
0x1536   :  { %v4118_v18 = vsel %vm88_vm1, %v4117_v57, %v4056_v56 }
0x1537   :  { %v4124_v42 = vperm.slane %v4118_v18, %v9720_v15  ;;  %v4141_v53 = vrot.slane %v4128_v59, 4  ;;  %v4144_v10 = vsel %vm88_vm1, %v4128_v59, %v4143_v35 }
0x1538   :  { %v4152_v29 = vperm.slane %v4144_v10, %v9733_v38 }
0x1539   :  { %v4129_v27 = vrot.slane %v4124_v42, 4  ;;  %v4132_v24 = vsel %vm88_vm1, %v4124_v42, %v4131_v34  ;;  %v4142_v43 = vsel %vm88_vm1, %v4141_v53, %v4116_v23  ;;  %v9335_v42 = vpop.permute.xlu1 %9334 }
0x153a   :  { %v4140_v41 = vperm.slane %v4132_v24, %v9733_v38  ;;  %v4148_v37 = vperm.slane %v4142_v43, %v9733_v38  ;;  %v4159_v52 = vrot.slane %v4152_v29, 4  ;;  %v9337_v53 = vunpack.i.h.bf16 %v9335_v42  ;;  %v9340_v29 = vpop.permute.xlu0 %9339 }
0x153b   :  { %v4130_v62 = vsel %vm88_vm1, %v4129_v27, %v4112_v20  ;;  %v4560_v35 = vpop.f32.mrf.mxu2  ;;  %v9336_v10 = vunpack.i.l.bf16 %v9335_v42  ;;  %v9341_v27 = vunpack.i.l.bf16 %v9340_v29  ;;  %v9342_v24 = vunpack.i.h.bf16 %v9340_v29 }
0x153c   :  { %v4136_v55 = vperm.slane %v4130_v62, %v9733_v38  ;;  %v4155_v8 = vrot.slane %v4140_v41, 4  ;;  %v4157_v36 = vrot.slane %v4148_v37, 4  ;;  %v4160_v5 = vsel %vm88_vm1, 0.0, %v4159_v52 }
0x153d   :  { %v4172_v47 = vsel %vm88_vm1, %v4159_v52, %v4148_v37  ;;  %v4177_v0 = vrot.slane %v4160_v5, 4  ;;  %v11270_v34 = vadd.f32 %v9422_v54, %v4560_v35  ;;  %4267 = vmatpush.msra.mxu3 %v9336_v10 }
0x153e   :  { %v4153_v6 = vrot.slane %v4136_v55, 4  ;;  %v4156_v50 = vsel %vm88_vm1, 0.0, %v4155_v8  ;;  %v4158_v26 = vsel %vm88_vm1, 0.0, %v4157_v36  ;;  %v4176_v49 = vperm.slane %v4172_v47, %v9720_v15 }
0x153f   :  { %v4166_v16 = vrot.slane %v4156_v50, 4  ;;  %v4161_v2 = vsel %vm88_vm1, %v4155_v8, %v4136_v55  ;;  %v4178_v25 = vsel %vm88_vm1, %v4177_v0, %v4158_v26  ;;  %4268 = vmatpush.msra.mxu3 %v9337_v53  ;;  %v4599_v0 = vrot.slane %v11270_v34, 4 }
0x1540   :  { %v4154_v58 = vsel %vm88_vm1, 0.0, %v4153_v6  ;;  %v4165_v28 = vperm.slane %v4161_v2, %v9720_v15  ;;  %v4182_v48 = vperm.slane %v4178_v25, %v9720_v15  ;;  %v4197_v21 = vrot.slane %v4176_v49, 4 }
0x1541   :  { %v4167_v14 = vsel %vm88_vm1, %v4166_v16, %v4154_v58  ;;  %4269 = vmatpush.msra.mxu3 %v9341_v27 }
0x1542   :  { %v4171_v31 = vperm.slane %v4167_v14, %v9720_v15  ;;  %v4185_v40 = vrot.slane %v4165_v28, 4  ;;  %v4198_v7 = vsel %vm88_vm1, %v4182_v48, %v4197_v21  ;;  %v4195_v39 = vrot.slane %v4182_v48, 4 }
0x1543   :  { %v4206_v1 = vperm.slane %v4198_v7, %v9733_v38  ;;  %4270 = vmatpush.msra.mxu3 %v9342_v24 }
0x1544   :  { %v4186_v30 = vsel %vm88_vm1, %v4171_v31, %v4185_v40  ;;  %v4183_v3 = vrot.slane %v4171_v31, 4  ;;  %v4196_v13 = vsel %vm88_vm1, %v4195_v39, %v4176_v49 }
0x1545   :  { %v4194_v60 = vperm.slane %v4186_v30, %v9733_v38  ;;  %v4211_v44 = vrot.slane %v4206_v1, 4  ;;  %v4202_v12 = vperm.slane %v4196_v13, %v9733_v38 }
0x1546   :  { %v4184_v56 = vsel %vm88_vm1, %v4183_v3, %v4165_v28 }
0x1547   :  { %v4212_v17 = vsel %vm88_vm1, %v4211_v44, %v4194_v60  ;;  %v4213_v23 = vrot.slane %v4194_v60, 4  ;;  %v4190_v11 = vperm.slane %v4184_v56, %v9733_v38  ;;  %v4207_v20 = vrot.slane %v4202_v12, 4 }
0x1548   :  { %4220 = vrot.lane.b32.xlu0 %v4212_v17, %s9632_s19 }
0x1549   :  { %v4214_v57 = vsel %vm88_vm1, %v4206_v1, %v4213_v23  ;;  %v4209_v33 = vrot.slane %v4190_v11, 4  ;;  %v4208_v59 = vsel %vm88_vm1, %v4207_v20, %v4190_v11 }
0x154a   :  { %4224 = vrot.lane.b32.xlu1 %v4214_v57, %s9633_s20 }
0x154b   :  { %v4210_v18 = vsel %vm88_vm1, %v4202_v12, %v4209_v33 }
0x154c   :  { %4216 = vrot.lane.b32.xlu2 %v4210_v18, %s9634_s21 }
0x1550   :  { %4564 = vrot.lane.b32.xlu0 %v11270_v34, %s9623_s10 }
0x1552   :  { %4570 = vrot.lane.b32.xlu1 %v11270_v34, %s9620_s7 }
0x1558   :  { %4576 = vrot.lane.b32.xlu0 %v11270_v34, %s9618_s30 }
0x155a   :  { %4567 = vrot.lane.b32.xlu1 %v11270_v34, %s9619_s6 }
0x1560   :  { %4573 = vrot.lane.b32.xlu0 %v11270_v34, %s9625_s12 }
0x1562   :  { %4582 = vrot.lane.b32.xlu1 %v11270_v34, %s9622_s9 }
0x1568   :  { %4579 = vrot.lane.b32.xlu0 %v11270_v34, %s9621_s8 }
0x15a6   :  { %v4217_v43 = vpop.permute.xlu2 %4216 }
0x15a7   :  { %v4227_v41 = vsel %vm422_vm2, %v4208_v59, %v4217_v43 }
0x15ba   :  { %v4221_v37 = vpop.permute.xlu0 %4220 }
0x15bb   :  { %v4228_v52 = vsel %vm786_vm3, %v4227_v41, %v4221_v37 }
0x15bc   :  { %v4225_v62 = vpop.permute.xlu1 %4224 }
0x15bd   :  { %v4229_v55 = vsel %vm788_vm4, %v4228_v52, %v4225_v62 }
0x15be   :  { %9125 = vmatmul.msk.f32.vlgmr.msra.gmra.mxu3 %vm29_vm0, %v4229_v55 }
0x15c2   :  { %v4565_v8 = vpop.permute.xlu0 %4564 }
0x15c3   :  { %v4611_v5 = vrot.slane %v4565_v8, 4 }
0x15c4   :  { %v4571_v36 = vpop.permute.xlu1 %4570 }
0x15c5   :  { %v4609_v47 = vrot.slane %v4571_v36, 4  ;;  %v4612_v50 = vsel %vm88_vm1, %v4571_v36, %v4611_v5 }
0x15c6   :  { %v4620_v25 = vperm.slane %v4612_v50, %v9720_v15 }
0x15c7   :  { %v4610_v49 = vsel %vm88_vm1, %v4609_v47, %v4565_v8 }
0x15c8   :  { %v4616_v28 = vperm.slane %v4610_v49, %v9720_v15  ;;  %v4657_v14 = vrot.slane %v4620_v25, 4 }
0x15ca   :  { %v4577_v6 = vpop.permute.xlu0 %4576  ;;  %v4645_v7 = vrot.slane %v4616_v28, 4 }
0x15cb   :  { %v4635_v31 = vrot.slane %v4577_v6, 4 }
0x15cc   :  { %v4568_v26 = vpop.permute.xlu1 %4567 }
0x15cd   :  { %v4597_v16 = vrot.slane %v4568_v26, 4  ;;  %v4600_v2 = vsel %vm88_vm1, %v4568_v26, %v4599_v0 }
0x15ce   :  { %v4608_v48 = vperm.slane %v4600_v2, %v9720_v15 }
0x15cf   :  { %v4598_v58 = vsel %vm88_vm1, %v4597_v16, %v11270_v34 }
0x15d0   :  { %v4604_v21 = vperm.slane %v4598_v58, %v9720_v15  ;;  %v4659_v39 = vrot.slane %v4608_v48, 4  ;;  %v4658_v13 = vsel %vm88_vm1, %v4657_v14, %v4608_v48 }
0x15d1   :  { %v4664_v54 = vperm.slane %v4658_v13, %v9733_v38 }
0x15d2   :  { %v4574_v40 = vpop.permute.xlu0 %4573  ;;  %v4647_v30 = vrot.slane %v4604_v21, 4  ;;  %v4646_v17 = vsel %vm88_vm1, %v4645_v7, %v4604_v21  ;;  %v4660_v23 = vsel %vm88_vm1, %v4620_v25, %v4659_v39 }
0x15d3   :  { %v4623_v44 = vrot.slane %v4574_v40, 4  ;;  %v4652_v35 = vperm.slane %v4646_v17, %v9733_v38  ;;  %v4668_v59 = vperm.slane %v4660_v23, %v9733_v38  ;;  %v4703_v27 = vrot.slane %v4664_v54, 4 }
0x15d4   :  { %v4583_v1 = vpop.permute.xlu1 %4582  ;;  %v4648_v20 = vsel %vm88_vm1, %v4616_v28, %v4647_v30 }
0x15d5   :  { %v4633_v3 = vrot.slane %v4583_v1, 4  ;;  %v4636_v60 = vsel %vm88_vm1, %v4583_v1, %v4635_v31  ;;  %v4656_v53 = vperm.slane %v4648_v20, %v9733_v38  ;;  %v4695_v52 = vrot.slane %v4652_v35, 4 }
0x15d6   :  { %v4644_v56 = vperm.slane %v4636_v60, %v9720_v15  ;;  %v4707_v62 = vrot.slane %v4668_v59, 4 }
0x15d7   :  { %v4634_v12 = vsel %vm88_vm1, %v4633_v3, %v4577_v6  ;;  %v4699_v8 = vrot.slane %v4656_v53, 4 }
0x15d8   :  { %v4640_v11 = vperm.slane %v4634_v12, %v9720_v15  ;;  %v4681_v57 = vrot.slane %v4644_v56, 4 }
0x15da   :  { %v4580_v33 = vpop.permute.xlu0 %4579  ;;  %v4669_v10 = vrot.slane %v4640_v11, 4 }
0x15db   :  { %v4621_v18 = vrot.slane %v4580_v33, 4  ;;  %v4624_v42 = vsel %vm88_vm1, %v4580_v33, %v4623_v44 }
0x15dc   :  { %v4632_v29 = vperm.slane %v4624_v42, %v9720_v15 }
0x15dd   :  { %v4622_v24 = vsel %vm88_vm1, %v4621_v18, %v4574_v40 }
0x15de   :  { %v4628_v43 = vperm.slane %v4622_v24, %v9720_v15  ;;  %v4682_v41 = vsel %vm88_vm1, %v4681_v57, %v4632_v29  ;;  %v4683_v37 = vrot.slane %v4632_v29, 4 }
0x15df   :  { %v4688_v55 = vperm.slane %v4682_v41, %v9733_v38 }
0x15e0   :  { %v4670_v36 = vsel %vm88_vm1, %v4669_v10, %v4628_v43  ;;  %v4671_v5 = vrot.slane %v4628_v43, 4  ;;  %v4684_v47 = vsel %vm88_vm1, %v4644_v56, %v4683_v37 }
0x15e1   :  { %v4676_v0 = vperm.slane %v4670_v36, %v9733_v38  ;;  %v4692_v6 = vperm.slane %v4684_v47, %v9733_v38  ;;  %v4701_v50 = vrot.slane %v4688_v55, 4  ;;  %v4704_v26 = vsel %vm88_vm1, %v4688_v55, %v4703_v27 }
0x15e2   :  { %v4672_v49 = vsel %vm88_vm1, %v4640_v11, %v4671_v5  ;;  %v4803_v16 = vrot.slane %v4704_v26, 4 }
0x15e3   :  { %v4680_v2 = vperm.slane %v4672_v49, %v9733_v38  ;;  %v4693_v25 = vrot.slane %v4676_v0, 4  ;;  %v4696_v58 = vsel %vm88_vm1, %v4676_v0, %v4695_v52  ;;  %v4702_v28 = vsel %vm88_vm1, %v4701_v50, %v4664_v54 }
0x15e4   :  { %v4705_v48 = vrot.slane %v4692_v6, 4  ;;  %v4708_v21 = vsel %vm88_vm1, %v4692_v6, %v4707_v62  ;;  %v4779_v14 = vrot.slane %v4696_v58, 4  ;;  %v4791_v31 = vrot.slane %v4702_v28, 4 }
0x15e5   :  { %v4694_v40 = vsel %vm88_vm1, %v4693_v25, %v4652_v35  ;;  %v4697_v7 = vrot.slane %v4680_v2, 4  ;;  %v4700_v39 = vsel %vm88_vm1, %v4680_v2, %v4699_v8  ;;  %v4801_v1 = vrot.slane %v4708_v21, 4 }
0x15e6   :  { %v4706_v30 = vsel %vm88_vm1, %v4705_v48, %v4668_v59  ;;  %v4767_v3 = vrot.slane %v4694_v40, 4  ;;  %v4777_v13 = vrot.slane %v4700_v39, 4  ;;  %v4804_v60 = vsel %vm88_vm1, %v4708_v21, %v4803_v16 }
0x15e7   :  { %v4789_v44 = vrot.slane %v4706_v30, 4  ;;  %v4802_v12 = vsel %vm88_vm1, %v4801_v1, %v4704_v26  ;;  %v4812_v56 = vperm.slane %v4804_v60, %v9720_v15  ;;  %v4698_v17 = vsel %vm88_vm1, %v4697_v7, %v4656_v53 }
0x15e8   :  { %v4808_v23 = vperm.slane %v4802_v12, %v9720_v15  ;;  %v4765_v11 = vrot.slane %v4698_v17, 4  ;;  %v4768_v20 = vsel %vm88_vm1, %v4698_v17, %v4767_v3  ;;  %v4780_v54 = vsel %vm88_vm1, %v4700_v39, %v4779_v14  ;;  %v9131_v17 = vld [vmem:[%s13103_s1 + $0xb8] sm:$0xff] }
0x15e9   :  { %v4790_v57 = vsel %vm88_vm1, %v4789_v44, %v4702_v28  ;;  %v4776_v33 = vperm.slane %v4768_v20, %v9720_v15  ;;  %v4788_v35 = vperm.slane %v4780_v54, %v9720_v15  ;;  %v4792_v59 = vsel %vm88_vm1, %v4706_v30, %v4791_v31  ;;  %4450 = vmatpush.msra.mxu0 %v9131_v17  ;;  %v9129_v20 = vld [vmem:[%s13103_s1 + $0x88] sm:$0xff]  ;;  %v9128_v54 = vld [vmem:[%s13103_s1 + $0x70] sm:$0xff] }
0x15ea   :  { %v4800_v18 = vperm.slane %v4792_v59, %v9720_v15  ;;  %v4849_v42 = vrot.slane %v4812_v56, 4  ;;  %v4766_v53 = vsel %vm88_vm1, %v4765_v11, %v4694_v40  ;;  %v4778_v10 = vsel %vm88_vm1, %v4777_v13, %v4696_v58 }
0x15eb   :  { %v4825_v29 = vrot.slane %v4788_v35, 4  ;;  %v4827_v27 = vrot.slane %v4776_v33, 4  ;;  %v4772_v24 = vperm.slane %v4766_v53, %v9720_v15  ;;  %v4784_v43 = vperm.slane %v4778_v10, %v9720_v15  ;;  %v11404_v10 = vld [vmem:[%s13104_s0 + $0x38] sm:$0xff] }
0x15ec   :  { %v4850_v41 = vsel %vm88_vm1, %v4849_v42, %v4800_v18  ;;  %v4851_v37 = vrot.slane %v4800_v18, 4  ;;  %v4796_v52 = vperm.slane %v4790_v57, %v9720_v15  ;;  %v4837_v62 = vrot.slane %v4808_v23, 4 }
0x15ed   :  { %v4826_v55 = vsel %vm88_vm1, %v4825_v29, %v4776_v33  ;;  %v4856_v8 = vperm.slane %v4850_v41, %v9733_v38  ;;  %v4828_v36 = vsel %vm88_vm1, %v4788_v35, %v4827_v27  ;;  %v4813_v5 = vrot.slane %v4784_v43, 4  ;;  %v9423_v33 = vld [vmem:[%s13105_s3 + $0x14] ss:$0 sm:$0xff] }
0x15ee   :  { %v4832_v47 = vperm.slane %v4826_v55, %v9733_v38  ;;  %v4836_v0 = vperm.slane %v4828_v36, %v9733_v38  ;;  %v4852_v6 = vsel %vm88_vm1, %v4812_v56, %v4851_v37  ;;  %v4838_v50 = vsel %vm88_vm1, %v4837_v62, %v4796_v52 }
0x15ef   :  { %v4869_v26 = vrot.slane %v4856_v8, 4  ;;  %v4860_v49 = vperm.slane %v4852_v6, %v9733_v38  ;;  %v4814_v16 = vsel %vm88_vm1, %v4813_v5, %v4772_v24  ;;  %v11359_v2 = vperm.slane %v4838_v50, %v9733_v38 }
0x15f0   :  { %v11362_v25 = vperm.slane %v4814_v16, %v9733_v38  ;;  %v4815_v58 = vrot.slane %v4772_v24, 4  ;;  %v4839_v28 = vrot.slane %v4796_v52, 4  ;;  %v4875_v48 = vrot.slane %v4836_v0, 4 }
0x15f1   :  { %v4870_v21 = vsel %vm88_vm1, %v4869_v26, %v4832_v47  ;;  %v4873_v14 = vrot.slane %v4860_v49, 4  ;;  %v4861_v31 = vrot.slane %v11359_v2, 4  ;;  %v4871_v11 = vrot.slane %v4832_v47, 4 }
0x15f2   :  { %9151 = vmatpush.xpose.msk.msrb.mxu3 %vm422_vm2, %v4870_v21  ;;  %v4816_v40 = vsel %vm88_vm1, %v4784_v43, %v4815_v58  ;;  %v4840_v7 = vsel %vm88_vm1, %v4808_v23, %v4839_v28  ;;  %v4876_v39 = vsel %vm88_vm1, %v4860_v49, %v4875_v48  ;;  %v9130_v23 = vld [vmem:[%s13103_s1 + $0xa0] sm:$0xff] }
0x15f3   :  { %v4874_v1 = vsel %vm88_vm1, %v4873_v14, %v4836_v0  ;;  %v4862_v30 = vsel %vm88_vm1, %v4861_v31, %v11362_v25  ;;  %v4824_v3 = vperm.slane %v4816_v40, %v9733_v38  ;;  %v4848_v13 = vperm.slane %v4840_v7, %v9733_v38  ;;  %4451 = vmatpush.msra.mxu0 %v9130_v23 }
0x15f4   :  { %9155 = vmatpush.xpose.msk.msrb.mxu2 %vm422_vm2, %v4874_v1  ;;  %v4872_v57 = vsel %vm88_vm1, %v4856_v8, %v4871_v11  ;;  %v4863_v23 = vrot.slane %v11362_v25, 4  ;;  %v9137_v25 = vld [vmem:[%s13106_s2 + $0x58] sm:$0xff] }
0x15f5   :  { %9152 = vmatmul.msk.f32.vlgmr.msrb.gmra.mxu3 %vm422_vm2, %v4862_v30  ;;  %v4865_v60 = vrot.slane %v4848_v13, 4  ;;  %v4867_v44 = vrot.slane %v4824_v3, 4  ;;  %4452 = vmatpush.msra.mxu0 %v9129_v20  ;;  %v9141_v20 = vld [vmem:[%s13106_s2 + $0x78] sm:$0xff] }
0x15f6   :  { %9157 = vmatpush.xpose.msk.msra.mxu3 %vm422_vm2, %v4876_v39  ;;  %v4864_v11 = vsel %vm88_vm1, %v11359_v2, %v4863_v23  ;;  %4481 = vmatpush.msrb.mxu1 %v9141_v20  ;;  %v9138_v2 = vld [vmem:[%s13106_s2 + $0x60] sm:$0xff] }
0x15f7   :  { %v4866_v12 = vsel %vm88_vm1, %v4865_v60, %v4824_v3  ;;  %v4868_v56 = vsel %vm88_vm1, %v4848_v13, %v4867_v44  ;;  %4453 = vmatpush.msra.mxu0 %v9128_v54  ;;  %v9424_v13 = vld [vmem:[%s13105_s3 + $0x19] ss:$0 sm:$0xff]  ;;  %v9140_v54 = vld [vmem:[%s13106_s2 + $0x70] sm:$0xff] }
0x15f8   :  { %9156 = vmatmul.msk.f32.vlgmr.msrb.gmra.mxu2 %vm422_vm2, %v4866_v12  ;;  %v9425_v12 = vld [vmem:[%s13105_s3 + $0x1a] ss:$0 sm:$0xff]  ;;  %4482 = vmatpush.msrb.mxu1 %v9140_v54 }
0x15f9   :  { %9153 = vmatpush.xpose.msk.msrb.mxu0 %vm422_vm2, %v4872_v57  ;;  %v9139_v57 = vld [vmem:[%s13106_s2 + $0x68] sm:$0xff] }
0x15fa   :  { %4483 = vmatpush.msrb.mxu1 %v9139_v57 }
0x15fc   :  { %4484 = vmatpush.msrb.mxu1 %v9138_v2 }
0x15fd   :  { %9158 = vmatmul.msk.f32.vlgmr.msra.gmra.mxu3 %vm422_vm2, %v4868_v56 }
0x15fe   :  { %4485 = vmatpush.msrb.mxu1 %v9137_v25 }
0x1641   :  { %v4272_v35 = vpop.f32.mrf.mxu3 }
0x1642   :  { %v4273_v59 = vadd.f32 %v9423_v33, %v4272_v35  ;;  %v9136_v33 = vld [vmem:[%s13106_s2 + $0x50] sm:$0xff]  ;;  %v9135_v35 = vld [vmem:[%s13106_s2 + $0x48] sm:$0xff] }
0x1643   :  { %4486 = vmatpush.msrb.mxu1 %v9136_v33 }
0x1644   :  { %v4275_v18 = vadd.f32 %v4273_v59, %v10839_v45  ;;  %v9134_v59 = vld [vmem:[%s13106_s2 + $0x40] sm:$0xff] }
0x1645   :  { %4487 = vmatpush.msrb.mxu1 %v9135_v35 }
0x1646   :  { %v4278_v42 = vsel %vm29_vm0, %v4275_v18, 0.0 }
0x1647   :  { %4279 = vadd.xlane.f32.xlu2 %v4278_v42  ;;  %4488 = vmatpush.msrb.mxu1 %v9134_v59 }
0x1678   :  { %v4954_v53 = vpop.f32.mrf.mxu3 }
0x1679   :  { %v4955_v37 = vadd.f32 %v11404_v10, %v4954_v53 }
0x167b   :  { %v5006_v29 = vpop.f32.mrf.mxu2  ;;  %v5035_v52 = vsel %vm422_vm2, %v4955_v37, -inf }
0x167c   :  { %v11407_v27 = vadd.f32 %v11404_v10, %v5006_v29 }
0x167e   :  { %v5041_v24 = vsel %vm422_vm2, %v11407_v27, -inf }
0x167f   :  { %5042 = vmax.xlane.f32.xlu0 %v5041_v24 }
0x1680   :  { %v5032_v43 = vpop.f32.mrf.mxu3 }
0x1681   :  { %v5033_v45 = vadd.f32 %v11404_v10, %v5032_v43 }
0x1683   :  { %v5044_v41 = vsel %vm422_vm2, %v5033_v45, -inf }
0x1684   :  { %5045 = vmax.xlane.f32.xlu2 %v5044_v41 }
0x168c   :  { %5036 = vmax.xlane.f32.xlu2 %v5035_v52 }
0x1693   :  { %4591 = vrot.lane.b32.xlu0 %v11270_v34, %s9628_s15 }
0x16a4   :  { %4585 = vrot.lane.b32.xlu2 %v11270_v34, %s9624_s11 }
0x16ba   :  { %v4280_v62 = vpop.xlane.xlu2 %4279 }
0x16bb   :  { %v4281_v55 = vmul.f32 %v4280_v62, %v9972_v22 }
0x16bd   :  { %v4282_v8 = vsub.f32 %v4275_v18, %v4281_v55  ;;  %v9426_v18 = vld [vmem:[%s13105_s3 + $0x15] ss:$0 sm:$0xff] }
0x16bf   :  { %v4283_v36 = vmul.f32 %v4282_v8, %v4282_v8 }
0x16c1   :  { %v4284_v5 = vsel %vm29_vm0, %v4283_v36, 0.0 }
0x16c2   :  { %4285 = vadd.xlane.f32.xlu1 %v4284_v5 }
0x16db   :  { %4588 = vrot.lane.b32.xlu1 %v11270_v34, %s9630_s17 }
0x16f2   :  { %v5043_v41 = vpop.xlane.xlu0 %5042 }
0x16f7   :  { %v5046_v47 = vpop.xlane.xlu2 %5045 }
0x16f8   :  { %v5050_v0 = vsub.f32 %v5033_v45, %v5046_v47 }
0x16fa   :  { %v5057_v6 = vmul.f32 1.442695, %v5050_v0 }
0x16fc   :  { %9529 = vpow2.f32 %v5057_v6 }
0x16ff   :  { %v5037_v50 = vpop.xlane.xlu2 %5036 }
0x1700   :  { %v5047_v26 = vsub.f32 %v4955_v37, %v5037_v50  ;;  %v5049_v37 = vsub.f32 %v11407_v27, %v5043_v41 }
0x1702   :  { %v11423_v49 = vpop.eup %9529  ;;  %v5051_v16 = vmul.f32 1.442695, %v5047_v26  ;;  %v5055_v52 = vmul.f32 1.442695, %v5049_v37 }
0x1703   :  { %v5068_v58 = vsel %vm422_vm2, %v11423_v49, 0.0 }
0x1704   :  { %9531 = vpow2.f32 %v5051_v16 }
0x1705   :  { %5069 = vadd.xlane.f32.xlu1 %v5068_v58  ;;  %v4592_v36 = vpop.permute.xlu0 %4591 }
0x1706   :  { %v4709_v5 = vrot.slane %v4592_v36, 4 }
0x170a   :  { %v11427_v28 = vpop.eup %9531 }
0x170b   :  { %v5059_v48 = vsel %vm422_vm2, %v11427_v28, 0.0 }
0x170c   :  { %5060 = vadd.xlane.f32.xlu0 %v5059_v48 }
0x1735   :  { %v4286_v21 = vpop.xlane.xlu1 %4285 }
0x1736   :  { %v4287_v14 = vmul.f32 %v4286_v21, %v9972_v22 }
0x1738   :  { %v4288_v31 = vadd.f32 1e-05, %v4287_v14 }
0x173a   :  { %9533 = vrsqrt.f32 %v4288_v31  ;;  %vm4295_vm10 = vweird.f32 %v4288_v31 }
0x173b   :  { %9535 = vpow2.f32 %v5055_v52 }
0x1740   :  { %v9534_v40 = vpop.eup %9533 }
0x1741   :  { %v4290_v7 = vmul.f32 %v9534_v40, %v4288_v31  ;;  %vm4296_vm9 = vweird.f32 %v9534_v40  ;;  %v11479_v62 = vpop.eup %9535 }
0x1742   :  { %vm4297_vm11 = vmor %vm4295_vm10, %vm4296_vm9  ;;  %v5065_v55 = vsel %vm422_vm2, %v11479_v62, 0.0 }
0x1743   :  { %v4291_v39 = vmul.f32 %v9534_v40, %v4290_v7 }
0x1745   :  { %v4292_v1 = vmul.f32 0.5, %v4291_v39 }
0x1747   :  { %v4293_v30 = vsub.f32 1.5, %v4292_v1 }
0x1749   :  { %v4294_v3 = vmul.f32 %v9534_v40, %v4293_v30 }
0x174b   :  { %v4298_v60 = vsel %vm4297_vm11, %v9534_v40, %v4294_v3 }
0x174c   :  { %v4299_v44 = vmul.f32 %v4298_v60, %v4282_v8  ;;  %v4586_v8 = vpop.permute.xlu2 %4585 }
0x174d   :  { %v4710_v50 = vsel %vm88_vm1, %v4709_v5, %v4586_v8  ;;  %v4589_v27 = vpop.permute.xlu1 %4588 }
0x174e   :  { %v4301_v56 = vmul.f32 %v9424_v13, %v4299_v44  ;;  %v4716_v16 = vperm.slane %v4710_v50, %v9720_v15  ;;  %v4723_v58 = vrot.slane %v4589_v27, 4 }
0x1750   :  { %v11438_v17 = vadd.f32 %v9425_v12, %v4301_v56  ;;  %v4735_v39 = vrot.slane %v4716_v16, 4 }
0x1752   :  { %9133 = vmatmul.msk.f32.vlgmr.msra.gmra.mxu0 %vm29_vm0, %v11438_v17 }
0x175a   :  { %9154 = vmatmul.msk.f32.vlgmr.msrb.gmra.mxu0 %vm422_vm2, %v4864_v11 }
0x1778   :  { %v5070_v11 = vpop.xlane.xlu1 %5069 }
0x177f   :  { %v5061_v25 = vpop.xlane.xlu0 %5060 }
0x17cf   :  { %v4455_v42 = vpop.f32.mrf.mxu0 }
0x17d0   :  { %v4456_v53 = vadd.f32 %v9426_v18, %v4455_v42 }
0x17d2   :  { %v4458_v29 = vmax.f32 %v4456_v53, 0.0 }
0x17d4   :  { %9143 = vmatmul.msk.f32.vlgmr.msrb.gmra.mxu1 %vm2228_vm6, %v4458_v29 }
0x17d7   :  { %v4980_v24 = vpop.f32.mrf.mxu0 }
0x17d8   :  { %v4981_v43 = vadd.f32 %v11404_v10, %v4980_v24  ;;  %v4711_v10 = vrot.slane %v4586_v8, 4 }
0x17da   :  { %v5038_v45 = vsel %vm422_vm2, %v4981_v43, -inf  ;;  %v4712_v6 = vsel %vm88_vm1, %v4592_v36, %v4711_v10 }
0x17db   :  { %5039 = vmax.xlane.f32.xlu2 %v5038_v45  ;;  %v4720_v26 = vperm.slane %v4712_v6, %v9720_v15 }
0x17dd   :  { %v4747_v31 = vrot.slane %v4720_v26, 4 }
0x17f3   :  { %4594 = vrot.lane.b32.xlu2 %v11270_v34, %s9629_s16 }
0x181c   :  { %5066 = vadd.xlane.f32.xlu2 %v5065_v55 }
0x184e   :  { %v5040_v47 = vpop.xlane.xlu2 %5039 }
0x184f   :  { %v5048_v0 = vsub.f32 %v4981_v43, %v5040_v47 }
0x1851   :  { %v5053_v34 = vmul.f32 1.442695, %v5048_v0 }
0x1853   :  { %9537 = vpow2.f32 %v5053_v34 }
0x1854   :  { %9539 = vrcp.f32 %v5070_v11 }
0x1855   :  { %9541 = vrcp.f32 %v5061_v25  ;;  %v9613_v25 = vld [vmem:[%s13103_s1 + $0x30] sm:$0xff] }
0x1856   :  { %v4595_v48 = vpop.permute.xlu2 %4594 }
0x1857   :  { %v4721_v21 = vrot.slane %v4595_v48, 4  ;;  %v4724_v14 = vsel %vm88_vm1, %v4595_v48, %v4723_v58 }
0x1858   :  { %v4732_v40 = vperm.slane %v4724_v14, %v9720_v15 }
0x1859   :  { %v11489_v7 = vpop.eup %9537  ;;  %v4722_v1 = vsel %vm88_vm1, %v4721_v21, %v4589_v27 }
0x185a   :  { %v4728_v30 = vperm.slane %v4722_v1, %v9720_v15  ;;  %v4745_v3 = vrot.slane %v4732_v40, 4  ;;  %v4748_v13 = vsel %vm88_vm1, %v4732_v40, %v4747_v31  ;;  %v5062_v60 = vsel %vm422_vm2, %v11489_v7, 0.0  ;;  %v9540_v50 = vpop.eup %9539 }
0x185b   :  { %v4756_v44 = vperm.slane %v4748_v13, %v9733_v38  ;;  %5063 = vadd.xlane.f32.xlu2 %v5062_v60  ;;  %v9542_v48 = vpop.eup %9541  ;;  %v5078_v13 = vmul.f32 %v9540_v50, %v11423_v49 }
0x185c   :  { %v4733_v12 = vrot.slane %v4728_v30, 4  ;;  %v4736_v56 = vsel %vm88_vm1, %v4728_v30, %v4735_v39  ;;  %v4746_v23 = vsel %vm88_vm1, %v4745_v3, %v4720_v26  ;;  %v5075_v60 = vmul.f32 %v9542_v48, %v11427_v28 }
0x185d   :  { %v4744_v20 = vperm.slane %v4736_v56, %v9733_v38  ;;  %v4752_v54 = vperm.slane %v4746_v23, %v9733_v38  ;;  %v4763_v57 = vrot.slane %v4756_v44, 4 }
0x185e   :  { %v4734_v2 = vsel %vm88_vm1, %v4733_v12, %v4716_v16 }
0x185f   :  { %v4740_v33 = vperm.slane %v4734_v2, %v9733_v38  ;;  %v4759_v35 = vrot.slane %v4744_v20, 4  ;;  %v4761_v59 = vrot.slane %v4752_v54, 4  ;;  %v4764_v18 = vsel %vm88_vm1, 0.0, %v4763_v57  ;;  %v9612_v2 = vld [vmem:[%s13103_s1 + $0x48] sm:$0xff] }
0x1860   :  { %v4888_v42 = vsel %vm88_vm1, %v4763_v57, %v4752_v54  ;;  %v4893_v53 = vrot.slane %v4764_v18, 4 }
0x1861   :  { %v4757_v29 = vrot.slane %v4740_v33, 4  ;;  %v4760_v24 = vsel %vm88_vm1, 0.0, %v4759_v35  ;;  %v4762_v43 = vsel %vm88_vm1, 0.0, %v4761_v59  ;;  %v4892_v45 = vperm.slane %v4888_v42, %v9720_v15  ;;  %v11542_v59 = vpop.f32.mrf.mxu1 }
0x1862   :  { %v4882_v41 = vrot.slane %v4760_v24, 4  ;;  %v4894_v37 = vsel %vm88_vm1, %v4893_v53, %v4762_v43  ;;  %v4877_v52 = vsel %vm88_vm1, %v4759_v35, %v4740_v33  ;;  %v9343_v33 = vpack.i.bf16 %v9613_v25, %v9612_v2 }
0x1863   :  { %v4758_v55 = vsel %vm88_vm1, 0.0, %v4757_v29  ;;  %v4881_v8 = vperm.slane %v4877_v52, %v9720_v15  ;;  %v4898_v36 = vperm.slane %v4894_v37, %v9720_v15  ;;  %v4913_v10 = vrot.slane %v4892_v45, 4 }
0x1864   :  { %v4883_v5 = vsel %vm88_vm1, %v4882_v41, %v4758_v55  ;;  %9344 = vrot.lane.b32.xlu1 %v9343_v33, %s9631_s18  ;;  %v5297_v41 = vld [vmem:[%s13103_s1 + $0x18] sm:$0xff] }
0x1865   :  { %v4887_v47 = vperm.slane %v4883_v5, %v9720_v15  ;;  %v4901_v0 = vrot.slane %v4881_v8, 4  ;;  %v4914_v6 = vsel %vm88_vm1, %v4898_v36, %v4913_v10  ;;  %v4911_v34 = vrot.slane %v4898_v36, 4 }
0x1866   :  { %v4922_v27 = vperm.slane %v4914_v6, %v9733_v38 }
0x1867   :  { %v4902_v26 = vsel %vm88_vm1, %v4887_v47, %v4901_v0  ;;  %v4899_v16 = vrot.slane %v4887_v47, 4  ;;  %v4912_v58 = vsel %vm88_vm1, %v4911_v34, %v4892_v45  ;;  %v5296_v45 = vld [vmem:[%s13103_s1] sm:$0xff] }
0x1868   :  { %v4910_v21 = vperm.slane %v4902_v26, %v9733_v38  ;;  %v4927_v14 = vrot.slane %v4922_v27, 4  ;;  %v4918_v31 = vperm.slane %v4912_v58, %v9733_v38  ;;  %v9348_v55 = vpack.i.bf16 %v5296_v45, %v5297_v41 }
0x1869   :  { %v4900_v40 = vsel %vm88_vm1, %v4899_v16, %v4881_v8 }
0x186a   :  { %v4928_v39 = vsel %vm88_vm1, %v4927_v14, %v4910_v21  ;;  %v4906_v1 = vperm.slane %v4900_v40, %v9733_v38  ;;  %v4923_v30 = vrot.slane %v4918_v31, 4  ;;  %v4929_v3 = vrot.slane %v4910_v21, 4 }
0x186b   :  { %5143 = vmatpush.msra.mxu2 %v4928_v39 }
0x186c   :  { %v4924_v44 = vsel %vm88_vm1, %v4923_v30, %v4906_v1  ;;  %v4930_v12 = vsel %vm88_vm1, %v4922_v27, %v4929_v3  ;;  %v4925_v56 = vrot.slane %v4906_v1, 4 }
0x186d   :  { %5097 = vmatpush.msra.mxu0 %v4924_v44  ;;  %5166 = vmatpush.msrb.mxu3 %v4930_v12 }
0x186e   :  { %9159 = vmatmul.msk.f32.vlgmr.msra.gmra.mxu0 %vm422_vm2, %v5075_v60  ;;  %9162 = vmatmul.msk.f32.vlgmr.msrb.gmra.mxu3 %vm422_vm2, %v5078_v13  ;;  %v4926_v23 = vsel %vm88_vm1, %v4918_v31, %v4925_v56 }
0x186f   :  { %5120 = vmatpush.msra.mxu1 %v4926_v23 }
0x1873   :  { %9349 = vrot.lane.b32.xlu2 %v9348_v55, %s9631_s18 }
0x188f   :  { %v5067_v11 = vpop.xlane.xlu2 %5066 }
0x1890   :  { %9543 = vrcp.f32 %v5067_v11 }
0x1896   :  { %v9544_v49 = vpop.eup %9543 }
0x1897   :  { %v5077_v20 = vmul.f32 %v9544_v49, %v11479_v62 }
0x1899   :  { %9161 = vmatmul.msk.f32.vlgmr.msra.gmra.mxu2 %vm422_vm2, %v5077_v20 }
0x18ce   :  { %v5064_v28 = vpop.xlane.xlu2 %5063 }
0x18cf   :  { %9545 = vrcp.f32 %v5064_v28 }
0x18d5   :  { %v9546_v54 = vpop.eup %9545 }
0x18d6   :  { %v5076_v57 = vmul.f32 %v9546_v54, %v11489_v7 }
0x18d8   :  { %9160 = vmatmul.msk.f32.vlgmr.msra.gmra.mxu1 %vm422_vm2, %v5076_v57 }
0x18eb   :  { %v5099_v18 = vpop.f32.mrf.mxu0 }
0x18ec   :  { %v5173_v42 = vrot.slane %v5099_v18, 4 }
0x18f1   :  { %v5168_v53 = vpop.f32.mrf.mxu3 }
0x18f2   :  { %v5183_v43 = vrot.slane %v5168_v53, 4 }
0x191c   :  { %v5145_v62 = vpop.f32.mrf.mxu2 }
0x191d   :  { %v5171_v35 = vrot.slane %v5145_v62, 4  ;;  %v5174_v29 = vsel %vm88_vm1, %v5145_v62, %v5173_v42 }
0x191e   :  { %v5182_v37 = vperm.slane %v5174_v29, %v9720_v15 }
0x191f   :  { %v5172_v7 = vsel %vm88_vm1, %v5171_v35, %v5099_v18 }
0x1920   :  { %v5178_v24 = vperm.slane %v5172_v7, %v9720_v15  ;;  %v5209_v0 = vrot.slane %v5182_v37, 4 }
0x1922   :  { %v5197_v10 = vrot.slane %v5178_v24, 4 }
0x1955   :  { %v5122_v52 = vpop.f32.mrf.mxu1 }
0x1956   :  { %v5184_v8 = vsel %vm88_vm1, %v5183_v43, %v5122_v52  ;;  %v5185_v36 = vrot.slane %v5122_v52, 4 }
0x1957   :  { %v5190_v5 = vperm.slane %v5184_v8, %v9720_v15 }
0x1958   :  { %v5186_v47 = vsel %vm88_vm1, %v5168_v53, %v5185_v36 }
0x1959   :  { %v5194_v6 = vperm.slane %v5186_v47, %v9720_v15  ;;  %v5195_v34 = vrot.slane %v5190_v5, 4  ;;  %v5198_v50 = vsel %vm88_vm1, %v5190_v5, %v5197_v10  ;;  %v9345_v47 = vpop.permute.xlu1 %9344 }
0x195a   :  { %v5206_v27 = vperm.slane %v5198_v50, %v9733_v38 }
0x195b   :  { %v5196_v26 = vsel %vm88_vm1, %v5195_v34, %v5178_v24  ;;  %v5207_v16 = vrot.slane %v5194_v6, 4  ;;  %v5210_v58 = vsel %vm88_vm1, %v5194_v6, %v5209_v0  ;;  %v9347_v0 = vunpack.i.h.bf16 %v9345_v47  ;;  %v9350_v34 = vpop.permute.xlu2 %9349 }
0x195c   :  { %v5202_v48 = vperm.slane %v5196_v26, %v9733_v38  ;;  %v5218_v21 = vperm.slane %v5210_v58, %v9733_v38  ;;  %v5221_v14 = vrot.slane %v5206_v27, 4  ;;  %v9346_v6 = vunpack.i.l.bf16 %v9345_v47  ;;  %v5372_v26 = vld [vmem:[%s13103_s1 + $0x38] sm:$0xff] }
0x195d   :  { %v5208_v31 = vsel %vm88_vm1, %v5207_v16, %v5182_v37  ;;  %v9352_v50 = vunpack.i.h.bf16 %v9350_v34  ;;  %v9351_v27 = vunpack.i.l.bf16 %v9350_v34  ;;  %v5373_v16 = vld [vmem:[%s13103_s1 + $0x50] sm:$0xff] }
0x195e   :  { %v5214_v40 = vperm.slane %v5208_v31, %v9733_v38  ;;  %v5219_v39 = vrot.slane %v5202_v48, 4  ;;  %v5222_v1 = vsel %vm88_vm1, 0.0, %v5221_v14  ;;  %v5225_v30 = vrot.slane %v5218_v21, 4  ;;  %5333 = vmatpush.msrb.mxu0 %v9346_v6  ;;  %5391 = vmatpush.msrb.mxu1 %v5373_v16  ;;  %v5371_v21 = vld [vmem:[%s13103_s1 + $0x20] sm:$0xff] }
0x195f   :  { %v5227_v3 = vsel %vm88_vm1, %v5221_v14, %v5202_v48  ;;  %v5232_v13 = vrot.slane %v5222_v1, 4  ;;  %v9353_v58 = vpack.i.bf16 %v5372_v26, %v5373_v16  ;;  %v5370_v48 = vld [vmem:[%s13103_s1 + $0x8] sm:$0xff] }
0x1960   :  { %v5220_v60 = vsel %vm88_vm1, 0.0, %v5219_v39  ;;  %v5223_v44 = vrot.slane %v5214_v40, 4  ;;  %v5226_v12 = vsel %vm88_vm1, 0.0, %v5225_v30  ;;  %v5231_v56 = vperm.slane %v5227_v3, %v9720_v15  ;;  %5334 = vmatpush.msrb.mxu0 %v9347_v0  ;;  %5392 = vmatpush.msrb.mxu1 %v5372_v26 }
0x1961   :  { %v5243_v23 = vrot.slane %v5226_v12, 4  ;;  %v5233_v11 = vsel %vm88_vm1, %v5232_v13, %v5220_v60  ;;  %v5238_v49 = vsel %vm88_vm1, %v5225_v30, %v5214_v40  ;;  %v9358_v14 = vpack.i.bf16 %v5370_v48, %v5371_v21 }
0x1962   :  { %v5224_v20 = vsel %vm88_vm1, 0.0, %v5223_v44  ;;  %v5237_v28 = vperm.slane %v5233_v11, %v9720_v15  ;;  %v5242_v54 = vperm.slane %v5238_v49, %v9720_v15  ;;  %v5251_v57 = vrot.slane %v5231_v56, 4  ;;  %5335 = vmatpush.msrb.mxu0 %v9351_v27  ;;  %5393 = vmatpush.msrb.mxu1 %v5371_v21  ;;  %v9147_v11 = vld [vmem:[%s13104_s0 + $0x28] sm:$0xff]  ;;  %v9148_v49 = vld [vmem:[%s13104_s0 + $0x30] sm:$0xff] }
0x1963   :  { %v5244_v2 = vsel %vm88_vm1, %v5243_v23, %v5224_v20  ;;  %v9428_v20 = vld [vmem:[%s13105_s3 + $0x1] ss:$0 sm:$0xff] }
0x1964   :  { %v5248_v25 = vperm.slane %v5244_v2, %v9720_v15  ;;  %v5252_v33 = vsel %vm88_vm1, %v5237_v28, %v5251_v57  ;;  %v5263_v62 = vrot.slane %v5242_v54, 4  ;;  %v5249_v35 = vrot.slane %v5237_v28, 4  ;;  %5336 = vmatpush.msrb.mxu0 %v9352_v50  ;;  %5394 = vmatpush.msrb.mxu1 %v5370_v48  ;;  %v9614_v57 = vld [vmem:[%s13104_s0 + $0x20] sm:$0xff] }
0x1965   :  { %v5260_v18 = vperm.slane %v5252_v33, %v9733_v38 }
0x1966   :  { %v5264_v42 = vsel %vm88_vm1, %v5248_v25, %v5263_v62  ;;  %v5250_v7 = vsel %vm88_vm1, %v5249_v35, %v5231_v56  ;;  %v5261_v53 = vrot.slane %v5248_v25, 4 }
0x1967   :  { %v5272_v29 = vperm.slane %v5264_v42, %v9733_v38  ;;  %v5279_v24 = vrot.slane %v5260_v18, 4  ;;  %v5256_v43 = vperm.slane %v5250_v7, %v9733_v38  ;;  %v9429_v42 = vld [vmem:[%s13105_s3 + $0x3] ss:$0 sm:$0xff] }
0x1968   :  { %v5262_v45 = vsel %vm88_vm1, %v5261_v53, %v5242_v54 }
0x1969   :  { %v5280_v41 = vsel %vm88_vm1, %v5272_v29, %v5279_v24  ;;  %v5268_v37 = vperm.slane %v5262_v45, %v9733_v38  ;;  %v5275_v52 = vrot.slane %v5256_v43, 4  ;;  %v5277_v10 = vrot.slane %v5272_v29, 4 }
0x196a   :  { %5290 = vrot.lane.b32.xlu1 %v5280_v41, %s9633_s20 }
0x196b   :  { %v5276_v55 = vsel %vm88_vm1, %v5268_v37, %v5275_v52  ;;  %v5273_v8 = vrot.slane %v5268_v37, 4  ;;  %v5278_v5 = vsel %vm88_vm1, %v5277_v10, %v5260_v18 }
0x196c   :  { %5282 = vrot.lane.b32.xlu0 %v5276_v55, %s9634_s21 }
0x196d   :  { %v5274_v36 = vsel %vm88_vm1, %v5273_v8, %v5256_v43 }
0x1972   :  { %9354 = vrot.lane.b32.xlu1 %v9353_v58, %s9625_s12 }
0x1974   :  { %5286 = vrot.lane.b32.xlu0 %v5278_v5, %s9632_s19 }
0x197a   :  { %9359 = vrot.lane.b32.xlu1 %v9358_v14, %s9625_s12 }
0x19dc   :  { %v5291_v1 = vpop.permute.xlu1 %5290 }
0x19de   :  { %v5283_v31 = vpop.permute.xlu0 %5282 }
0x19df   :  { %v5293_v40 = vsel %vm422_vm2, %v5274_v36, %v5283_v31 }
0x19e4   :  { %v9355_v13 = vpop.permute.xlu1 %9354 }
0x19e5   :  { %v9357_v60 = vunpack.i.h.bf16 %v9355_v13  ;;  %v9356_v44 = vunpack.i.l.bf16 %v9355_v13 }
0x19e6   :  { %v5287_v39 = vpop.permute.xlu0 %5286 }
0x19e7   :  { %v5294_v30 = vsel %vm786_vm3, %v5293_v40, %v5287_v39  ;;  %5435 = vmatpush.msrb.mxu2 %v9356_v44 }
0x19e8   :  { %v5295_v3 = vsel %vm788_vm4, %v5294_v30, %v5291_v1 }
0x19e9   :  { %9163 = vmatmul.msk.f32.vlgmr.msrb.gmra.mxu0 %vm29_vm0, %v5295_v3  ;;  %5436 = vmatpush.msrb.mxu2 %v9357_v60 }
0x19ec   :  { %v9360_v12 = vpop.permute.xlu1 %9359 }
0x19ed   :  { %v9362_v56 = vunpack.i.h.bf16 %v9360_v12  ;;  %v9361_v23 = vunpack.i.l.bf16 %v9360_v12 }
0x19ef   :  { %5437 = vmatpush.msrb.mxu2 %v9361_v23 }
0x19f1   :  { %5438 = vmatpush.msrb.mxu2 %v9362_v56 }
0x19f2   :  { %9165 = vmatmul.msk.f32.vlgmr.msrb.gmra.mxu2 %vm29_vm0, %v9147_v11 }
0x19fa   :  { %9166 = vmatmul.msk.f32.gmra.mxu2 %vm29_vm0, %v9148_v49 }
0x1a66   :  { %v5338_v28 = vpop.f32.mrf.mxu0 }
0x1a67   :  { %v5339_v54 = vadd.f32 %v9428_v20, %v5338_v28 }
0x1a69   :  { %v5341_v2 = vadd.f32 %v9614_v57, %v5339_v54  ;;  %v9430_v57 = vld [vmem:[%s13105_s3 + $0x7] ss:$0 sm:$0xff] }
0x1a6b   :  { %v5344_v25 = vsel %vm29_vm0, %v5341_v2, 0.0 }
0x1a6c   :  { %5345 = vadd.xlane.f32.xlu2 %v5344_v25 }
0x1a75   :  { %v5440_v33 = vpop.f32.mrf.mxu2 }
0x1a76   :  { %v11640_v43 = vadd.f32 %v9429_v42, %v5440_v33 }
0x1a7d   :  { %v5443_v53 = vpop.f32.mrf.mxu2 }
0x1a7e   :  { %v5444_v24 = vadd.f32 %v9429_v42, %v5443_v53  ;;  %v9431_v53 = vld [vmem:[%s13105_s3 + $0x8] ss:$0 sm:$0xff] }
0x1a80   :  { %5570 = vrot.lane.b32.xlu1 %v5444_v24, %s9623_s10  ;;  %v5724_v10 = vrot.slane %v5444_v24, 4 }
0x1a84   :  { %5582 = vrot.lane.b32.xlu2 %v5444_v24, %s9620_s7 }
0x1a88   :  { %5576 = vrot.lane.b32.xlu1 %v5444_v24, %s9619_s6 }
0x1a8c   :  { %5606 = vrot.lane.b32.xlu2 %v5444_v24, %s9622_s9 }
0x1a90   :  { %5588 = vrot.lane.b32.xlu1 %v5444_v24, %s9625_s12 }
0x1a94   :  { %5598 = vrot.lane.b32.xlu2 %v11640_v43, %s9621_s8 }
0x1a98   :  { %5600 = vrot.lane.b32.xlu1 %v5444_v24, %s9621_s8 }
0x1a9c   :  { %5604 = vrot.lane.b32.xlu2 %v11640_v43, %s9622_s9 }
0x1aa0   :  { %5568 = vrot.lane.b32.xlu1 %v11640_v43, %s9623_s10 }
0x1aa8   :  { %5574 = vrot.lane.b32.xlu1 %v11640_v43, %s9619_s6 }
0x1ab0   :  { %5580 = vrot.lane.b32.xlu1 %v11640_v43, %s9620_s7 }
0x1adf   :  { %v5346_v62 = vpop.xlane.xlu2 %5345 }
0x1ae0   :  { %v5347_v35 = vmul.f32 %v5346_v62, %v9972_v22 }
0x1ae2   :  { %v11628_v18 = vsub.f32 %v5341_v2, %v5347_v35 }
0x1ae4   :  { %v5349_v7 = vmul.f32 %v11628_v18, %v11628_v18 }
0x1ae6   :  { %v5350_v29 = vsel %vm29_vm0, %v5349_v7, 0.0 }
0x1ae7   :  { %5351 = vadd.xlane.f32.xlu0 %v5350_v29  ;;  %v5583_v45 = vpop.permute.xlu2 %5582 }
0x1ae8   :  { %v5734_v36 = vrot.slane %v5583_v45, 4 }
0x1aef   :  { %v5607_v5 = vpop.permute.xlu2 %5606 }
0x1af0   :  { %v5758_v13 = vrot.slane %v5607_v5, 4 }
0x1af2   :  { %v5571_v37 = vpop.permute.xlu1 %5570 }
0x1af3   :  { %v5736_v8 = vrot.slane %v5571_v37, 4  ;;  %v5735_v0 = vsel %vm88_vm1, %v5734_v36, %v5571_v37 }
0x1af4   :  { %v5741_v16 = vperm.slane %v5735_v0, %v9720_v15  ;;  %v5612_v0 = vrot.slane %v11640_v43, 4 }
0x1af5   :  { %v5737_v6 = vsel %vm88_vm1, %v5583_v45, %v5736_v8 }
0x1af6   :  { %v5745_v58 = vperm.slane %v5737_v6, %v9720_v15  ;;  %v5770_v40 = vrot.slane %v5741_v16, 4 }
0x1af7   :  { %v5599_v44 = vpop.permute.xlu2 %5598 }
0x1af8   :  { %v5782_v39 = vrot.slane %v5745_v58, 4 }
0x1afa   :  { %v5577_v47 = vpop.permute.xlu1 %5576 }
0x1afb   :  { %5594 = vrot.lane.b32.xlu0 %v5444_v24, %s9618_s30  ;;  %v5722_v34 = vrot.slane %v5577_v47, 4  ;;  %v5725_v50 = vsel %vm88_vm1, %v5577_v47, %v5724_v10 }
0x1afc   :  { %v5733_v21 = vperm.slane %v5725_v50, %v9720_v15 }
0x1afd   :  { %v5723_v26 = vsel %vm88_vm1, %v5722_v34, %v5444_v24 }
0x1afe   :  { %v5729_v14 = vperm.slane %v5723_v26, %v9720_v15  ;;  %v5784_v30 = vrot.slane %v5733_v21, 4  ;;  %v5783_v23 = vsel %vm88_vm1, %v5782_v39, %v5733_v21 }
0x1aff   :  { %v5789_v29 = vperm.slane %v5783_v23, %v9733_v38 }
0x1b00   :  { %v5772_v60 = vrot.slane %v5729_v14, 4  ;;  %v5771_v56 = vsel %vm88_vm1, %v5770_v40, %v5729_v14  ;;  %v5785_v20 = vsel %vm88_vm1, %v5745_v58, %v5784_v30 }
0x1b01   :  { %v11677_v62 = vperm.slane %v5771_v56, %v9733_v38  ;;  %v5793_v24 = vperm.slane %v5785_v20, %v9733_v38  ;;  %v5828_v50 = vrot.slane %v5789_v29, 4 }
0x1b02   :  { %v5589_v3 = vpop.permute.xlu1 %5588  ;;  %v5773_v25 = vsel %vm88_vm1, %v5741_v16, %v5772_v60  ;;  %v5605_v16 = vpop.permute.xlu2 %5604 }
0x1b03   :  { %5586 = vrot.lane.b32.xlu0 %v11640_v43, %s9625_s12  ;;  %v5748_v2 = vrot.slane %v5589_v3, 4  ;;  %v5781_v37 = vperm.slane %v5773_v25, %v9733_v38 }
0x1b0b   :  { %5592 = vrot.lane.b32.xlu0 %v11640_v43, %s9618_s30 }
0x1b5a   :  { %v5352_v41 = vpop.xlane.xlu0 %5351 }
0x1b5b   :  { %v5353_v52 = vmul.f32 %v5352_v41, %v9972_v22  ;;  %v5601_v41 = vpop.permute.xlu1 %5600 }
0x1b5c   :  { %v5746_v8 = vrot.slane %v5601_v41, 4  ;;  %v5749_v36 = vsel %vm88_vm1, %v5601_v41, %v5748_v2 }
0x1b5d   :  { %v5354_v55 = vadd.f32 1e-05, %v5353_v52  ;;  %v5634_v52 = vrot.slane %v5599_v44, 4 }
0x1b5e   :  { %v5747_v34 = vsel %vm88_vm1, %v5746_v8, %v5589_v3 }
0x1b5f   :  { %9547 = vrsqrt.f32 %v5354_v55  ;;  %vm5361_vm13 = vweird.f32 %v5354_v55  ;;  %v5753_v58 = vperm.slane %v5747_v34, %v9720_v15 }
0x1b61   :  { %v5796_v30 = vrot.slane %v5753_v58, 4 }
0x1b65   :  { %v9548_v27 = vpop.eup %9547 }
0x1b66   :  { %v5356_v48 = vmul.f32 %v9548_v27, %v5354_v55  ;;  %vm5362_vm12 = vweird.f32 %v9548_v27 }
0x1b67   :  { %vm5363_vm14 = vmor %vm5361_vm13, %vm5362_vm12 }
0x1b68   :  { %v5357_v31 = vmul.f32 %v9548_v27, %v5356_v48 }
0x1b6a   :  { %v5358_v1 = vmul.f32 0.5, %v5357_v31  ;;  %v5824_v31 = vrot.slane %v5781_v37, 4 }
0x1b6c   :  { %v5359_v12 = vsub.f32 1.5, %v5358_v1  ;;  %v5646_v1 = vrot.slane %v5605_v16, 4 }
0x1b6d   :  { %v5595_v11 = vpop.permute.xlu0 %5594 }
0x1b6e   :  { %v5360_v49 = vmul.f32 %v9548_v27, %v5359_v12  ;;  %v5760_v28 = vrot.slane %v5595_v11, 4  ;;  %v5759_v54 = vsel %vm88_vm1, %v5758_v13, %v5595_v11 }
0x1b6f   :  { %v5765_v42 = vperm.slane %v5759_v54, %v9720_v15 }
0x1b70   :  { %v5364_v33 = vsel %vm5363_vm14, %v9548_v27, %v5360_v49  ;;  %v5761_v35 = vsel %vm88_vm1, %v5607_v5, %v5760_v28  ;;  %v5820_v5 = vrot.slane %v11677_v62, 4  ;;  %v5832_v27 = vrot.slane %v5793_v24, 4  ;;  %v11708_v49 = vpop.permute.xlu1 %5568 }
0x1b71   :  { %v5365_v7 = vmul.f32 %v5364_v33, %v11628_v18  ;;  %v5769_v45 = vperm.slane %v5761_v35, %v9720_v15  ;;  %v5757_v18 = vperm.slane %v5749_v36, %v9720_v15  ;;  %v5794_v47 = vrot.slane %v5765_v42, 4 }
0x1b72   :  { %v5797_v20 = vsel %vm88_vm1, %v5765_v42, %v5796_v30  ;;  %v5624_v2 = vrot.slane %v11708_v49, 4 }
0x1b73   :  { %v5367_v55 = vmul.f32 %v9430_v57, %v5365_v7  ;;  %v5806_v10 = vrot.slane %v5769_v45, 4  ;;  %v5808_v48 = vrot.slane %v5757_v18, 4  ;;  %v5795_v3 = vsel %vm88_vm1, %v5794_v47, %v5753_v58 }
0x1b74   :  { %v5801_v12 = vperm.slane %v5795_v3, %v9733_v38 }
0x1b75   :  { %v11693_v6 = vadd.f32 %v9431_v53, %v5367_v55  ;;  %v5587_v26 = vpop.permute.xlu0 %5586  ;;  %v5807_v21 = vsel %vm88_vm1, %v5806_v10, %v5757_v18  ;;  %v5809_v13 = vsel %vm88_vm1, %v5769_v45, %v5808_v48 }
0x1b76   :  { %v5636_v14 = vrot.slane %v5587_v26, 4  ;;  %v5813_v40 = vperm.slane %v5807_v21, %v9733_v38  ;;  %v5635_v39 = vsel %vm88_vm1, %v5634_v52, %v5587_v26  ;;  %v5817_v56 = vperm.slane %v5809_v13, %v9733_v38 }
0x1b77   :  { %9164 = vmatmul.msk.f32.vlgmr.msrb.gmra.mxu1 %vm29_vm0, %v11693_v6  ;;  %v5641_v54 = vperm.slane %v5635_v39, %v9720_v15  ;;  %v5818_v25 = vrot.slane %v5801_v12, 4  ;;  %v11716_v33 = vsel %vm88_vm1, %v5801_v12, %v5820_v5 }
0x1b78   :  { %v5637_v60 = vsel %vm88_vm1, %v5599_v44, %v5636_v14  ;;  %v5826_v23 = vrot.slane %v5813_v40, 4  ;;  %v5829_v11 = vsel %vm88_vm1, %v5813_v40, %v5828_v50  ;;  %v5805_v44 = vperm.slane %v5797_v20, %v9733_v38 }
0x1b79   :  { %v5984_v28 = vrot.slane %v5829_v11, 4  ;;  %v5645_v57 = vperm.slane %v5637_v60, %v9720_v15  ;;  %v5830_v7 = vrot.slane %v5817_v56, 4  ;;  %v5833_v53 = vsel %vm88_vm1, %v5817_v56, %v5832_v27 }
0x1b7a   :  { %v11719_v35 = vsel %vm88_vm1, %v5826_v23, %v5789_v29  ;;  %v5960_v42 = vrot.slane %v11716_v33, 4  ;;  %v5822_v45 = vrot.slane %v5805_v44, 4  ;;  %v11724_v41 = vsel %vm88_vm1, %v5805_v44, %v5824_v31  ;;  %v5575_v31 = vpop.permute.xlu1 %5574 }
0x1b7b   :  { %v5972_v52 = vrot.slane %v11719_v35, 4  ;;  %v5982_v55 = vrot.slane %v5833_v53, 4  ;;  %v11728_v36 = vsel %vm88_vm1, %v5830_v7, %v5793_v24  ;;  %v5958_v10 = vrot.slane %v11724_v41, 4 }
0x1b7c   :  { %v5985_v29 = vsel %vm88_vm1, %v5833_v53, %v5984_v28  ;;  %v5684_v18 = vrot.slane %v5641_v54, 4  ;;  %v5823_v5 = vsel %vm88_vm1, %v5822_v45, %v5781_v37  ;;  %v5970_v47 = vrot.slane %v11728_v36, 4 }
0x1b7d   :  { %v5593_v8 = vpop.permute.xlu0 %5592  ;;  %v5983_v34 = vsel %vm88_vm1, %v5982_v55, %v5829_v11  ;;  %v11736_v50 = vperm.slane %v5985_v29, %v9720_v15  ;;  %v5946_v27 = vrot.slane %v5823_v5, 4  ;;  %v5696_v58 = vrot.slane %v5645_v57, 4 }
0x1b7e   :  { %v5989_v26 = vperm.slane %v5983_v34, %v9720_v15  ;;  %v5648_v24 = vrot.slane %v5593_v8, 4  ;;  %v5647_v48 = vsel %vm88_vm1, %v5646_v1, %v5593_v8  ;;  %v5819_v21 = vsel %vm88_vm1, %v5818_v25, %v11677_v62 }
0x1b7f   :  { %v5959_v37 = vsel %vm88_vm1, %v5958_v10, %v11716_v33  ;;  %v5971_v14 = vsel %vm88_vm1, %v5970_v47, %v11719_v35  ;;  %v5653_v39 = vperm.slane %v5647_v48, %v9720_v15  ;;  %v5947_v30 = vsel %vm88_vm1, %v5946_v27, %v5819_v21 }
0x1b80   :  { %v5649_v40 = vsel %vm88_vm1, %v5605_v16, %v5648_v24  ;;  %v5965_v3 = vperm.slane %v5959_v37, %v9720_v15  ;;  %v5610_v13 = vrot.slane %v5575_v31, 4  ;;  %v5613_v62 = vsel %vm88_vm1, %v5575_v31, %v5612_v0 }
0x1b81   :  { %v5657_v1 = vperm.slane %v5649_v40, %v9720_v15  ;;  %v5953_v60 = vperm.slane %v5947_v30, %v9720_v15  ;;  %v5621_v12 = vperm.slane %v5613_v62, %v9720_v15  ;;  %v5682_v56 = vrot.slane %v5653_v39, 4 }
0x1b82   :  { %v5685_v16 = vsel %vm88_vm1, %v5653_v39, %v5684_v18  ;;  %v5977_v23 = vperm.slane %v5971_v14, %v9720_v15  ;;  %v5611_v11 = vsel %vm88_vm1, %v5610_v13, %v11640_v43  ;;  %v5994_v8 = vrot.slane %v5965_v3, 4  ;;  %v5581_v24 = vpop.permute.xlu1 %5580 }
0x1b83   :  { %v11761_v20 = vperm.slane %v5685_v16, %v9733_v38  ;;  %v5694_v28 = vrot.slane %v5657_v1, 4  ;;  %v5697_v0 = vsel %vm88_vm1, %v5657_v1, %v5696_v58  ;;  %v5617_v44 = vperm.slane %v5611_v11, %v9720_v15 }
0x1b84   :  { %v5672_v25 = vrot.slane %v5621_v12, 4  ;;  %v5683_v7 = vsel %vm88_vm1, %v5682_v56, %v5641_v54  ;;  %v5705_v53 = vperm.slane %v5697_v0, %v9733_v38  ;;  %v6018_v47 = vrot.slane %v5989_v26, 4 }
0x1b85   :  { %v11768_v45 = vperm.slane %v5683_v7, %v9733_v38  ;;  %v5695_v55 = vsel %vm88_vm1, %v5694_v28, %v5645_v57  ;;  %v5710_v43 = vrot.slane %v11761_v20, 4  ;;  %v5660_v10 = vrot.slane %v5617_v44, 4 }
0x1b86   :  { %v5701_v29 = vperm.slane %v5695_v55, %v9733_v38  ;;  %v5718_v18 = vrot.slane %v5705_v53, 4  ;;  %v5995_v27 = vsel %vm88_vm1, %v5994_v8, %v5953_v60  ;;  %v5996_v54 = vrot.slane %v5953_v60, 4 }
0x1b87   :  { %v5706_v34 = vrot.slane %v11768_v45, 4  ;;  %v6020_v58 = vrot.slane %v5977_v23, 4  ;;  %v6001_v37 = vperm.slane %v5995_v27, %v9733_v38  ;;  %v6019_v57 = vsel %vm88_vm1, %v6018_v47, %v5977_v23 }
0x1b88   :  { %v5714_v48 = vrot.slane %v5701_v29, 4  ;;  %v5948_v14 = vrot.slane %v5819_v21, 4  ;;  %v5622_v31 = vrot.slane %v5581_v24, 4  ;;  %v5625_v40 = vsel %vm88_vm1, %v5581_v24, %v5624_v2 }
0x1b89   :  { %v6025_v39 = vperm.slane %v6019_v57, %v9733_v38  ;;  %v5997_v30 = vsel %vm88_vm1, %v5965_v3, %v5996_v54  ;;  %v5633_v13 = vperm.slane %v5625_v40, %v9720_v15  ;;  %v6044_v62 = vrot.slane %v6001_v37, 4 }
0x1b8a   :  { %v6005_v1 = vperm.slane %v5997_v30, %v9733_v38  ;;  %v6021_v60 = vsel %vm88_vm1, %v5989_v26, %v6020_v58  ;;  %v5623_v56 = vsel %vm88_vm1, %v5622_v31, %v11708_v49  ;;  %v5949_v23 = vsel %vm88_vm1, %v5823_v5, %v5948_v14 }
0x1b8b   :  { %v6042_v21 = vrot.slane %v6025_v39, 4  ;;  %v6029_v16 = vperm.slane %v6021_v60, %v9733_v38  ;;  %v5629_v2 = vperm.slane %v5623_v56, %v9720_v15  ;;  %v5670_v11 = vrot.slane %v5633_v13, 4 }
0x1b8c   :  { %v5673_v3 = vsel %vm88_vm1, %v5633_v13, %v5672_v25  ;;  %v6045_v28 = vsel %vm88_vm1, %v6025_v39, %v6044_v62  ;;  %v6048_v49 = vrot.slane %v6005_v1, 4  ;;  %v11799_v47 = vperm.slane %v5949_v23, %v9720_v15 }
0x1b8d   :  { %v5681_v0 = vperm.slane %v5673_v3, %v9733_v38  ;;  %v6043_v7 = vsel %vm88_vm1, %v6042_v21, %v6001_v37  ;;  %9170 = vmatpush.xpose.msk.msra.mxu0 %vm422_vm2, %v6045_v28  ;;  %v6046_v26 = vrot.slane %v6029_v16, 4  ;;  %v5658_v55 = vrot.slane %v5629_v2, 4 }
0x1b8e   :  { %v5661_v8 = vsel %vm88_vm1, %v5629_v2, %v5660_v10  ;;  %v5671_v5 = vsel %vm88_vm1, %v5670_v11, %v5621_v12  ;;  %9167 = vmatpush.xpose.msk.msra.mxu3 %vm422_vm2, %v6043_v7  ;;  %v11810_v12 = vsel %vm88_vm1, %v6029_v16, %v6048_v49  ;;  %v5961_v30 = vsel %vm88_vm1, %v11724_v41, %v5960_v42 }
0x1b8f   :  { %v5669_v25 = vperm.slane %v5661_v8, %v9733_v38  ;;  %v5677_v27 = vperm.slane %v5671_v5, %v9733_v38  ;;  %v5720_v54 = vrot.slane %v5681_v0, 4  ;;  %v11804_v58 = vsel %vm88_vm1, %v5718_v18, %v5681_v0 }
0x1b90   :  { %v5659_v24 = vsel %vm88_vm1, %v5658_v55, %v5617_v44  ;;  %v5858_v37 = vrot.slane %v11804_v58, 4  ;;  %v6047_v10 = vsel %vm88_vm1, %v6046_v26, %v6005_v1  ;;  %v5969_v42 = vperm.slane %v5961_v30, %v9720_v15 }
0x1b91   :  { %v5665_v57 = vperm.slane %v5659_v24, %v9733_v38  ;;  %v5712_v14 = vrot.slane %v5669_v25, 4  ;;  %v5716_v31 = vrot.slane %v5677_v27, 4  ;;  %v5711_v40 = vsel %vm88_vm1, %v5710_v43, %v5669_v25  ;;  %9173 = vmatpush.xpose.msk.msra.mxu1 %vm422_vm2, %v6047_v10 }
0x1b92   :  { %v5715_v18 = vsel %vm88_vm1, %v5714_v48, %v5677_v27  ;;  %v5721_v39 = vsel %vm88_vm1, %v5705_v53, %v5720_v54  ;;  %v5834_v44 = vrot.slane %v5711_v40, 4  ;;  %v5973_v11 = vsel %vm88_vm1, %v11728_v36, %v5972_v52 }
0x1b93   :  { %v5708_v13 = vrot.slane %v5665_v57, 4  ;;  %v5713_v62 = vsel %vm88_vm1, %v11761_v20, %v5712_v14  ;;  %v5717_v1 = vsel %vm88_vm1, %v5701_v29, %v5716_v31  ;;  %v5860_v60 = vrot.slane %v5715_v18, 4 }
0x1b94   :  { %v5846_v43 = vrot.slane %v5713_v62, 4  ;;  %v5870_v56 = vrot.slane %v5721_v39, 4  ;;  %v5872_v21 = vrot.slane %v5717_v1, 4  ;;  %v5707_v48 = vsel %vm88_vm1, %v5706_v34, %v5665_v57 }
0x1b95   :  { %v5709_v53 = vsel %vm88_vm1, %v11768_v45, %v5708_v13  ;;  %v5835_v33 = vsel %vm88_vm1, %v5834_v44, %v5707_v48  ;;  %v5859_v16 = vsel %vm88_vm1, %v5858_v37, %v5715_v18  ;;  %v5981_v3 = vperm.slane %v5973_v11, %v9720_v15 }
0x1b96   :  { %v5871_v41 = vsel %vm88_vm1, %v5870_v56, %v5717_v1  ;;  %v5873_v20 = vsel %vm88_vm1, %v5721_v39, %v5872_v21  ;;  %v5841_v29 = vperm.slane %v5835_v33, %v9720_v15  ;;  %v5847_v23 = vsel %vm88_vm1, %v5846_v43, %v5709_v53 }
0x1b97   :  { %v5853_v2 = vperm.slane %v5847_v23, %v9720_v15  ;;  %v5865_v34 = vperm.slane %v5859_v16, %v9720_v15  ;;  %v5877_v45 = vperm.slane %v5871_v41, %v9720_v15  ;;  %v6006_v28 = vrot.slane %v5969_v42, 4 }
0x1b98   :  { %v6030_v0 = vrot.slane %v11736_v50, 4  ;;  %v5884_v7 = vrot.slane %v5841_v29, 4  ;;  %v5836_v8 = vrot.slane %v5707_v48, 4  ;;  %v5848_v27 = vrot.slane %v5709_v53, 4 }
0x1b99   :  { %v5882_v26 = vrot.slane %v5853_v2, 4  ;;  %v5906_v49 = vrot.slane %v5877_v45, 4  ;;  %v5908_v55 = vrot.slane %v5865_v34, 4  ;;  %v6007_v5 = vsel %vm88_vm1, %v6006_v28, %v11799_v47 }
0x1b9a   :  { %v6031_v25 = vsel %vm88_vm1, %v6030_v0, %v5981_v3  ;;  %v5885_v35 = vsel %vm88_vm1, %v5853_v2, %v5884_v7  ;;  %v6013_v54 = vperm.slane %v6007_v5, %v9733_v38  ;;  %v5837_v39 = vsel %vm88_vm1, %v5711_v40, %v5836_v8 }
0x1b9b   :  { %v5883_v52 = vsel %vm88_vm1, %v5882_v26, %v5841_v29  ;;  %v5907_v36 = vsel %vm88_vm1, %v5906_v49, %v5865_v34  ;;  %v6037_v24 = vperm.slane %v6031_v25, %v9733_v38  ;;  %v5893_v57 = vperm.slane %v5885_v35, %v9733_v38 }
0x1b9c   :  { %v5889_v37 = vperm.slane %v5883_v52, %v9733_v38  ;;  %v5913_v10 = vperm.slane %v5907_v36, %v9733_v38  ;;  %v5909_v14 = vsel %vm88_vm1, %v5877_v45, %v5908_v55  ;;  %v5849_v44 = vsel %vm88_vm1, %v5713_v62, %v5848_v27 }
0x1b9d   :  { %v6050_v31 = vrot.slane %v6037_v24, 4  ;;  %v5917_v18 = vperm.slane %v5909_v14, %v9733_v38  ;;  %v5845_v1 = vperm.slane %v5837_v39, %v9720_v15  ;;  %v5857_v43 = vperm.slane %v5849_v44, %v9720_v15 }
0x1b9e   :  { %v5930_v30 = vrot.slane %v5913_v10, 4  ;;  %v5932_v13 = vrot.slane %v5889_v37, 4  ;;  %v5861_v48 = vsel %vm88_vm1, %v11804_v58, %v5860_v60  ;;  %v5881_v53 = vperm.slane %v5873_v20, %v9720_v15 }
0x1b9f   :  { %v6051_v56 = vsel %vm88_vm1, %v6050_v31, %v6013_v54  ;;  %v5934_v21 = vrot.slane %v5917_v18, 4  ;;  %v5869_v62 = vperm.slane %v5861_v48, %v9720_v15  ;;  %v5894_v16 = vrot.slane %v5857_v43, 4  ;;  %v9432_v31 = vld [vmem:[%s13105_s3 + $0x2] ss:$0 sm:$0xff] }
0x1ba0   :  { %v5931_v33 = vsel %vm88_vm1, %v5930_v30, %v5889_v37  ;;  %v5933_v40 = vsel %vm88_vm1, %v5913_v10, %v5932_v13  ;;  %v5918_v29 = vrot.slane %v5881_v53, 4  ;;  %v6052_v23 = vrot.slane %v6013_v54, 4 }
0x1ba1   :  { %9168 = vmatpush.xpose.msk.msra.mxu3 %vm422_vm2, %v5931_v33  ;;  %9171 = vmatpush.xpose.msk.msra.mxu0 %vm422_vm2, %v5933_v40  ;;  %v5935_v41 = vsel %vm88_vm1, %v5934_v21, %v5893_v57  ;;  %v6008_v2 = vrot.slane %v11799_v47, 4  ;;  %v5895_v58 = vsel %vm88_vm1, %v5894_v16, %v5845_v1  ;;  %v6032_v60 = vrot.slane %v5981_v3, 4 }
0x1ba2   :  { %v5936_v20 = vrot.slane %v5893_v57, 4  ;;  %v5896_v34 = vrot.slane %v5845_v1, 4  ;;  %9174 = vmatpush.xpose.msk.msra.mxu1 %vm422_vm2, %v5935_v41  ;;  %v5901_v45 = vperm.slane %v5895_v58, %v9733_v38  ;;  %v5919_v11 = vsel %vm88_vm1, %v5918_v29, %v5869_v62 }
0x1ba3   :  { %v6053_v28 = vsel %vm88_vm1, %v6037_v24, %v6052_v23  ;;  %v6009_v0 = vsel %vm88_vm1, %v5969_v42, %v6008_v2  ;;  %v5925_v47 = vperm.slane %v5919_v11, %v9733_v38  ;;  %v6033_v3 = vsel %vm88_vm1, %v11736_v50, %v6032_v60 }
0x1ba4   :  { %v5937_v7 = vsel %vm88_vm1, %v5917_v18, %v5936_v20  ;;  %v6041_v26 = vperm.slane %v6033_v3, %v9733_v38  ;;  %v5940_v49 = vrot.slane %v5901_v45, 4  ;;  %v5897_v55 = vsel %vm88_vm1, %v5857_v43, %v5896_v34 }
0x1ba5   :  { %9176 = vmatpush.xpose.msk.msrb.mxu3 %vm422_vm2, %v11810_v12  ;;  %6287 = vmatpush.msrb.mxu0 %v6051_v56  ;;  %v6017_v12 = vperm.slane %v6009_v0, %v9733_v38  ;;  %v5920_v8 = vrot.slane %v5869_v62, 4  ;;  %v5938_v5 = vrot.slane %v5925_v47, 4  ;;  %v5905_v50 = vperm.slane %v5897_v55, %v9733_v38 }
0x1ba6   :  { %6310 = vmatpush.msrb.mxu1 %v6053_v28  ;;  %v6054_v42 = vrot.slane %v6041_v26, 4  ;;  %v5941_v25 = vsel %vm88_vm1, %v5925_v47, %v5940_v49 }
0x1ba7   :  { %v5921_v35 = vsel %vm88_vm1, %v5881_v53, %v5920_v8  ;;  %v5939_v27 = vsel %vm88_vm1, %v5938_v5, %v5901_v45  ;;  %v5944_v37 = vrot.slane %v5905_v50, 4  ;;  %v6056_v57 = vrot.slane %v6017_v12, 4 }
0x1ba8   :  { %6311 = vmatpush.msrb.mxu1 %v5941_v25  ;;  %v5929_v52 = vperm.slane %v5921_v35, %v9733_v38  ;;  %6288 = vmatpush.msrb.mxu0 %v5939_v27  ;;  %v6055_v36 = vsel %vm88_vm1, %v6054_v42, %v6017_v12 }
0x1ba9   :  { %9177 = vmatpush.xpose.msk.msrb.mxu3 %vm422_vm2, %v5937_v7  ;;  %6333 = vmatpush.msra.mxu2 %v6055_v36  ;;  %v11898_v14 = vsel %vm88_vm1, %v6041_v26, %v6056_v57 }
0x1baa   :  { %v5942_v54 = vrot.slane %v5929_v52, 4  ;;  %v11895_v10 = vsel %vm88_vm1, %v5929_v52, %v5944_v37 }
0x1bac   :  { %v5943_v24 = vsel %vm88_vm1, %v5942_v54, %v5905_v50 }
0x1bad   :  { %6334 = vmatpush.msra.mxu2 %v5943_v24 }
0x1bf4   :  { %v5396_v18 = vpop.f32.mrf.mxu1 }
0x1bf5   :  { %v5397_v39 = vadd.f32 %v9432_v31, %v5396_v18 }
0x1bf7   :  { %5450 = vrot.lane.b32.xlu0 %v5397_v39, %s9619_s6  ;;  %5447 = vrot.lane.b32.xlu1 %v5397_v39, %s9623_s10  ;;  %v5458_v13 = vrot.slane %v5397_v39, 4 }
0x1bff   :  { %5453 = vrot.lane.b32.xlu1 %v5397_v39, %s9620_s7 }
0x1c69   :  { %v5448_v44 = vpop.permute.xlu1 %5447  ;;  %v5451_v30 = vpop.permute.xlu0 %5450 }
0x1c6a   :  { %v5456_v1 = vrot.slane %v5451_v30, 4  ;;  %v5459_v43 = vsel %vm88_vm1, %v5451_v30, %v5458_v13  ;;  %v5470_v48 = vrot.slane %v5448_v44, 4 }
0x1c6b   :  { %v5467_v21 = vperm.slane %v5459_v43, %v9720_v15 }
0x1c6c   :  { %v5457_v56 = vsel %vm88_vm1, %v5456_v1, %v5397_v39 }
0x1c6d   :  { %v5463_v53 = vperm.slane %v5457_v56, %v9720_v15  ;;  %v5494_v16 = vrot.slane %v5467_v21, 4 }
0x1c6f   :  { %v5482_v23 = vrot.slane %v5463_v53, 4 }
0x1c71   :  { %v5454_v33 = vpop.permute.xlu1 %5453 }
0x1c72   :  { %v5468_v40 = vrot.slane %v5454_v33, 4  ;;  %v5471_v62 = vsel %vm88_vm1, %v5454_v33, %v5470_v48 }
0x1c73   :  { %v5479_v41 = vperm.slane %v5471_v62, %v9720_v15 }
0x1c74   :  { %v5469_v29 = vsel %vm88_vm1, %v5468_v40, %v5448_v44 }
0x1c75   :  { %v5475_v2 = vperm.slane %v5469_v29, %v9720_v15  ;;  %v5492_v58 = vrot.slane %v5479_v41, 4  ;;  %v5495_v60 = vsel %vm88_vm1, %v5479_v41, %v5494_v16 }
0x1c76   :  { %v5503_v20 = vperm.slane %v5495_v60, %v9733_v38 }
0x1c77   :  { %v5480_v34 = vrot.slane %v5475_v2, 4  ;;  %v5483_v45 = vsel %vm88_vm1, %v5475_v2, %v5482_v23  ;;  %v5493_v11 = vsel %vm88_vm1, %v5492_v58, %v5467_v21 }
0x1c78   :  { %v5491_v28 = vperm.slane %v5483_v45, %v9733_v38  ;;  %v5499_v0 = vperm.slane %v5493_v11, %v9733_v38  ;;  %v5510_v47 = vrot.slane %v5503_v20, 4 }
0x1c79   :  { %v5481_v12 = vsel %vm88_vm1, %v5480_v34, %v5463_v53 }
0x1c7a   :  { %v5487_v3 = vperm.slane %v5481_v12, %v9733_v38  ;;  %v5506_v7 = vrot.slane %v5491_v28, 4  ;;  %v5508_v26 = vrot.slane %v5499_v0, 4  ;;  %v5511_v49 = vsel %vm88_vm1, 0.0, %v5510_v47 }
0x1c7b   :  { %v5523_v55 = vsel %vm88_vm1, %v5510_v47, %v5499_v0  ;;  %v5528_v8 = vrot.slane %v5511_v49, 4 }
0x1c7c   :  { %v5504_v5 = vrot.slane %v5487_v3, 4  ;;  %v5507_v42 = vsel %vm88_vm1, 0.0, %v5506_v7  ;;  %v5509_v25 = vsel %vm88_vm1, 0.0, %v5508_v26  ;;  %v5512_v35 = vsel %vm88_vm1, %v5506_v7, %v5487_v3 }
0x1c7d   :  { %v5517_v27 = vrot.slane %v5507_v42, 4  ;;  %v5527_v50 = vperm.slane %v5523_v55, %v9720_v15  ;;  %v5529_v52 = vsel %vm88_vm1, %v5528_v8, %v5509_v25  ;;  %v5516_v36 = vperm.slane %v5512_v35, %v9720_v15 }
0x1c7e   :  { %v5505_v54 = vsel %vm88_vm1, 0.0, %v5504_v5  ;;  %v5533_v24 = vperm.slane %v5529_v52, %v9720_v15 }
0x1c7f   :  { %v5548_v37 = vrot.slane %v5527_v50, 4  ;;  %v5518_v57 = vsel %vm88_vm1, %v5517_v27, %v5505_v54  ;;  %v5536_v31 = vrot.slane %v5516_v36, 4 }
0x1c80   :  { %v5522_v18 = vperm.slane %v5518_v57, %v9720_v15  ;;  %v5546_v39 = vrot.slane %v5533_v24, 4 }
0x1c81   :  { %v5549_v44 = vsel %vm88_vm1, %v5533_v24, %v5548_v37 }
0x1c82   :  { %v5537_v30 = vsel %vm88_vm1, %v5522_v18, %v5536_v31  ;;  %v5557_v13 = vperm.slane %v5549_v44, %v9733_v38  ;;  %v5534_v1 = vrot.slane %v5522_v18, 4  ;;  %v5547_v43 = vsel %vm88_vm1, %v5546_v39, %v5527_v50 }
0x1c83   :  { %v5545_v56 = vperm.slane %v5537_v30, %v9733_v38  ;;  %v5553_v21 = vperm.slane %v5547_v43, %v9733_v38 }
0x1c84   :  { %v5562_v48 = vrot.slane %v5557_v13, 4  ;;  %v5535_v53 = vsel %vm88_vm1, %v5534_v1, %v5516_v36 }
0x1c85   :  { %v5541_v33 = vperm.slane %v5535_v53, %v9733_v38  ;;  %v5558_v40 = vrot.slane %v5553_v21, 4  ;;  %v5564_v23 = vrot.slane %v5545_v56, 4 }
0x1c86   :  { %v5563_v62 = vsel %vm88_vm1, %v5562_v48, %v5545_v56 }
0x1c87   :  { %9175 = vmatmul.msk.f32.vlgmr.msra.gmra.mxu1 %vm422_vm2, %v5563_v62  ;;  %v5559_v16 = vsel %vm88_vm1, %v5558_v40, %v5541_v33  ;;  %v5560_v41 = vrot.slane %v5541_v33, 4  ;;  %v5565_v2 = vsel %vm88_vm1, %v5557_v13, %v5564_v23 }
0x1c88   :  { %9169 = vmatmul.msk.f32.vlgmr.msra.gmra.mxu3 %vm422_vm2, %v5559_v16 }
0x1c89   :  { %6356 = vmatpush.msra.mxu3 %v11898_v14  ;;  %v5561_v29 = vsel %vm88_vm1, %v5553_v21, %v5560_v41 }
0x1c8a   :  { %9172 = vmatmul.msk.f32.vlgmr.msra.gmra.mxu0 %vm422_vm2, %v5561_v29 }
0x1c8b   :  { %6357 = vmatpush.msra.mxu3 %v11895_v10 }
0x1c90   :  { %9178 = vmatmul.msk.f32.vlgmr.msrb.gmra.mxu3 %vm422_vm2, %v5565_v2 }
0x1d04   :  { %v6142_v58 = vpop.f32.mrf.mxu1 }
0x1d05   :  { %v6180_v60 = vsel %vm786_vm3, %v6142_v58, -inf }
0x1d06   :  { %6181 = vmax.xlane.f32.xlu0 %v6180_v60 }
0x1d07   :  { %v6113_v20 = vpop.f32.mrf.mxu0 }
0x1d08   :  { %v6177_v14 = vsel %vm786_vm3, %v6113_v20, -inf }
0x1d0b   :  { %v6084_v34 = vpop.f32.mrf.mxu3 }
0x1d0c   :  { %v6174_v45 = vsel %vm786_vm3, %v6084_v34, -inf }
0x1d0d   :  { %6175 = vmax.xlane.f32.xlu1 %v6174_v45 }
0x1d0e   :  { %6178 = vmax.xlane.f32.xlu0 %v6177_v14 }
0x1d13   :  { %v6171_v11 = vpop.f32.mrf.mxu3 }
0x1d14   :  { %v6183_v10 = vsel %vm786_vm3, %v6171_v11, -inf }
0x1d15   :  { %6184 = vmax.xlane.f32.xlu2 %v6183_v10 }
0x1d79   :  { %v6182_v28 = vpop.xlane.xlu0 %6181 }
0x1d7a   :  { %v6188_v0 = vsub.f32 %v6142_v58, %v6182_v28 }
0x1d7c   :  { %v6194_v47 = vmul.f32 1.442695, %v6188_v0 }
0x1d7e   :  { %9549 = vpow2.f32 %v6194_v47 }
0x1d80   :  { %v6176_v12 = vpop.xlane.xlu1 %6175 }
0x1d81   :  { %v6179_v3 = vpop.xlane.xlu0 %6178  ;;  %v6186_v7 = vsub.f32 %v6084_v34, %v6176_v12 }
0x1d82   :  { %v6187_v26 = vsub.f32 %v6113_v20, %v6179_v3 }
0x1d83   :  { %v6190_v49 = vmul.f32 1.442695, %v6186_v7 }
0x1d84   :  { %v9550_v55 = vpop.eup %9549  ;;  %v6192_v8 = vmul.f32 1.442695, %v6187_v26 }
0x1d85   :  { %9551 = vpow2.f32 %v6190_v49  ;;  %v6204_v5 = vsel %vm786_vm3, %v9550_v55, 0.0 }
0x1d86   :  { %9553 = vpow2.f32 %v6192_v8  ;;  %6205 = vadd.xlane.f32.xlu2 %v6204_v5 }
0x1d88   :  { %v6185_v42 = vpop.xlane.xlu2 %6184 }
0x1d89   :  { %v6189_v25 = vsub.f32 %v6171_v11, %v6185_v42 }
0x1d8b   :  { %v11957_v35 = vpop.eup %9551  ;;  %v6196_v27 = vmul.f32 1.442695, %v6189_v25 }
0x1d8c   :  { %v11959_v50 = vpop.eup %9553  ;;  %v6198_v52 = vsel %vm786_vm3, %v11957_v35, 0.0 }
0x1d8d   :  { %9555 = vpow2.f32 %v6196_v27  ;;  %6199 = vadd.xlane.f32.xlu0 %v6198_v52  ;;  %v6201_v36 = vsel %vm786_vm3, %v11959_v50, 0.0 }
0x1d8e   :  { %6202 = vadd.xlane.f32.xlu2 %v6201_v36 }
0x1d93   :  { %v11965_v54 = vpop.eup %9555 }
0x1d94   :  { %v6207_v24 = vsel %vm786_vm3, %v11965_v54, 0.0 }
0x1d95   :  { %6208 = vadd.xlane.f32.xlu1 %v6207_v24 }
0x1df9   :  { %v6206_v37 = vpop.xlane.xlu2 %6205 }
0x1dfa   :  { %9557 = vrcp.f32 %v6206_v37  ;;  %v6251_v30 = vand.u32 2147483648, %v6206_v37  ;;  %v6249_v1 = vand.u32 2147483647, %v6206_v37  ;;  %vm6245_vm5 = vweird.f32 %v6206_v37 }
0x1dfc   :  { %v6252_v48 = vor.u32 1.1754944e-38, %v6251_v30  ;;  %vm6250_vm8 = vcmp.eq.f32.partialorder %v6249_v1, 8.507059e+37 }
0x1e00   :  { %v9558_v57 = vpop.eup %9557  ;;  %v6200_v31 = vpop.xlane.xlu0 %6199 }
0x1e01   :  { %v6241_v18 = vmul.f32 %v9558_v57, %v6206_v37  ;;  %9559 = vrcp.f32 %v6200_v31  ;;  %v6203_v39 = vpop.xlane.xlu2 %6202  ;;  %vm6246_vm15 = vweird.f32 %v9558_v57  ;;  %v6221_v29 = vand.u32 2147483648, %v6200_v31 }
0x1e02   :  { %9561 = vrcp.f32 %v6203_v39  ;;  %vm6247_vm7 = vmor %vm6245_vm5, %vm6246_vm15  ;;  %v6219_v60 = vand.u32 2147483647, %v6200_v31  ;;  %v6236_v20 = vand.u32 2147483648, %v6203_v39  ;;  %v6234_v45 = vand.u32 2147483647, %v6203_v39 }
0x1e03   :  { %v6242_v44 = vsub.f32 1.0, %v6241_v18  ;;  %vm6215_vm11 = vweird.f32 %v6200_v31  ;;  %v6222_v10 = vor.u32 1.1754944e-38, %v6221_v29  ;;  %vm6230_vm13 = vweird.f32 %v6203_v39 }
0x1e04   :  { %vm6220_vm14 = vcmp.eq.f32.partialorder %v6219_v60, 8.507059e+37  ;;  %v6237_v47 = vor.u32 1.1754944e-38, %v6236_v20  ;;  %vm6235_vm5 = vcmp.eq.f32.partialorder %v6234_v45, 8.507059e+37 }
0x1e05   :  { %v6243_v13 = vmul.f32 %v9558_v57, %v6242_v44 }
0x1e07   :  { %v9560_v43 = vpop.eup %9559  ;;  %v6244_v56 = vadd.f32 %v9558_v57, %v6243_v13 }
0x1e08   :  { %v9562_v21 = vpop.eup %9561  ;;  %v6211_v53 = vmul.f32 %v9560_v43, %v6200_v31  ;;  %v6209_v33 = vpop.xlane.xlu1 %6208  ;;  %vm6216_vm9 = vweird.f32 %v9560_v43 }
0x1e09   :  { %v6248_v40 = vsel %vm6247_vm7, %v9558_v57, %v6244_v56  ;;  %v6226_v62 = vmul.f32 %v9562_v21, %v6203_v39  ;;  %9563 = vrcp.f32 %v6209_v33  ;;  %vm6231_vm10 = vweird.f32 %v9562_v21  ;;  %vm6217_vm12 = vmor %vm6215_vm11, %vm6216_vm9 }
0x1e0a   :  { %v6253_v16 = vsel %vm6250_vm8, %v6252_v48, %v6248_v40  ;;  %v6212_v41 = vsub.f32 1.0, %v6211_v53  ;;  %vm6232_vm15 = vmor %vm6230_vm13, %vm6231_vm10  ;;  %v6264_v5 = vand.u32 2147483647, %v6209_v33  ;;  %v6266_v42 = vand.u32 2147483648, %v6209_v33 }
0x1e0b   :  { %v6227_v23 = vsub.f32 1.0, %v6226_v62  ;;  %v6254_v2 = vmul.f32 %v9550_v55, %v6253_v16  ;;  %vm6260_vm8 = vweird.f32 %v6209_v33 }
0x1e0c   :  { %v6213_v58 = vmul.f32 %v9560_v43, %v6212_v41  ;;  %v6267_v57 = vor.u32 1.1754944e-38, %v6266_v42  ;;  %vm6265_vm10 = vcmp.eq.f32.partialorder %v6264_v5, 8.507059e+37 }
0x1e0d   :  { %v6228_v34 = vmul.f32 %v9562_v21, %v6227_v23  ;;  %9181 = vmatmul.msk.f32.vlgmr.msra.gmra.mxu2 %vm786_vm3, %v6254_v2  ;;  %v6561_v55 = vrot.slane %v6254_v2, 4 }
0x1e0e   :  { %v6214_v14 = vadd.f32 %v9560_v43, %v6213_v58 }
0x1e0f   :  { %v9564_v11 = vpop.eup %9563  ;;  %v6229_v28 = vadd.f32 %v9562_v21, %v6228_v34 }
0x1e10   :  { %v6218_v0 = vsel %vm6217_vm12, %v9560_v43, %v6214_v14  ;;  %v6256_v12 = vmul.f32 %v9564_v11, %v6209_v33  ;;  %vm6261_vm7 = vweird.f32 %v9564_v11 }
0x1e11   :  { %v6223_v3 = vsel %vm6220_vm14, %v6222_v10, %v6218_v0  ;;  %v6233_v7 = vsel %vm6232_vm15, %v9562_v21, %v6229_v28  ;;  %vm6262_vm9 = vmor %vm6260_vm8, %vm6261_vm7 }
0x1e12   :  { %v6238_v26 = vsel %vm6235_vm5, %v6237_v47, %v6233_v7  ;;  %v6257_v49 = vsub.f32 1.0, %v6256_v12  ;;  %v6224_v8 = vmul.f32 %v11957_v35, %v6223_v3 }
0x1e13   :  { %v6239_v25 = vmul.f32 %v11959_v50, %v6238_v26 }
0x1e14   :  { %v6258_v27 = vmul.f32 %v9564_v11, %v6257_v49  ;;  %9179 = vmatmul.msk.f32.vlgmr.msrb.gmra.mxu0 %vm786_vm3, %v6224_v8  ;;  %v6562_v52 = vsel %vm88_vm1, %v6561_v55, %v6224_v8  ;;  %v6563_v36 = vrot.slane %v6224_v8, 4 }
0x1e15   :  { %9180 = vmatmul.msk.f32.vlgmr.msrb.gmra.mxu1 %vm786_vm3, %v6239_v25  ;;  %v6575_v18 = vrot.slane %v6239_v25, 4  ;;  %v6568_v44 = vperm.slane %v6562_v52, %v9720_v15 }
0x1e16   :  { %v6259_v24 = vadd.f32 %v9564_v11, %v6258_v27  ;;  %v6564_v37 = vsel %vm88_vm1, %v6254_v2, %v6563_v36 }
0x1e17   :  { %v6572_v50 = vperm.slane %v6564_v37, %v9720_v15  ;;  %v6587_v21 = vrot.slane %v6568_v44, 4 }
0x1e18   :  { %v6263_v35 = vsel %vm6262_vm9, %v9564_v11, %v6259_v24 }
0x1e19   :  { %v6268_v31 = vsel %vm6265_vm10, %v6267_v57, %v6263_v35  ;;  %v6599_v1 = vrot.slane %v6572_v50, 4 }
0x1e1a   :  { %v6269_v39 = vmul.f32 %v11965_v54, %v6268_v31 }
0x1e1c   :  { %9182 = vmatmul.msk.f32.vlgmr.msra.gmra.mxu3 %vm786_vm3, %v6269_v39  ;;  %v6573_v30 = vrot.slane %v6269_v39, 4  ;;  %v6576_v13 = vsel %vm88_vm1, %v6269_v39, %v6575_v18 }
0x1e1d   :  { %v6584_v43 = vperm.slane %v6576_v13, %v9720_v15 }
0x1e1e   :  { %v6574_v56 = vsel %vm88_vm1, %v6573_v30, %v6239_v25 }
0x1e1f   :  { %v6580_v48 = vperm.slane %v6574_v56, %v9720_v15  ;;  %v6597_v53 = vrot.slane %v6584_v43, 4  ;;  %v6600_v33 = vsel %vm88_vm1, %v6584_v43, %v6599_v1 }
0x1e20   :  { %v6608_v54 = vperm.slane %v6600_v33, %v9733_v38 }
0x1e21   :  { %v6585_v40 = vrot.slane %v6580_v48, 4  ;;  %v6588_v62 = vsel %vm88_vm1, %v6580_v48, %v6587_v21  ;;  %v6598_v16 = vsel %vm88_vm1, %v6597_v53, %v6572_v50  ;;  %v6489_v21 = vld [vmem:[%s13103_s1 + $0x38] sm:$0xff]  ;;  %v6490_v48 = vld [vmem:[%s13103_s1 + $0x50] sm:$0xff] }
0x1e22   :  { %v6596_v41 = vperm.slane %v6588_v62, %v9733_v38  ;;  %v6604_v29 = vperm.slane %v6598_v16, %v9733_v38  ;;  %v6615_v23 = vrot.slane %v6608_v54, 4  ;;  %v9363_v53 = vpack.i.bf16 %v6489_v21, %v6490_v48 }
0x1e23   :  { %v6586_v2 = vsel %vm88_vm1, %v6585_v40, %v6568_v44 }
0x1e24   :  { %v6592_v58 = vperm.slane %v6586_v2, %v9733_v38  ;;  %v6611_v60 = vrot.slane %v6596_v41, 4  ;;  %v6613_v20 = vrot.slane %v6604_v29, 4  ;;  %v6616_v34 = vsel %vm88_vm1, 0.0, %v6615_v23  ;;  %9364 = vrot.lane.b32.xlu1 %v9363_v53, %s9631_s18 }
0x1e25   :  { %v6628_v45 = vsel %vm88_vm1, %v6615_v23, %v6604_v29  ;;  %v6633_v14 = vrot.slane %v6616_v34, 4 }
0x1e26   :  { %v6609_v11 = vrot.slane %v6592_v58, 4  ;;  %v6612_v10 = vsel %vm88_vm1, 0.0, %v6611_v60  ;;  %v6614_v28 = vsel %vm88_vm1, 0.0, %v6613_v20  ;;  %v6617_v0 = vsel %vm88_vm1, %v6611_v60, %v6592_v58 }
0x1e27   :  { %v6621_v47 = vperm.slane %v6617_v0, %v9720_v15  ;;  %v6622_v12 = vrot.slane %v6612_v10, 4  ;;  %v6632_v3 = vperm.slane %v6628_v45, %v9720_v15  ;;  %v6634_v7 = vsel %vm88_vm1, %v6633_v14, %v6614_v28  ;;  %v6487_v45 = vld [vmem:[%s13103_s1 + $0x8] sm:$0xff]  ;;  %v6488_v14 = vld [vmem:[%s13103_s1 + $0x20] sm:$0xff] }
0x1e28   :  { %v6610_v26 = vsel %vm88_vm1, 0.0, %v6609_v11  ;;  %v6638_v49 = vperm.slane %v6634_v7, %v9720_v15  ;;  %v9368_v28 = vpack.i.bf16 %v6487_v45, %v6488_v14 }
0x1e29   :  { %v6623_v55 = vsel %vm88_vm1, %v6622_v12, %v6610_v26  ;;  %v6641_v8 = vrot.slane %v6621_v47, 4  ;;  %v6653_v5 = vrot.slane %v6632_v3, 4 }
0x1e2a   :  { %v6627_v42 = vperm.slane %v6623_v55, %v9720_v15  ;;  %v6651_v25 = vrot.slane %v6638_v49, 4  ;;  %9369 = vrot.lane.b32.xlu2 %v9368_v28, %s9631_s18 }
0x1e2b   :  { %v6654_v27 = vsel %vm88_vm1, %v6638_v49, %v6653_v5 }
0x1e2c   :  { %v6642_v52 = vsel %vm88_vm1, %v6627_v42, %v6641_v8  ;;  %v6662_v36 = vperm.slane %v6654_v27, %v9733_v38  ;;  %v6639_v24 = vrot.slane %v6627_v42, 4  ;;  %v6652_v37 = vsel %vm88_vm1, %v6651_v25, %v6632_v3 }
0x1e2d   :  { %v6650_v57 = vperm.slane %v6642_v52, %v9733_v38  ;;  %v6658_v35 = vperm.slane %v6652_v37, %v9733_v38 }
0x1e2e   :  { %v6640_v31 = vsel %vm88_vm1, %v6639_v24, %v6621_v47  ;;  %v6667_v50 = vrot.slane %v6662_v36, 4 }
0x1e2f   :  { %v6669_v18 = vrot.slane %v6650_v57, 4  ;;  %v6646_v39 = vperm.slane %v6640_v31, %v9733_v38  ;;  %v6663_v44 = vrot.slane %v6658_v35, 4 }
0x1e30   :  { %v12013_v30 = vsel %vm88_vm1, %v6667_v50, %v6650_v57 }
0x1e31   :  { %v12016_v13 = vsel %vm88_vm1, %v6662_v36, %v6669_v18  ;;  %v6665_v1 = vrot.slane %v6646_v39, 4  ;;  %v12019_v43 = vsel %vm88_vm1, %v6663_v44, %v6646_v39 }
0x1e33   :  { %v12022_v56 = vsel %vm88_vm1, %v6658_v35, %v6665_v1 }
0x1e90   :  { %v6336_v54 = vpop.f32.mrf.mxu2 }
0x1e91   :  { %v6290_v33 = vpop.f32.mrf.mxu0  ;;  %v6362_v62 = vrot.slane %v6336_v54, 4 }
0x1e92   :  { %v6364_v40 = vrot.slane %v6290_v33, 4  ;;  %v6313_v41 = vpop.f32.mrf.mxu1 }
0x1e93   :  { %v6363_v29 = vsel %vm88_vm1, %v6362_v62, %v6290_v33  ;;  %v6376_v2 = vrot.slane %v6313_v41, 4 }
0x1e94   :  { %v6365_v16 = vsel %vm88_vm1, %v6336_v54, %v6364_v40  ;;  %v6369_v58 = vperm.slane %v6363_v29, %v9720_v15 }
0x1e95   :  { %v6373_v23 = vperm.slane %v6365_v16, %v9720_v15 }
0x1e96   :  { %v6388_v47 = vrot.slane %v6369_v58, 4 }
0x1e97   :  { %v6400_v11 = vrot.slane %v6373_v23, 4 }
0x1e9f   :  { %v6359_v60 = vpop.f32.mrf.mxu3 }
0x1ea0   :  { %v6374_v20 = vrot.slane %v6359_v60, 4  ;;  %v6377_v34 = vsel %vm88_vm1, %v6359_v60, %v6376_v2 }
0x1ea1   :  { %v6385_v10 = vperm.slane %v6377_v34, %v9720_v15 }
0x1ea2   :  { %v6375_v0 = vsel %vm88_vm1, %v6374_v20, %v6313_v41 }
0x1ea3   :  { %v6381_v12 = vperm.slane %v6375_v0, %v9720_v15  ;;  %v6398_v3 = vrot.slane %v6385_v10, 4  ;;  %v6401_v7 = vsel %vm88_vm1, %v6385_v10, %v6400_v11 }
0x1ea4   :  { %v6409_v26 = vperm.slane %v6401_v7, %v9733_v38 }
0x1ea5   :  { %v6386_v49 = vrot.slane %v6381_v12, 4  ;;  %v6389_v55 = vsel %vm88_vm1, %v6381_v12, %v6388_v47  ;;  %v6399_v8 = vsel %vm88_vm1, %v6398_v3, %v6373_v23 }
0x1ea6   :  { %v6397_v5 = vperm.slane %v6389_v55, %v9733_v38  ;;  %v6405_v42 = vperm.slane %v6399_v8, %v9733_v38  ;;  %v6416_v25 = vrot.slane %v6409_v26, 4  ;;  %v9365_v26 = vpop.permute.xlu1 %9364  ;;  %v9370_v8 = vpop.permute.xlu2 %9369 }
0x1ea7   :  { %v6387_v27 = vsel %vm88_vm1, %v6386_v49, %v6369_v58  ;;  %v9367_v49 = vunpack.i.h.bf16 %v9365_v26  ;;  %v9366_v55 = vunpack.i.l.bf16 %v9365_v26  ;;  %v6717_v26 = vld [vmem:[%s13106_s2 + $0x8] sm:$0xff] }
0x1ea8   :  { %v6393_v52 = vperm.slane %v6387_v27, %v9733_v38  ;;  %v6412_v36 = vrot.slane %v6397_v5, 4  ;;  %v6414_v24 = vrot.slane %v6405_v42, 4  ;;  %v6417_v37 = vsel %vm88_vm1, 0.0, %v6416_v25 }
0x1ea9   :  { %v6429_v57 = vsel %vm88_vm1, %v6416_v25, %v6405_v42  ;;  %v6434_v35 = vrot.slane %v6417_v37, 4  ;;  %6524 = vmatpush.msra.mxu0 %v9366_v55  ;;  %v9372_v5 = vunpack.i.h.bf16 %v9370_v8  ;;  %v9371_v42 = vunpack.i.l.bf16 %v9370_v8  ;;  %v9436_v55 = vld [vmem:[%s13105_s3 + $0x5] ss:$0 sm:$0xff] }
0x1eaa   :  { %v6410_v31 = vrot.slane %v6393_v52, 4  ;;  %v6413_v50 = vsel %vm88_vm1, 0.0, %v6412_v36  ;;  %v6415_v18 = vsel %vm88_vm1, 0.0, %v6414_v24  ;;  %v6418_v39 = vsel %vm88_vm1, %v6412_v36, %v6393_v52 }
0x1eab   :  { %v6423_v44 = vrot.slane %v6413_v50, 4  ;;  %v6433_v1 = vperm.slane %v6429_v57, %v9720_v15  ;;  %v6422_v21 = vperm.slane %v6418_v39, %v9720_v15  ;;  %v6435_v48 = vsel %vm88_vm1, %v6434_v35, %v6415_v18  ;;  %6525 = vmatpush.msra.mxu0 %v9367_v49  ;;  %v9433_v57 = vld [vmem:[%s13105_s3 + $0x4] ss:$0 sm:$0xff] }
0x1eac   :  { %v6411_v53 = vsel %vm88_vm1, 0.0, %v6410_v31  ;;  %v6439_v33 = vperm.slane %v6435_v48, %v9720_v15  ;;  %v6716_v49 = vld [vmem:[%s13106_s2] sm:$0xff] }
0x1ead   :  { %v6424_v54 = vsel %vm88_vm1, %v6423_v44, %v6411_v53  ;;  %v6442_v40 = vrot.slane %v6422_v21, 4  ;;  %v6454_v62 = vrot.slane %v6433_v1, 4  ;;  %6526 = vmatpush.msra.mxu0 %v9371_v42  ;;  %v6689_v53 = vld [vmem:[%s13103_s1 + $0x58] sm:$0xff] }
0x1eae   :  { %v6428_v16 = vperm.slane %v6424_v54, %v9720_v15  ;;  %v6452_v41 = vrot.slane %v6439_v33, 4  ;;  %6707 = vmatpush.msra.mxu1 %v6689_v53  ;;  %v6686_v54 = vld [vmem:[%s13103_s1 + $0x10] sm:$0xff] }
0x1eaf   :  { %v6455_v23 = vsel %vm88_vm1, %v6439_v33, %v6454_v62  ;;  %6527 = vmatpush.msra.mxu0 %v9372_v5  ;;  %v6688_v33 = vld [vmem:[%s13103_s1 + $0x40] sm:$0xff]  ;;  %v6722_v62 = vld [vmem:[%s13106_s2 + $0x30] sm:$0xff] }
0x1eb0   :  { %v6443_v29 = vsel %vm88_vm1, %v6428_v16, %v6442_v40  ;;  %v6440_v2 = vrot.slane %v6428_v16, 4  ;;  %v6453_v58 = vsel %vm88_vm1, %v6452_v41, %v6433_v1  ;;  %v6463_v45 = vperm.slane %v6455_v23, %v9733_v38  ;;  %6708 = vmatpush.msra.mxu1 %v6688_v33  ;;  %v6723_v40 = vld [vmem:[%s13106_s2 + $0x38] sm:$0xff]  ;;  %v6721_v16 = vld [vmem:[%s13106_s2 + $0x28] sm:$0xff]  ;;  %v6720_v23 = vld [vmem:[%s13106_s2 + $0x20] sm:$0xff] }
0x1eb1   :  { %v6451_v60 = vperm.slane %v6443_v29, %v9733_v38  ;;  %v6459_v20 = vperm.slane %v6453_v58, %v9733_v38  ;;  %6737 = vmatpush.msrb.mxu2 %v6723_v40  ;;  %v6719_v58 = vld [vmem:[%s13106_s2 + $0x18] sm:$0xff] }
0x1eb2   :  { %v6441_v34 = vsel %vm88_vm1, %v6440_v2, %v6422_v21  ;;  %v6468_v3 = vrot.slane %v6463_v45, 4 }
0x1eb3   :  { %v6470_v14 = vrot.slane %v6451_v60, 4  ;;  %v6447_v11 = vperm.slane %v6441_v34, %v9733_v38  ;;  %v6464_v10 = vrot.slane %v6459_v20, 4  ;;  %6738 = vmatpush.msrb.mxu2 %v6722_v62 }
0x1eb4   :  { %v6469_v7 = vsel %vm88_vm1, %v6468_v3, %v6451_v60 }
0x1eb5   :  { %v6471_v28 = vsel %vm88_vm1, %v6463_v45, %v6470_v14  ;;  %v6466_v0 = vrot.slane %v6447_v11, 4  ;;  %v6465_v47 = vsel %vm88_vm1, %v6464_v10, %v6447_v11  ;;  %6739 = vmatpush.msrb.mxu2 %v6721_v16  ;;  %v9434_v10 = vld [vmem:[%s13105_s3 + $0x9] ss:$0 sm:$0xff] }
0x1eb6   :  { %6481 = vrot.lane.b32.xlu1 %v6471_v28, %s9633_s20 }
0x1eb7   :  { %v6467_v12 = vsel %vm88_vm1, %v6459_v20, %v6466_v0  ;;  %6740 = vmatpush.msrb.mxu2 %v6720_v23 }
0x1eb8   :  { %6473 = vrot.lane.b32.xlu0 %v6467_v12, %s9634_s21 }
0x1eb9   :  { %6741 = vmatpush.msrb.mxu2 %v6719_v58 }
0x1ec0   :  { %6477 = vrot.lane.b32.xlu0 %v6469_v7, %s9632_s19  ;;  %v6718_v7 = vld [vmem:[%s13106_s2 + $0x10] sm:$0xff] }
0x1ec1   :  { %6742 = vmatpush.msrb.mxu2 %v6718_v7 }
0x1ec3   :  { %6743 = vmatpush.msrb.mxu2 %v6717_v26 }
0x1ec5   :  { %6744 = vmatpush.msrb.mxu2 %v6716_v49 }
0x1f28   :  { %v6482_v36 = vpop.permute.xlu1 %6481 }
0x1f2a   :  { %v6474_v25 = vpop.permute.xlu0 %6473 }
0x1f2b   :  { %v6484_v27 = vsel %vm422_vm2, %v6465_v47, %v6474_v25  ;;  %v9435_v47 = vld [vmem:[%s13105_s3 + $0xa] ss:$0 sm:$0xff]  ;;  %v9437_v25 = vld [vmem:[%s13105_s3 + $0x6] ss:$0 sm:$0xff] }
0x1f32   :  { %v6478_v52 = vpop.permute.xlu0 %6477 }
0x1f33   :  { %v6485_v24 = vsel %vm786_vm3, %v6484_v27, %v6478_v52 }
0x1f34   :  { %v6486_v37 = vsel %vm788_vm4, %v6485_v24, %v6482_v36 }
0x1f35   :  { %9183 = vmatmul.msk.f32.vlgmr.msra.gmra.mxu0 %vm29_vm0, %v6486_v37 }
0x1fb2   :  { %v6529_v35 = vpop.f32.mrf.mxu0 }
0x1fb3   :  { %v6530_v31 = vadd.f32 %v9433_v57, %v6529_v35 }
0x1fb5   :  { %v6532_v50 = vadd.f32 %v6530_v31, %v11693_v6  ;;  %v6687_v6 = vld [vmem:[%s13103_s1 + $0x28] sm:$0xff] }
0x1fb6   :  { %6709 = vmatpush.msra.mxu1 %v6687_v6 }
0x1fb7   :  { %v6535_v18 = vsel %vm29_vm0, %v6532_v50, 0.0 }
0x1fb8   :  { %6536 = vadd.xlane.f32.xlu2 %v6535_v18  ;;  %6710 = vmatpush.msra.mxu1 %v6686_v54  ;;  %v12149_v18 = vld [vmem:[%s13103_s1 + $0xa8] sm:$0xff] }
0x1fb9   :  { %6799 = vmatpush.msrb.mxu3 %v12149_v18 }
0x202b   :  { %v6537_v39 = vpop.xlane.xlu2 %6536 }
0x202c   :  { %v6538_v44 = vmul.f32 %v6537_v39, %v9972_v22  ;;  %v12154_v39 = vld [vmem:[%s13103_s1 + $0x90] sm:$0xff] }
0x202d   :  { %6800 = vmatpush.msrb.mxu3 %v12154_v39 }
0x202e   :  { %v6539_v1 = vsub.f32 %v6532_v50, %v6538_v44  ;;  %v12160_v44 = vld [vmem:[%s13103_s1 + $0x78] sm:$0xff] }
0x202f   :  { %6801 = vmatpush.msrb.mxu3 %v12160_v44 }
0x2030   :  { %v6540_v21 = vmul.f32 %v6539_v1, %v6539_v1 }
0x2032   :  { %v6541_v48 = vsel %vm29_vm0, %v6540_v21, 0.0 }
0x2033   :  { %6542 = vadd.xlane.f32.xlu0 %v6541_v48 }
0x20a6   :  { %v6543_v41 = vpop.xlane.xlu0 %6542 }
0x20a7   :  { %v6544_v29 = vmul.f32 %v6543_v41, %v9972_v22  ;;  %v9438_v41 = vld [vmem:[%s13105_s3 + $0xb] ss:$0 sm:$0xff] }
0x20a9   :  { %v6545_v2 = vadd.f32 1e-05, %v6544_v29 }
0x20ab   :  { %9565 = vrsqrt.f32 %v6545_v2  ;;  %vm6552_vm12 = vweird.f32 %v6545_v2 }
0x20b1   :  { %v9566_v60 = vpop.eup %9565 }
0x20b2   :  { %v6547_v20 = vmul.f32 %v9566_v60, %v6545_v2  ;;  %vm6553_vm11 = vweird.f32 %v9566_v60  ;;  %v9439_v2 = vld [vmem:[%s13105_s3 + $0xc] ss:$0 sm:$0xff] }
0x20b3   :  { %vm6554_vm13 = vmor %vm6552_vm12, %vm6553_vm11 }
0x20b4   :  { %v6548_v34 = vmul.f32 %v9566_v60, %v6547_v20  ;;  %v9440_v20 = vld [vmem:[%s13105_s3 + $0x10] ss:$0 sm:$0xff] }
0x20b6   :  { %v6549_v45 = vmul.f32 0.5, %v6548_v34 }
0x20b8   :  { %v6550_v14 = vsub.f32 1.5, %v6549_v45 }
0x20ba   :  { %v6551_v11 = vmul.f32 %v9566_v60, %v6550_v14 }
0x20bc   :  { %v6555_v28 = vsel %vm6554_vm13, %v9566_v60, %v6551_v11 }
0x20bd   :  { %v6556_v0 = vmul.f32 %v6555_v28, %v6539_v1  ;;  %v12166_v1 = vld [vmem:[%s13103_s1 + $0x60] sm:$0xff] }
0x20be   :  { %6802 = vmatpush.msrb.mxu3 %v12166_v1 }
0x20bf   :  { %v6558_v12 = vmul.f32 %v9434_v10, %v6556_v0 }
0x20c1   :  { %v6560_v3 = vadd.f32 %v9435_v47, %v6558_v12 }
0x20c3   :  { %9184 = vmatmul.msk.f32.vlgmr.msra.gmra.mxu1 %vm29_vm0, %v6560_v3 }
0x2140   :  { %v6712_v8 = vpop.f32.mrf.mxu1 }
0x2141   :  { %v6713_v5 = vadd.f32 %v9436_v55, %v6712_v8 }
0x2143   :  { %v6715_v42 = vmax.f32 %v6713_v5, 0.0 }
0x2145   :  { %9185 = vmatmul.msk.f32.vlgmr.msrb.gmra.mxu2 %vm2228_vm6, %v6715_v42 }
0x21c8   :  { %v6746_v27 = vpop.f32.mrf.mxu2 }
0x21c9   :  { %v6747_v52 = vadd.f32 %v9437_v25, %v6746_v27 }
0x21cb   :  { %v6749_v36 = vadd.f32 %v6747_v52, %v6560_v3 }
0x21cd   :  { %v6752_v24 = vsel %vm29_vm0, %v6749_v36, 0.0 }
0x21ce   :  { %6753 = vadd.xlane.f32.xlu1 %v6752_v24 }
0x2241   :  { %v6754_v37 = vpop.xlane.xlu1 %6753 }
0x2242   :  { %v6755_v57 = vmul.f32 %v6754_v37, %v9972_v22 }
0x2244   :  { %v6756_v35 = vsub.f32 %v6749_v36, %v6755_v57 }
0x2246   :  { %v6757_v31 = vmul.f32 %v6756_v35, %v6756_v35 }
0x2248   :  { %v6758_v50 = vsel %vm29_vm0, %v6757_v31, 0.0 }
0x2249   :  { %6759 = vadd.xlane.f32.xlu2 %v6758_v50 }
0x22bc   :  { %v6760_v21 = vpop.xlane.xlu2 %6759 }
0x22bd   :  { %v6761_v48 = vmul.f32 %v6760_v21, %v9972_v22 }
0x22bf   :  { %v6762_v53 = vadd.f32 1e-05, %v6761_v48 }
0x22c1   :  { %9567 = vrsqrt.f32 %v6762_v53  ;;  %vm6769_vm15 = vweird.f32 %v6762_v53 }
0x22c7   :  { %v9568_v33 = vpop.eup %9567 }
0x22c8   :  { %v6764_v6 = vmul.f32 %v9568_v33, %v6762_v53  ;;  %vm6770_vm14 = vweird.f32 %v9568_v33 }
0x22c9   :  { %vm6771_vm5 = vmor %vm6769_vm15, %vm6770_vm14 }
0x22ca   :  { %v6765_v54 = vmul.f32 %v9568_v33, %v6764_v6 }
0x22cc   :  { %v6766_v40 = vmul.f32 0.5, %v6765_v54 }
0x22ce   :  { %v6767_v62 = vsub.f32 1.5, %v6766_v40 }
0x22d0   :  { %v6768_v16 = vmul.f32 %v9568_v33, %v6767_v62 }
0x22d2   :  { %v6772_v29 = vsel %vm6771_vm5, %v9568_v33, %v6768_v16 }
0x22d3   :  { %v6773_v23 = vmul.f32 %v6772_v29, %v6756_v35 }
0x22d5   :  { %v6775_v58 = vmul.f32 %v9438_v41, %v6773_v23 }
0x22d7   :  { %v12177_v60 = vadd.f32 %v9439_v2, %v6775_v58 }
0x22d9   :  { %9191 = vmatmul.msk.f32.vlgmr.msrb.gmra.mxu3 %vm29_vm0, %v12177_v60 }
0x235c   :  { %v6804_v34 = vpop.f32.mrf.mxu3 }
0x235d   :  { %v12184_v45 = vadd.f32 %v9440_v20, %v6804_v34 }
0x235f   :  { %6817 = vrot.lane.b32.xlu2 %v12184_v45, %s9625_s12  ;;  %6808 = vrot.lane.b32.xlu1 %v12184_v45, %s9623_s10  ;;  %v6843_v47 = vrot.slane %v12184_v45, 4 }
0x2360   :  { %6820 = vrot.lane.b32.xlu0 %v12184_v45, %s9618_s30 }
0x2367   :  { %6811 = vrot.lane.b32.xlu2 %v12184_v45, %s9619_s6  ;;  %6814 = vrot.lane.b32.xlu1 %v12184_v45, %s9620_s7 }
0x2368   :  { %6826 = vrot.lane.b32.xlu0 %v12184_v45, %s9622_s9 }
0x2370   :  { %6823 = vrot.lane.b32.xlu0 %v12184_v45, %s9621_s8 }
0x23b9   :  { %v6818_v14 = vpop.permute.xlu2 %6817 }
0x23ba   :  { %v6867_v33 = vrot.slane %v6818_v14, 4 }
0x23c1   :  { %v6812_v10 = vpop.permute.xlu2 %6811 }
0x23c2   :  { %v6841_v0 = vrot.slane %v6812_v10, 4  ;;  %v6844_v7 = vsel %vm88_vm1, %v6812_v10, %v6843_v47 }
0x23c3   :  { %v6852_v52 = vperm.slane %v6844_v7, %v9720_v15 }
0x23c4   :  { %v6842_v3 = vsel %vm88_vm1, %v6841_v0, %v12184_v45 }
0x23c5   :  { %v6848_v27 = vperm.slane %v6842_v3, %v9720_v15  ;;  %v6903_v21 = vrot.slane %v6852_v52, 4 }
0x23c7   :  { %v6891_v50 = vrot.slane %v6848_v27, 4 }
0x23d1   :  { %v6809_v11 = vpop.permute.xlu1 %6808 }
0x23d2   :  { %v6821_v28 = vpop.permute.xlu0 %6820  ;;  %v6855_v12 = vrot.slane %v6809_v11, 4 }
0x23d3   :  { %v6879_v5 = vrot.slane %v6821_v28, 4 }
0x23d9   :  { %v6815_v26 = vpop.permute.xlu1 %6814 }
0x23da   :  { %v6853_v49 = vrot.slane %v6815_v26, 4  ;;  %v6856_v55 = vsel %vm88_vm1, %v6815_v26, %v6855_v12  ;;  %v6827_v8 = vpop.permute.xlu0 %6826 }
0x23db   :  { %v6864_v42 = vperm.slane %v6856_v55, %v9720_v15  ;;  %v6877_v25 = vrot.slane %v6827_v8, 4  ;;  %v6880_v57 = vsel %vm88_vm1, %v6827_v8, %v6879_v5 }
0x23dc   :  { %v6854_v36 = vsel %vm88_vm1, %v6853_v49, %v6809_v11  ;;  %v6888_v53 = vperm.slane %v6880_v57, %v9720_v15 }
0x23dd   :  { %v6860_v24 = vperm.slane %v6854_v36, %v9720_v15  ;;  %v6901_v37 = vrot.slane %v6864_v42, 4  ;;  %v6878_v31 = vsel %vm88_vm1, %v6877_v25, %v6821_v28  ;;  %v6904_v40 = vsel %vm88_vm1, %v6864_v42, %v6903_v21 }
0x23de   :  { %v6884_v62 = vperm.slane %v6878_v31, %v9720_v15  ;;  %v6925_v58 = vrot.slane %v6888_v53, 4  ;;  %v6912_v11 = vperm.slane %v6904_v40, %v9733_v38 }
0x23df   :  { %v6889_v35 = vrot.slane %v6860_v24, 4  ;;  %v6902_v48 = vsel %vm88_vm1, %v6901_v37, %v6852_v52  ;;  %v6892_v54 = vsel %vm88_vm1, %v6860_v24, %v6891_v50 }
0x23e0   :  { %v6908_v41 = vperm.slane %v6902_v48, %v9733_v38  ;;  %v6900_v34 = vperm.slane %v6892_v54, %v9733_v38  ;;  %v6913_v28 = vrot.slane %v6884_v62, 4  ;;  %v6951_v52 = vrot.slane %v6912_v11, 4 }
0x23e1   :  { %v6890_v6 = vsel %vm88_vm1, %v6889_v35, %v6848_v27 }
0x23e2   :  { %v6824_v16 = vpop.permute.xlu0 %6823  ;;  %v6896_v2 = vperm.slane %v6890_v6, %v9733_v38  ;;  %v6947_v3 = vrot.slane %v6908_v41, 4  ;;  %v6943_v27 = vrot.slane %v6900_v34, 4 }
0x23e3   :  { %v6865_v29 = vrot.slane %v6824_v16, 4  ;;  %v6868_v23 = vsel %vm88_vm1, %v6824_v16, %v6867_v33 }
0x23e4   :  { %v6876_v20 = vperm.slane %v6868_v23, %v9720_v15  ;;  %v6939_v26 = vrot.slane %v6896_v2, 4 }
0x23e5   :  { %v6866_v10 = vsel %vm88_vm1, %v6865_v29, %v6818_v14 }
0x23e6   :  { %v6872_v0 = vperm.slane %v6866_v10, %v9720_v15  ;;  %v6926_v47 = vsel %vm88_vm1, %v6925_v58, %v6876_v20  ;;  %v6927_v12 = vrot.slane %v6876_v20, 4 }
0x23e7   :  { %v6932_v7 = vperm.slane %v6926_v47, %v9733_v38 }
0x23e8   :  { %v6914_v49 = vsel %vm88_vm1, %v6913_v28, %v6872_v0  ;;  %v6915_v55 = vrot.slane %v6872_v0, 4  ;;  %v6928_v8 = vsel %vm88_vm1, %v6888_v53, %v6927_v12 }
0x23e9   :  { %v6920_v5 = vperm.slane %v6914_v49, %v9733_v38  ;;  %v6936_v42 = vperm.slane %v6928_v8, %v9733_v38  ;;  %v6945_v14 = vrot.slane %v6932_v7, 4  ;;  %v6948_v25 = vsel %vm88_vm1, %v6932_v7, %v6947_v3 }
0x23ea   :  { %v6916_v36 = vsel %vm88_vm1, %v6884_v62, %v6915_v55  ;;  %v7047_v24 = vrot.slane %v6948_v25, 4 }
0x23eb   :  { %v6924_v37 = vperm.slane %v6916_v36, %v9733_v38  ;;  %v6937_v57 = vrot.slane %v6920_v5, 4  ;;  %v6940_v35 = vsel %vm88_vm1, %v6920_v5, %v6939_v26  ;;  %v6946_v31 = vsel %vm88_vm1, %v6945_v14, %v6908_v41 }
0x23ec   :  { %v6949_v50 = vrot.slane %v6936_v42, 4  ;;  %v6952_v21 = vsel %vm88_vm1, %v6936_v42, %v6951_v52  ;;  %v7023_v48 = vrot.slane %v6940_v35, 4  ;;  %v7035_v53 = vrot.slane %v6946_v31, 4 }
0x23ed   :  { %v6938_v33 = vsel %vm88_vm1, %v6937_v57, %v6896_v2  ;;  %v6941_v6 = vrot.slane %v6924_v37, 4  ;;  %v6944_v54 = vsel %vm88_vm1, %v6924_v37, %v6943_v27  ;;  %v7045_v40 = vrot.slane %v6952_v21, 4 }
0x23ee   :  { %v6950_v62 = vsel %vm88_vm1, %v6949_v50, %v6912_v11  ;;  %v7011_v16 = vrot.slane %v6938_v33, 4  ;;  %v7021_v29 = vrot.slane %v6944_v54, 4  ;;  %v7048_v23 = vsel %vm88_vm1, %v6952_v21, %v7047_v24 }
0x23ef   :  { %v7033_v58 = vrot.slane %v6950_v62, 4  ;;  %v7046_v41 = vsel %vm88_vm1, %v7045_v40, %v6948_v25  ;;  %v7056_v20 = vperm.slane %v7048_v23, %v9720_v15  ;;  %v6942_v10 = vsel %vm88_vm1, %v6941_v6, %v6900_v34 }
0x23f0   :  { %v7052_v28 = vperm.slane %v7046_v41, %v9720_v15  ;;  %v7009_v2 = vrot.slane %v6942_v10, 4  ;;  %v7012_v0 = vsel %vm88_vm1, %v6942_v10, %v7011_v16  ;;  %v7024_v47 = vsel %vm88_vm1, %v6944_v54, %v7023_v48 }
0x23f1   :  { %v7034_v11 = vsel %vm88_vm1, %v7033_v58, %v6946_v31  ;;  %v7020_v12 = vperm.slane %v7012_v0, %v9720_v15  ;;  %v7032_v3 = vperm.slane %v7024_v47, %v9720_v15  ;;  %v7036_v7 = vsel %vm88_vm1, %v6950_v62, %v7035_v53 }
0x23f2   :  { %v7044_v26 = vperm.slane %v7036_v7, %v9720_v15  ;;  %v7093_v49 = vrot.slane %v7056_v20, 4  ;;  %v7010_v34 = vsel %vm88_vm1, %v7009_v2, %v6938_v33  ;;  %v7022_v55 = vsel %vm88_vm1, %v7021_v29, %v6940_v35 }
0x23f3   :  { %v7069_v8 = vrot.slane %v7032_v3, 4  ;;  %v7071_v5 = vrot.slane %v7020_v12, 4  ;;  %v7016_v42 = vperm.slane %v7010_v34, %v9720_v15  ;;  %v7028_v14 = vperm.slane %v7022_v55, %v9720_v15 }
0x23f4   :  { %v7094_v25 = vsel %vm88_vm1, %v7093_v49, %v7044_v26  ;;  %v7095_v27 = vrot.slane %v7044_v26, 4  ;;  %v7040_v52 = vperm.slane %v7034_v11, %v9720_v15  ;;  %v7081_v36 = vrot.slane %v7052_v28, 4 }
0x23f5   :  { %v7070_v24 = vsel %vm88_vm1, %v7069_v8, %v7020_v12  ;;  %v7100_v37 = vperm.slane %v7094_v25, %v9733_v38  ;;  %v7072_v57 = vsel %vm88_vm1, %v7032_v3, %v7071_v5  ;;  %v7057_v31 = vrot.slane %v7028_v14, 4 }
0x23f6   :  { %v7076_v35 = vperm.slane %v7070_v24, %v9733_v38  ;;  %v7080_v50 = vperm.slane %v7072_v57, %v9733_v38  ;;  %v7096_v21 = vsel %vm88_vm1, %v7056_v20, %v7095_v27  ;;  %v7082_v48 = vsel %vm88_vm1, %v7081_v36, %v7040_v52 }
0x23f7   :  { %v7113_v53 = vrot.slane %v7100_v37, 4  ;;  %v7104_v33 = vperm.slane %v7096_v21, %v9733_v38  ;;  %v7058_v6 = vsel %vm88_vm1, %v7057_v31, %v7016_v42  ;;  %v7088_v54 = vperm.slane %v7082_v48, %v9733_v38 }
0x23f8   :  { %v7115_v40 = vrot.slane %v7076_v35, 4  ;;  %v7064_v62 = vperm.slane %v7058_v6, %v9733_v38  ;;  %v7119_v16 = vrot.slane %v7080_v50, 4  ;;  %v7059_v29 = vrot.slane %v7016_v42, 4 }
0x23f9   :  { %v7114_v23 = vsel %vm88_vm1, %v7113_v53, %v7076_v35  ;;  %v7117_v58 = vrot.slane %v7104_v33, 4  ;;  %v7105_v41 = vrot.slane %v7088_v54, 4  ;;  %v7083_v10 = vrot.slane %v7040_v52, 4 }
0x23fa   :  { %9192 = vmatpush.xpose.msk.msrb.mxu0 %vm422_vm2, %v7114_v23  ;;  %v7116_v20 = vsel %vm88_vm1, %v7100_v37, %v7115_v40  ;;  %v7120_v2 = vsel %vm88_vm1, %v7104_v33, %v7119_v16  ;;  %v7107_v0 = vrot.slane %v7064_v62, 4  ;;  %v7060_v47 = vsel %vm88_vm1, %v7028_v14, %v7059_v29 }
0x23fb   :  { %9194 = vmatpush.xpose.msk.msrb.mxu1 %vm422_vm2, %v7116_v20  ;;  %v7118_v11 = vsel %vm88_vm1, %v7117_v58, %v7080_v50  ;;  %v7106_v12 = vsel %vm88_vm1, %v7105_v41, %v7064_v62  ;;  %v7068_v7 = vperm.slane %v7060_v47, %v9733_v38  ;;  %v7084_v26 = vsel %vm88_vm1, %v7052_v28, %v7083_v10  ;;  %v9615_v28 = vld [vmem:[%s13104_s0 + $0x38] sm:$0xff] }
0x23fc   :  { %9196 = vmatpush.xpose.msk.msra.mxu3 %vm422_vm2, %v7118_v11  ;;  %v7108_v3 = vsel %vm88_vm1, %v7088_v54, %v7107_v0  ;;  %v7092_v49 = vperm.slane %v7084_v26, %v9733_v38 }
0x23fd   :  { %9193 = vmatmul.msk.f32.vlgmr.msrb.gmra.mxu0 %vm422_vm2, %v7106_v12  ;;  %v7111_v55 = vrot.slane %v7068_v7, 4 }
0x23fe   :  { %9198 = vmatpush.xpose.msk.msra.mxu0 %vm422_vm2, %v7120_v2  ;;  %9195 = vmatmul.msk.f32.vlgmr.msrb.gmra.mxu1 %vm422_vm2, %v7108_v3  ;;  %v7109_v34 = vrot.slane %v7092_v49, 4 }
0x23ff   :  { %v7112_v5 = vsel %vm88_vm1, %v7092_v49, %v7111_v55 }
0x2400   :  { %v7110_v8 = vsel %vm88_vm1, %v7109_v34, %v7068_v7 }
0x2401   :  { %9197 = vmatmul.msk.f32.vlgmr.msra.gmra.mxu3 %vm422_vm2, %v7110_v8 }
0x2405   :  { %9199 = vmatmul.msk.f32.vlgmr.msra.gmra.mxu0 %vm422_vm2, %v7112_v5 }
0x247a   :  { %v7198_v42 = vpop.f32.mrf.mxu0 }
0x247b   :  { %v7199_v14 = vadd.f32 %v9615_v28, %v7198_v42  ;;  %v7224_v25 = vpop.f32.mrf.mxu1 }
0x247c   :  { %v7225_v27 = vadd.f32 %v9615_v28, %v7224_v25 }
0x247d   :  { %v7279_v52 = vsel %vm422_vm2, %v7199_v14, -inf }
0x247e   :  { %7280 = vmax.xlane.f32.xlu2 %v7279_v52  ;;  %v7282_v36 = vsel %vm422_vm2, %v7225_v27, -inf }
0x247f   :  { %7283 = vmax.xlane.f32.xlu0 %v7282_v36 }
0x2482   :  { %v7276_v31 = vpop.f32.mrf.mxu0 }
0x2483   :  { %v7277_v35 = vadd.f32 %v9615_v28, %v7276_v31 }
0x2484   :  { %v7250_v24 = vpop.f32.mrf.mxu3 }
0x2485   :  { %v7251_v37 = vadd.f32 %v9615_v28, %v7250_v24  ;;  %v7288_v50 = vsel %vm422_vm2, %v7277_v35, -inf }
0x2487   :  { %v7285_v57 = vsel %vm422_vm2, %v7251_v37, -inf }
0x2488   :  { %7286 = vmax.xlane.f32.xlu1 %v7285_v57 }
0x2490   :  { %7289 = vmax.xlane.f32.xlu1 %v7288_v50 }
0x2493   :  { %6832 = vrot.lane.b32.xlu0 %v12184_v45, %s9630_s17 }
0x2496   :  { %6829 = vrot.lane.b32.xlu2 %v12184_v45, %s9624_s11 }
0x249b   :  { %6838 = vrot.lane.b32.xlu0 %v12184_v45, %s9629_s16 }
0x24a9   :  { %6835 = vrot.lane.b32.xlu1 %v12184_v45, %s9628_s15 }
0x24f1   :  { %v7281_v21 = vpop.xlane.xlu2 %7280 }
0x24f2   :  { %v7291_v48 = vsub.f32 %v7199_v14, %v7281_v21  ;;  %v7284_v53 = vpop.xlane.xlu0 %7283 }
0x24f3   :  { %v7292_v33 = vsub.f32 %v7225_v27, %v7284_v53 }
0x24f4   :  { %v7295_v6 = vmul.f32 1.442695, %v7291_v48 }
0x24f5   :  { %v7297_v54 = vmul.f32 1.442695, %v7292_v33 }
0x24f6   :  { %9569 = vpow2.f32 %v7295_v6 }
0x24f7   :  { %9571 = vpow2.f32 %v7297_v54 }
0x24f9   :  { %v6830_v34 = vpop.permute.xlu2 %6829 }
0x24fa   :  { %v6955_v5 = vrot.slane %v6830_v34, 4 }
0x24fb   :  { %v7287_v62 = vpop.xlane.xlu1 %7286 }
0x24fc   :  { %v12305_v40 = vpop.eup %9569  ;;  %v7293_v29 = vsub.f32 %v7251_v37, %v7287_v62 }
0x24fd   :  { %v12307_v16 = vpop.eup %9571  ;;  %v7303_v23 = vsel %vm422_vm2, %v12305_v40, 0.0 }
0x24fe   :  { %7304 = vadd.xlane.f32.xlu1 %v7303_v23  ;;  %v7306_v45 = vsel %vm422_vm2, %v12307_v16, 0.0  ;;  %v7299_v58 = vmul.f32 1.442695, %v7293_v29 }
0x24ff   :  { %7307 = vadd.xlane.f32.xlu0 %v7306_v45 }
0x2500   :  { %9573 = vpow2.f32 %v7299_v58 }
0x2503   :  { %v7290_v41 = vpop.xlane.xlu1 %7289 }
0x2504   :  { %v7294_v10 = vsub.f32 %v7277_v35, %v7290_v41 }
0x2505   :  { %v6833_v0 = vpop.permute.xlu0 %6832 }
0x2506   :  { %v12313_v20 = vpop.eup %9573  ;;  %v7301_v2 = vmul.f32 1.442695, %v7294_v10  ;;  %v6967_v7 = vrot.slane %v6833_v0, 4 }
0x2507   :  { %v7309_v47 = vsel %vm422_vm2, %v12313_v20, 0.0 }
0x2508   :  { %9575 = vpow2.f32 %v7301_v2  ;;  %7310 = vadd.xlane.f32.xlu2 %v7309_v47 }
0x250d   :  { %v6839_v3 = vpop.permute.xlu0 %6838 }
0x250e   :  { %v12317_v11 = vpop.eup %9575  ;;  %v6965_v26 = vrot.slane %v6839_v3, 4  ;;  %v6968_v49 = vsel %vm88_vm1, %v6839_v3, %v6967_v7 }
0x250f   :  { %v7312_v12 = vsel %vm422_vm2, %v12317_v11, 0.0  ;;  %v6976_v8 = vperm.slane %v6968_v49, %v9720_v15 }
0x2510   :  { %7313 = vadd.xlane.f32.xlu2 %v7312_v12  ;;  %v6966_v55 = vsel %vm88_vm1, %v6965_v26, %v6833_v0 }
0x2511   :  { %v6972_v42 = vperm.slane %v6966_v55, %v9720_v15  ;;  %v6989_v27 = vrot.slane %v6976_v8, 4 }
0x2513   :  { %v6977_v24 = vrot.slane %v6972_v42, 4 }
0x251b   :  { %v6836_v28 = vpop.permute.xlu1 %6835 }
0x251c   :  { %v6953_v14 = vrot.slane %v6836_v28, 4  ;;  %v6956_v25 = vsel %vm88_vm1, %v6836_v28, %v6955_v5 }
0x251d   :  { %v6964_v52 = vperm.slane %v6956_v25, %v9720_v15 }
0x251e   :  { %v6954_v36 = vsel %vm88_vm1, %v6953_v14, %v6830_v34 }
0x251f   :  { %v6960_v37 = vperm.slane %v6954_v36, %v9720_v15  ;;  %v6990_v57 = vsel %vm88_vm1, %v6989_v27, %v6964_v52  ;;  %v6991_v31 = vrot.slane %v6964_v52, 4 }
0x2520   :  { %v6996_v35 = vperm.slane %v6990_v57, %v9733_v38 }
0x2521   :  { %v6978_v50 = vsel %vm88_vm1, %v6977_v24, %v6960_v37  ;;  %v6979_v21 = vrot.slane %v6960_v37, 4  ;;  %v6992_v48 = vsel %vm88_vm1, %v6976_v8, %v6991_v31 }
0x2522   :  { %v6984_v53 = vperm.slane %v6978_v50, %v9733_v38  ;;  %v7000_v33 = vperm.slane %v6992_v48, %v9733_v38  ;;  %v7005_v62 = vrot.slane %v6996_v35, 4 }
0x2523   :  { %v6980_v6 = vsel %vm88_vm1, %v6972_v42, %v6979_v21 }
0x2524   :  { %v6988_v54 = vperm.slane %v6980_v6, %v9733_v38  ;;  %v7007_v29 = vrot.slane %v7000_v33, 4  ;;  %v7001_v23 = vrot.slane %v6984_v53, 4  ;;  %v7006_v47 = vsel %vm88_vm1, 0.0, %v7005_v62 }
0x2526   :  { %v7003_v45 = vrot.slane %v6988_v54, 4  ;;  %v7008_v58 = vsel %vm88_vm1, 0.0, %v7007_v29  ;;  %v7132_v41 = vsel %vm88_vm1, %v7007_v29, %v6996_v35  ;;  %v7002_v34 = vsel %vm88_vm1, 0.0, %v7001_v23 }
0x2527   :  { %v7136_v10 = vperm.slane %v7132_v41, %v9720_v15  ;;  %v7137_v2 = vrot.slane %v7008_v58, 4 }
0x2528   :  { %v7004_v0 = vsel %vm88_vm1, 0.0, %v7003_v45  ;;  %v7121_v12 = vsel %vm88_vm1, %v7003_v45, %v6984_v53 }
0x2529   :  { %v7126_v3 = vrot.slane %v7004_v0, 4  ;;  %v7138_v7 = vsel %vm88_vm1, %v7137_v2, %v7006_v47  ;;  %v7125_v26 = vperm.slane %v7121_v12, %v9720_v15  ;;  %v7157_v49 = vrot.slane %v7136_v10, 4 }
0x252a   :  { %v7142_v55 = vperm.slane %v7138_v7, %v9720_v15 }
0x252b   :  { %v7127_v8 = vsel %vm88_vm1, %v7126_v3, %v7002_v34  ;;  %v7145_v5 = vrot.slane %v7125_v26, 4 }
0x252c   :  { %v7131_v42 = vperm.slane %v7127_v8, %v9720_v15  ;;  %v7158_v28 = vsel %vm88_vm1, %v7142_v55, %v7157_v49  ;;  %v7155_v14 = vrot.slane %v7142_v55, 4 }
0x252d   :  { %v7166_v25 = vperm.slane %v7158_v28, %v9733_v38 }
0x252e   :  { %v7146_v27 = vsel %vm88_vm1, %v7131_v42, %v7145_v5  ;;  %v7143_v52 = vrot.slane %v7131_v42, 4  ;;  %v7156_v36 = vsel %vm88_vm1, %v7155_v14, %v7136_v10 }
0x252f   :  { %v7154_v24 = vperm.slane %v7146_v27, %v9733_v38  ;;  %v7171_v37 = vrot.slane %v7166_v25, 4  ;;  %v7162_v57 = vperm.slane %v7156_v36, %v9733_v38 }
0x2530   :  { %v7144_v31 = vsel %vm88_vm1, %v7143_v52, %v7125_v26 }
0x2531   :  { %v7172_v35 = vsel %vm88_vm1, %v7171_v37, %v7154_v24  ;;  %v7150_v50 = vperm.slane %v7144_v31, %v9733_v38  ;;  %v7167_v21 = vrot.slane %v7162_v57, 4  ;;  %v7173_v48 = vrot.slane %v7154_v24, 4 }
0x2532   :  { %7387 = vmatpush.msrb.mxu3 %v7172_v35 }
0x2533   :  { %v7168_v53 = vsel %vm88_vm1, %v7167_v21, %v7150_v50  ;;  %v7174_v33 = vsel %vm88_vm1, %v7166_v25, %v7173_v48  ;;  %v7169_v6 = vrot.slane %v7150_v50, 4 }
0x2534   :  { %7341 = vmatpush.msra.mxu1 %v7168_v53  ;;  %7410 = vmatpush.msrb.mxu0 %v7174_v33 }
0x2535   :  { %v7170_v54 = vsel %vm88_vm1, %v7162_v57, %v7169_v6 }
0x2536   :  { %7364 = vmatpush.msra.mxu2 %v7170_v54 }
0x2571   :  { %v7305_v62 = vpop.xlane.xlu1 %7304 }
0x2572   :  { %9577 = vrcp.f32 %v7305_v62  ;;  %v7308_v29 = vpop.xlane.xlu0 %7307 }
0x2573   :  { %9579 = vrcp.f32 %v7308_v29 }
0x2578   :  { %v9578_v23 = vpop.eup %9577 }
0x2579   :  { %v9580_v45 = vpop.eup %9579  ;;  %v7319_v58 = vmul.f32 %v9578_v23, %v12305_v40  ;;  %v9373_v40 = vpack.i.bf16 %v12154_v39, %v12149_v18 }
0x257a   :  { %v7320_v41 = vmul.f32 %v9580_v45, %v12307_v16  ;;  %v9378_v16 = vpack.i.bf16 %v12166_v1, %v12160_v44 }
0x257b   :  { %9200 = vmatmul.msk.f32.vlgmr.msra.gmra.mxu1 %vm422_vm2, %v7319_v58  ;;  %v7311_v10 = vpop.xlane.xlu2 %7310  ;;  %9374 = vrot.lane.b32.xlu0 %v9373_v40, %s9631_s18 }
0x257c   :  { %9201 = vmatmul.msk.f32.vlgmr.msra.gmra.mxu2 %vm422_vm2, %v7320_v41  ;;  %9581 = vrcp.f32 %v7311_v10  ;;  %9379 = vrot.lane.b32.xlu1 %v9378_v16, %s9631_s18 }
0x2582   :  { %v9582_v2 = vpop.eup %9581 }
0x2583   :  { %v7321_v0 = vmul.f32 %v9582_v2, %v12313_v20  ;;  %v7314_v47 = vpop.xlane.xlu2 %7313 }
0x2584   :  { %9583 = vrcp.f32 %v7314_v47 }
0x2585   :  { %9202 = vmatmul.msk.f32.vlgmr.msrb.gmra.mxu3 %vm422_vm2, %v7321_v0 }
0x258a   :  { %v9584_v12 = vpop.eup %9583 }
0x258b   :  { %v7322_v3 = vmul.f32 %v9584_v12, %v12317_v11 }
0x258d   :  { %9203 = vmatmul.msk.f32.vlgmr.msrb.gmra.mxu0 %vm422_vm2, %v7322_v3 }
0x25f8   :  { %v7343_v20 = vpop.f32.mrf.mxu1 }
0x25f9   :  { %v7417_v26 = vrot.slane %v7343_v20, 4 }
0x25ff   :  { %v7366_v7 = vpop.f32.mrf.mxu2 }
0x2600   :  { %v7429_v34 = vrot.slane %v7366_v7, 4 }
0x2608   :  { %v7389_v49 = vpop.f32.mrf.mxu3 }
0x2609   :  { %v7415_v55 = vrot.slane %v7389_v49, 4  ;;  %v7418_v11 = vsel %vm88_vm1, %v7389_v49, %v7417_v26 }
0x260a   :  { %v7426_v8 = vperm.slane %v7418_v11, %v9720_v15  ;;  %v7412_v5 = vpop.f32.mrf.mxu0 }
0x260b   :  { %v7416_v18 = vsel %vm88_vm1, %v7415_v55, %v7343_v20  ;;  %v7427_v39 = vrot.slane %v7412_v5, 4  ;;  %v7430_v44 = vsel %vm88_vm1, %v7412_v5, %v7429_v34 }
0x260c   :  { %v7422_v1 = vperm.slane %v7416_v18, %v9720_v15  ;;  %v7453_v42 = vrot.slane %v7426_v8, 4  ;;  %v7438_v28 = vperm.slane %v7430_v44, %v9720_v15 }
0x260d   :  { %v7428_v14 = vsel %vm88_vm1, %v7427_v39, %v7366_v7 }
0x260e   :  { %v7441_v25 = vrot.slane %v7422_v1, 4  ;;  %v7434_v27 = vperm.slane %v7428_v14, %v9720_v15  ;;  %v7451_v52 = vrot.slane %v7438_v28, 4  ;;  %v7454_v36 = vsel %vm88_vm1, %v7438_v28, %v7453_v42 }
0x260f   :  { %v7462_v24 = vperm.slane %v7454_v36, %v9733_v38 }
0x2610   :  { %v7439_v37 = vrot.slane %v7434_v27, 4  ;;  %v7442_v57 = vsel %vm88_vm1, %v7434_v27, %v7441_v25  ;;  %v7452_v31 = vsel %vm88_vm1, %v7451_v52, %v7426_v8 }
0x2611   :  { %v7450_v35 = vperm.slane %v7442_v57, %v9733_v38  ;;  %v7458_v50 = vperm.slane %v7452_v31, %v9733_v38  ;;  %v7469_v21 = vrot.slane %v7462_v24, 4  ;;  %v9375_v24 = vpop.permute.xlu0 %9374 }
0x2612   :  { %v7440_v48 = vsel %vm88_vm1, %v7439_v37, %v7422_v1  ;;  %v9380_v37 = vpop.permute.xlu1 %9379  ;;  %v9377_v57 = vunpack.i.h.bf16 %v9375_v24  ;;  %v9376_v31 = vunpack.i.l.bf16 %v9375_v24 }
0x2613   :  { %v7446_v53 = vperm.slane %v7440_v48, %v9733_v38  ;;  %v7465_v33 = vrot.slane %v7450_v35, 4  ;;  %v7467_v6 = vrot.slane %v7458_v50, 4  ;;  %v7470_v54 = vsel %vm88_vm1, 0.0, %v7469_v21  ;;  %v9215_v48 = vld [vmem:[%s13103_s1 + $0xb0] sm:$0xff] }
0x2614   :  { %v7482_v62 = vsel %vm88_vm1, %v7469_v21, %v7458_v50  ;;  %v7487_v29 = vrot.slane %v7470_v54, 4  ;;  %7577 = vmatpush.msrb.mxu1 %v9376_v31  ;;  %v9381_v35 = vunpack.i.l.bf16 %v9380_v37  ;;  %v9382_v50 = vunpack.i.h.bf16 %v9380_v37  ;;  %v9214_v21 = vld [vmem:[%s13103_s1 + $0x98] sm:$0xff]  ;;  %7635 = vmatpush.msrb.mxu2 %v9215_v48 }
0x2615   :  { %v7463_v23 = vrot.slane %v7446_v53, 4  ;;  %v7466_v45 = vsel %vm88_vm1, 0.0, %v7465_v33  ;;  %v7468_v58 = vsel %vm88_vm1, 0.0, %v7467_v6  ;;  %v7486_v41 = vperm.slane %v7482_v62, %v9720_v15  ;;  %v9213_v6 = vld [vmem:[%s13103_s1 + $0x80] sm:$0xff] }
0x2616   :  { %v7476_v10 = vrot.slane %v7466_v45, 4  ;;  %v7488_v2 = vsel %vm88_vm1, %v7487_v29, %v7468_v58  ;;  %v7471_v0 = vsel %vm88_vm1, %v7465_v33, %v7446_v53  ;;  %7578 = vmatpush.msrb.mxu1 %v9377_v57  ;;  %v9383_v53 = vpack.i.bf16 %v9214_v21, %v9215_v48  ;;  %7636 = vmatpush.msrb.mxu2 %v9214_v21  ;;  %v9212_v33 = vld [vmem:[%s13103_s1 + $0x68] sm:$0xff] }
0x2617   :  { %v7464_v47 = vsel %vm88_vm1, 0.0, %v7463_v23  ;;  %v7475_v12 = vperm.slane %v7471_v0, %v9720_v15  ;;  %v7492_v3 = vperm.slane %v7488_v2, %v9720_v15  ;;  %v7507_v40 = vrot.slane %v7486_v41, 4 }
0x2618   :  { %v7477_v16 = vsel %vm88_vm1, %v7476_v10, %v7464_v47  ;;  %7579 = vmatpush.msrb.mxu1 %v9381_v35  ;;  %7637 = vmatpush.msrb.mxu2 %v9213_v6  ;;  %v9388_v54 = vpack.i.bf16 %v9212_v33, %v9213_v6 }
0x2619   :  { %v7481_v20 = vperm.slane %v7477_v16, %v9720_v15  ;;  %v7495_v7 = vrot.slane %v7475_v12, 4  ;;  %v7508_v26 = vsel %vm88_vm1, %v7492_v3, %v7507_v40  ;;  %v7505_v49 = vrot.slane %v7492_v3, 4  ;;  %v9616_v40 = vld [vmem:[%s13104_s0 + $0x28] sm:$0xff]  ;;  %v9617_v16 = vld [vmem:[%s13104_s0 + $0x30] sm:$0xff] }
0x261a   :  { %v7516_v34 = vperm.slane %v7508_v26, %v9733_v38  ;;  %7580 = vmatpush.msrb.mxu1 %v9382_v50  ;;  %7638 = vmatpush.msrb.mxu2 %v9212_v33 }
0x261b   :  { %v7496_v55 = vsel %vm88_vm1, %v7481_v20, %v7495_v7  ;;  %v7493_v11 = vrot.slane %v7481_v20, 4  ;;  %v7506_v8 = vsel %vm88_vm1, %v7505_v49, %v7486_v41  ;;  %v9441_v20 = vld [vmem:[%s13105_s3 + $0x11] ss:$0 sm:$0xff] }
0x261c   :  { %v7504_v5 = vperm.slane %v7496_v55, %v9733_v38  ;;  %v7521_v18 = vrot.slane %v7516_v34, 4  ;;  %v7512_v39 = vperm.slane %v7506_v8, %v9733_v38 }
0x261d   :  { %v7494_v44 = vsel %vm88_vm1, %v7493_v11, %v7475_v12 }
0x261e   :  { %v7522_v1 = vsel %vm88_vm1, %v7521_v18, %v7504_v5  ;;  %v7500_v42 = vperm.slane %v7494_v44, %v9733_v38  ;;  %v7517_v28 = vrot.slane %v7512_v39, 4  ;;  %v7523_v52 = vrot.slane %v7504_v5, 4  ;;  %v9442_v18 = vld [vmem:[%s13105_s3 + $0x13] ss:$0 sm:$0xff] }
0x261f   :  { %7530 = vrot.lane.b32.xlu0 %v7522_v1, %s9632_s19 }
0x2620   :  { %v7519_v14 = vrot.slane %v7500_v42, 4  ;;  %v7518_v25 = vsel %vm88_vm1, %v7517_v28, %v7500_v42  ;;  %v7524_v36 = vsel %vm88_vm1, %v7516_v34, %v7523_v52 }
0x2622   :  { %v7520_v27 = vsel %vm88_vm1, %v7512_v39, %v7519_v14 }
0x2623   :  { %7526 = vrot.lane.b32.xlu2 %v7520_v27, %s9634_s21 }
0x262b   :  { %7534 = vrot.lane.b32.xlu2 %v7524_v36, %s9633_s20 }
0x2633   :  { %9384 = vrot.lane.b32.xlu2 %v9383_v53, %s9625_s12 }
0x263b   :  { %9389 = vrot.lane.b32.xlu2 %v9388_v54, %s9625_s12 }
0x267d   :  { %v7527_v62 = vpop.permute.xlu2 %7526 }
0x267e   :  { %v7537_v29 = vsel %vm422_vm2, %v7518_v25, %v7527_v62 }
0x2685   :  { %v7535_v45 = vpop.permute.xlu2 %7534 }
0x268d   :  { %v9385_v10 = vpop.permute.xlu2 %9384 }
0x268e   :  { %v9387_v2 = vunpack.i.h.bf16 %v9385_v10  ;;  %v9386_v0 = vunpack.i.l.bf16 %v9385_v10 }
0x2690   :  { %7673 = vmatpush.msra.mxu3 %v9386_v0 }
0x2691   :  { %v7531_v23 = vpop.permute.xlu0 %7530 }
0x2692   :  { %v7538_v58 = vsel %vm786_vm3, %v7537_v29, %v7531_v23  ;;  %7674 = vmatpush.msra.mxu3 %v9387_v2  ;;  %v9443_v2 = vld [vmem:[%s13105_s3 + $0x17] ss:$0 sm:$0xff] }
0x2693   :  { %v7539_v41 = vsel %vm788_vm4, %v7538_v58, %v7535_v45 }
0x2694   :  { %9209 = vmatmul.msk.f32.vlgmr.msrb.gmra.mxu1 %vm29_vm0, %v7539_v41 }
0x2695   :  { %v9390_v47 = vpop.permute.xlu2 %9389 }
0x2696   :  { %v9392_v12 = vunpack.i.h.bf16 %v9390_v47  ;;  %v9391_v3 = vunpack.i.l.bf16 %v9390_v47 }
0x2698   :  { %7675 = vmatpush.msra.mxu3 %v9391_v3 }
0x269a   :  { %7676 = vmatpush.msra.mxu3 %v9392_v12 }
0x269b   :  { %9219 = vmatmul.msk.f32.vlgmr.msra.gmra.mxu3 %vm29_vm0, %v9616_v40 }
0x26a3   :  { %9220 = vmatmul.msk.f32.gmra.mxu3 %vm29_vm0, %v9617_v16 }
0x2711   :  { %v7582_v7 = vpop.f32.mrf.mxu1 }
0x2712   :  { %v7583_v26 = vadd.f32 %v9441_v20, %v7582_v7  ;;  %v9444_v20 = vld [vmem:[%s13105_s3 + $0x18] ss:$0 sm:$0xff] }
0x2714   :  { %v7585_v49 = vadd.f32 %v7583_v26, %v12177_v60 }
0x2716   :  { %v7588_v34 = vsel %vm29_vm0, %v7585_v49, 0.0 }
0x2717   :  { %7589 = vadd.xlane.f32.xlu0 %v7588_v34 }
0x271e   :  { %v7678_v55 = vpop.f32.mrf.mxu3 }
0x271f   :  { %v12464_v60 = vadd.f32 %v9442_v18, %v7678_v55 }
0x2726   :  { %v7681_v44 = vpop.f32.mrf.mxu3 }
0x2727   :  { %v12454_v42 = vadd.f32 %v9442_v18, %v7681_v44 }
0x2729   :  { %7826 = vrot.lane.b32.xlu2 %v12454_v42, %s9625_s12  ;;  %v7962_v47 = vrot.slane %v12454_v42, 4 }
0x272b   :  { %7808 = vrot.lane.b32.xlu0 %v12454_v42, %s9623_s10 }
0x2731   :  { %7832 = vrot.lane.b32.xlu2 %v12454_v42, %s9618_s30 }
0x2733   :  { %7820 = vrot.lane.b32.xlu0 %v12454_v42, %s9620_s7 }
0x2739   :  { %7838 = vrot.lane.b32.xlu2 %v12454_v42, %s9621_s8 }
0x273b   :  { %7806 = vrot.lane.b32.xlu0 %v12464_v60, %s9623_s10 }
0x2741   :  { %7824 = vrot.lane.b32.xlu2 %v12464_v60, %s9625_s12 }
0x2743   :  { %7818 = vrot.lane.b32.xlu0 %v12464_v60, %s9620_s7 }
0x2749   :  { %7844 = vrot.lane.b32.xlu2 %v12454_v42, %s9622_s9 }
0x2751   :  { %7830 = vrot.lane.b32.xlu2 %v12464_v60, %s9618_s30 }
0x2759   :  { %7812 = vrot.lane.b32.xlu2 %v12464_v60, %s9619_s6 }
0x2783   :  { %v7827_v28 = vpop.permute.xlu2 %7826 }
0x2784   :  { %v7986_v48 = vrot.slane %v7827_v28, 4 }
0x278a   :  { %v7590_v11 = vpop.xlane.xlu0 %7589 }
0x278b   :  { %v7591_v8 = vmul.f32 %v7590_v11, %v9972_v22  ;;  %v12487_v36 = vpop.permute.xlu2 %7832 }
0x278c   :  { %v7998_v26 = vrot.slane %v12487_v36, 4 }
0x278d   :  { %v7592_v5 = vsub.f32 %v7585_v49, %v7591_v8 }
0x278f   :  { %v7593_v39 = vmul.f32 %v7592_v5, %v7592_v5 }
0x2791   :  { %v7594_v1 = vsel %vm29_vm0, %v7593_v39, 0.0  ;;  %v7850_v39 = vrot.slane %v12464_v60, 4 }
0x2792   :  { %7595 = vadd.xlane.f32.xlu1 %v7594_v1 }
0x2793   :  { %v7839_v31 = vpop.permute.xlu2 %7838 }
0x2794   :  { %v7984_v33 = vrot.slane %v7839_v31, 4  ;;  %v7987_v23 = vsel %vm88_vm1, %v7839_v31, %v7986_v48 }
0x2795   :  { %v7995_v3 = vperm.slane %v7987_v23, %v9720_v15 }
0x2796   :  { %v7985_v58 = vsel %vm88_vm1, %v7984_v33, %v7827_v28 }
0x2797   :  { %v7991_v7 = vperm.slane %v7985_v58, %v9720_v15  ;;  %v8046_v1 = vrot.slane %v7995_v3, 4 }
0x279b   :  { %v12498_v0 = vpop.permute.xlu2 %7824 }
0x279d   :  { %v7809_v25 = vpop.permute.xlu0 %7808 }
0x279e   :  { %v7974_v35 = vrot.slane %v7809_v25, 4 }
0x27a5   :  { %v7821_v24 = vpop.permute.xlu0 %7820 }
0x27a6   :  { %v7972_v50 = vrot.slane %v7821_v24, 4  ;;  %v7975_v62 = vsel %vm88_vm1, %v7821_v24, %v7974_v35 }
0x27a7   :  { %v7983_v10 = vperm.slane %v7975_v62, %v9720_v15 }
0x27a8   :  { %v7973_v54 = vsel %vm88_vm1, %v7972_v50, %v7809_v25  ;;  %v7874_v50 = vrot.slane %v12498_v0, 4 }
0x27a9   :  { %v7979_v41 = vperm.slane %v7973_v54, %v9720_v15  ;;  %v8020_v34 = vrot.slane %v7983_v10, 4 }
0x27ab   :  { %7814 = vrot.lane.b32.xlu1 %v12454_v42, %s9619_s6  ;;  %v8008_v49 = vrot.slane %v7979_v41, 4 }
0x27ad   :  { %v7807_v6 = vpop.permute.xlu0 %7806 }
0x27ae   :  { %v7862_v40 = vrot.slane %v7807_v6, 4 }
0x27b3   :  { %7836 = vrot.lane.b32.xlu1 %v12464_v60, %s9621_s8 }
0x27b5   :  { %v7819_v44 = vpop.permute.xlu0 %7818 }
0x27b6   :  { %v7860_v28 = vrot.slane %v7819_v44, 4 }
0x27b8   :  { %v7861_v35 = vsel %vm88_vm1, %v7860_v28, %v7807_v6 }
0x27bb   :  { %7842 = vrot.lane.b32.xlu1 %v12464_v60, %s9622_s9 }
0x2805   :  { %v7596_v14 = vpop.xlane.xlu1 %7595 }
0x2806   :  { %v7597_v27 = vmul.f32 %v7596_v14, %v9972_v22  ;;  %v7863_v14 = vsel %vm88_vm1, %v7819_v44, %v7862_v40 }
0x2807   :  { %v12516_v24 = vperm.slane %v7863_v14, %v9720_v15 }
0x2808   :  { %v7598_v52 = vadd.f32 1e-05, %v7597_v27  ;;  %v8034_v27 = vrot.slane %v7991_v7, 4 }
0x280a   :  { %9585 = vrsqrt.f32 %v7598_v52  ;;  %vm7605_vm8 = vweird.f32 %v7598_v52 }
0x2810   :  { %v9586_v37 = vpop.eup %9585 }
0x2811   :  { %v7600_v57 = vmul.f32 %v9586_v37, %v7598_v52  ;;  %vm7606_vm7 = vweird.f32 %v9586_v37 }
0x2812   :  { %vm7607_vm9 = vmor %vm7605_vm8, %vm7606_vm7 }
0x2813   :  { %v7601_v21 = vmul.f32 %v9586_v37, %v7600_v57 }
0x2815   :  { %v7602_v53 = vmul.f32 0.5, %v7601_v21  ;;  %v7845_v21 = vpop.permute.xlu2 %7844 }
0x2816   :  { %v7996_v33 = vrot.slane %v7845_v21, 4  ;;  %v7999_v54 = vsel %vm88_vm1, %v7845_v21, %v7998_v26 }
0x2817   :  { %v7603_v29 = vsub.f32 1.5, %v7602_v53  ;;  %v7908_v53 = vrot.slane %v12516_v24, 4  ;;  %v8007_v6 = vperm.slane %v7999_v54, %v9720_v15 }
0x2819   :  { %v7604_v45 = vmul.f32 %v9586_v37, %v7603_v29  ;;  %v8044_v26 = vrot.slane %v8007_v6, 4 }
0x281b   :  { %v7608_v12 = vsel %vm7607_vm9, %v9586_v37, %v7604_v45 }
0x281c   :  { %v7609_v16 = vmul.f32 %v7608_v12, %v7592_v5 }
0x281d   :  { %v7815_v55 = vpop.permute.xlu1 %7814 }
0x281e   :  { %v7611_v11 = vmul.f32 %v9443_v2, %v7609_v16  ;;  %v7960_v8 = vrot.slane %v7815_v55, 4  ;;  %v7963_v18 = vsel %vm88_vm1, %v7815_v55, %v7962_v47  ;;  %v7997_v2 = vsel %vm88_vm1, %v7996_v33, %v12487_v36 }
0x281f   :  { %v7971_v5 = vperm.slane %v7963_v18, %v9720_v15  ;;  %v8045_v18 = vsel %vm88_vm1, %v8044_v26, %v7995_v3 }
0x2820   :  { %v12511_v25 = vadd.f32 %v9444_v20, %v7611_v11  ;;  %v7961_v52 = vsel %vm88_vm1, %v7960_v8, %v12454_v42  ;;  %v12526_v42 = vperm.slane %v7861_v35, %v9720_v15  ;;  %v8003_v20 = vperm.slane %v7997_v2, %v9720_v15 }
0x2821   :  { %v7967_v37 = vperm.slane %v7961_v52, %v9720_v15  ;;  %v8021_v57 = vsel %vm88_vm1, %v8020_v34, %v7971_v5  ;;  %v8022_v31 = vrot.slane %v7971_v5, 4  ;;  %v8051_v28 = vperm.slane %v8045_v18, %v9733_v38 }
0x2822   :  { %9217 = vmatmul.msk.f32.vlgmr.msrb.gmra.mxu2 %vm29_vm0, %v12511_v25  ;;  %v8027_v48 = vperm.slane %v8021_v57, %v9733_v38  ;;  %v7896_v16 = vrot.slane %v12526_v42, 4  ;;  %v8032_v36 = vrot.slane %v8003_v20, 4  ;;  %v7831_v57 = vpop.permute.xlu2 %7830 }
0x2823   :  { %v8009_v62 = vsel %vm88_vm1, %v8008_v49, %v7967_v37  ;;  %v8010_v29 = vrot.slane %v7967_v37, 4  ;;  %v8023_v45 = vsel %vm88_vm1, %v7983_v10, %v8022_v31  ;;  %v8047_v49 = vsel %vm88_vm1, %v8007_v6, %v8046_v1 }
0x2824   :  { %v8015_v23 = vperm.slane %v8009_v62, %v9733_v38  ;;  %v8066_v58 = vrot.slane %v8027_v48, 4  ;;  %v8031_v12 = vperm.slane %v8023_v45, %v9733_v38  ;;  %v8055_v10 = vperm.slane %v8047_v49, %v9733_v38 }
0x2825   :  { %v8011_v47 = vsel %vm88_vm1, %v7979_v41, %v8010_v29  ;;  %v7837_v40 = vpop.permute.xlu1 %7836  ;;  %v8035_v41 = vsel %vm88_vm1, %v8003_v20, %v8034_v27  ;;  %v8033_v52 = vsel %vm88_vm1, %v8032_v36, %v7991_v7  ;;  %v8064_v21 = vrot.slane %v8051_v28, 4 }
0x2826   :  { %v8019_v34 = vperm.slane %v8011_v47, %v9733_v38  ;;  %v8058_v55 = vrot.slane %v8015_v23, 4  ;;  %v8070_v11 = vrot.slane %v8031_v12, 4  ;;  %v7872_v8 = vrot.slane %v7837_v40, 4 }
0x2827   :  { %v8043_v5 = vperm.slane %v8035_v41, %v9733_v38  ;;  %v8068_v14 = vrot.slane %v8055_v10, 4  ;;  %v7875_v27 = vsel %vm88_vm1, %v7837_v40, %v7874_v50  ;;  %v8039_v3 = vperm.slane %v8033_v52, %v9733_v38 }
0x2828   :  { %v8062_v44 = vrot.slane %v8019_v34, 4  ;;  %v12548_v1 = vsel %vm88_vm1, %v8055_v10, %v8070_v11  ;;  %v7873_v31 = vsel %vm88_vm1, %v7872_v8, %v12498_v0  ;;  %v12560_v54 = vsel %vm88_vm1, %v8051_v28, %v8066_v58 }
0x2829   :  { %v8220_v37 = vrot.slane %v12548_v1, 4  ;;  %v8060_v35 = vrot.slane %v8043_v5, 4  ;;  %v12563_v7 = vsel %vm88_vm1, %v8068_v14, %v8031_v12  ;;  %v7886_v29 = vrot.slane %v7831_v57, 4 }
0x282a   :  { %v12557_v33 = vsel %vm88_vm1, %v8043_v5, %v8062_v44  ;;  %v8056_v6 = vrot.slane %v8039_v3, 4  ;;  %v12567_v0 = vsel %vm88_vm1, %v8039_v3, %v8058_v55  ;;  %v12573_v45 = vsel %vm88_vm1, %v8064_v21, %v8027_v48  ;;  %v7813_v44 = vpop.permute.xlu2 %7812 }
0x282b   :  { %v8196_v62 = vrot.slane %v12557_v33, 4  ;;  %v12570_v50 = vsel %vm88_vm1, %v8060_v35, %v8019_v34  ;;  %v8198_v58 = vrot.slane %v12567_v0, 4  ;;  %v8208_v47 = vrot.slane %v12563_v7, 4 }
0x282c   :  { %v8184_v2 = vrot.slane %v12570_v50, 4  ;;  %v8210_v12 = vrot.slane %v12573_v45, 4  ;;  %v12580_v20 = vsel %vm88_vm1, %v8056_v6, %v8015_v23  ;;  %v8221_v26 = vsel %vm88_vm1, %v8220_v37, %v12560_v54 }
0x282d   :  { %v7843_v40 = vpop.permute.xlu1 %7842  ;;  %v8222_v49 = vrot.slane %v12560_v54, 4  ;;  %v7879_v48 = vperm.slane %v7873_v31, %v9720_v15  ;;  %v8186_v34 = vrot.slane %v12580_v20, 4  ;;  %v8209_v10 = vsel %vm88_vm1, %v8208_v47, %v12573_v45 }
0x282e   :  { %v12590_v55 = vperm.slane %v8221_v26, %v9720_v15  ;;  %v7883_v11 = vperm.slane %v7875_v27, %v9720_v15  ;;  %v12594_v23 = vperm.slane %v8209_v10, %v9720_v15  ;;  %v7884_v36 = vrot.slane %v7843_v40, 4 }
0x282f   :  { %v7922_v8 = vrot.slane %v7879_v48, 4  ;;  %v7887_v41 = vsel %vm88_vm1, %v7843_v40, %v7886_v29  ;;  %v8185_v28 = vsel %vm88_vm1, %v8184_v2, %v12580_v20  ;;  %v8197_v14 = vsel %vm88_vm1, %v8196_v62, %v12567_v0 }
0x2830   :  { %v7934_v18 = vrot.slane %v7883_v11, 4  ;;  %v7895_v5 = vperm.slane %v7887_v41, %v9720_v15  ;;  %v7848_v52 = vrot.slane %v7813_v44, 4  ;;  %v7851_v37 = vsel %vm88_vm1, %v7813_v44, %v7850_v39 }
0x2831   :  { %v7885_v31 = vsel %vm88_vm1, %v7884_v36, %v7831_v57  ;;  %v8191_v27 = vperm.slane %v8185_v28, %v9720_v15  ;;  %v7859_v3 = vperm.slane %v7851_v37, %v9720_v15  ;;  %v8203_v2 = vperm.slane %v8197_v14, %v9720_v15 }
0x2832   :  { %v7891_v35 = vperm.slane %v7885_v31, %v9720_v15  ;;  %v7932_v21 = vrot.slane %v7895_v5, 4  ;;  %v7935_v29 = vsel %vm88_vm1, %v7895_v5, %v7934_v18  ;;  %v7849_v6 = vsel %vm88_vm1, %v7848_v52, %v12464_v60 }
0x2833   :  { %v7943_v62 = vperm.slane %v7935_v29, %v9733_v38  ;;  %v8256_v39 = vrot.slane %v12590_v55, 4  ;;  %v7855_v57 = vperm.slane %v7849_v6, %v9720_v15  ;;  %v7910_v47 = vrot.slane %v7859_v3, 4 }
0x2834   :  { %v7909_v40 = vsel %vm88_vm1, %v7908_v53, %v7859_v3  ;;  %v7920_v26 = vrot.slane %v7891_v35, 4  ;;  %v7923_v36 = vsel %vm88_vm1, %v7891_v35, %v7922_v8  ;;  %v7933_v60 = vsel %vm88_vm1, %v7932_v21, %v7883_v11 }
0x2835   :  { %v7915_v10 = vperm.slane %v7909_v40, %v9733_v38  ;;  %v7956_v41 = vrot.slane %v7943_v62, 4  ;;  %v7898_v18 = vrot.slane %v7855_v57, 4  ;;  %v7897_v44 = vsel %vm88_vm1, %v7896_v16, %v7855_v57 }
0x2836   :  { %v7911_v5 = vsel %vm88_vm1, %v12516_v24, %v7910_v47  ;;  %v7921_v28 = vsel %vm88_vm1, %v7920_v26, %v7879_v48  ;;  %v7903_v53 = vperm.slane %v7897_v44, %v9733_v38  ;;  %v7931_v37 = vperm.slane %v7923_v36, %v9733_v38 }
0x2837   :  { %v7919_v14 = vperm.slane %v7911_v5, %v9733_v38  ;;  %v7954_v52 = vrot.slane %v7915_v10, 4  ;;  %v7927_v8 = vperm.slane %v7921_v28, %v9733_v38  ;;  %v7899_v11 = vsel %vm88_vm1, %v12526_v42, %v7898_v18 }
0x2838   :  { %v7939_v31 = vperm.slane %v7933_v60, %v9733_v38  ;;  %v8232_v16 = vrot.slane %v8203_v2, 4  ;;  %v7907_v3 = vperm.slane %v7899_v11, %v9733_v38  ;;  %v7946_v24 = vrot.slane %v7903_v53, 4 }
0x2839   :  { %v7958_v35 = vrot.slane %v7919_v14, 4  ;;  %v7944_v48 = vrot.slane %v7927_v8, 4  ;;  %v7948_v21 = vrot.slane %v7931_v37, 4  ;;  %v12638_v57 = vsel %vm88_vm1, %v7956_v41, %v7919_v14 }
0x283a   :  { %v7952_v29 = vrot.slane %v7939_v31, 4  ;;  %v7955_v6 = vsel %vm88_vm1, %v7939_v31, %v7954_v52  ;;  %v7950_v47 = vrot.slane %v7907_v3, 4  ;;  %v8096_v40 = vrot.slane %v12638_v57, 4 }
0x283b   :  { %v7959_v42 = vsel %vm88_vm1, %v7943_v62, %v7958_v35  ;;  %v8110_v26 = vrot.slane %v7955_v6, 4  ;;  %v12643_v36 = vsel %vm88_vm1, %v7948_v21, %v7907_v3  ;;  %v8233_v44 = vsel %vm88_vm1, %v8232_v16, %v8191_v27 }
0x283c   :  { %v12646_v60 = vsel %vm88_vm1, %v7952_v29, %v7915_v10  ;;  %v8108_v18 = vrot.slane %v7959_v42, 4  ;;  %v12650_v5 = vsel %vm88_vm1, %v7931_v37, %v7950_v47  ;;  %v8239_v62 = vperm.slane %v8233_v44, %v9733_v38 }
0x283d   :  { %v8098_v41 = vrot.slane %v12646_v60, 4  ;;  %v12654_v28 = vsel %vm88_vm1, %v7959_v42, %v8110_v26  ;;  %v8084_v14 = vrot.slane %v12650_v5, 4  ;;  %v8257_v10 = vsel %vm88_vm1, %v8256_v39, %v12594_v23 }
0x283e   :  { %v8109_v52 = vsel %vm88_vm1, %v8108_v18, %v7955_v6  ;;  %v8234_v11 = vrot.slane %v8191_v27, 4  ;;  %v8263_v31 = vperm.slane %v8257_v10, %v9733_v38  ;;  %v8282_v16 = vrot.slane %v8239_v62, 4 }
0x283f   :  { %v8258_v37 = vrot.slane %v12594_v23, 4  ;;  %v7945_v3 = vsel %vm88_vm1, %v7944_v48, %v7903_v53  ;;  %v7947_v21 = vsel %vm88_vm1, %v7927_v8, %v7946_v24  ;;  %v8072_v29 = vrot.slane %v12643_v36, 4 }
0x2840   :  { %v8235_v35 = vsel %vm88_vm1, %v8203_v2, %v8234_v11  ;;  %v8097_v6 = vsel %vm88_vm1, %v8096_v40, %v12646_v60  ;;  %v8280_v47 = vrot.slane %v8263_v31, 4  ;;  %v8283_v39 = vsel %vm88_vm1, %v8263_v31, %v8282_v16 }
0x2841   :  { %v8243_v27 = vperm.slane %v8235_v35, %v9733_v38  ;;  %v8259_v42 = vsel %vm88_vm1, %v12590_v55, %v8258_v37  ;;  %9224 = vmatpush.xpose.msk.msra.mxu1 %vm422_vm2, %v8283_v39  ;;  %v8073_v2 = vsel %vm88_vm1, %v8072_v29, %v7945_v3  ;;  %v8085_v53 = vsel %vm88_vm1, %v8084_v14, %v7947_v21 }
0x2842   :  { %v8267_v23 = vperm.slane %v8259_v42, %v9733_v38  ;;  %v8103_v8 = vperm.slane %v8097_v6, %v9720_v15  ;;  %v8281_v24 = vsel %vm88_vm1, %v8280_v47, %v8239_v62  ;;  %v8079_v48 = vperm.slane %v8073_v2, %v9720_v15 }
0x2843   :  { %v8091_v40 = vperm.slane %v8085_v53, %v9720_v15  ;;  %v8115_v26 = vperm.slane %v8109_v52, %v9720_v15  ;;  %9221 = vmatpush.xpose.msk.msra.mxu0 %vm422_vm2, %v8281_v24  ;;  %v8286_v18 = vrot.slane %v8243_v27, 4  ;;  %v8187_v44 = vsel %vm88_vm1, %v12570_v50, %v8186_v34 }
0x2844   :  { %v8284_v55 = vrot.slane %v8267_v23, 4  ;;  %v8199_v62 = vsel %vm88_vm1, %v12557_v33, %v8198_v58  ;;  %v8195_v11 = vperm.slane %v8187_v44, %v9720_v15  ;;  %v8211_v50 = vsel %vm88_vm1, %v12563_v7, %v8210_v12 }
0x2845   :  { %v8120_v14 = vrot.slane %v8091_v40, 4  ;;  %v8144_v10 = vrot.slane %v8115_v26, 4  ;;  %v8207_v52 = vperm.slane %v8199_v62, %v9720_v15  ;;  %v8287_v16 = vsel %vm88_vm1, %v8267_v23, %v8286_v18 }
0x2846   :  { %v8285_v31 = vsel %vm88_vm1, %v8284_v55, %v8243_v27  ;;  %v8223_v33 = vsel %vm88_vm1, %v12548_v1, %v8222_v49  ;;  %v8219_v20 = vperm.slane %v8211_v50, %v9720_v15  ;;  %v8122_v12 = vrot.slane %v8079_v48, 4 }
0x2847   :  { %9227 = vmatpush.xpose.msk.msra.mxu2 %vm422_vm2, %v8285_v31  ;;  %v8121_v0 = vsel %vm88_vm1, %v8120_v14, %v8079_v48  ;;  %v8145_v58 = vsel %vm88_vm1, %v8144_v10, %v8103_v8  ;;  %v8231_v34 = vperm.slane %v8223_v33, %v9720_v15  ;;  %v8244_v7 = vrot.slane %v8207_v52, 4 }
0x2848   :  { %v8127_v45 = vperm.slane %v8121_v0, %v9733_v38  ;;  %v8151_v37 = vperm.slane %v8145_v58, %v9733_v38  ;;  %v8146_v35 = vrot.slane %v8103_v8, 4  ;;  %v8074_v29 = vrot.slane %v7945_v3, 4 }
0x2849   :  { %v8268_v54 = vrot.slane %v8231_v34, 4  ;;  %v8086_v1 = vrot.slane %v7947_v21, 4  ;;  %v8245_v47 = vsel %vm88_vm1, %v8244_v7, %v8195_v11  ;;  %v8123_v39 = vsel %vm88_vm1, %v8091_v40, %v8122_v12 }
0x284a   :  { %v8168_v49 = vrot.slane %v8151_v37, 4  ;;  %v8170_v6 = vrot.slane %v8127_v45, 4  ;;  %v8251_v27 = vperm.slane %v8245_v47, %v9733_v38  ;;  %v8131_v23 = vperm.slane %v8123_v39, %v9733_v38 }
0x284b   :  { %v8269_v42 = vsel %vm88_vm1, %v8268_v54, %v8219_v20  ;;  %v8147_v2 = vsel %vm88_vm1, %v8115_v26, %v8146_v35  ;;  %v8075_v24 = vsel %vm88_vm1, %v12643_v36, %v8074_v29  ;;  %v8087_v48 = vsel %vm88_vm1, %v12650_v5, %v8086_v1 }
0x284c   :  { %v8169_v53 = vsel %vm88_vm1, %v8168_v49, %v8127_v45  ;;  %v8171_v8 = vsel %vm88_vm1, %v8151_v37, %v8170_v6  ;;  %v8275_v3 = vperm.slane %v8269_v42, %v9733_v38  ;;  %v8155_v21 = vperm.slane %v8147_v2, %v9733_v38 }
0x284d   :  { %9222 = vmatpush.xpose.msk.msra.mxu0 %vm422_vm2, %v8169_v53  ;;  %9225 = vmatpush.xpose.msk.msra.mxu1 %vm422_vm2, %v8171_v8  ;;  %v8099_v40 = vsel %vm88_vm1, %v12638_v57, %v8098_v41  ;;  %v8290_v26 = vrot.slane %v8251_v27, 4  ;;  %v8083_v44 = vperm.slane %v8075_v24, %v9720_v15  ;;  %v8095_v62 = vperm.slane %v8087_v48, %v9720_v15 }
0x284e   :  { %v8288_v55 = vrot.slane %v8275_v3, 4  ;;  %v8172_v18 = vrot.slane %v8155_v21, 4  ;;  %v8107_v14 = vperm.slane %v8099_v40, %v9720_v15  ;;  %v8119_v36 = vperm.slane %v12654_v28, %v9720_v15 }
0x284f   :  { %v8291_v5 = vsel %vm88_vm1, %v8275_v3, %v8290_v26  ;;  %v8246_v60 = vrot.slane %v8195_v11, 4  ;;  %v8132_v41 = vrot.slane %v8095_v62, 4  ;;  %v8270_v31 = vrot.slane %v8219_v20, 4 }
0x2850   :  { %v8289_v10 = vsel %vm88_vm1, %v8288_v55, %v8251_v27  ;;  %v8173_v57 = vsel %vm88_vm1, %v8172_v18, %v8131_v23  ;;  %v8174_v33 = vrot.slane %v8131_v23, 4  ;;  %v8134_v0 = vrot.slane %v8083_v44, 4 }
0x2851   :  { %9230 = vmatpush.xpose.msk.msrb.mxu0 %vm422_vm2, %v8287_v16  ;;  %8525 = vmatpush.msrb.mxu1 %v8289_v10  ;;  %v8156_v16 = vrot.slane %v8119_v36, 4  ;;  %v8247_v50 = vsel %vm88_vm1, %v8207_v52, %v8246_v60  ;;  %v8133_v58 = vsel %vm88_vm1, %v8132_v41, %v8083_v44  ;;  %v8271_v11 = vsel %vm88_vm1, %v8231_v34, %v8270_v31 }
0x2852   :  { %9228 = vmatpush.xpose.msk.msra.mxu2 %vm422_vm2, %v8173_v57  ;;  %v8255_v28 = vperm.slane %v8247_v50, %v9733_v38  ;;  %v8158_v45 = vrot.slane %v8107_v14, 4  ;;  %v8139_v37 = vperm.slane %v8133_v58, %v9733_v38  ;;  %v8279_v7 = vperm.slane %v8271_v11, %v9733_v38 }
0x2853   :  { %v8157_v20 = vsel %vm88_vm1, %v8156_v16, %v8107_v14  ;;  %v8175_v12 = vsel %vm88_vm1, %v8155_v21, %v8174_v33  ;;  %v8135_v54 = vsel %vm88_vm1, %v8095_v62, %v8134_v0  ;;  %v9445_v21 = vld [vmem:[%s13105_s3 + $0x12] ss:$0 sm:$0xff] }
0x2854   :  { %v8163_v52 = vperm.slane %v8157_v20, %v9733_v38  ;;  %v8159_v35 = vsel %vm88_vm1, %v8119_v36, %v8158_v45  ;;  %v8292_v29 = vrot.slane %v8279_v7, 4  ;;  %v8178_v1 = vrot.slane %v8139_v37, 4 }
0x2855   :  { %9231 = vmatpush.xpose.msk.msrb.mxu0 %vm422_vm2, %v8175_v12  ;;  %v8143_v34 = vperm.slane %v8135_v54, %v9733_v38  ;;  %v8167_v49 = vperm.slane %v8159_v35, %v9733_v38  ;;  %v8294_v8 = vrot.slane %v8255_v28, 4 }
0x2856   :  { %8548 = vmatpush.msrb.mxu2 %v8291_v5  ;;  %v8176_v6 = vrot.slane %v8163_v52, 4  ;;  %v8293_v47 = vsel %vm88_vm1, %v8292_v29, %v8255_v28  ;;  %v8179_v39 = vsel %vm88_vm1, %v8163_v52, %v8178_v1 }
0x2857   :  { %v8180_v27 = vrot.slane %v8167_v49, 4  ;;  %8571 = vmatpush.msrb.mxu3 %v8293_v47  ;;  %v8182_v2 = vrot.slane %v8143_v34, 4  ;;  %v12762_v3 = vsel %vm88_vm1, %v8279_v7, %v8294_v8 }
0x2858   :  { %v8177_v42 = vsel %vm88_vm1, %v8176_v6, %v8139_v37  ;;  %8549 = vmatpush.msrb.mxu2 %v8179_v39 }
0x2859   :  { %8526 = vmatpush.msrb.mxu1 %v8177_v42  ;;  %v8181_v23 = vsel %vm88_vm1, %v8180_v27, %v8143_v34  ;;  %v12759_v53 = vsel %vm88_vm1, %v8167_v49, %v8182_v2 }
0x285a   :  { %8572 = vmatpush.msrb.mxu3 %v8181_v23 }
0x28a5   :  { %v7640_v24 = vpop.f32.mrf.mxu2 }
0x28a6   :  { %v7641_v48 = vadd.f32 %v9445_v21, %v7640_v24 }
0x28a8   :  { %7691 = vrot.lane.b32.xlu0 %v7641_v48, %s9620_s7  ;;  %7688 = vrot.lane.b32.xlu1 %v7641_v48, %s9619_s6  ;;  %v7696_v55 = vrot.slane %v7641_v48, 4 }
0x28a9   :  { %7685 = vrot.lane.b32.xlu2 %v7641_v48, %s9623_s10 }
0x2903   :  { %v7686_v40 = vpop.permute.xlu2 %7685 }
0x2904   :  { %v7708_v26 = vrot.slane %v7686_v40, 4 }
0x291a   :  { %v7689_v18 = vpop.permute.xlu1 %7688  ;;  %v7692_v44 = vpop.permute.xlu0 %7691 }
0x291b   :  { %v7694_v62 = vrot.slane %v7689_v18, 4  ;;  %v7697_v14 = vsel %vm88_vm1, %v7689_v18, %v7696_v55  ;;  %v7706_v36 = vrot.slane %v7692_v44, 4  ;;  %v7709_v5 = vsel %vm88_vm1, %v7692_v44, %v7708_v26 }
0x291c   :  { %v7705_v60 = vperm.slane %v7697_v14, %v9720_v15  ;;  %v7717_v10 = vperm.slane %v7709_v5, %v9720_v15 }
0x291d   :  { %v7695_v57 = vsel %vm88_vm1, %v7694_v62, %v7641_v48  ;;  %v7707_v41 = vsel %vm88_vm1, %v7706_v36, %v7686_v40 }
0x291e   :  { %v7701_v31 = vperm.slane %v7695_v57, %v9720_v15  ;;  %v7732_v16 = vrot.slane %v7705_v60, 4  ;;  %v7713_v50 = vperm.slane %v7707_v41, %v9720_v15  ;;  %v7730_v33 = vrot.slane %v7717_v10, 4 }
0x2920   :  { %v7720_v0 = vrot.slane %v7701_v31, 4  ;;  %v7718_v58 = vrot.slane %v7713_v50, 4  ;;  %v7731_v28 = vsel %vm88_vm1, %v7730_v33, %v7705_v60  ;;  %v7733_v11 = vsel %vm88_vm1, %v7717_v10, %v7732_v16 }
0x2921   :  { %v7737_v45 = vperm.slane %v7731_v28, %v9733_v38  ;;  %v7741_v37 = vperm.slane %v7733_v11, %v9733_v38 }
0x2922   :  { %v7719_v20 = vsel %vm88_vm1, %v7718_v58, %v7701_v31  ;;  %v7721_v7 = vsel %vm88_vm1, %v7713_v50, %v7720_v0 }
0x2923   :  { %v7725_v12 = vperm.slane %v7719_v20, %v9733_v38  ;;  %v7729_v52 = vperm.slane %v7721_v7, %v9733_v38  ;;  %v7746_v54 = vrot.slane %v7737_v45, 4  ;;  %v7748_v35 = vrot.slane %v7741_v37, 4 }
0x2925   :  { %v7742_v29 = vrot.slane %v7725_v12, 4  ;;  %v7744_v1 = vrot.slane %v7729_v52, 4  ;;  %v7749_v34 = vsel %vm88_vm1, 0.0, %v7748_v35  ;;  %v7761_v49 = vsel %vm88_vm1, %v7748_v35, %v7737_v45 }
0x2926   :  { %v7766_v6 = vrot.slane %v7749_v34, 4  ;;  %v7747_v39 = vsel %vm88_vm1, 0.0, %v7746_v54  ;;  %v7765_v42 = vperm.slane %v7761_v49, %v9720_v15 }
0x2927   :  { %v7745_v47 = vsel %vm88_vm1, 0.0, %v7744_v1  ;;  %v7750_v27 = vsel %vm88_vm1, %v7744_v1, %v7725_v12  ;;  %v7743_v21 = vsel %vm88_vm1, 0.0, %v7742_v29 }
0x2928   :  { %v7755_v23 = vrot.slane %v7745_v47, 4  ;;  %v7767_v2 = vsel %vm88_vm1, %v7766_v6, %v7747_v39  ;;  %v7754_v8 = vperm.slane %v7750_v27, %v9720_v15  ;;  %v7786_v48 = vrot.slane %v7765_v42, 4 }
0x2929   :  { %v7771_v24 = vperm.slane %v7767_v2, %v9720_v15 }
0x292a   :  { %v7756_v40 = vsel %vm88_vm1, %v7755_v23, %v7743_v21  ;;  %v7774_v26 = vrot.slane %v7754_v8, 4 }
0x292b   :  { %v7760_v55 = vperm.slane %v7756_v40, %v9720_v15  ;;  %v7787_v18 = vsel %vm88_vm1, %v7771_v24, %v7786_v48  ;;  %v7784_v44 = vrot.slane %v7771_v24, 4 }
0x292c   :  { %v7795_v62 = vperm.slane %v7787_v18, %v9733_v38 }
0x292d   :  { %v7775_v14 = vsel %vm88_vm1, %v7760_v55, %v7774_v26  ;;  %v7772_v36 = vrot.slane %v7760_v55, 4  ;;  %v7785_v5 = vsel %vm88_vm1, %v7784_v44, %v7765_v42 }
0x292e   :  { %v7783_v60 = vperm.slane %v7775_v14, %v9733_v38  ;;  %v7800_v10 = vrot.slane %v7795_v62, 4  ;;  %v7791_v57 = vperm.slane %v7785_v5, %v9733_v38 }
0x292f   :  { %v7773_v41 = vsel %vm88_vm1, %v7772_v36, %v7754_v8 }
0x2930   :  { %v7801_v31 = vsel %vm88_vm1, %v7800_v10, %v7783_v60  ;;  %v7779_v16 = vperm.slane %v7773_v41, %v9733_v38  ;;  %v7796_v50 = vrot.slane %v7791_v57, 4  ;;  %v7802_v28 = vrot.slane %v7783_v60, 4 }
0x2931   :  { %9229 = vmatmul.msk.f32.vlgmr.msra.gmra.mxu2 %vm422_vm2, %v7801_v31 }
0x2932   :  { %v7797_v33 = vsel %vm88_vm1, %v7796_v50, %v7779_v16  ;;  %v7798_v0 = vrot.slane %v7779_v16, 4  ;;  %v7803_v11 = vsel %vm88_vm1, %v7795_v62, %v7802_v28 }
0x2933   :  { %9223 = vmatmul.msk.f32.vlgmr.msra.gmra.mxu0 %vm422_vm2, %v7797_v33 }
0x2934   :  { %8594 = vmatpush.msra.mxu0 %v12762_v3  ;;  %v7799_v58 = vsel %vm88_vm1, %v7791_v57, %v7798_v0 }
0x2935   :  { %9226 = vmatmul.msk.f32.vlgmr.msra.gmra.mxu1 %vm422_vm2, %v7799_v58 }
0x2936   :  { %8595 = vmatpush.msra.mxu0 %v12759_v53 }
0x293b   :  { %9232 = vmatmul.msk.f32.vlgmr.msrb.gmra.mxu0 %vm422_vm2, %v7803_v11 }
0x29b0   :  { %v8322_v45 = vpop.f32.mrf.mxu0 }
0x29b1   :  { %v8412_v37 = vsel %vm786_vm3, %v8322_v45, -inf }
0x29b2   :  { %v8351_v20 = vpop.f32.mrf.mxu1  ;;  %8413 = vmax.xlane.f32.xlu0 %v8412_v37 }
0x29b3   :  { %v8415_v7 = vsel %vm786_vm3, %v8351_v20, -inf }
0x29b4   :  { %v8380_v12 = vpop.f32.mrf.mxu2  ;;  %8416 = vmax.xlane.f32.xlu1 %v8415_v7 }
0x29b5   :  { %v8418_v3 = vsel %vm786_vm3, %v8380_v12, -inf }
0x29b6   :  { %8419 = vmax.xlane.f32.xlu2 %v8418_v3 }
0x29b8   :  { %v8409_v52 = vpop.f32.mrf.mxu0 }
0x29b9   :  { %v8421_v53 = vsel %vm786_vm3, %v8409_v52, -inf }
0x29be   :  { %8422 = vmax.xlane.f32.xlu2 %v8421_v53 }
0x2a25   :  { %v8414_v54 = vpop.xlane.xlu0 %8413 }
0x2a26   :  { %v8424_v35 = vsub.f32 %v8322_v45, %v8414_v54 }
0x2a27   :  { %v8417_v29 = vpop.xlane.xlu1 %8416 }
0x2a28   :  { %v8428_v1 = vmul.f32 1.442695, %v8424_v35  ;;  %v8425_v34 = vsub.f32 %v8351_v20, %v8417_v29 }
0x2a29   :  { %v8420_v49 = vpop.xlane.xlu2 %8419 }
0x2a2a   :  { %9587 = vpow2.f32 %v8428_v1  ;;  %v8430_v6 = vmul.f32 1.442695, %v8425_v34  ;;  %v8426_v47 = vsub.f32 %v8380_v12, %v8420_v49 }
0x2a2c   :  { %9589 = vpow2.f32 %v8430_v6  ;;  %v8432_v39 = vmul.f32 1.442695, %v8426_v47 }
0x2a2e   :  { %9591 = vpow2.f32 %v8432_v39 }
0x2a30   :  { %v9588_v27 = vpop.eup %9587 }
0x2a31   :  { %v8423_v42 = vpop.xlane.xlu2 %8422  ;;  %v8436_v23 = vsel %vm786_vm3, %v9588_v27, 0.0 }
0x2a32   :  { %v12821_v2 = vpop.eup %9589  ;;  %v8427_v8 = vsub.f32 %v8409_v52, %v8423_v42  ;;  %8437 = vadd.xlane.f32.xlu0 %v8436_v23 }
0x2a33   :  { %v8439_v21 = vsel %vm786_vm3, %v12821_v2, 0.0 }
0x2a34   :  { %v12825_v24 = vpop.eup %9591  ;;  %v8434_v48 = vmul.f32 1.442695, %v8427_v8  ;;  %8440 = vadd.xlane.f32.xlu2 %v8439_v21 }
0x2a35   :  { %v8442_v40 = vsel %vm786_vm3, %v12825_v24, 0.0 }
0x2a36   :  { %9593 = vpow2.f32 %v8434_v48  ;;  %8443 = vadd.xlane.f32.xlu1 %v8442_v40 }
0x2a3c   :  { %v12829_v26 = vpop.eup %9593 }
0x2a3d   :  { %v8445_v55 = vsel %vm786_vm3, %v12829_v26, 0.0 }
0x2a3e   :  { %8446 = vadd.xlane.f32.xlu1 %v8445_v55 }
0x2aa5   :  { %v8438_v18 = vpop.xlane.xlu0 %8437 }
0x2aa6   :  { %9595 = vrcp.f32 %v8438_v18  ;;  %v8457_v60 = vand.u32 2147483647, %v8438_v18  ;;  %vm8453_vm10 = vweird.f32 %v8438_v18  ;;  %v8459_v31 = vand.u32 2147483648, %v8438_v18 }
0x2aa7   :  { %v8441_v44 = vpop.xlane.xlu2 %8440 }
0x2aa8   :  { %9597 = vrcp.f32 %v8441_v44  ;;  %vm12833_vm12 = vcmp.eq.f32.partialorder %v8457_v60, 8.507059e+37  ;;  %v8472_v28 = vand.u32 2147483647, %v8441_v44  ;;  %v8474_v11 = vand.u32 2147483648, %v8441_v44 }
0x2aa9   :  { %v8444_v62 = vpop.xlane.xlu1 %8443  ;;  %v8460_v7 = vor.u32 1.1754944e-38, %v8459_v31  ;;  %vm8468_vm15 = vweird.f32 %v8441_v44 }
0x2aaa   :  { %9599 = vrcp.f32 %v8444_v62  ;;  %v8487_v12 = vand.u32 2147483647, %v8444_v62  ;;  %v8489_v3 = vand.u32 2147483648, %v8444_v62  ;;  %v8475_v29 = vor.u32 1.1754944e-38, %v8474_v11 }
0x2aab   :  { %vm8483_vm8 = vweird.f32 %v8444_v62  ;;  %vm8473_vm9 = vcmp.eq.f32.partialorder %v8472_v28, 8.507059e+37 }
0x2aac   :  { %v9596_v14 = vpop.eup %9595  ;;  %v8490_v39 = vor.u32 1.1754944e-38, %v8489_v3 }
0x2aad   :  { %v8449_v36 = vmul.f32 %v9596_v14, %v8438_v18  ;;  %vm8454_vm11 = vweird.f32 %v9596_v14 }
0x2aae   :  { %v9598_v5 = vpop.eup %9597  ;;  %vm8455_vm14 = vmor %vm8453_vm10, %vm8454_vm11  ;;  %vm8488_vm11 = vcmp.eq.f32.partialorder %v8487_v12, 8.507059e+37 }
0x2aaf   :  { %v8450_v10 = vsub.f32 1.0, %v8449_v36  ;;  %v8464_v57 = vmul.f32 %v9598_v5, %v8441_v44  ;;  %vm8469_vm13 = vweird.f32 %v9598_v5 }
0x2ab0   :  { %v9600_v41 = vpop.eup %9599  ;;  %vm8470_vm7 = vmor %vm8468_vm15, %vm8469_vm13 }
0x2ab1   :  { %v8451_v16 = vmul.f32 %v9596_v14, %v8450_v10  ;;  %v8465_v50 = vsub.f32 1.0, %v8464_v57  ;;  %v8479_v33 = vmul.f32 %v9600_v41, %v8444_v62  ;;  %v8447_v0 = vpop.xlane.xlu1 %8446  ;;  %vm8484_vm5 = vweird.f32 %v9600_v41 }
0x2ab2   :  { %9601 = vrcp.f32 %v8447_v0  ;;  %vm8485_vm10 = vmor %vm8483_vm8, %vm8484_vm5  ;;  %v8502_v18 = vand.u32 2147483647, %v8447_v0  ;;  %v8504_v44 = vand.u32 2147483648, %v8447_v0  ;;  %vm8498_vm13 = vweird.f32 %v8447_v0 }
0x2ab3   :  { %v8452_v45 = vadd.f32 %v9596_v14, %v8451_v16  ;;  %v8466_v37 = vmul.f32 %v9598_v5, %v8465_v50  ;;  %v8480_v20 = vsub.f32 1.0, %v8479_v33 }
0x2ab4   :  { %vm8503_vm15 = vcmp.eq.f32.partialorder %v8502_v18, 8.507059e+37 }
0x2ab5   :  { %v8456_v52 = vsel %vm8455_vm14, %v9596_v14, %v8452_v45  ;;  %v8467_v53 = vadd.f32 %v9598_v5, %v8466_v37  ;;  %v8481_v54 = vmul.f32 %v9600_v41, %v8480_v20 }
0x2ab6   :  { %v8461_v35 = vsel %vm12833_vm12, %v8460_v7, %v8456_v52 }
0x2ab7   :  { %v8471_v1 = vsel %vm8470_vm7, %v9598_v5, %v8467_v53  ;;  %v8482_v34 = vadd.f32 %v9600_v41, %v8481_v54  ;;  %v8462_v49 = vmul.f32 %v9588_v27, %v8461_v35 }
0x2ab8   :  { %v9602_v6 = vpop.eup %9601  ;;  %v8476_v47 = vsel %vm8473_vm9, %v8475_v29, %v8471_v1  ;;  %vm2186_vm9 = vcmask 392192  }
0x2ab9   :  { %v8486_v42 = vsel %vm8485_vm10, %v9600_v41, %v8482_v34  ;;  %v8494_v23 = vmul.f32 %v9602_v6, %v8447_v0  ;;  %9233 = vmatmul.msk.f32.vlgmr.msrb.gmra.mxu1 %vm786_vm3, %v8462_v49  ;;  %v8477_v21 = vmul.f32 %v12821_v2, %v8476_v47  ;;  %v8801_v40 = vrot.slane %v8462_v49, 4 }
0x2aba   :  { %v8491_v8 = vsel %vm8488_vm11, %v8490_v39, %v8486_v42  ;;  %vm8499_vm12 = vweird.f32 %v9602_v6  ;;  %v8505_v2 = vor.u32 1.1754944e-38, %v8504_v44 }
0x2abb   :  { %v8495_v48 = vsub.f32 1.0, %v8494_v23  ;;  %v8492_v55 = vmul.f32 %v12825_v24, %v8491_v8  ;;  %9234 = vmatmul.msk.f32.vlgmr.msrb.gmra.mxu2 %vm786_vm3, %v8477_v21  ;;  %vm8500_vm14 = vmor %vm8498_vm13, %vm8499_vm12  ;;  %v8813_v57 = vrot.slane %v8477_v21, 4 }
0x2abd   :  { %v8496_v27 = vmul.f32 %v9602_v6, %v8495_v48  ;;  %9235 = vmatmul.msk.f32.vlgmr.msrb.gmra.mxu3 %vm786_vm3, %v8492_v55  ;;  %v8799_v62 = vrot.slane %v8492_v55, 4  ;;  %v8802_v14 = vsel %vm88_vm1, %v8492_v55, %v8801_v40 }
0x2abe   :  { %v8810_v10 = vperm.slane %v8802_v14, %v9720_v15 }
0x2abf   :  { %v8497_v36 = vadd.f32 %v9602_v6, %v8496_v27  ;;  %v8800_v5 = vsel %vm88_vm1, %v8799_v62, %v8462_v49 }
0x2ac0   :  { %v8806_v31 = vperm.slane %v8800_v5, %v9720_v15  ;;  %v8837_v33 = vrot.slane %v8810_v10, 4 }
0x2ac1   :  { %v8501_v60 = vsel %vm8500_vm14, %v9602_v6, %v8497_v36 }
0x2ac2   :  { %v8506_v24 = vsel %vm8503_vm15, %v8505_v2, %v8501_v60  ;;  %v8825_v28 = vrot.slane %v8806_v31, 4 }
0x2ac3   :  { %v8507_v41 = vmul.f32 %v12829_v26, %v8506_v24 }
0x2ac5   :  { %9236 = vmatmul.msk.f32.vlgmr.msra.gmra.mxu0 %vm786_vm3, %v8507_v41  ;;  %v8811_v16 = vrot.slane %v8507_v41, 4  ;;  %v8814_v50 = vsel %vm88_vm1, %v8507_v41, %v8813_v57 }
0x2ac6   :  { %v8822_v0 = vperm.slane %v8814_v50, %v9720_v15 }
0x2ac7   :  { %v8812_v58 = vsel %vm88_vm1, %v8811_v16, %v8477_v21 }
0x2ac8   :  { %v8818_v11 = vperm.slane %v8812_v58, %v9720_v15  ;;  %v8835_v45 = vrot.slane %v8822_v0, 4  ;;  %v8838_v37 = vsel %vm88_vm1, %v8822_v0, %v8837_v33 }
0x2ac9   :  { %v8846_v26 = vperm.slane %v8838_v37, %v9733_v38 }
0x2aca   :  { %v8823_v20 = vrot.slane %v8818_v11, 4  ;;  %v8826_v7 = vsel %vm88_vm1, %v8818_v11, %v8825_v28  ;;  %v8836_v12 = vsel %vm88_vm1, %v8835_v45, %v8810_v10 }
0x2acb   :  { %v8834_v3 = vperm.slane %v8826_v7, %v9733_v38  ;;  %v8842_v52 = vperm.slane %v8836_v12, %v9733_v38  ;;  %v8853_v53 = vrot.slane %v8846_v26, 4  ;;  %v9239_v26 = vld [vmem:[%s13103_s1 + $0x98] sm:$0xff]  ;;  %v9237_v12 = vld [vmem:[%s13103_s1 + $0x68] sm:$0xff] }
0x2acc   :  { %v8824_v54 = vsel %vm88_vm1, %v8823_v20, %v8806_v31  ;;  %v9240_v20 = vld [vmem:[%s13103_s1 + $0xb0] sm:$0xff] }
0x2acd   :  { %v8830_v35 = vperm.slane %v8824_v54, %v9733_v38  ;;  %v8849_v29 = vrot.slane %v8834_v3, 4  ;;  %v8851_v1 = vrot.slane %v8842_v52, 4  ;;  %v8854_v34 = vsel %vm88_vm1, 0.0, %v8853_v53  ;;  %v9238_v3 = vld [vmem:[%s13103_s1 + $0x80] sm:$0xff] }
0x2ace   :  { %v8866_v49 = vsel %vm88_vm1, %v8853_v53, %v8842_v52  ;;  %v8871_v6 = vrot.slane %v8854_v34, 4  ;;  %v9393_v7 = vpack.i.bf16 %v9239_v26, %v9240_v20  ;;  %v9398_v53 = vpack.i.bf16 %v9237_v12, %v9238_v3 }
0x2acf   :  { %v8847_v47 = vrot.slane %v8830_v35, 4  ;;  %v8850_v39 = vsel %vm88_vm1, 0.0, %v8849_v29  ;;  %v8852_v42 = vsel %vm88_vm1, 0.0, %v8851_v1  ;;  %v8855_v23 = vsel %vm88_vm1, %v8849_v29, %v8830_v35 }
0x2ad0   :  { %v8859_v8 = vperm.slane %v8855_v23, %v9720_v15  ;;  %v8860_v21 = vrot.slane %v8850_v39, 4  ;;  %v8870_v48 = vperm.slane %v8866_v49, %v9720_v15  ;;  %v8872_v40 = vsel %vm88_vm1, %v8871_v6, %v8852_v42  ;;  %9394 = vrot.lane.b32.xlu2 %v9393_v7, %s9631_s18  ;;  %9399 = vrot.lane.b32.xlu1 %v9398_v53, %s9631_s18 }
0x2ad1   :  { %v8848_v55 = vsel %vm88_vm1, 0.0, %v8847_v47  ;;  %v8876_v18 = vperm.slane %v8872_v40, %v9720_v15 }
0x2ad2   :  { %v8861_v44 = vsel %vm88_vm1, %v8860_v21, %v8848_v55  ;;  %v8879_v27 = vrot.slane %v8859_v8, 4  ;;  %v8891_v62 = vrot.slane %v8870_v48, 4 }
0x2ad3   :  { %v8865_v14 = vperm.slane %v8861_v44, %v9720_v15  ;;  %v8889_v36 = vrot.slane %v8876_v18, 4 }
0x2ad4   :  { %v8892_v5 = vsel %vm88_vm1, %v8876_v18, %v8891_v62 }
0x2ad5   :  { %v8877_v2 = vrot.slane %v8865_v14, 4  ;;  %v8890_v60 = vsel %vm88_vm1, %v8889_v36, %v8870_v48  ;;  %v8880_v24 = vsel %vm88_vm1, %v8865_v14, %v8879_v27  ;;  %v8900_v10 = vperm.slane %v8892_v5, %v9733_v38 }
0x2ad6   :  { %v8896_v57 = vperm.slane %v8890_v60, %v9733_v38  ;;  %v8888_v41 = vperm.slane %v8880_v24, %v9733_v38 }
0x2ad7   :  { %v8878_v31 = vsel %vm88_vm1, %v8877_v2, %v8859_v8  ;;  %v8905_v16 = vrot.slane %v8900_v10, 4 }
0x2ad8   :  { %v8884_v50 = vperm.slane %v8878_v31, %v9733_v38  ;;  %v8901_v33 = vrot.slane %v8896_v57, 4  ;;  %v8907_v0 = vrot.slane %v8888_v41, 4 }
0x2ad9   :  { %v12884_v58 = vsel %vm88_vm1, %v8905_v16, %v8888_v41 }
0x2ada   :  { %v8903_v28 = vrot.slane %v8884_v50, 4  ;;  %v12887_v11 = vsel %vm88_vm1, %v8901_v33, %v8884_v50  ;;  %v12890_v45 = vsel %vm88_vm1, %v8900_v10, %v8907_v0 }
0x2adc   :  { %v12893_v37 = vsel %vm88_vm1, %v8896_v57, %v8903_v28 }
0x2b36   :  { %v8528_v52 = vpop.f32.mrf.mxu1 }
0x2b37   :  { %v8602_v54 = vrot.slane %v8528_v52, 4 }
0x2b3e   :  { %v8551_v35 = vpop.f32.mrf.mxu2 }
0x2b3f   :  { %v8614_v1 = vrot.slane %v8551_v35, 4 }
0x2b40   :  { %v8574_v29 = vpop.f32.mrf.mxu3 }
0x2b41   :  { %v8600_v34 = vrot.slane %v8574_v29, 4  ;;  %v8603_v49 = vsel %vm88_vm1, %v8574_v29, %v8602_v54 }
0x2b42   :  { %v8611_v6 = vperm.slane %v8603_v49, %v9720_v15  ;;  %v8597_v47 = vpop.f32.mrf.mxu0 }
0x2b43   :  { %v8601_v39 = vsel %vm88_vm1, %v8600_v34, %v8528_v52  ;;  %v8612_v42 = vrot.slane %v8597_v47, 4  ;;  %v8615_v23 = vsel %vm88_vm1, %v8597_v47, %v8614_v1 }
0x2b44   :  { %v8607_v8 = vperm.slane %v8601_v39, %v9720_v15  ;;  %v8638_v21 = vrot.slane %v8611_v6, 4  ;;  %v8623_v48 = vperm.slane %v8615_v23, %v9720_v15 }
0x2b45   :  { %v8613_v40 = vsel %vm88_vm1, %v8612_v42, %v8551_v35 }
0x2b46   :  { %v8626_v55 = vrot.slane %v8607_v8, 4  ;;  %v8619_v18 = vperm.slane %v8613_v40, %v9720_v15  ;;  %v8636_v44 = vrot.slane %v8623_v48, 4  ;;  %v8639_v27 = vsel %vm88_vm1, %v8623_v48, %v8638_v21 }
0x2b47   :  { %v8647_v62 = vperm.slane %v8639_v27, %v9733_v38 }
0x2b48   :  { %v8624_v14 = vrot.slane %v8619_v18, 4  ;;  %v8627_v36 = vsel %vm88_vm1, %v8619_v18, %v8626_v55  ;;  %v8637_v5 = vsel %vm88_vm1, %v8636_v44, %v8611_v6 }
0x2b49   :  { %v8635_v2 = vperm.slane %v8627_v36, %v9733_v38  ;;  %v8643_v60 = vperm.slane %v8637_v5, %v9733_v38  ;;  %v8654_v24 = vrot.slane %v8647_v62, 4 }
0x2b4a   :  { %v8625_v10 = vsel %vm88_vm1, %v8624_v14, %v8607_v8 }
0x2b4b   :  { %v8631_v57 = vperm.slane %v8625_v10, %v9733_v38  ;;  %v8650_v41 = vrot.slane %v8635_v2, 4  ;;  %v8652_v31 = vrot.slane %v8643_v60, 4  ;;  %v8655_v16 = vsel %vm88_vm1, 0.0, %v8654_v24 }
0x2b4c   :  { %v8667_v50 = vsel %vm88_vm1, %v8654_v24, %v8643_v60  ;;  %v8672_v33 = vrot.slane %v8655_v16, 4  ;;  %v9395_v24 = vpop.permute.xlu2 %9394 }
0x2b4d   :  { %v8648_v0 = vrot.slane %v8631_v57, 4  ;;  %v8651_v28 = vsel %vm88_vm1, 0.0, %v8650_v41  ;;  %v8653_v26 = vsel %vm88_vm1, 0.0, %v8652_v31  ;;  %v8656_v20 = vsel %vm88_vm1, %v8650_v41, %v8631_v57  ;;  %v9400_v41 = vpop.permute.xlu1 %9399 }
0x2b4e   :  { %v8661_v7 = vrot.slane %v8651_v28, 4  ;;  %v8671_v12 = vperm.slane %v8667_v50, %v9720_v15  ;;  %v8660_v3 = vperm.slane %v8656_v20, %v9720_v15  ;;  %v8673_v52 = vsel %vm88_vm1, %v8672_v33, %v8653_v26 }
0x2b4f   :  { %v8649_v53 = vsel %vm88_vm1, 0.0, %v8648_v0  ;;  %v8677_v54 = vperm.slane %v8673_v52, %v9720_v15  ;;  %v9397_v10 = vunpack.i.h.bf16 %v9395_v24  ;;  %v9396_v57 = vunpack.i.l.bf16 %v9395_v24  ;;  %v9446_v52 = vld [vmem:[%s13105_s3 + $0x14] ss:$0 sm:$0xff]  ;;  %v9255_v24 = vld [vmem:[%s13106_s2 + $0x60] sm:$0xff] }
0x2b50   :  { %v8662_v35 = vsel %vm88_vm1, %v8661_v7, %v8649_v53  ;;  %v8680_v29 = vrot.slane %v8660_v3, 4  ;;  %v8692_v1 = vrot.slane %v8671_v12, 4  ;;  %v9402_v31 = vunpack.i.h.bf16 %v9400_v41 }
0x2b51   :  { %v8666_v34 = vperm.slane %v8662_v35, %v9720_v15  ;;  %v8690_v49 = vrot.slane %v8677_v54, 4  ;;  %8762 = vmatpush.msra.mxu1 %v9396_v57  ;;  %v9401_v16 = vunpack.i.l.bf16 %v9400_v41 }
0x2b52   :  { %v8693_v47 = vsel %vm88_vm1, %v8677_v54, %v8692_v1 }
0x2b53   :  { %v8681_v6 = vsel %vm88_vm1, %v8666_v34, %v8680_v29  ;;  %v8678_v39 = vrot.slane %v8666_v34, 4  ;;  %v8691_v42 = vsel %vm88_vm1, %v8690_v49, %v8671_v12  ;;  %v8701_v48 = vperm.slane %v8693_v47, %v9733_v38  ;;  %8763 = vmatpush.msra.mxu1 %v9397_v10  ;;  %v9254_v10 = vld [vmem:[%s13106_s2 + $0x58] sm:$0xff] }
0x2b54   :  { %v8689_v23 = vperm.slane %v8681_v6, %v9733_v38  ;;  %v8697_v8 = vperm.slane %v8691_v42, %v9733_v38 }
0x2b55   :  { %v8679_v21 = vsel %vm88_vm1, %v8678_v39, %v8660_v3  ;;  %v8706_v14 = vrot.slane %v8701_v48, 4  ;;  %8764 = vmatpush.msra.mxu1 %v9401_v16 }
0x2b56   :  { %v8708_v40 = vrot.slane %v8689_v23, 4  ;;  %v8685_v55 = vperm.slane %v8679_v21, %v9733_v38  ;;  %v8702_v15 = vrot.slane %v8697_v8, 4  ;;  %v9427_v38 = vld [vmem:[%s13105_s3 + $0x16] ss:$0 sm:$0xff] }
0x2b57   :  { %v8707_v36 = vsel %vm88_vm1, %v8706_v14, %v8689_v23  ;;  %v4491_v5 = vadd.f32 %v9427_v38, %v11542_v59  ;;  %8765 = vmatpush.msra.mxu1 %v9402_v31  ;;  %v9246_v14 = vld [vmem:[%s13103_s1 + $0x88] sm:$0xff]  ;;  %v9258_v38 = vld [vmem:[%s13106_s2 + $0x78] sm:$0xff] }
0x2b58   :  { %v8709_v18 = vsel %vm88_vm1, %v8701_v48, %v8708_v40  ;;  %v8704_v44 = vrot.slane %v8685_v55, 4  ;;  %v8703_v27 = vsel %vm88_vm1, %v8702_v15, %v8685_v55  ;;  %8975 = vmatpush.msra.mxu3 %v9258_v38 }
0x2b59   :  { %8719 = vrot.lane.b32.xlu2 %v8709_v18, %s9633_s20  ;;  %v4493_v2 = vadd.f32 %v4491_v5, %v11438_v17  ;;  %v9257_v5 = vld [vmem:[%s13106_s2 + $0x70] sm:$0xff] }
0x2b5a   :  { %v8705_v62 = vsel %vm88_vm1, %v8697_v8, %v8704_v44  ;;  %v9448_v8 = vld [vmem:[%s13105_s3 + $0x1c] ss:$0 sm:$0xff]  ;;  %8976 = vmatpush.msra.mxu3 %v9257_v5 }
0x2b5b   :  { %8711 = vrot.lane.b32.xlu0 %v8705_v62, %s9634_s21  ;;  %v4496_v60 = vsel %vm29_vm0, %v4493_v2, 0.0  ;;  %v9247_v62 = vld [vmem:[%s13103_s1 + $0xa0] sm:$0xff] }
0x2b63   :  { %8715 = vrot.lane.b32.xlu0 %v8707_v36, %s9632_s19 }
0x2b82   :  { %4497 = vadd.xlane.f32.xlu2 %v4496_v60  ;;  %v9256_v60 = vld [vmem:[%s13106_s2 + $0x68] sm:$0xff] }
0x2b83   :  { %8977 = vmatpush.msra.mxu3 %v9256_v60 }
0x2b85   :  { %8978 = vmatpush.msra.mxu3 %v9255_v24 }
0x2b87   :  { %8979 = vmatpush.msra.mxu3 %v9254_v10 }
0x2b9a   :  { %8910 = vrot.lane.b32.xlu2 %v12893_v37, %s9632_s19 }
0x2ba2   :  { %8914 = vrot.lane.b32.xlu2 %v12884_v58, %s9631_s18 }
0x2bb3   :  { %v8720_v33 = vpop.permute.xlu2 %8719 }
0x2bcd   :  { %v8712_v17 = vpop.permute.xlu0 %8711 }
0x2bce   :  { %v8722_v59 = vsel %vm422_vm2, %v8703_v27, %v8712_v17  ;;  %v9248_v27 = vld [vmem:[%s13103_s1 + $0xb8] sm:$0xff] }
0x2bcf   :  { %8945 = vmatpush.msra.mxu2 %v9248_v27 }
0x2bd1   :  { %8946 = vmatpush.msra.mxu2 %v9247_v62 }
0x2bd3   :  { %8947 = vmatpush.msra.mxu2 %v9246_v14 }
0x2bd5   :  { %v8716_v50 = vpop.permute.xlu0 %8715 }
0x2bd6   :  { %v8723_v0 = vsel %vm786_vm3, %v8722_v59, %v8716_v50  ;;  %v9449_v50 = vld [vmem:[%s13105_s3 + $0x19] ss:$0 sm:$0xff] }
0x2bd7   :  { %v8724_v28 = vsel %vm788_vm4, %v8723_v0, %v8720_v33 }
0x2bd8   :  { %9242 = vmatmul.msk.f32.vlgmr.msra.gmra.mxu1 %vm29_vm0, %v8724_v28  ;;  %v9450_v28 = vld [vmem:[%s13105_s3 + $0x1a] ss:$0 sm:$0xff] }
0x2bf5   :  { %v4498_v37 = vpop.xlane.xlu2 %4497 }
0x2bf6   :  { %v4499_v26 = vmul.f32 %v4498_v37, %v9972_v22 }
0x2bf8   :  { %v4500_v58 = vsub.f32 %v4493_v2, %v4499_v26 }
0x2bfa   :  { %v4501_v20 = vmul.f32 %v4500_v58, %v4500_v58 }
0x2bfc   :  { %v4502_v7 = vsel %vm29_vm0, %v4501_v20, 0.0  ;;  %v9252_v20 = vld [vmem:[%s13106_s2 + $0x48] sm:$0xff] }
0x2bfd   :  { %4503 = vadd.xlane.f32.xlu2 %v4502_v7  ;;  %v8911_v12 = vpop.permute.xlu2 %8910  ;;  %v9251_v7 = vld [vmem:[%s13106_s2 + $0x40] sm:$0xff] }
0x2bfe   :  { %v12970_v3 = vsel %vm786_vm3, %v12887_v11, %v8911_v12  ;;  %v9451_v12 = vld [vmem:[%s13105_s3 + $0x15] ss:$0 sm:$0xff] }
0x2c05   :  { %v12979_v1 = vpop.permute.xlu2 %8914 }
0x2c15   :  { %6680 = vrot.lane.b32.xlu2 %v12016_v13, %s9628_s15 }
0x2c55   :  { %v8767_v53 = vpop.f32.mrf.mxu1 }
0x2c56   :  { %v8768_v54 = vadd.f32 %v9446_v52, %v8767_v53 }
0x2c58   :  { %v8770_v35 = vadd.f32 %v8768_v54, %v12511_v25 }
0x2c5a   :  { %v8773_v29 = vsel %vm29_vm0, %v8770_v35, 0.0 }
0x2c5b   :  { %8774 = vadd.xlane.f32.xlu0 %v8773_v29 }
0x2c6f   :  { %4419 = vrot.lane.b32.xlu0 %v11199_v51, %s9631_s18  ;;  %v9447_v51 = vld [vmem:[%s13105_s3 + $0x1b] ss:$0 sm:$0xff] }
0x2c70   :  { %v4504_v11 = vpop.xlane.xlu2 %4503 }
0x2c71   :  { %v4505_v34 = vmul.f32 %v4504_v11, %v9972_v22 }
0x2c73   :  { %v4506_v13 = vadd.f32 1e-05, %v4505_v34 }
0x2c75   :  { %9603 = vrsqrt.f32 %v4506_v13  ;;  %vm4513_vm2 = vweird.f32 %v4506_v13 }
0x2c77   :  { %8918 = vrot.lane.b32.xlu0 %v12890_v45, %s9628_s15 }
0x2c78   :  { %v6681_v24 = vpop.permute.xlu2 %6680 }
0x2c7b   :  { %v9604_v49 = vpop.eup %9603 }
0x2c7c   :  { %v4508_v6 = vmul.f32 %v9604_v49, %v4506_v13  ;;  %vm4514_vm1 = vweird.f32 %v9604_v49 }
0x2c7d   :  { %vm4515_vm4 = vmor %vm4513_vm2, %vm4514_vm1 }
0x2c7e   :  { %v4509_v47 = vmul.f32 %v9604_v49, %v4508_v6 }
0x2c80   :  { %v4510_v25 = vmul.f32 0.5, %v4509_v47 }
0x2c82   :  { %v4511_v39 = vsub.f32 1.5, %v4510_v25 }
0x2c84   :  { %v4512_v42 = vmul.f32 %v9604_v49, %v4511_v39 }
0x2c86   :  { %v4516_v23 = vsel %vm4515_vm4, %v9604_v49, %v4512_v42 }
0x2c87   :  { %v4517_v21 = vmul.f32 %v4516_v23, %v4500_v58  ;;  %v9253_v58 = vld [vmem:[%s13106_s2 + $0x50] sm:$0xff] }
0x2c88   :  { %8980 = vmatpush.msra.mxu3 %v9253_v58 }
0x2c89   :  { %v4519_v45 = vmul.f32 %v9447_v51, %v4517_v21  ;;  %v8922_v21 = vsel %vm29_vm0, %v12970_v3, %v12979_v1 }
0x2c8a   :  { %8981 = vmatpush.msra.mxu3 %v9252_v20 }
0x2c8b   :  { %v4521_v48 = vadd.f32 %v9448_v8, %v4519_v45 }
0x2c8c   :  { %8982 = vmatpush.msra.mxu3 %v9251_v7 }
0x2c8d   :  { %4522 = vst.msk [vmem:[%s13107_s4] sm:$0xff] %vm29_vm0, %v4521_v48 }
0x2cce   :  { %v8775_v40 = vpop.xlane.xlu0 %8774 }
0x2ccf   :  { %v8776_v55 = vmul.f32 %v8775_v40, %v9972_v22 }
0x2cd1   :  { %v8777_v15 = vsub.f32 %v8770_v35, %v8776_v55  ;;  %v9452_v35 = vld [vmem:[%s13105_s3 + $0x16] ss:$0 sm:$0xff] }
0x2cd3   :  { %v8778_v18 = vmul.f32 %v8777_v15, %v8777_v15 }
0x2cd5   :  { %v8779_v44 = vsel %vm29_vm0, %v8778_v18, 0.0 }
0x2cd6   :  { %8780 = vadd.xlane.f32.xlu1 %v8779_v44 }
0x2ce1   :  { %v4420_v25 = vpop.permute.xlu0 %4419 }
0x2cef   :  { %4415 = vrot.lane.b32.xlu1 %v11205_v19, %s9632_s19  ;;  %v9245_v19 = vld [vmem:[%s13103_s1 + $0x70] sm:$0xff] }
0x2cf0   :  { %8948 = vmatpush.msra.mxu2 %v9245_v19 }
0x2cf7   :  { %4423 = vrot.lane.b32.xlu1 %v11202_v4, %s9628_s15 }
0x2d49   :  { %v8781_v4 = vpop.xlane.xlu1 %8780 }
0x2d4a   :  { %v8782_v36 = vmul.f32 %v8781_v4, %v9972_v22 }
0x2d4c   :  { %v8783_v2 = vadd.f32 1e-05, %v8782_v36 }
0x2d4e   :  { %9605 = vrsqrt.f32 %v8783_v2  ;;  %vm8790_vm7 = vweird.f32 %v8783_v2 }
0x2d54   :  { %v9606_v57 = vpop.eup %9605 }
0x2d55   :  { %v8785_v41 = vmul.f32 %v9606_v57, %v8783_v2  ;;  %vm8791_vm5 = vweird.f32 %v9606_v57  ;;  %v9453_v2 = vld [vmem:[%s13105_s3 + $0x1b] ss:$0 sm:$0xff] }
0x2d56   :  { %vm8792_vm8 = vmor %vm8790_vm7, %vm8791_vm5 }
0x2d57   :  { %v8786_v31 = vmul.f32 %v9606_v57, %v8785_v41 }
0x2d59   :  { %v8787_v16 = vmul.f32 0.5, %v8786_v31 }
0x2d5b   :  { %v8788_v17 = vsub.f32 1.5, %v8787_v16 }
0x2d5d   :  { %v8789_v59 = vmul.f32 %v9606_v57, %v8788_v17 }
0x2d5f   :  { %v8793_v33 = vsel %vm8792_vm8, %v9606_v57, %v8789_v59 }
0x2d60   :  { %v8794_v0 = vmul.f32 %v8793_v33, %v8777_v15 }
0x2d61   :  { %v4416_v49 = vpop.permute.xlu1 %4415 }
0x2d62   :  { %v8796_v37 = vmul.f32 %v9449_v50, %v8794_v0  ;;  %v4426_v6 = vsel %vm786_vm3, %v11208_v32, %v4416_v49 }
0x2d64   :  { %v8798_v26 = vadd.f32 %v9450_v28, %v8796_v37 }
0x2d66   :  { %9250 = vmatmul.msk.f32.vlgmr.msra.gmra.mxu2 %vm29_vm0, %v8798_v26 }
0x2d69   :  { %v4424_v47 = vpop.permute.xlu1 %4423 }
0x2de9   :  { %v8950_v52 = vpop.f32.mrf.mxu2 }
0x2dea   :  { %v8951_v53 = vadd.f32 %v9451_v12, %v8950_v52 }
0x2dec   :  { %v8953_v54 = vmax.f32 %v8951_v53, 0.0 }
0x2dee   :  { %9260 = vmatmul.msk.f32.vlgmr.msra.gmra.mxu3 %vm2228_vm6, %v8953_v54 }
0x2e71   :  { %v8984_v29 = vpop.f32.mrf.mxu3 }
0x2e72   :  { %v8985_v11 = vadd.f32 %v9452_v35, %v8984_v29 }
0x2e74   :  { %v8987_v34 = vadd.f32 %v8985_v11, %v8798_v26 }
0x2e76   :  { %v8990_v13 = vsel %vm29_vm0, %v8987_v34, 0.0 }
0x2e77   :  { %8991 = vadd.xlane.f32.xlu0 %v8990_v13 }
0x2e8b   :  { %2173 = vrot.lane.b32.xlu0 %v10358_v9, %s9632_s19  ;;  %v4427_v9 = vsel %vm29_vm0, %v4426_v6, %v4420_v25 }
0x2e93   :  { %6672 = vrot.lane.b32.xlu0 %v12022_v56, %s9632_s19  ;;  %v4428_v56 = vsel %vm2186_vm9, %v4427_v9, %v4424_v47 }
0x2e9b   :  { %2177 = vrot.lane.b32.xlu0 %v10349_v46, %s9631_s18  ;;  %v8919_v46 = vpop.permute.xlu0 %8918 }
0x2e9c   :  { %v8923_v45 = vsel %vm2186_vm9, %v8922_v21, %v8919_v46 }
0x2ea3   :  { %6676 = vrot.lane.b32.xlu0 %v12013_v30, %s9631_s18 }
0x2eab   :  { %2181 = vrot.lane.b32.xlu0 %v10352_v63, %s9628_s15 }
0x2eb3   :  { %4524 = vrot.lane.b32.xlu0 %v4428_v56, %s9624_s11 }
0x2eea   :  { %v8992_v39 = vpop.xlane.xlu0 %8991 }
0x2eeb   :  { %v8993_v30 = vmul.f32 %v8992_v39, %v9972_v22 }
0x2eed   :  { %v8994_v42 = vsub.f32 %v8987_v34, %v8993_v30 }
0x2eef   :  { %v8995_v51 = vmul.f32 %v8994_v42, %v8994_v42 }
0x2ef1   :  { %v8996_v63 = vsel %vm29_vm0, %v8995_v51, 0.0 }
0x2ef2   :  { %8997 = vadd.xlane.f32.xlu1 %v8996_v63 }
0x2efd   :  { %v2174_v23 = vpop.permute.xlu0 %2173 }
0x2efe   :  { %v2184_v18 = vsel %vm786_vm3, %v10355_v61, %v2174_v23 }
0x2f05   :  { %v6673_v32 = vpop.permute.xlu0 %6672 }
0x2f06   :  { %v6683_v8 = vsel %vm786_vm3, %v12019_v43, %v6673_v32 }
0x2f0b   :  { %9019 = vrot.lane.b32.xlu1 %v8923_v45, %s9624_s11 }
0x2f0d   :  { %v2178_v48 = vpop.permute.xlu0 %2177 }
0x2f0e   :  { %v2185_v44 = vsel %vm29_vm0, %v2184_v18, %v2178_v48 }
0x2f15   :  { %v6677_v40 = vpop.permute.xlu0 %6676 }
0x2f16   :  { %v6684_v55 = vsel %vm29_vm0, %v6683_v8, %v6677_v40 }
0x2f17   :  { %v6685_v41 = vsel %vm2186_vm9, %v6684_v55, %v6681_v24 }
0x2f1d   :  { %v2182_v15 = vpop.permute.xlu0 %2181 }
0x2f1e   :  { %v2187_v43 = vsel %vm2186_vm9, %v2185_v44, %v2182_v15 }
0x2f25   :  { %v4525_v27 = vpop.permute.xlu0 %4524 }
0x2f26   :  { %v4527_v62 = vsel %vm2228_vm6, %v2187_v43, %v4525_v27 }
0x2f27   :  { %4528 = vst [vmem:[%s13108_s5] sm:$0xff] %v4527_v62 }
0x2f65   :  { %v8998_v3 = vpop.xlane.xlu1 %8997 }
0x2f66   :  { %v8999_v1 = vmul.f32 %v8998_v3, %v9972_v22  ;;  %v9454_v22 = vld [vmem:[%s13105_s3 + $0x1c] ss:$0 sm:$0xff] }
0x2f68   :  { %v9000_v14 = vadd.f32 1e-05, %v8999_v1 }
0x2f6a   :  { %9607 = vrsqrt.f32 %v9000_v14  ;;  %vm9007_vm10 = vweird.f32 %v9000_v14 }
0x2f70   :  { %v9608_v19 = vpop.eup %9607 }
0x2f71   :  { %v9002_v4 = vmul.f32 %v9608_v19, %v9000_v14  ;;  %vm9008_vm3 = vweird.f32 %v9608_v19 }
0x2f72   :  { %vm9009_vm11 = vmor %vm9007_vm10, %vm9008_vm3 }
0x2f73   :  { %v9003_v36 = vmul.f32 %v9608_v19, %v9002_v4 }
0x2f75   :  { %v9004_v61 = vmul.f32 0.5, %v9003_v36 }
0x2f77   :  { %v9005_v38 = vsub.f32 1.5, %v9004_v61 }
0x2f79   :  { %v9006_v5 = vmul.f32 %v9608_v19, %v9005_v38 }
0x2f7b   :  { %v9010_v60 = vsel %vm9009_vm11, %v9608_v19, %v9006_v5 }
0x2f7c   :  { %v9011_v10 = vmul.f32 %v9010_v60, %v8994_v42 }
0x2f7d   :  { %v9020_v57 = vpop.permute.xlu1 %9019 }
0x2f7e   :  { %v9013_v31 = vmul.f32 %v9453_v2, %v9011_v10  ;;  %v9022_v16 = vsel %vm2228_vm6, %v6685_v41, %v9020_v57 }
0x2f7f   :  { %9264 = vst [vmem:[%s13108_s5 + $0x8] sm:$0xff] %v9022_v16 }
0x2f80   :  { %v9015_v17 = vadd.f32 %v9454_v22, %v9013_v31 }
0x2f82   :  { %9263 = vst.msk [vmem:[%s13107_s4 + $0x8] sm:$0xff] %vm29_vm0, %v9015_v17 }

</bundles_post_ra>
